<compile_context>
chip_gen: v7x
topology: tpu7x:2x2x1
jax: 0.10.0
libtpu: 0.0.40
codegen_flags: <defaults>
</compile_context>

<pallas_src>
import functools

import jax
import jax.numpy as jnp
from jax.experimental import pallas as pl
from jax.experimental.pallas import tpu as pltpu

EMB = 64                    # params.emb_dim == global_emb_size
REVIEW = 64                 # global_review_size
D1 = REVIEW * 5             # 320
D2 = REVIEW * 5 * 2         # 640
RATES = ["1", "2", "3", "4", "5"]
NRATE = len(RATES)
PRED_PAD = 128              # 5-wide predictor head padded to one lane group
EPS = 1e-8                  # torch.cosine_similarity eps (product clamp per docs)


# ----------------------------------------------------------------------------
# Kernel 1: fused GCN encoders (interaction / com / dis / review) for all 5
#           rating graphs + fused per-rating KD-loss partial sums.  grid=(5,)
# ----------------------------------------------------------------------------

def _gcn_kernel(gsrc_ref, sdst_ref, ci_ref, umask_ref, rf_ref, wrev_ref, xcat_ref,
                o_cd_ref, o_int_ref, o_rv_ref, loss_ref):
    bf16 = jnp.bfloat16
    f32 = jnp.float32

    gsrc = gsrc_ref[...]                                   # [E, N] bf16 one-hot (src)
    ci = ci_ref[...]                                       # [N, 1] f32

    # node features scaled by their own ci: [weight_com | weight_dis | weight]
    x_ci = (xcat_ref[...].astype(f32) * ci).astype(bf16)                       # [N,192]
    xg = jnp.dot(gsrc, x_ci, preferred_element_type=f32)                       # [E,192]

    # per-edge src ci via a tiny extra gather matmul (replaces the old [E,N]
    # f32 one-hot temp + XLU lane reduce)
    ci_e = jnp.dot(gsrc, ci.astype(bf16), preferred_element_type=f32)          # [E,1]

    # review projections [W_int | W_rev | 0] (zero-padded to 192 host-side),
    # scaled by src ci
    rw = jnp.dot(rf_ref[...], wrev_ref[...], preferred_element_type=f32) * ci_e  # [E,192]

    # single fused scatter: edge message [com|dis|int_node|int_rev|rev|pad64]
    m = jnp.concatenate([xg, rw], axis=1).astype(bf16)                         # [E,384]
    h = jnp.dot(sdst_ref[...], m, preferred_element_type=f32) * ci             # [N,384]

    # lane-aligned bf16 writebacks: one 128-wide column block per rating graph
    o_cd_ref[...] = h[:, 0:128].astype(bf16)      # [com_r | dis_r]
    o_int_ref[...] = h[:, 128:256].astype(bf16)   # [int_node_r | int_rev_r] (torch order)
    o_rv_ref[...] = h[:, 256:384].astype(bf16)    # [rev_r | 0]

    # fused KD-loss partials: per-column cosine over user rows / item rows,
    # computed from the f32 accumulator before the bf16 cast.
    um = umask_ref[...]                                    # [N, 1]  1. for user rows
    com = h[:, 0:64]
    dis = h[:, 64:128]
    rev = h[:, 256:320]

    def cos_sum(a, b, mask):
        d = jnp.sum(mask * a * b, axis=0, keepdims=True)                       # [1,64]
        na = jnp.sqrt(jnp.sum(mask * a * a, axis=0, keepdims=True))
        nb = jnp.sqrt(jnp.sum(mask * b * b, axis=0, keepdims=True))
        cos = d / jnp.maximum(na * nb, EPS)
        return jnp.sum(cos, axis=1, keepdims=True)                             # [1,1]

    stats = jnp.concatenate(
        [cos_sum(com, rev, um), cos_sum(com, rev, 1.0 - um),
         cos_sum(dis, rev, um), cos_sum(dis, rev, 1.0 - um),
         jnp.zeros((4, 1), f32)], axis=0)                                      # [8,1]
    loss_ref[...] = jnp.broadcast_to(stats, (8, 128))


def gcn_all(gsrc, sdst, ci, umask, review_feat, w_rev_cat, x_cat):
    R, E, N = gsrc.shape
    per_rate = lambda r: (r, 0, 0)
    col_block = lambda r: (0, r)
    in_specs = [
        pl.BlockSpec((None, E, N), per_rate),              # gsrc
        pl.BlockSpec((None, N, E), per_rate),              # sdst
        pl.BlockSpec((None, N, 1), per_rate),              # ci
        pl.BlockSpec((N, 1), lambda r: (0, 0)),            # user-row mask (shared)
        pl.BlockSpec((None, E, REVIEW), per_rate),         # review_feat
        pl.BlockSpec((None, REVIEW, 3 * EMB), per_rate),   # [W_int | W_rev | 0]
        pl.BlockSpec((None, N, 3 * EMB), per_rate),        # [w_com | w_dis | w_int]
    ]
    out_specs = [
        pl.BlockSpec((N, 2 * EMB), col_block),             # o_cd  [com | dis]
        pl.BlockSpec((N, 2 * EMB), col_block),             # o_int [node | review]
        pl.BlockSpec((N, 2 * EMB), col_block),             # o_rv  [rev | 0]
        pl.BlockSpec((None, 8, 128), per_rate),            # per-rating loss partials
    ]
    out_shape = [
        jax.ShapeDtypeStruct((N, R * 2 * EMB), jnp.bfloat16),
        jax.ShapeDtypeStruct((N, R * 2 * EMB), jnp.bfloat16),
        jax.ShapeDtypeStruct((N, R * 2 * EMB), jnp.bfloat16),
        jax.ShapeDtypeStruct((R, 8, 128), jnp.float32),
    ]
    return pl.pallas_call(
        _gcn_kernel,
        grid=(R,),
        in_specs=in_specs,
        out_specs=out_specs,
        out_shape=out_shape,
        compiler_params=pltpu.CompilerParams(
            dimension_semantics=("parallel",),
            # safe on all generations at demo shapes; raise toward 96-100 MiB on
            # v5e/v6e (and keep <48 MiB on v7x) once real graph tiling lands.
            vmem_limit_bytes=32 * 1024 * 1024),
    )(gsrc, sdst, ci, umask, review_feat, w_rev_cat, x_cat)


# ----------------------------------------------------------------------------
# Kernel 2: ALL FOUR branches fused: fc_user + fc_item + users/items gather
#           (one-hot select matmuls) + 2-layer predictor.
# ----------------------------------------------------------------------------

def _branch_kernel(oint_ref, ocd_ref, orv_ref, selu_ref, seli_ref,
                   wui_ref, bui_ref, wii_ref, bii_ref, w1i_ref, w2i_ref,
                   wu3_ref, bu3_ref, wi3_ref, bi3_ref, w13_ref, w23_ref,
                   p_int_ref, p_com_ref, p_dis_ref, p_rev_ref, *, num_user):
    bf16 = jnp.bfloat16
    f32 = jnp.float32
    selu = selu_ref[...]                                   # [B, N] bf16 one-hot
    seli = seli_ref[...]
    oint = oint_ref[...]                                   # [N, 640] bf16
    ocd = ocd_ref[...]
    orv = orv_ref[...]

    def run(feat, wu, bu, wi, bi, w1, w2, out_ref):
        # num_user is kept a multiple of 8, so these are free sublane slices.
        u = jnp.dot(feat[:num_user], wu, preferred_element_type=f32) + bu
        i = jnp.dot(feat[num_user:], wi, preferred_element_type=f32) + bi
        feat_id = jnp.concatenate([u, i], axis=0).astype(bf16)                 # [N, D]
        ue = jnp.dot(selu, feat_id, preferred_element_type=f32)                # [B, D]
        ie = jnp.dot(seli, feat_id, preferred_element_type=f32)
        x = (ue * ie).astype(bf16)
        hidden = jnp.maximum(jnp.dot(x, w1, preferred_element_type=f32), 0.0)
        out_ref[...] = jnp.dot(hidden.astype(bf16), w2, preferred_element_type=f32)

    # interaction branch (640-wide features, full-depth fc matmul)
    run(oint, wui_ref[...], bui_ref[...], wii_ref[...], bii_ref[...],
        w1i_ref[...], w2i_ref[...], p_int_ref)

    # com / dis / rev branches with stacked weights (zero rows map the 320
    # torch columns onto the 640-wide [com|dis] / [rev|0] kernel slabs)
    feats = (ocd, ocd, orv)
    outs = (p_com_ref, p_dis_ref, p_rev_ref)
    for b in range(3):
        run(feats[b], wu3_ref[b], bu3_ref[b], wi3_ref[b], bi3_ref[b],
            w13_ref[b], w23_ref[b], outs[b])


def branch_all(o_int, o_cd, o_rv, sel_u, sel_i, prep, num_user):
    batch = sel_u.shape[0]
    kern = functools.partial(_branch_kernel, num_user=num_user)
    vmem = pl.BlockSpec(memory_space=pltpu.MemorySpace.VMEM)
    outs = pl.pallas_call(
        kern,
        out_shape=tuple(jax.ShapeDtypeStruct((batch, PRED_PAD), jnp.float32)
                        for _ in range(4)),
        in_specs=[vmem] * 17,
        out_specs=tuple(pl.BlockSpec(memory_space=pltpu.MemorySpace.VMEM)
                        for _ in range(4)),
    )(o_int, o_cd, o_rv, sel_u, sel_i,
      prep["wu_int"], prep["bu_int"], prep["wi_int"], prep["bi_int"],
      prep["w1_int"], prep["w2_int"],
      prep["wu3"], prep["bu3"], prep["wi3"], prep["bi3"],
      prep["w13"], prep["w23"])
    return outs


# ----------------------------------------------------------------------------
# Forward pass (2 pallas_calls total)
# ----------------------------------------------------------------------------

def net_forward(prep, g, sel_u, sel_i, num_user):
    N = g["ci"].shape[1]
    umask = (jnp.arange(N) < num_user).astype(jnp.float32).reshape(N, 1)

    o_cd, o_int, o_rv, loss_part = gcn_all(
        g["gsrc"], g["sdst"], g["ci"], umask, g["review_feat"],
        prep["w_rev_cat"], prep["x_cat"])

    p_int, p_com, p_dis, p_rev = branch_all(
        o_int, o_cd, o_rv, sel_u, sel_i, prep, num_user)

    # tiny (5x4) final reduction kept in the wrapper so the rating grid axis
    # stays "parallel" inside the GCN kernel.
    s = jnp.sum(loss_part[:, :4, 0], axis=0) / float(NRATE * EMB)
    loss_kd_feat_com = -0.5 * s[0] - 0.5 * s[1]
    loss_kd_feat_dis = 0.5 * s[2] + 0.5 * s[3]

    return (p_int[:, :5], p_rev[:, :5], p_com[:, :5], p_dis[:, :5],
            loss_kd_feat_com, loss_kd_feat_dis)


# ----------------------------------------------------------------------------
# Parameter construction (PyTorch-equivalent init) and kernel-layout repack
# ----------------------------------------------------------------------------

def xavier_uniform(key, shape):
    fan_out, fan_in = shape[0], shape[1]
    a = (6.0 / (fan_in + fan_out)) ** 0.5
    return jax.random.uniform(key, shape, jnp.float32, -a, a)


def make_linear(key, din, dout):
    """Return (W^T [din, dout], b [1, dout]) matching nn.Linear(din, dout)."""
    k1, k2 = jax.random.split(key)
    w = xavier_uniform(k1, (dout, din))                    # PyTorch layout [out, in]
    bound = 1.0 / (din ** 0.5)
    b = jax.random.uniform(k2, (1, dout), jnp.float32, -bound, bound)
    return (w.T, b)


def _pad_fc_rows(wt, half):
    """Map a [320, Dout] fc weight (torch column order r*64+k) onto the 640-wide
    kernel feature slab (rating r occupies half `half` of column block r*128)."""
    dout = wt.shape[1]
    w5 = wt.reshape(NRATE, EMB, dout)
    z = jnp.zeros_like(w5)
    parts = (w5, z) if half == 0 else (z, w5)
    return jnp.concatenate(parts, axis=1).reshape(NRATE * 2 * EMB, dout)


def prepare_params(p):
    """One-time repack of PyTorch-layout params into kernel-ready tensors."""
    bf16 = jnp.bfloat16
    # gather RHS per rating: [weight_com | weight_dis | weight]   -> [5, N, 192]
    x_cat = jnp.stack([jnp.concatenate(
        [p["weight_com"][r], p["weight_dis"][r], p["weight"][r]], axis=1)
        for r in RATES], axis=0).astype(bf16)
    # review projections per rating: [W_int | W_rev | 0]          -> [5, 64, 192]
    zero_pad = jnp.zeros((REVIEW, EMB), jnp.float32)
    w_rev_cat = jnp.stack([jnp.concatenate(
        [p["enc_int_review_w"][r], p["enc_rev_review_w"][r], zero_pad], axis=1)
        for r in RATES], axis=0).astype(bf16)

    def pred(w1_name, w2_name):
        w1t = p[w1_name].astype(bf16)                      # [Din, 320]
        w2t = p[w2_name]                                   # [320, 5]
        w2p = jnp.pad(w2t, ((0, 0), (0, PRED_PAD - w2t.shape[1]))).astype(bf16)
        return w1t, w2p

    w1i, w2i = pred("pred_int_w1", "pred_int_w2")
    w1c, w2c = pred("pred_com_w1", "pred_com_w2")
    w1d, w2d = pred("pred_dis_w1", "pred_dis_w2")
    w1r, w2r = pred("pred_rev_w1", "pred_rev_w2")

    # fc weights for the three 320-wide branches mapped onto the 640-wide slabs
    halves = (("com", 0), ("dis", 1), ("rev", 0))
    wu3, bu3, wi3, bi3 = [], [], [], []
    for name, half in halves:
        wtu, bu = p["fc_user_" + name]
        wti, bi = p["fc_item_" + name]
        wu3.append(_pad_fc_rows(wtu, half))
        wi3.append(_pad_fc_rows(wti, half))
        bu3.append(bu)
        bi3.append(bi)

    return {
        "x_cat": x_cat,
        "w_rev_cat": w_rev_cat,
        "wu_int": p["fc_user"][0].astype(bf16),            # [640, 640]
        "bu_int": p["fc_user"][1],                         # [1, 640] f32
        "wi_int": p["fc_item"][0].astype(bf16),
        "bi_int": p["fc_item"][1],
        "w1_int": w1i, "w2_int": w2i,
        "wu3": jnp.stack(wu3).astype(bf16),                # [3, 640, 320]
        "bu3": jnp.stack(bu3),                             # [3, 1, 320] f32
        "wi3": jnp.stack(wi3).astype(bf16),
        "bi3": jnp.stack(bi3),
        "w13": jnp.stack([w1c, w1d, w1r]),                 # [3, 320, 320] bf16
        "w23": jnp.stack([w2c, w2d, w2r]),                 # [3, 320, 128] bf16
    }


if __name__ == "__main__":
    NUM_USERS, NUM_ITEMS = 16, 16      # num_user kept a multiple of 8 (free slices)
    N = NUM_USERS + NUM_ITEMS
    E = 40                             # edges per rating graph
    BATCH = 8

    key = jax.random.PRNGKey(0)
    keys = iter(jax.random.split(key, 256))
    nk = lambda: next(keys)

    params = {
        "weight":     {r: xavier_uniform(nk(), (N, EMB)) for r in RATES},
        "weight_com": {r: xavier_uniform(nk(), (N, EMB)) for r in RATES},
        "weight_dis": {r: xavier_uniform(nk(), (N, EMB)) for r in RATES},
        # per-rating review_w (bias-free Linear 64->64), stored pre-transposed [in,out]
        "enc_int_review_w": {r: xavier_uniform(nk(), (REVIEW, REVIEW)).T for r in RATES},
        "enc_rev_review_w": {r: xavier_uniform(nk(), (REVIEW, REVIEW)).T for r in RATES},
        "fc_user": make_linear(nk(), D2, D2),
        "fc_item": make_linear(nk(), D2, D2),
        "fc_user_com": make_linear(nk(), D1, D1),          # fc_user_com_1
        "fc_item_com": make_linear(nk(), D1, D1),          # fc_item_com_1
        "fc_user_dis": make_linear(nk(), D1, D1),          # fc_user_dis_1
        "fc_item_dis": make_linear(nk(), D1, D1),          # fc_item_dis_1
        "fc_user_rev": make_linear(nk(), D1, D1),          # fc_user_review
        "fc_item_rev": make_linear(nk(), D1, D1),          # fc_item_review
        "pred_int_w1": xavier_uniform(nk(), (D1, D2)).T,   # [640, 320]
        "pred_int_w2": xavier_uniform(nk(), (5, D1)).T,    # [320, 5]
        "pred_com_w1": xavier_uniform(nk(), (D1, D1)).T,
        "pred_com_w2": xavier_uniform(nk(), (5, D1)).T,
        "pred_dis_w1": xavier_uniform(nk(), (D1, D1)).T,
        "pred_dis_w2": xavier_uniform(nk(), (5, D1)).T,
        "pred_rev_w1": xavier_uniform(nk(), (D1, D1)).T,
        "pred_rev_w2": xavier_uniform(nk(), (5, D1)).T,
    }

    # five rating graphs expressed densely (one-hot gather/scatter), stacked over r
    gsrc_l, sdst_l, ci_l, rf_l = [], [], [], []
    for r in RATES:
        k1, k2, k3, k4 = jax.random.split(nk(), 4)
        src = jax.random.randint(k1, (E,), 0, N)
        dst = jax.random.randint(k2, (E,), 0, N)
        gsrc_l.append(jax.nn.one_hot(src, N, dtype=jnp.float32))          # [E, N]
        sdst_l.append(jax.nn.one_hot(dst, N, dtype=jnp.float32).T)        # [N, E]
        ci_l.append(jax.random.uniform(k3, (N, 1), jnp.float32, 0.3, 1.0))
        rf_l.append(jax.random.normal(k4, (E, REVIEW), jnp.float32))
    graphs = {
        "gsrc": jnp.stack(gsrc_l).astype(jnp.bfloat16),                   # [5, E, N]
        "sdst": jnp.stack(sdst_l).astype(jnp.bfloat16),                   # [5, N, E]
        "ci": jnp.stack(ci_l),                                            # [5, N, 1]
        "review_feat": jnp.stack(rf_l).astype(jnp.bfloat16),              # [5, E, 64]
    }

    users = jax.random.randint(nk(), (BATCH,), 0, NUM_USERS)
    items = jax.random.randint(nk(), (BATCH,), NUM_USERS, N)
    sel_u = jax.nn.one_hot(users, N, dtype=jnp.bfloat16)                  # [B, N]
    sel_i = jax.nn.one_hot(items, N, dtype=jnp.bfloat16)

    prep = prepare_params(params)

    fwd = jax.jit(net_forward, static_argnums=(4,))
    outs = fwd(prep, graphs, sel_u, sel_i, NUM_USERS)
    outs = jax.block_until_ready(outs)

    assert outs[0].shape == (BATCH, 5)      # pred_ratings
    assert outs[1].shape == (BATCH, 5)      # pred_ratings_review
    assert outs[2].shape == (BATCH, 5)      # pred_ratings_com
    assert outs[3].shape == (BATCH, 5)      # pred_ratings_dis
    assert outs[4].shape == () and outs[5].shape == ()
    print("KERNEL_OK")
</pallas_src>

<mosaic_0001>
module attributes {stable_mosaic.version = 11 : i64} {
  func.func @_gcn_kernel(%arg0: i32, %arg1: memref<1x40x32xbf16, #tpu.memory_space<vmem>>, %arg2: memref<1x32x40xbf16, #tpu.memory_space<vmem>>, %arg3: memref<1x32x1xf32, #tpu.memory_space<vmem>>, %arg4: memref<32x1xf32, #tpu.memory_space<vmem>>, %arg5: memref<1x40x64xbf16, #tpu.memory_space<vmem>>, %arg6: memref<1x64x192xbf16, #tpu.memory_space<vmem>>, %arg7: memref<1x32x192xbf16, #tpu.memory_space<vmem>>, %arg8: memref<32x128xbf16, #tpu.memory_space<vmem>>, %arg9: memref<32x128xbf16, #tpu.memory_space<vmem>>, %arg10: memref<32x128xbf16, #tpu.memory_space<vmem>>, %arg11: memref<1x8x128xf32, #tpu.memory_space<vmem>>) attributes {dimension_semantics = [#tpu.dimension_semantics<parallel>], iteration_bounds = array<i64: 5>, scalar_prefetch = 0 : i64, scratch_operands = 0 : i64, tpu.core_type = #tpu.core_type<tc>, window_params = [{transform_indices = @transform_0, window_bounds = array<i64: 1, 40, 32>}, {transform_indices = @transform_1, window_bounds = array<i64: 1, 32, 40>}, {transform_indices = @transform_2, window_bounds = array<i64: 1, 32, 1>}, {pipeline_mode = #tpu.pipeline_mode<synchronous>, transform_indices = @transform_3, window_bounds = array<i64: 32, 1>}, {transform_indices = @transform_4, window_bounds = array<i64: 1, 40, 64>}, {transform_indices = @transform_5, window_bounds = array<i64: 1, 64, 192>}, {transform_indices = @transform_6, window_bounds = array<i64: 1, 32, 192>}, {transform_indices = @transform_7, window_bounds = array<i64: 32, 128>}, {transform_indices = @transform_8, window_bounds = array<i64: 32, 128>}, {transform_indices = @transform_9, window_bounds = array<i64: 32, 128>}, {transform_indices = @transform_10, window_bounds = array<i64: 1, 8, 128>}]} {
    %c0 = arith.constant 0 : index
    %c0_0 = arith.constant 0 : index
    %c0_1 = arith.constant 0 : index
    %0 = vector.load %arg1[%c0, %c0_0, %c0_1] : memref<1x40x32xbf16, #tpu.memory_space<vmem>>, vector<1x40x32xbf16>
    %1 = vector.shape_cast %0 : vector<1x40x32xbf16> to vector<40x32xbf16>
    %c0_2 = arith.constant 0 : index
    %c0_3 = arith.constant 0 : index
    %c0_4 = arith.constant 0 : index
    %2 = vector.load %arg3[%c0_2, %c0_3, %c0_4] : memref<1x32x1xf32, #tpu.memory_space<vmem>>, vector<1x32x1xf32>
    %3 = vector.shape_cast %2 : vector<1x32x1xf32> to vector<32x1xf32>
    %c0_5 = arith.constant 0 : index
    %c0_6 = arith.constant 0 : index
    %c0_7 = arith.constant 0 : index
    %4 = vector.load %arg7[%c0_5, %c0_6, %c0_7] : memref<1x32x192xbf16, #tpu.memory_space<vmem>>, vector<1x32x192xbf16>
    %5 = vector.shape_cast %4 : vector<1x32x192xbf16> to vector<32x192xbf16>
    %6 = arith.extf %5 : vector<32x192xbf16> to vector<32x192xf32>
    %7 = vector.broadcast %3 : vector<32x1xf32> to vector<32x192xf32>
    %8 = arith.mulf %6, %7 : vector<32x192xf32>
    %9 = arith.truncf %8 : vector<32x192xf32> to vector<32x192xbf16>
    %cst = arith.constant dense<0.000000e+00> : vector<40x192xf32>
    %10 = tpu.matmul %1, %9, %cst {dimension_numbers = #tpu.dot_dimension_numbers<[1], [0], [0], [1], [0, 0, 1, 1], [], []>} : vector<40x32xbf16>, vector<32x192xbf16>, vector<40x192xf32> -> vector<40x192xf32>
    %11 = arith.truncf %3 : vector<32x1xf32> to vector<32x1xbf16>
    %cst_8 = arith.constant dense<0.000000e+00> : vector<40x1xf32>
    %12 = tpu.matmul %1, %11, %cst_8 {dimension_numbers = #tpu.dot_dimension_numbers<[1], [0], [0], [1], [0, 0, 1, 1], [], []>} : vector<40x32xbf16>, vector<32x1xbf16>, vector<40x1xf32> -> vector<40x1xf32>
    %c0_9 = arith.constant 0 : index
    %c0_10 = arith.constant 0 : index
    %c0_11 = arith.constant 0 : index
    %13 = vector.load %arg5[%c0_9, %c0_10, %c0_11] : memref<1x40x64xbf16, #tpu.memory_space<vmem>>, vector<1x40x64xbf16>
    %14 = vector.shape_cast %13 : vector<1x40x64xbf16> to vector<40x64xbf16>
    %c0_12 = arith.constant 0 : index
    %c0_13 = arith.constant 0 : index
    %c0_14 = arith.constant 0 : index
    %15 = vector.load %arg6[%c0_12, %c0_13, %c0_14] : memref<1x64x192xbf16, #tpu.memory_space<vmem>>, vector<1x64x192xbf16>
    %16 = vector.shape_cast %15 : vector<1x64x192xbf16> to vector<64x192xbf16>
    %cst_15 = arith.constant dense<0.000000e+00> : vector<40x192xf32>
    %17 = tpu.matmul %14, %16, %cst_15 {dimension_numbers = #tpu.dot_dimension_numbers<[1], [0], [0], [1], [0, 0, 1, 1], [], []>} : vector<40x64xbf16>, vector<64x192xbf16>, vector<40x192xf32> -> vector<40x192xf32>
    %18 = vector.broadcast %12 : vector<40x1xf32> to vector<40x192xf32>
    %19 = arith.mulf %17, %18 : vector<40x192xf32>
    %20 = tpu.concatenate %10, %19 in 1 : vector<40x192xf32>, vector<40x192xf32> -> vector<40x384xf32>
    %21 = arith.truncf %20 : vector<40x384xf32> to vector<40x384xbf16>
    %c0_16 = arith.constant 0 : index
    %c0_17 = arith.constant 0 : index
    %c0_18 = arith.constant 0 : index
    %22 = vector.load %arg2[%c0_16, %c0_17, %c0_18] : memref<1x32x40xbf16, #tpu.memory_space<vmem>>, vector<1x32x40xbf16>
    %23 = vector.shape_cast %22 : vector<1x32x40xbf16> to vector<32x40xbf16>
    %cst_19 = arith.constant dense<0.000000e+00> : vector<32x384xf32>
    %24 = tpu.matmul %23, %21, %cst_19 {dimension_numbers = #tpu.dot_dimension_numbers<[1], [0], [0], [1], [0, 0, 1, 1], [], []>} : vector<32x40xbf16>, vector<40x384xbf16>, vector<32x384xf32> -> vector<32x384xf32>
    %25 = vector.broadcast %3 : vector<32x1xf32> to vector<32x384xf32>
    %26 = arith.mulf %24, %25 : vector<32x384xf32>
    %27 = vector.extract_strided_slice %26 {offsets = [0, 0], sizes = [32, 128], strides = [1, 1]} : vector<32x384xf32> to vector<32x128xf32>
    %28 = arith.truncf %27 : vector<32x128xf32> to vector<32x128xbf16>
    %c0_20 = arith.constant 0 : index
    %c0_21 = arith.constant 0 : index
    %29 = vector.load %arg8[%c0_20, %c0_21] : memref<32x128xbf16, #tpu.memory_space<vmem>>, vector<32x128xbf16>
    tpu.vector_store %arg8[%c0_20, %c0_21], %28 {strides = array<i32>} : memref<32x128xbf16, #tpu.memory_space<vmem>>, vector<32x128xbf16>,
    %30 = vector.extract_strided_slice %26 {offsets = [0, 128], sizes = [32, 128], strides = [1, 1]} : vector<32x384xf32> to vector<32x128xf32>
    %31 = arith.truncf %30 : vector<32x128xf32> to vector<32x128xbf16>
    %c0_22 = arith.constant 0 : index
    %c0_23 = arith.constant 0 : index
    %32 = vector.load %arg9[%c0_22, %c0_23] : memref<32x128xbf16, #tpu.memory_space<vmem>>, vector<32x128xbf16>
    tpu.vector_store %arg9[%c0_22, %c0_23], %31 {strides = array<i32>} : memref<32x128xbf16, #tpu.memory_space<vmem>>, vector<32x128xbf16>,
    %33 = vector.extract_strided_slice %26 {offsets = [0, 256], sizes = [32, 128], strides = [1, 1]} : vector<32x384xf32> to vector<32x128xf32>
    %34 = arith.truncf %33 : vector<32x128xf32> to vector<32x128xbf16>
    %c0_24 = arith.constant 0 : index
    %c0_25 = arith.constant 0 : index
    %35 = vector.load %arg10[%c0_24, %c0_25] : memref<32x128xbf16, #tpu.memory_space<vmem>>, vector<32x128xbf16>
    tpu.vector_store %arg10[%c0_24, %c0_25], %34 {strides = array<i32>} : memref<32x128xbf16, #tpu.memory_space<vmem>>, vector<32x128xbf16>,
    %c0_26 = arith.constant 0 : index
    %c0_27 = arith.constant 0 : index
    %36 = vector.load %arg4[%c0_26, %c0_27] : memref<32x1xf32, #tpu.memory_space<vmem>>, vector<32x1xf32>
    %37 = vector.extract_strided_slice %26 {offsets = [0, 0], sizes = [32, 64], strides = [1, 1]} : vector<32x384xf32> to vector<32x64xf32>
    %38 = vector.extract_strided_slice %26 {offsets = [0, 64], sizes = [32, 64], strides = [1, 1]} : vector<32x384xf32> to vector<32x64xf32>
    %39 = vector.extract_strided_slice %26 {offsets = [0, 256], sizes = [32, 64], strides = [1, 1]} : vector<32x384xf32> to vector<32x64xf32>
    %40 = vector.broadcast %36 : vector<32x1xf32> to vector<32x64xf32>
    %41 = arith.mulf %40, %37 : vector<32x64xf32>
    %42 = arith.mulf %41, %39 : vector<32x64xf32>
    %cst_28 = arith.constant dense<0.000000e+00> : vector<64xf32>
    %43 = vector.multi_reduction <add>, %42, %cst_28 [0] : vector<32x64xf32> to vector<64xf32>
    %44 = vector.shape_cast %43 : vector<64xf32> to vector<1x64xf32>
    %45 = vector.broadcast %36 : vector<32x1xf32> to vector<32x64xf32>
    %46 = arith.mulf %45, %37 : vector<32x64xf32>
    %47 = arith.mulf %46, %37 : vector<32x64xf32>
    %cst_29 = arith.constant dense<0.000000e+00> : vector<64xf32>
    %48 = vector.multi_reduction <add>, %47, %cst_29 [0] : vector<32x64xf32> to vector<64xf32>
    %49 = vector.shape_cast %48 : vector<64xf32> to vector<1x64xf32>
    %50 = math.sqrt %49 : vector<1x64xf32>
    %51 = vector.broadcast %36 : vector<32x1xf32> to vector<32x64xf32>
    %52 = arith.mulf %51, %39 : vector<32x64xf32>
    %53 = arith.mulf %52, %39 : vector<32x64xf32>
    %cst_30 = arith.constant dense<0.000000e+00> : vector<64xf32>
    %54 = vector.multi_reduction <add>, %53, %cst_30 [0] : vector<32x64xf32> to vector<64xf32>
    %55 = vector.shape_cast %54 : vector<64xf32> to vector<1x64xf32>
    %56 = math.sqrt %55 : vector<1x64xf32>
    %57 = arith.mulf %50, %56 : vector<1x64xf32>
    %cst_31 = arith.constant 9.99999993E-9 : f32
    %58 = vector.broadcast %cst_31 : f32 to vector<1x64xf32>
    %59 = arith.maximumf %57, %58 : vector<1x64xf32>
    %60 = arith.divf %44, %59 : vector<1x64xf32>
    %cst_32 = arith.constant dense<0.000000e+00> : vector<1xf32>
    %61 = vector.multi_reduction <add>, %60, %cst_32 [1] : vector<1x64xf32> to vector<1xf32>
    %62 = vector.shape_cast %61 : vector<1xf32> to vector<1x1xf32>
    %cst_33 = arith.constant 1.000000e+00 : f32
    %63 = vector.broadcast %cst_33 : f32 to vector<32x1xf32>
    %64 = arith.subf %63, %36 : vector<32x1xf32>
    %65 = vector.broadcast %64 : vector<32x1xf32> to vector<32x64xf32>
    %66 = arith.mulf %65, %37 : vector<32x64xf32>
    %67 = arith.mulf %66, %39 : vector<32x64xf32>
    %cst_34 = arith.constant dense<0.000000e+00> : vector<64xf32>
    %68 = vector.multi_reduction <add>, %67, %cst_34 [0] : vector<32x64xf32> to vector<64xf32>
    %69 = vector.shape_cast %68 : vector<64xf32> to vector<1x64xf32>
    %70 = vector.broadcast %64 : vector<32x1xf32> to vector<32x64xf32>
    %71 = arith.mulf %70, %37 : vector<32x64xf32>
    %72 = arith.mulf %71, %37 : vector<32x64xf32>
    %cst_35 = arith.constant dense<0.000000e+00> : vector<64xf32>
    %73 = vector.multi_reduction <add>, %72, %cst_35 [0] : vector<32x64xf32> to vector<64xf32>
    %74 = vector.shape_cast %73 : vector<64xf32> to vector<1x64xf32>
    %75 = math.sqrt %74 : vector<1x64xf32>
    %76 = vector.broadcast %64 : vector<32x1xf32> to vector<32x64xf32>
    %77 = arith.mulf %76, %39 : vector<32x64xf32>
    %78 = arith.mulf %77, %39 : vector<32x64xf32>
    %cst_36 = arith.constant dense<0.000000e+00> : vector<64xf32>
    %79 = vector.multi_reduction <add>, %78, %cst_36 [0] : vector<32x64xf32> to vector<64xf32>
    %80 = vector.shape_cast %79 : vector<64xf32> to vector<1x64xf32>
    %81 = math.sqrt %80 : vector<1x64xf32>
    %82 = arith.mulf %75, %81 : vector<1x64xf32>
    %cst_37 = arith.constant 9.99999993E-9 : f32
    %83 = vector.broadcast %cst_37 : f32 to vector<1x64xf32>
    %84 = arith.maximumf %82, %83 : vector<1x64xf32>
    %85 = arith.divf %69, %84 : vector<1x64xf32>
    %cst_38 = arith.constant dense<0.000000e+00> : vector<1xf32>
    %86 = vector.multi_reduction <add>, %85, %cst_38 [1] : vector<1x64xf32> to vector<1xf32>
    %87 = vector.shape_cast %86 : vector<1xf32> to vector<1x1xf32>
    %88 = vector.broadcast %36 : vector<32x1xf32> to vector<32x64xf32>
    %89 = arith.mulf %88, %38 : vector<32x64xf32>
    %90 = arith.mulf %89, %39 : vector<32x64xf32>
    %cst_39 = arith.constant dense<0.000000e+00> : vector<64xf32>
    %91 = vector.multi_reduction <add>, %90, %cst_39 [0] : vector<32x64xf32> to vector<64xf32>
    %92 = vector.shape_cast %91 : vector<64xf32> to vector<1x64xf32>
    %93 = vector.broadcast %36 : vector<32x1xf32> to vector<32x64xf32>
    %94 = arith.mulf %93, %38 : vector<32x64xf32>
    %95 = arith.mulf %94, %38 : vector<32x64xf32>
    %cst_40 = arith.constant dense<0.000000e+00> : vector<64xf32>
    %96 = vector.multi_reduction <add>, %95, %cst_40 [0] : vector<32x64xf32> to vector<64xf32>
    %97 = vector.shape_cast %96 : vector<64xf32> to vector<1x64xf32>
    %98 = math.sqrt %97 : vector<1x64xf32>
    %99 = vector.broadcast %36 : vector<32x1xf32> to vector<32x64xf32>
    %100 = arith.mulf %99, %39 : vector<32x64xf32>
    %101 = arith.mulf %100, %39 : vector<32x64xf32>
    %cst_41 = arith.constant dense<0.000000e+00> : vector<64xf32>
    %102 = vector.multi_reduction <add>, %101, %cst_41 [0] : vector<32x64xf32> to vector<64xf32>
    %103 = vector.shape_cast %102 : vector<64xf32> to vector<1x64xf32>
    %104 = math.sqrt %103 : vector<1x64xf32>
    %105 = arith.mulf %98, %104 : vector<1x64xf32>
    %cst_42 = arith.constant 9.99999993E-9 : f32
    %106 = vector.broadcast %cst_42 : f32 to vector<1x64xf32>
    %107 = arith.maximumf %105, %106 : vector<1x64xf32>
    %108 = arith.divf %92, %107 : vector<1x64xf32>
    %cst_43 = arith.constant dense<0.000000e+00> : vector<1xf32>
    %109 = vector.multi_reduction <add>, %108, %cst_43 [1] : vector<1x64xf32> to vector<1xf32>
    %110 = vector.shape_cast %109 : vector<1xf32> to vector<1x1xf32>
    %cst_44 = arith.constant 1.000000e+00 : f32
    %111 = vector.broadcast %cst_44 : f32 to vector<32x1xf32>
    %112 = arith.subf %111, %36 : vector<32x1xf32>
    %113 = vector.broadcast %112 : vector<32x1xf32> to vector<32x64xf32>
    %114 = arith.mulf %113, %38 : vector<32x64xf32>
    %115 = arith.mulf %114, %39 : vector<32x64xf32>
    %cst_45 = arith.constant dense<0.000000e+00> : vector<64xf32>
    %116 = vector.multi_reduction <add>, %115, %cst_45 [0] : vector<32x64xf32> to vector<64xf32>
    %117 = vector.shape_cast %116 : vector<64xf32> to vector<1x64xf32>
    %118 = vector.broadcast %112 : vector<32x1xf32> to vector<32x64xf32>
    %119 = arith.mulf %118, %38 : vector<32x64xf32>
    %120 = arith.mulf %119, %38 : vector<32x64xf32>
    %cst_46 = arith.constant dense<0.000000e+00> : vector<64xf32>
    %121 = vector.multi_reduction <add>, %120, %cst_46 [0] : vector<32x64xf32> to vector<64xf32>
    %122 = vector.shape_cast %121 : vector<64xf32> to vector<1x64xf32>
    %123 = math.sqrt %122 : vector<1x64xf32>
    %124 = vector.broadcast %112 : vector<32x1xf32> to vector<32x64xf32>
    %125 = arith.mulf %124, %39 : vector<32x64xf32>
    %126 = arith.mulf %125, %39 : vector<32x64xf32>
    %cst_47 = arith.constant dense<0.000000e+00> : vector<64xf32>
    %127 = vector.multi_reduction <add>, %126, %cst_47 [0] : vector<32x64xf32> to vector<64xf32>
    %128 = vector.shape_cast %127 : vector<64xf32> to vector<1x64xf32>
    %129 = math.sqrt %128 : vector<1x64xf32>
    %130 = arith.mulf %123, %129 : vector<1x64xf32>
    %cst_48 = arith.constant 9.99999993E-9 : f32
    %131 = vector.broadcast %cst_48 : f32 to vector<1x64xf32>
    %132 = arith.maximumf %130, %131 : vector<1x64xf32>
    %133 = arith.divf %117, %132 : vector<1x64xf32>
    %cst_49 = arith.constant dense<0.000000e+00> : vector<1xf32>
    %134 = vector.multi_reduction <add>, %133, %cst_49 [1] : vector<1x64xf32> to vector<1xf32>
    %135 = vector.shape_cast %134 : vector<1xf32> to vector<1x1xf32>
    %cst_50 = arith.constant 0.000000e+00 : f32
    %136 = vector.broadcast %cst_50 : f32 to vector<4x1xf32>
    %137 = tpu.concatenate %62, %87, %110, %135, %136 in 0 : vector<1x1xf32>, vector<1x1xf32>, vector<1x1xf32>, vector<1x1xf32>, vector<4x1xf32> -> vector<8x1xf32>
    %138 = vector.shape_cast %137 : vector<8x1xf32> to vector<8x1xf32>
    %139 = vector.broadcast %138 : vector<8x1xf32> to vector<8x128xf32>
    %c0_51 = arith.constant 0 : index
    %c0_52 = arith.constant 0 : index
    %c0_53 = arith.constant 0 : index
    %140 = vector.load %arg11[%c0_51, %c0_52, %c0_53] : memref<1x8x128xf32, #tpu.memory_space<vmem>>, vector<1x8x128xf32>
    %141 = vector.shape_cast %140 : vector<1x8x128xf32> to vector<8x128xf32>
    %142 = vector.shape_cast %139 : vector<8x128xf32> to vector<1x8x128xf32>
    tpu.vector_store %arg11[%c0_51, %c0_52, %c0_53], %142 {strides = array<i32>} : memref<1x8x128xf32, #tpu.memory_space<vmem>>, vector<1x8x128xf32>,
    return
  }
  func.func @transform_0(%arg0: i32) -> (i32, i32, i32) {
    %c0_i32 = arith.constant 0 : i32
    %c0_i32_0 = arith.constant 0 : i32
    %c0_i32_1 = arith.constant 0 : i32
    return %arg0, %c0_i32, %c0_i32_0 : i32, i32, i32
  }
  func.func @transform_1(%arg0: i32) -> (i32, i32, i32) {
    %c0_i32 = arith.constant 0 : i32
    %c0_i32_0 = arith.constant 0 : i32
    %c0_i32_1 = arith.constant 0 : i32
    return %arg0, %c0_i32, %c0_i32_0 : i32, i32, i32
  }
  func.func @transform_2(%arg0: i32) -> (i32, i32, i32) {
    %c0_i32 = arith.constant 0 : i32
    %c0_i32_0 = arith.constant 0 : i32
    %c0_i32_1 = arith.constant 0 : i32
    return %arg0, %c0_i32, %c0_i32_0 : i32, i32, i32
  }
  func.func @transform_3(%arg0: i32) -> (i32, i32) {
    %c0_i32 = arith.constant 0 : i32
    %c0_i32_0 = arith.constant 0 : i32
    %c0_i32_1 = arith.constant 0 : i32
    return %c0_i32, %c0_i32_0 : i32, i32
  }
  func.func @transform_4(%arg0: i32) -> (i32, i32, i32) {
    %c0_i32 = arith.constant 0 : i32
    %c0_i32_0 = arith.constant 0 : i32
    %c0_i32_1 = arith.constant 0 : i32
    return %arg0, %c0_i32, %c0_i32_0 : i32, i32, i32
  }
  func.func @transform_5(%arg0: i32) -> (i32, i32, i32) {
    %c0_i32 = arith.constant 0 : i32
    %c0_i32_0 = arith.constant 0 : i32
    %c0_i32_1 = arith.constant 0 : i32
    return %arg0, %c0_i32, %c0_i32_0 : i32, i32, i32
  }
  func.func @transform_6(%arg0: i32) -> (i32, i32, i32) {
    %c0_i32 = arith.constant 0 : i32
    %c0_i32_0 = arith.constant 0 : i32
    %c0_i32_1 = arith.constant 0 : i32
    return %arg0, %c0_i32, %c0_i32_0 : i32, i32, i32
  }
  func.func @transform_7(%arg0: i32) -> (i32, i32) {
    %c0_i32 = arith.constant 0 : i32
    %c0_i32_0 = arith.constant 0 : i32
    return %c0_i32, %arg0 : i32, i32
  }
  func.func @transform_8(%arg0: i32) -> (i32, i32) {
    %c0_i32 = arith.constant 0 : i32
    %c0_i32_0 = arith.constant 0 : i32
    return %c0_i32, %arg0 : i32, i32
  }
  func.func @transform_9(%arg0: i32) -> (i32, i32) {
    %c0_i32 = arith.constant 0 : i32
    %c0_i32_0 = arith.constant 0 : i32
    return %c0_i32, %arg0 : i32, i32
  }
  func.func @transform_10(%arg0: i32) -> (i32, i32, i32) {
    %c0_i32 = arith.constant 0 : i32
    %c0_i32_0 = arith.constant 0 : i32
    %c0_i32_1 = arith.constant 0 : i32
    return %arg0, %c0_i32, %c0_i32_0 : i32, i32, i32
  }
}

module attributes {stable_mosaic.version = 11 : i64} {
  func.func @_branch_kernel(%arg0: memref<32x640xbf16, #tpu.memory_space<vmem>>, %arg1: memref<32x640xbf16, #tpu.memory_space<vmem>>, %arg2: memref<32x640xbf16, #tpu.memory_space<vmem>>, %arg3: memref<8x32xbf16, #tpu.memory_space<vmem>>, %arg4: memref<8x32xbf16, #tpu.memory_space<vmem>>, %arg5: memref<640x640xbf16, #tpu.memory_space<vmem>>, %arg6: memref<1x640xf32, #tpu.memory_space<vmem>>, %arg7: memref<640x640xbf16, #tpu.memory_space<vmem>>, %arg8: memref<1x640xf32, #tpu.memory_space<vmem>>, %arg9: memref<640x320xbf16, #tpu.memory_space<vmem>>, %arg10: memref<320x128xbf16, #tpu.memory_space<vmem>>, %arg11: memref<3x640x320xbf16, #tpu.memory_space<vmem>>, %arg12: memref<3x1x320xf32, #tpu.memory_space<vmem>>, %arg13: memref<3x640x320xbf16, #tpu.memory_space<vmem>>, %arg14: memref<3x1x320xf32, #tpu.memory_space<vmem>>, %arg15: memref<3x320x320xbf16, #tpu.memory_space<vmem>>, %arg16: memref<3x320x128xbf16, #tpu.memory_space<vmem>>, %arg17: memref<8x128xf32, #tpu.memory_space<vmem>>, %arg18: memref<8x128xf32, #tpu.memory_space<vmem>>, %arg19: memref<8x128xf32, #tpu.memory_space<vmem>>, %arg20: memref<8x128xf32, #tpu.memory_space<vmem>>) attributes {dimension_semantics = [], scalar_prefetch = 0 : i64, scratch_operands = 0 : i64, tpu.core_type = #tpu.core_type<tc>} {
    %c0 = arith.constant 0 : index
    %c0_0 = arith.constant 0 : index
    %0 = vector.load %arg3[%c0, %c0_0] : memref<8x32xbf16, #tpu.memory_space<vmem>>, vector<8x32xbf16>
    %c0_1 = arith.constant 0 : index
    %c0_2 = arith.constant 0 : index
    %1 = vector.load %arg4[%c0_1, %c0_2] : memref<8x32xbf16, #tpu.memory_space<vmem>>, vector<8x32xbf16>
    %c0_3 = arith.constant 0 : index
    %c0_4 = arith.constant 0 : index
    %2 = vector.load %arg0[%c0_3, %c0_4] : memref<32x640xbf16, #tpu.memory_space<vmem>>, vector<32x640xbf16>
    %c0_5 = arith.constant 0 : index
    %c0_6 = arith.constant 0 : index
    %3 = vector.load %arg1[%c0_5, %c0_6] : memref<32x640xbf16, #tpu.memory_space<vmem>>, vector<32x640xbf16>
    %c0_7 = arith.constant 0 : index
    %c0_8 = arith.constant 0 : index
    %4 = vector.load %arg2[%c0_7, %c0_8] : memref<32x640xbf16, #tpu.memory_space<vmem>>, vector<32x640xbf16>
    %c0_9 = arith.constant 0 : index
    %c0_10 = arith.constant 0 : index
    %5 = vector.load %arg5[%c0_9, %c0_10] : memref<640x640xbf16, #tpu.memory_space<vmem>>, vector<640x640xbf16>
    %c0_11 = arith.constant 0 : index
    %c0_12 = arith.constant 0 : index
    %6 = vector.load %arg6[%c0_11, %c0_12] : memref<1x640xf32, #tpu.memory_space<vmem>>, vector<1x640xf32>
    %c0_13 = arith.constant 0 : index
    %c0_14 = arith.constant 0 : index
    %7 = vector.load %arg7[%c0_13, %c0_14] : memref<640x640xbf16, #tpu.memory_space<vmem>>, vector<640x640xbf16>
    %c0_15 = arith.constant 0 : index
    %c0_16 = arith.constant 0 : index
    %8 = vector.load %arg8[%c0_15, %c0_16] : memref<1x640xf32, #tpu.memory_space<vmem>>, vector<1x640xf32>
    %c0_17 = arith.constant 0 : index
    %c0_18 = arith.constant 0 : index
    %9 = vector.load %arg9[%c0_17, %c0_18] : memref<640x320xbf16, #tpu.memory_space<vmem>>, vector<640x320xbf16>
    %c0_19 = arith.constant 0 : index
    %c0_20 = arith.constant 0 : index
    %10 = vector.load %arg10[%c0_19, %c0_20] : memref<320x128xbf16, #tpu.memory_space<vmem>>, vector<320x128xbf16>
    %11 = vector.extract_strided_slice %2 {offsets = [0, 0], sizes = [16, 640], strides = [1, 1]} : vector<32x640xbf16> to vector<16x640xbf16>
    %cst = arith.constant dense<0.000000e+00> : vector<16x640xf32>
    %12 = tpu.matmul %11, %5, %cst {dimension_numbers = #tpu.dot_dimension_numbers<[1], [0], [0], [1], [0, 0, 1, 1], [], []>} : vector<16x640xbf16>, vector<640x640xbf16>, vector<16x640xf32> -> vector<16x640xf32>
    %13 = vector.broadcast %6 : vector<1x640xf32> to vector<16x640xf32>
    %14 = arith.addf %12, %13 : vector<16x640xf32>
    %15 = vector.extract_strided_slice %2 {offsets = [16, 0], sizes = [16, 640], strides = [1, 1]} : vector<32x640xbf16> to vector<16x640xbf16>
    %cst_21 = arith.constant dense<0.000000e+00> : vector<16x640xf32>
    %16 = tpu.matmul %15, %7, %cst_21 {dimension_numbers = #tpu.dot_dimension_numbers<[1], [0], [0], [1], [0, 0, 1, 1], [], []>} : vector<16x640xbf16>, vector<640x640xbf16>, vector<16x640xf32> -> vector<16x640xf32>
    %17 = vector.broadcast %8 : vector<1x640xf32> to vector<16x640xf32>
    %18 = arith.addf %16, %17 : vector<16x640xf32>
    %19 = tpu.concatenate %14, %18 in 0 : vector<16x640xf32>, vector<16x640xf32> -> vector<32x640xf32>
    %20 = arith.truncf %19 : vector<32x640xf32> to vector<32x640xbf16>
    %cst_22 = arith.constant dense<0.000000e+00> : vector<8x640xf32>
    %21 = tpu.matmul %0, %20, %cst_22 {dimension_numbers = #tpu.dot_dimension_numbers<[1], [0], [0], [1], [0, 0, 1, 1], [], []>} : vector<8x32xbf16>, vector<32x640xbf16>, vector<8x640xf32> -> vector<8x640xf32>
    %cst_23 = arith.constant dense<0.000000e+00> : vector<8x640xf32>
    %22 = tpu.matmul %1, %20, %cst_23 {dimension_numbers = #tpu.dot_dimension_numbers<[1], [0], [0], [1], [0, 0, 1, 1], [], []>} : vector<8x32xbf16>, vector<32x640xbf16>, vector<8x640xf32> -> vector<8x640xf32>
    %23 = arith.mulf %21, %22 : vector<8x640xf32>
    %24 = arith.truncf %23 : vector<8x640xf32> to vector<8x640xbf16>
    %cst_24 = arith.constant dense<0.000000e+00> : vector<8x320xf32>
    %25 = tpu.matmul %24, %9, %cst_24 {dimension_numbers = #tpu.dot_dimension_numbers<[1], [0], [0], [1], [0, 0, 1, 1], [], []>} : vector<8x640xbf16>, vector<640x320xbf16>, vector<8x320xf32> -> vector<8x320xf32>
    %cst_25 = arith.constant 0.000000e+00 : f32
    %26 = vector.broadcast %cst_25 : f32 to vector<8x320xf32>
    %27 = arith.maximumf %25, %26 : vector<8x320xf32>
    %28 = arith.truncf %27 : vector<8x320xf32> to vector<8x320xbf16>
    %cst_26 = arith.constant dense<0.000000e+00> : vector<8x128xf32>
    %29 = tpu.matmul %28, %10, %cst_26 {dimension_numbers = #tpu.dot_dimension_numbers<[1], [0], [0], [1], [0, 0, 1, 1], [], []>} : vector<8x320xbf16>, vector<320x128xbf16>, vector<8x128xf32> -> vector<8x128xf32>
    %c0_27 = arith.constant 0 : index
    %c0_28 = arith.constant 0 : index
    %30 = vector.load %arg17[%c0_27, %c0_28] : memref<8x128xf32, #tpu.memory_space<vmem>>, vector<8x128xf32>
    tpu.vector_store %arg17[%c0_27, %c0_28], %29 {strides = array<i32>} : memref<8x128xf32, #tpu.memory_space<vmem>>, vector<8x128xf32>,
    %c0_29 = arith.constant 0 : index
    %c0_30 = arith.constant 0 : index
    %c0_31 = arith.constant 0 : index
    %31 = vector.load %arg11[%c0_29, %c0_30, %c0_31] : memref<3x640x320xbf16, #tpu.memory_space<vmem>>, vector<1x640x320xbf16>
    %32 = vector.shape_cast %31 : vector<1x640x320xbf16> to vector<640x320xbf16>
    %c0_32 = arith.constant 0 : index
    %c0_33 = arith.constant 0 : index
    %c0_34 = arith.constant 0 : index
    %33 = vector.load %arg12[%c0_32, %c0_33, %c0_34] : memref<3x1x320xf32, #tpu.memory_space<vmem>>, vector<1x1x320xf32>
    %34 = vector.shape_cast %33 : vector<1x1x320xf32> to vector<1x320xf32>
    %c0_35 = arith.constant 0 : index
    %c0_36 = arith.constant 0 : index
    %c0_37 = arith.constant 0 : index
    %35 = vector.load %arg13[%c0_35, %c0_36, %c0_37] : memref<3x640x320xbf16, #tpu.memory_space<vmem>>, vector<1x640x320xbf16>
    %36 = vector.shape_cast %35 : vector<1x640x320xbf16> to vector<640x320xbf16>
    %c0_38 = arith.constant 0 : index
    %c0_39 = arith.constant 0 : index
    %c0_40 = arith.constant 0 : index
    %37 = vector.load %arg14[%c0_38, %c0_39, %c0_40] : memref<3x1x320xf32, #tpu.memory_space<vmem>>, vector<1x1x320xf32>
    %38 = vector.shape_cast %37 : vector<1x1x320xf32> to vector<1x320xf32>
    %c0_41 = arith.constant 0 : index
    %c0_42 = arith.constant 0 : index
    %c0_43 = arith.constant 0 : index
    %39 = vector.load %arg15[%c0_41, %c0_42, %c0_43] : memref<3x320x320xbf16, #tpu.memory_space<vmem>>, vector<1x320x320xbf16>
    %40 = vector.shape_cast %39 : vector<1x320x320xbf16> to vector<320x320xbf16>
    %c0_44 = arith.constant 0 : index
    %c0_45 = arith.constant 0 : index
    %c0_46 = arith.constant 0 : index
    %41 = vector.load %arg16[%c0_44, %c0_45, %c0_46] : memref<3x320x128xbf16, #tpu.memory_space<vmem>>, vector<1x320x128xbf16>
    %42 = vector.shape_cast %41 : vector<1x320x128xbf16> to vector<320x128xbf16>
    %43 = vector.extract_strided_slice %3 {offsets = [0, 0], sizes = [16, 640], strides = [1, 1]} : vector<32x640xbf16> to vector<16x640xbf16>
    %cst_47 = arith.constant dense<0.000000e+00> : vector<16x320xf32>
    %44 = tpu.matmul %43, %32, %cst_47 {dimension_numbers = #tpu.dot_dimension_numbers<[1], [0], [0], [1], [0, 0, 1, 1], [], []>} : vector<16x640xbf16>, vector<640x320xbf16>, vector<16x320xf32> -> vector<16x320xf32>
    %45 = vector.broadcast %34 : vector<1x320xf32> to vector<16x320xf32>
    %46 = arith.addf %44, %45 : vector<16x320xf32>
    %47 = vector.extract_strided_slice %3 {offsets = [16, 0], sizes = [16, 640], strides = [1, 1]} : vector<32x640xbf16> to vector<16x640xbf16>
    %cst_48 = arith.constant dense<0.000000e+00> : vector<16x320xf32>
    %48 = tpu.matmul %47, %36, %cst_48 {dimension_numbers = #tpu.dot_dimension_numbers<[1], [0], [0], [1], [0, 0, 1, 1], [], []>} : vector<16x640xbf16>, vector<640x320xbf16>, vector<16x320xf32> -> vector<16x320xf32>
    %49 = vector.broadcast %38 : vector<1x320xf32> to vector<16x320xf32>
    %50 = arith.addf %48, %49 : vector<16x320xf32>
    %51 = tpu.concatenate %46, %50 in 0 : vector<16x320xf32>, vector<16x320xf32> -> vector<32x320xf32>
    %52 = arith.truncf %51 : vector<32x320xf32> to vector<32x320xbf16>
    %cst_49 = arith.constant dense<0.000000e+00> : vector<8x320xf32>
    %53 = tpu.matmul %0, %52, %cst_49 {dimension_numbers = #tpu.dot_dimension_numbers<[1], [0], [0], [1], [0, 0, 1, 1], [], []>} : vector<8x32xbf16>, vector<32x320xbf16>, vector<8x320xf32> -> vector<8x320xf32>
    %cst_50 = arith.constant dense<0.000000e+00> : vector<8x320xf32>
    %54 = tpu.matmul %1, %52, %cst_50 {dimension_numbers = #tpu.dot_dimension_numbers<[1], [0], [0], [1], [0, 0, 1, 1], [], []>} : vector<8x32xbf16>, vector<32x320xbf16>, vector<8x320xf32> -> vector<8x320xf32>
    %55 = arith.mulf %53, %54 : vector<8x320xf32>
    %56 = arith.truncf %55 : vector<8x320xf32> to vector<8x320xbf16>
    %cst_51 = arith.constant dense<0.000000e+00> : vector<8x320xf32>
    %57 = tpu.matmul %56, %40, %cst_51 {dimension_numbers = #tpu.dot_dimension_numbers<[1], [0], [0], [1], [0, 0, 1, 1], [], []>} : vector<8x320xbf16>, vector<320x320xbf16>, vector<8x320xf32> -> vector<8x320xf32>
    %cst_52 = arith.constant 0.000000e+00 : f32
    %58 = vector.broadcast %cst_52 : f32 to vector<8x320xf32>
    %59 = arith.maximumf %57, %58 : vector<8x320xf32>
    %60 = arith.truncf %59 : vector<8x320xf32> to vector<8x320xbf16>
    %cst_53 = arith.constant dense<0.000000e+00> : vector<8x128xf32>
    %61 = tpu.matmul %60, %42, %cst_53 {dimension_numbers = #tpu.dot_dimension_numbers<[1], [0], [0], [1], [0, 0, 1, 1], [], []>} : vector<8x320xbf16>, vector<320x128xbf16>, vector<8x128xf32> -> vector<8x128xf32>
    %c0_54 = arith.constant 0 : index
    %c0_55 = arith.constant 0 : index
    %62 = vector.load %arg18[%c0_54, %c0_55] : memref<8x128xf32, #tpu.memory_space<vmem>>, vector<8x128xf32>
    tpu.vector_store %arg18[%c0_54, %c0_55], %61 {strides = array<i32>} : memref<8x128xf32, #tpu.memory_space<vmem>>, vector<8x128xf32>,
    %c1 = arith.constant 1 : index
    %c0_56 = arith.constant 0 : index
    %c0_57 = arith.constant 0 : index
    %63 = vector.load %arg11[%c1, %c0_56, %c0_57] : memref<3x640x320xbf16, #tpu.memory_space<vmem>>, vector<1x640x320xbf16>
    %64 = vector.shape_cast %63 : vector<1x640x320xbf16> to vector<640x320xbf16>
    %c1_58 = arith.constant 1 : index
    %c0_59 = arith.constant 0 : index
    %c0_60 = arith.constant 0 : index
    %65 = vector.load %arg12[%c1_58, %c0_59, %c0_60] : memref<3x1x320xf32, #tpu.memory_space<vmem>>, vector<1x1x320xf32>
    %66 = vector.shape_cast %65 : vector<1x1x320xf32> to vector<1x320xf32>
    %c1_61 = arith.constant 1 : index
    %c0_62 = arith.constant 0 : index
    %c0_63 = arith.constant 0 : index
    %67 = vector.load %arg13[%c1_61, %c0_62, %c0_63] : memref<3x640x320xbf16, #tpu.memory_space<vmem>>, vector<1x640x320xbf16>
    %68 = vector.shape_cast %67 : vector<1x640x320xbf16> to vector<640x320xbf16>
    %c1_64 = arith.constant 1 : index
    %c0_65 = arith.constant 0 : index
    %c0_66 = arith.constant 0 : index
    %69 = vector.load %arg14[%c1_64, %c0_65, %c0_66] : memref<3x1x320xf32, #tpu.memory_space<vmem>>, vector<1x1x320xf32>
    %70 = vector.shape_cast %69 : vector<1x1x320xf32> to vector<1x320xf32>
    %c1_67 = arith.constant 1 : index
    %c0_68 = arith.constant 0 : index
    %c0_69 = arith.constant 0 : index
    %71 = vector.load %arg15[%c1_67, %c0_68, %c0_69] : memref<3x320x320xbf16, #tpu.memory_space<vmem>>, vector<1x320x320xbf16>
    %72 = vector.shape_cast %71 : vector<1x320x320xbf16> to vector<320x320xbf16>
    %c1_70 = arith.constant 1 : index
    %c0_71 = arith.constant 0 : index
    %c0_72 = arith.constant 0 : index
    %73 = vector.load %arg16[%c1_70, %c0_71, %c0_72] : memref<3x320x128xbf16, #tpu.memory_space<vmem>>, vector<1x320x128xbf16>
    %74 = vector.shape_cast %73 : vector<1x320x128xbf16> to vector<320x128xbf16>
    %75 = vector.extract_strided_slice %3 {offsets = [0, 0], sizes = [16, 640], strides = [1, 1]} : vector<32x640xbf16> to vector<16x640xbf16>
    %cst_73 = arith.constant dense<0.000000e+00> : vector<16x320xf32>
    %76 = tpu.matmul %75, %64, %cst_73 {dimension_numbers = #tpu.dot_dimension_numbers<[1], [0], [0], [1], [0, 0, 1, 1], [], []>} : vector<16x640xbf16>, vector<640x320xbf16>, vector<16x320xf32> -> vector<16x320xf32>
    %77 = vector.broadcast %66 : vector<1x320xf32> to vector<16x320xf32>
    %78 = arith.addf %76, %77 : vector<16x320xf32>
    %79 = vector.extract_strided_slice %3 {offsets = [16, 0], sizes = [16, 640], strides = [1, 1]} : vector<32x640xbf16> to vector<16x640xbf16>
    %cst_74 = arith.constant dense<0.000000e+00> : vector<16x320xf32>
    %80 = tpu.matmul %79, %68, %cst_74 {dimension_numbers = #tpu.dot_dimension_numbers<[1], [0], [0], [1], [0, 0, 1, 1], [], []>} : vector<16x640xbf16>, vector<640x320xbf16>, vector<16x320xf32> -> vector<16x320xf32>
    %81 = vector.broadcast %70 : vector<1x320xf32> to vector<16x320xf32>
    %82 = arith.addf %80, %81 : vector<16x320xf32>
    %83 = tpu.concatenate %78, %82 in 0 : vector<16x320xf32>, vector<16x320xf32> -> vector<32x320xf32>
    %84 = arith.truncf %83 : vector<32x320xf32> to vector<32x320xbf16>
    %cst_75 = arith.constant dense<0.000000e+00> : vector<8x320xf32>
    %85 = tpu.matmul %0, %84, %cst_75 {dimension_numbers = #tpu.dot_dimension_numbers<[1], [0], [0], [1], [0, 0, 1, 1], [], []>} : vector<8x32xbf16>, vector<32x320xbf16>, vector<8x320xf32> -> vector<8x320xf32>
    %cst_76 = arith.constant dense<0.000000e+00> : vector<8x320xf32>
    %86 = tpu.matmul %1, %84, %cst_76 {dimension_numbers = #tpu.dot_dimension_numbers<[1], [0], [0], [1], [0, 0, 1, 1], [], []>} : vector<8x32xbf16>, vector<32x320xbf16>, vector<8x320xf32> -> vector<8x320xf32>
    %87 = arith.mulf %85, %86 : vector<8x320xf32>
    %88 = arith.truncf %87 : vector<8x320xf32> to vector<8x320xbf16>
    %cst_77 = arith.constant dense<0.000000e+00> : vector<8x320xf32>
    %89 = tpu.matmul %88, %72, %cst_77 {dimension_numbers = #tpu.dot_dimension_numbers<[1], [0], [0], [1], [0, 0, 1, 1], [], []>} : vector<8x320xbf16>, vector<320x320xbf16>, vector<8x320xf32> -> vector<8x320xf32>
    %cst_78 = arith.constant 0.000000e+00 : f32
    %90 = vector.broadcast %cst_78 : f32 to vector<8x320xf32>
    %91 = arith.maximumf %89, %90 : vector<8x320xf32>
    %92 = arith.truncf %91 : vector<8x320xf32> to vector<8x320xbf16>
    %cst_79 = arith.constant dense<0.000000e+00> : vector<8x128xf32>
    %93 = tpu.matmul %92, %74, %cst_79 {dimension_numbers = #tpu.dot_dimension_numbers<[1], [0], [0], [1], [0, 0, 1, 1], [], []>} : vector<8x320xbf16>, vector<320x128xbf16>, vector<8x128xf32> -> vector<8x128xf32>
    %c0_80 = arith.constant 0 : index
    %c0_81 = arith.constant 0 : index
    %94 = vector.load %arg19[%c0_80, %c0_81] : memref<8x128xf32, #tpu.memory_space<vmem>>, vector<8x128xf32>
    tpu.vector_store %arg19[%c0_80, %c0_81], %93 {strides = array<i32>} : memref<8x128xf32, #tpu.memory_space<vmem>>, vector<8x128xf32>,
    %c2 = arith.constant 2 : index
    %c0_82 = arith.constant 0 : index
    %c0_83 = arith.constant 0 : index
    %95 = vector.load %arg11[%c2, %c0_82, %c0_83] : memref<3x640x320xbf16, #tpu.memory_space<vmem>>, vector<1x640x320xbf16>
    %96 = vector.shape_cast %95 : vector<1x640x320xbf16> to vector<640x320xbf16>
    %c2_84 = arith.constant 2 : index
    %c0_85 = arith.constant 0 : index
    %c0_86 = arith.constant 0 : index
    %97 = vector.load %arg12[%c2_84, %c0_85, %c0_86] : memref<3x1x320xf32, #tpu.memory_space<vmem>>, vector<1x1x320xf32>
    %98 = vector.shape_cast %97 : vector<1x1x320xf32> to vector<1x320xf32>
    %c2_87 = arith.constant 2 : index
    %c0_88 = arith.constant 0 : index
    %c0_89 = arith.constant 0 : index
    %99 = vector.load %arg13[%c2_87, %c0_88, %c0_89] : memref<3x640x320xbf16, #tpu.memory_space<vmem>>, vector<1x640x320xbf16>
    %100 = vector.shape_cast %99 : vector<1x640x320xbf16> to vector<640x320xbf16>
    %c2_90 = arith.constant 2 : index
    %c0_91 = arith.constant 0 : index
    %c0_92 = arith.constant 0 : index
    %101 = vector.load %arg14[%c2_90, %c0_91, %c0_92] : memref<3x1x320xf32, #tpu.memory_space<vmem>>, vector<1x1x320xf32>
    %102 = vector.shape_cast %101 : vector<1x1x320xf32> to vector<1x320xf32>
    %c2_93 = arith.constant 2 : index
    %c0_94 = arith.constant 0 : index
    %c0_95 = arith.constant 0 : index
    %103 = vector.load %arg15[%c2_93, %c0_94, %c0_95] : memref<3x320x320xbf16, #tpu.memory_space<vmem>>, vector<1x320x320xbf16>
    %104 = vector.shape_cast %103 : vector<1x320x320xbf16> to vector<320x320xbf16>
    %c2_96 = arith.constant 2 : index
    %c0_97 = arith.constant 0 : index
    %c0_98 = arith.constant 0 : index
    %105 = vector.load %arg16[%c2_96, %c0_97, %c0_98] : memref<3x320x128xbf16, #tpu.memory_space<vmem>>, vector<1x320x128xbf16>
    %106 = vector.shape_cast %105 : vector<1x320x128xbf16> to vector<320x128xbf16>
    %107 = vector.extract_strided_slice %4 {offsets = [0, 0], sizes = [16, 640], strides = [1, 1]} : vector<32x640xbf16> to vector<16x640xbf16>
    %cst_99 = arith.constant dense<0.000000e+00> : vector<16x320xf32>
    %108 = tpu.matmul %107, %96, %cst_99 {dimension_numbers = #tpu.dot_dimension_numbers<[1], [0], [0], [1], [0, 0, 1, 1], [], []>} : vector<16x640xbf16>, vector<640x320xbf16>, vector<16x320xf32> -> vector<16x320xf32>
    %109 = vector.broadcast %98 : vector<1x320xf32> to vector<16x320xf32>
    %110 = arith.addf %108, %109 : vector<16x320xf32>
    %111 = vector.extract_strided_slice %4 {offsets = [16, 0], sizes = [16, 640], strides = [1, 1]} : vector<32x640xbf16> to vector<16x640xbf16>
    %cst_100 = arith.constant dense<0.000000e+00> : vector<16x320xf32>
    %112 = tpu.matmul %111, %100, %cst_100 {dimension_numbers = #tpu.dot_dimension_numbers<[1], [0], [0], [1], [0, 0, 1, 1], [], []>} : vector<16x640xbf16>, vector<640x320xbf16>, vector<16x320xf32> -> vector<16x320xf32>
    %113 = vector.broadcast %102 : vector<1x320xf32> to vector<16x320xf32>
    %114 = arith.addf %112, %113 : vector<16x320xf32>
    %115 = tpu.concatenate %110, %114 in 0 : vector<16x320xf32>, vector<16x320xf32> -> vector<32x320xf32>
    %116 = arith.truncf %115 : vector<32x320xf32> to vector<32x320xbf16>
    %cst_101 = arith.constant dense<0.000000e+00> : vector<8x320xf32>
    %117 = tpu.matmul %0, %116, %cst_101 {dimension_numbers = #tpu.dot_dimension_numbers<[1], [0], [0], [1], [0, 0, 1, 1], [], []>} : vector<8x32xbf16>, vector<32x320xbf16>, vector<8x320xf32> -> vector<8x320xf32>
    %cst_102 = arith.constant dense<0.000000e+00> : vector<8x320xf32>
    %118 = tpu.matmul %1, %116, %cst_102 {dimension_numbers = #tpu.dot_dimension_numbers<[1], [0], [0], [1], [0, 0, 1, 1], [], []>} : vector<8x32xbf16>, vector<32x320xbf16>, vector<8x320xf32> -> vector<8x320xf32>
    %119 = arith.mulf %117, %118 : vector<8x320xf32>
    %120 = arith.truncf %119 : vector<8x320xf32> to vector<8x320xbf16>
    %cst_103 = arith.constant dense<0.000000e+00> : vector<8x320xf32>
    %121 = tpu.matmul %120, %104, %cst_103 {dimension_numbers = #tpu.dot_dimension_numbers<[1], [0], [0], [1], [0, 0, 1, 1], [], []>} : vector<8x320xbf16>, vector<320x320xbf16>, vector<8x320xf32> -> vector<8x320xf32>
    %cst_104 = arith.constant 0.000000e+00 : f32
    %122 = vector.broadcast %cst_104 : f32 to vector<8x320xf32>
    %123 = arith.maximumf %121, %122 : vector<8x320xf32>
    %124 = arith.truncf %123 : vector<8x320xf32> to vector<8x320xbf16>
    %cst_105 = arith.constant dense<0.000000e+00> : vector<8x128xf32>
    %125 = tpu.matmul %124, %106, %cst_105 {dimension_numbers = #tpu.dot_dimension_numbers<[1], [0], [0], [1], [0, 0, 1, 1], [], []>} : vector<8x320xbf16>, vector<320x128xbf16>, vector<8x128xf32> -> vector<8x128xf32>
    %c0_106 = arith.constant 0 : index
    %c0_107 = arith.constant 0 : index
    %126 = vector.load %arg20[%c0_106, %c0_107] : memref<8x128xf32, #tpu.memory_space<vmem>>, vector<8x128xf32>
    tpu.vector_store %arg20[%c0_106, %c0_107], %125 {strides = array<i32>} : memref<8x128xf32, #tpu.memory_space<vmem>>, vector<8x128xf32>,
    return
  }
}

</mosaic_0001>

<bundles_post_ra>
// kernel: net_forward.2
= control target key start
LH: loop header
LB: loop body
LE: loop exit
PB: predicated region body
PF: predicated region fallthrough
CT: control target
= control target key end

     0   :  { %s3102_s0 = inlined_call_operand.vmem [shape: bf16[5,40,32], index: 0, kind: input, shape index: {}]   ;;  %s3103_s1 = inlined_call_operand.hbm [shape: bf16[5,32,40], index: 1, kind: input, shape index: {}]   ;;  %s3104_s2 = inlined_call_operand.vmem [shape: f32[5,32,1], index: 2, kind: input, shape index: {}]   ;;  %s3105_s3 = inlined_call_operand.vmem [shape: f32[32,1], index: 3, kind: input, shape index: {}]   ;;  %s3106_s4 = inlined_call_operand.hbm [shape: bf16[5,40,64], index: 4, kind: input, shape index: {}]   ;;  %s3107_s5 = inlined_call_operand.hbm [shape: bf16[5,64,192], index: 5, kind: input, shape index: {}]   ;;  %s3108_s6 = inlined_call_operand.hbm [shape: bf16[5,32,192], index: 6, kind: input, shape index: {}]   ;;  %s3109_s7 = inlined_call_operand.vmem [shape: bf16[32,640], index: 7, kind: output, shape index: {0}]   ;;  %s3110_s8 = inlined_call_operand.vmem [shape: bf16[32,640], index: 8, kind: output, shape index: {1}]   ;;  %s3111_s9 = inlined_call_operand.vmem [shape: bf16[32,640], index: 9, kind: output, shape index: {2}]   ;;  %s3112_s10 = inlined_call_operand.vmem [shape: f32[5,8,128], index: 10, kind: output, shape index: {3}]  }
   0x1   :  { %3117 = sst [smem:[#allocation18_spill]] %s3106_s4 }
   0x2   :  { %3118 = sst [smem:[#allocation19_spill]] %s3109_s7 }
   0x3   :  { %3119 = sst [smem:[#allocation20_spill]] %s3110_s8 }
   0x4   :  { %3120 = sst [smem:[#allocation21_spill]] %s3111_s9 }
   0x5   :  { %16 = vsyncpa [#allocation3], 0 }
   0x6   :  { %18 = vsyncpa [#allocation3 + $0x1], 0 }
   0x7   :  { %19 = vsyncpa [#allocation5], 0 }
   0x8   :  { %21 = vsyncpa [#allocation5 + $0x1], 0 }
   0x9   :  { %22 = vsyncpa [#allocation8], 0 }
   0xa   :  { %24 = vsyncpa [#allocation8 + $0x1], 0  ;;  %s2473_s13 = smov 0   ;;  %s2475_s14 = smov 0  }
   0xb   :  { %s2477_s15 = smov 0   ;;  %s2479_s16 = smov 0  }
   0xc LB: > { %3121 = sst [smem:[#allocation15_spill]] %s2400_s15  ;;  %s2492_s17 = sadd.s32 4294967295, %s2404_s16   ;;  %s2404_s16 = sphi %s2479_s16, %s3138_s16   ;;  %s2400_s15 = sphi %s2477_s15, %s3140_s15   ;;  %s2396_s14 = sphi %s2475_s14, %s3142_s14   ;;  %s2392_s13 = sphi %s2473_s13, %s3141_s13  }
   0xd   : > { %s2495_s18 = sadd.s32 1, %s2404_s16   ;;  %s63_s20 = sadd.s32 1, %s2400_s15 }
   0xe   : > { %3122 = sst [smem:[#allocation16_spill]] %s2495_s18  ;;  %s60_s19 = ssub.s32 %s2404_s16, %s2495_s18 }
   0xf   : > { %p61_p0 = scmp.eq.s32.totalorder %s60_s19, 0  ;;  %p70_p1 = scmp.ne.s32.totalorder %s2400_s15, %s2396_s14 }
  0x10   : > { %p71_p2 = scmp.eq.s32.totalorder %s2404_s16, 0  ;;  %p76_p3 = scmp.ne.s32.totalorder %s2396_s14, %s2392_s13 }
  0x11   : > { %s2505_s21 = scalar_select %p61_p0, %s2400_s15, %s63_s20  }
  0x12   : > { %p72_p4 = por %p71_p2, %p70_p1  ;;  %p77_p5 = scmp.eq.s32.totalorder %s2492_s17, 0 }
  0x13   : > { %3123 = sst [smem:[#allocation17_spill]] %s2505_s21  ;;  %p225_p6 = scmp.eq.s32.totalorder %s2492_s17, 4 }
  0x14   : > { %p2509_p7 = por %p77_p5, %p76_p3  ;;  %p2139_p8 = scmp.lt.s32.totalorder %s2404_s16, 5 }
  0x15   : > { %p2514_p9 = por %p225_p6, %p70_p1  ;;  %s2519_s24 = sand.u32 1, %s2400_s15  }
  0x16   : > { %s3124_s22 = scalar_select %p2509_p7, 1, 0 }
  0x17   : > { %s3125_s23 = scalar_select %p2514_p9, 1, 0 }
  0x18   : > { %p2521_p10 = pnand %p2139_p8, %p72_p4  ;;  %s369_s26 = sand.u32 1, %s2404_s16  }
  0x19   : > { %s2114_s27 = smul.u32 20, %s2519_s24  ;;  %p1967_p11 = scmp.ge.s32.totalorder %s2404_s16, 1 }
  0x1a   : > { %s2115_s28 = smul.u32 320, %s2404_s16  ;;  %p430_p12 = scmp.lt.s32.totalorder %s2404_s16, 6 }
  0x1b   : > { %s3127_s4 = sld [smem:[#allocation18_spill]]  ;;  %s373_s12 = scalar_lea.vmem [#allocation4], %s2114_s27 }
  0x1c   : > { %s380_s13 = sshll.u32 %s373_s12, 4  ;;  %p2537_p13 = pnand %p1967_p11, %p430_p12  ;;  %s2535_s13 = int_to_ptr.vmem [resolvable:$true] %s380_s13 }
  0x1d   : > { %s2541_s20 = scalar_lea.sflag [#allocation5], %s369_s26  ;;  %p2547_p1 = pneg %p2521_p10 }
  0x1e   : > { %s3128_s19 = scalar_select %p2537_p13, 1, 0 }
  0x21   : > { %s2533_s11 = scalar_lea.hbm %s3127_s4, %s2115_s28  ;;  %s2247_s30 = scalar_lea.hbm %s3127_s4, 1600 }
  0x22   : > { %s2242_s21 = scalar_lea.hbm %s2533_s11, 320  ;;  %p2248_p4 = scmp.lt.u32.totalorder %s2533_s11, %s3127_s4 }
  0x23   : > { %p2243_p0 = scmp.ne.s32.totalorder %s2533_s11, %s2242_s21  ;;  %p2249_p5 = scmp.lt.u32.totalorder %s2247_s30, %s2242_s21 }
  0x24   : > { %p2251_p8 = scmp.lt.u32.totalorder %s2242_s21, %s2533_s11 }
  0x25   : > { %p2245_p2 = pnand %p2547_p1, %p2243_p0  ;;  %p2250_p6 = por %p2249_p5, %p2248_p4 }
  0x27   : > { %p2246_p3 = pneg %p2245_p2  ;;  %p2252_p11 = por %p2251_p8, %p2250_p6 }
  0x29   : > { %p2253_p12 = pnand %p2252_p11, %p2246_p3 }
  0x2b   : > { %2256 = shalt.err (!%p2253_p12)
}
  0x2c   : > { %s2257_s26 = scalar_lea.vmem %s2535_s13, 320  ;;  %s2406_s27 = smov [#allocation4]  }
  0x2d   : > { %p2258_p0 = scmp.ne.s32.totalorder %s2535_s13, %s2257_s26  ;;  %s2262_s29 = sshll.u32 %s2406_s27, 4  ;;  %s2263_s29 = int_to_ptr.vmem [resolvable:$false] %s2262_s29 }
  0x2e   : > { %s2264_s15 = scalar_lea.vmem %s2263_s29, 640  ;;  %p2265_p7 = scmp.lt.s32.totalorder %s2535_s13, %s2263_s29 }
  0x2f   : > { %p2260_p2 = pnand %p2258_p0, %p2547_p1  ;;  %p2266_p13 = scmp.lt.s32.totalorder %s2264_s15, %s2257_s26 }
  0x31   : > { %p2261_p9 = pneg %p2260_p2  ;;  %p2267_p4 = por %p2266_p13, %p2265_p7 }
  0x33   : > { %p2268_p5 = pnand %p2267_p4, %p2261_p9 }
  0x35   : > { %2271 = shalt.err (!%p2268_p5)
}
  0x36   : > { %s2407_s21 = smov 64   ;;  %s2408_s30 = smov 4  }
  0x37   : > { %2132 = dma.hbm_to_vmem [thread:$0]  (!%p2521_p10), %s2533_s11, 320, %s2535_s13, %s2541_s20, %s2407_s21, %s2407_s21, %s2408_s30  }
  0x38   : > { %s1957_s12 = sshll.u32 %s2519_s24, 4  ;;  %s2028_s26 = sshll.u32 %s2404_s16, 8 }
  0x39   : > { %s2579_s15 = scalar_lea.hbm %s3103_s1, %s2028_s26  ;;  %s344_s4 = scalar_lea.vmem [#allocation2], %s1957_s12 }
  0x3a   : > { %s351_s18 = sshll.u32 %s344_s4, 4  ;;  %s1961_s9 = sshll.u32 %s2519_s24, 6  ;;  %s2582_s18 = int_to_ptr.vmem [resolvable:$true] %s351_s18 }
  0x3b   : > { %s341_s8 = scalar_lea.sflag [#allocation3], %s2519_s24  ;;  %s2272_s7 = scalar_lea.hbm %s2579_s15, 256 }
  0x3c   : > { %p2273_p7 = scmp.ne.s32.totalorder %s2579_s15, %s2272_s7  ;;  %s2277_s26 = scalar_lea.hbm %s3103_s1, 1280 }
  0x3d   : > { %p2278_p3 = scmp.lt.u32.totalorder %s2579_s15, %s3103_s1  ;;  %p2279_p6 = scmp.lt.u32.totalorder %s2277_s26, %s2272_s7 }
  0x3e   : > { %p2275_p9 = pnand %p2273_p7, %p2547_p1  ;;  %p2281_p11 = scmp.lt.u32.totalorder %s2272_s7, %s2579_s15 }
  0x3f   : > { %p2280_p8 = por %p2279_p6, %p2278_p3 }
  0x40   : > { %p2276_p13 = pneg %p2275_p9 }
  0x41   : > { %p2282_p12 = por %p2281_p11, %p2280_p8 }
  0x43   : > { %p2283_p0 = pnand %p2282_p12, %p2276_p13 }
  0x45   : > { %2286 = shalt.err (!%p2283_p0)
}
  0x46   : > { %s2287_s4 = scalar_lea.vmem %s2582_s18, 256  ;;  %s2409_s12 = smov [#allocation2]  }
  0x47   : > { %p2288_p2 = scmp.ne.s32.totalorder %s2582_s18, %s2287_s4  ;;  %s2292_s11 = sshll.u32 %s2409_s12, 4  ;;  %s2293_s11 = int_to_ptr.vmem [resolvable:$false] %s2292_s11 }
  0x48   : > { %s2294_s13 = scalar_lea.vmem %s2293_s11, 512  ;;  %p2295_p7 = scmp.lt.s32.totalorder %s2582_s18, %s2293_s11 }
  0x49   : > { %p2290_p4 = pnand %p2288_p2, %p2547_p1  ;;  %p2296_p9 = scmp.lt.s32.totalorder %s2294_s13, %s2287_s4 }
  0x4b   : > { %p2291_p5 = pneg %p2290_p4  ;;  %p2297_p3 = por %p2296_p9, %p2295_p7 }
  0x4d   : > { %p2298_p6 = pnand %p2297_p3, %p2291_p5 }
  0x4f   : > { %2301 = shalt.err (!%p2298_p6)
}
  0x50   : > { %2129 = dma.hbm_to_vmem [thread:$0]  (!%p2521_p10), %s2579_s15, 256, %s2582_s18, %s341_s8, %s2407_s21, %s2407_s21, %s2408_s30  }
  0x51   : > { %s2029_s7 = sshll.u32 %s2404_s16, 10  ;;  %s394_s26 = scalar_lea.vmem [#allocation6], %s1961_s9 }
  0x52   : > { %s401_s27 = sshll.u32 %s394_s26, 4  ;;  %s2617_s12 = scalar_lea.hbm %s3107_s5, %s2029_s7  ;;  %s2619_s27 = int_to_ptr.vmem [resolvable:$true] %s401_s27 }
  0x53   : > { %s2302_s11 = scalar_lea.hbm %s2617_s12, 1024  ;;  %s2307_s9 = scalar_lea.hbm %s3107_s5, 5120 }
  0x54   : > { %p2303_p13 = scmp.ne.s32.totalorder %s2617_s12, %s2302_s11  ;;  %p2308_p12 = scmp.lt.u32.totalorder %s2617_s12, %s3107_s5 }
  0x55   : > { %p2309_p0 = scmp.lt.u32.totalorder %s2307_s9, %s2302_s11  ;;  %p2311_p4 = scmp.lt.u32.totalorder %s2302_s11, %s2617_s12 }
  0x56   : > { %p2305_p8 = pnand %p2303_p13, %p2547_p1 }
  0x57   : > { %p2310_p2 = por %p2309_p0, %p2308_p12 }
  0x58   : > { %p2306_p11 = pneg %p2305_p8 }
  0x59   : > { %p2312_p5 = por %p2311_p4, %p2310_p2 }
  0x5b   : > { %p2313_p7 = pnand %p2312_p5, %p2306_p11 }
  0x5d   : > { %2316 = shalt.err (!%p2313_p7)
}
  0x5e   : > { %s2317_s15 = scalar_lea.vmem %s2619_s27, 1024  ;;  %s2410_s13 = smov [#allocation6]  }
  0x5f   : > { %p2318_p9 = scmp.ne.s32.totalorder %s2619_s27, %s2317_s15  ;;  %s2322_s7 = sshll.u32 %s2410_s13, 4  ;;  %s2323_s7 = int_to_ptr.vmem [resolvable:$false] %s2322_s7 }
  0x60   : > { %s2324_s26 = scalar_lea.vmem %s2323_s7, 2048  ;;  %p2325_p13 = scmp.lt.s32.totalorder %s2619_s27, %s2323_s7 }
  0x61   : > { %p2320_p3 = pnand %p2318_p9, %p2547_p1  ;;  %p2326_p8 = scmp.lt.s32.totalorder %s2324_s26, %s2317_s15 }
  0x63   : > { %p2321_p6 = pneg %p2320_p3  ;;  %p2327_p12 = por %p2326_p8, %p2325_p13 }
  0x65   : > { %p2328_p0 = pnand %p2327_p12, %p2321_p6 }
  0x67   : > { %2331 = shalt.err (!%p2328_p0)
}
  0x68   : > { %s2411_s29 = smov 128   ;;  %s2412_s4 = smov 8  }
  0x69   : > { %2135 = dma.hbm_to_vmem [thread:$0]  (!%p2521_p10), %s2617_s12, 1024, %s2619_s27, %s2541_s20, %s2411_s29, %s2411_s29, %s2412_s4  }
  0x6a   : > { %s1964_s11 = sshll.u32 %s2519_s24, 5  ;;  %s2030_s8 = sshll.u32 %s2404_s16, 9 }
  0x6b   : > { %s2651_s21 = scalar_lea.hbm %s3108_s6, %s2030_s8  ;;  %s415_s30 = scalar_lea.vmem [#allocation7], %s1964_s11 }
  0x6c   : > { %s422_s15 = sshll.u32 %s415_s30, 4  ;;  %s412_s13 = scalar_lea.sflag [#allocation8], %s2519_s24  ;;  %s2653_s15 = int_to_ptr.vmem [resolvable:$true] %s422_s15 }
  0x6d   : > { %s2332_s7 = scalar_lea.hbm %s2651_s21, 512  ;;  %s2337_s27 = scalar_lea.hbm %s3108_s6, 2560 }
  0x6e   : > { %p2333_p11 = scmp.ne.s32.totalorder %s2651_s21, %s2332_s7  ;;  %p2338_p5 = scmp.lt.u32.totalorder %s2651_s21, %s3108_s6 }
  0x6f   : > { %p2339_p7 = scmp.lt.u32.totalorder %s2337_s27, %s2332_s7  ;;  %p2341_p3 = scmp.lt.u32.totalorder %s2332_s7, %s2651_s21 }
  0x70   : > { %p2335_p2 = pnand %p2333_p11, %p2547_p1 }
  0x71   : > { %p2340_p9 = por %p2339_p7, %p2338_p5 }
  0x72   : > { %p2336_p4 = pneg %p2335_p2 }
  0x73   : > { %p2342_p6 = por %p2341_p3, %p2340_p9 }
  0x75   : > { %p2343_p13 = pnand %p2342_p6, %p2336_p4 }
  0x77   : > { %2346 = shalt.err (!%p2343_p13)
}
  0x78   : > { %s2347_s11 = scalar_lea.vmem %s2653_s15, 512  ;;  %s2413_s8 = smov [#allocation7]  }
  0x79   : > { %p2348_p8 = scmp.ne.s32.totalorder %s2653_s15, %s2347_s11  ;;  %s2352_s18 = sshll.u32 %s2413_s8, 4  ;;  %s2353_s18 = int_to_ptr.vmem [resolvable:$false] %s2352_s18 }
  0x7a   : > { %s2354_s9 = scalar_lea.vmem %s2353_s18, 1024  ;;  %p2355_p11 = scmp.lt.s32.totalorder %s2653_s15, %s2353_s18 }
  0x7b   : > { %p2350_p12 = pnand %p2348_p8, %p2547_p1  ;;  %p2356_p2 = scmp.lt.s32.totalorder %s2354_s9, %s2347_s11 }
  0x7d   : > { %p2351_p0 = pneg %p2350_p12  ;;  %p2357_p5 = por %p2356_p2, %p2355_p11 }
  0x7f   : > { %p2358_p7 = pnand %p2357_p5, %p2351_p0 }
  0x81   : > { %2361 = shalt.err (!%p2358_p7)
}
  0x82   : > { %2138 = dma.hbm_to_vmem [thread:$0]  (!%p2521_p10), %s2651_s21, 512, %s2653_s15, %s412_s13, %s2411_s29, %s2411_s29, %s2412_s4  }
  0x83   : > { %p3130_p1 = scmp.ne.s32.totalorder %s3128_s19, 0 }
  0x84   : > { %s436_s28 = sand.u32 (!%p3130_p1), 1, %s2396_s14   ;;  %p3131_p4 = scmp.ne.s32.totalorder (!%p3130_p1), %s3124_s22, 0 }
  0x85   : > { %434 = sbr.rel (%p3130_p1) target bundleno = 1498 (0x5da), region = 48  ;;  %s2685_s30 = sshll.u32 (!%p3130_p1), %s436_s28, 4 }
  0x86   : > { %s437_s7 = scalar_lea.sflag (!%p3130_p1), [#allocation3], %s436_s28  ;;  %s440_s16 = scalar_lea.vmem (!%p3130_p1), [#allocation2], %s2685_s30 }
  0x8c   : > { %2379 = dma.done.wait (%p3131_p4), %s437_s7, 256  }
  0x8d   : > { %2381 = vsyncadd (%p3131_p4), %s437_s7, 4294967040  ;;  %s445_s24 = sand.u32 1, %s2492_s17   ;;  %s2116_s25 = smul.u32 20, %s436_s28 }
  0x8e   : > { %s446_s29 = scalar_lea.sflag [#allocation5], %s445_s24 }
  0x8f   : > { %s2693_s19 = scalar_lea.vmem [#allocation4], %s2116_s25 }
  0x90   : > { %2383 = dma.done.wait (%p3131_p4), %s446_s29, 1344  }
  0x91   : > { %2385 = vsyncadd (%p3131_p4), %s446_s29, 4294965952  ;;  %s1969_s4 = sshll.u32 %s436_s28, 6  ;;  %s1970_s21 = sshll.u32 %s436_s28, 5 }
  0x92   : > { %s2699_s15 = scalar_lea.vmem [#allocation6], %s1969_s4  ;;  %s464_s13 = scalar_lea.sflag [#allocation8], %s436_s28 }
  0x93   : > { %s2701_s20 = scalar_lea.vmem [#allocation7], %s1970_s21 }
  0x94   : > { %2387 = dma.done.wait (%p3131_p4), %s464_s13, 512  }
  0x95   : > { %2389 = vsyncadd (%p3131_p4), %s464_s13, 4294966784  ;;  %p540_p10 = scmp.lt.s32.totalorder %s2492_s17, 4  ;;  %v2414_v0 = vmov 0   ;;  %v2415_v1 = vmov 0.0   ;;  %vm2416_vm0 = vmmov 0   ;;  %vm621_vm1 = vcmask 261120  }
  0x96   : > { %2181 = vset.pattern.permute.xlu1 %v2414_v0  ;;  %2180 = vset.pattern.permute.xlu0 %v2414_v0  ;;  %v564_v11 = vld [vmem:[%s2701_s20] sm:$0xff]  ;;  %v565_v12 = vld [vmem:[%s2701_s20 + $0x8] sm:$0xff]  ;;  %v566_v13 = vld [vmem:[%s2701_s20 + $0x10] sm:$0xff]  ;;  %vm816_vm2 = vcmask 523264   ;;  %s2417_s7 = smov 64   ;;  %vm1002_vm3 = vcmask 1043456  }
  0x97   : > { %s2711_s27 = scalar_select %p540_p10, %s2492_s17, 4  ;;  %2087 = vmatprep.subr.bf16.mxu1 %v2415_v1  ;;  %2091 = vmatprep.mubr.msk.bf16.mxu1 %vm2416_vm0, %v2415_v1  ;;  %v567_v14 = vld [vmem:[%s2701_s20 + $0x18] sm:$0xff]  ;;  %v569_v17 = vunpack.c.h.bf16 %v564_v11  ;;  %v568_v18 = vunpack.c.l.bf16 %v564_v11  ;;  %v571_v19 = vunpack.c.h.bf16 %v565_v12  ;;  %v570_v20 = vunpack.c.l.bf16 %v565_v12  ;;  %v2207_v38 = vld [vmem:[%s2699_s15 + $0x4] ss:$8 sps:$4 sm:$0xff]   ;;  %v2205_v40 = vld [vmem:[%s2699_s15] ss:$8 sps:$4 sm:$0xff]  }
  0x98   : > { %663 = vmatprep.mubr.bf16.mxu0 %v2414_v0  ;;  %v573_v21 = vunpack.c.h.bf16 %v566_v13  ;;  %v575_v22 = vunpack.c.h.bf16 %v567_v14  ;;  %v572_v27 = vunpack.c.l.bf16 %v566_v13  ;;  %v574_v28 = vunpack.c.l.bf16 %v567_v14  ;;  %v2210_v41 = vld [vmem:[%s2699_s15 + $0x14] ss:$8 sps:$4 sm:$0xff]   ;;  %v2208_v42 = vld [vmem:[%s2699_s15 + $0x10] ss:$8 sps:$4 sm:$0xff]   ;;  %v2213_v43 = vld [vmem:[%s2699_s15 + $0x24] ss:$8 sps:$4 sm:$0xff]  }
  0x99   : > { %s2117_s22 = smul.u32 20, %s2711_s27  ;;  %s2031_s12 = sshll.u32 %s2711_s27, 5  ;;  %v2211_v44 = vld [vmem:[%s2699_s15 + $0x20] ss:$8 sps:$4 sm:$0xff]   ;;  %v2216_v45 = vld [vmem:[%s2699_s15 + $0x34] ss:$8 sps:$4 sm:$0xff]  }
  0x9a   : > { %s549_s8 = scalar_lea.vmem %s3104_s2, %s2031_s12  ;;  %v2214_v46 = vld [vmem:[%s2699_s15 + $0x30] ss:$8 sps:$4 sm:$0xff]   ;;  %v2219_v49 = vld [vmem:[%s2693_s19 + $0x10] ss:$0 sps:$4 sm:$0xff]   ;;  %vm995_vm4 = vcmask 326656   ;;  %vm1414_vm5 = vcmask 1048064  }
  0x9b   : > { %s544_s28 = scalar_lea.vmem %s3102_s0, %s2117_s22  ;;  %v562_v2 = vld [vmem:[%s549_s8 + $0x10] sm:$0xff]  ;;  %v563_v3 = vld [vmem:[%s549_s8 + $0x18] sm:$0xff]  ;;  %v560_v4 = vld [vmem:[%s549_s8] sm:$0xff]  ;;  %s2887_s20 = scalar_lea.vmem [#allocation10], %s2685_s30 }
  0x9c   : > { %588 = vperm.xlu1 %2181, %v562_v2   ;;  %578 = vperm.xlu0 %2180, %v560_v4   ;;  %v561_v5 = vld [vmem:[%s549_s8 + $0x8] sm:$0xff]  ;;  %v693_v7 = vpack.c.bf16 %v563_v3, %v562_v2  ;;  %v2202_v8 = vld [vmem:[%s544_s28] sm:$0xff]   ;;  %v2204_v10 = vld [vmem:[%s544_s28 + $0x10] ss:$0 sps:$4 sm:$0xff]   ;;  %s2956_s22 = scalar_lea.vmem [#allocation11], %s2685_s30  ;;  %p3132_p9 = scmp.ne.s32.totalorder %s3125_s23, 0 }
  0x9d   : > { %v692_v6 = vpack.c.bf16 %v561_v5, %v560_v4  ;;  %v2203_v9 = vld [vmem:[%s544_s28 + $0x8] sm:$0xff]   ;;  %v2217_v47 = vld [vmem:[%s2693_s19] sm:$0xff]   ;;  %s2023_s8 = sshll.u32 (%p3132_p9), %s2492_s17, 2 }
  0x9e   : > { %v2218_v48 = vld [vmem:[%s2693_s19 + $0x8] sm:$0xff]  }
  0x9f   : > { %2088 = vmatpush3.bf16.msra.mxu1 %v692_v6 }
  0xa0   : > { %593 = vperm.xlu1 %2181, %v563_v3   ;;  %583 = vperm.xlu0 %2180, %v561_v5  }
  0xa1   : > { %2089 = vmatprep.subr.bf16.mxu1 %v2415_v1 }
  0xa3   : > { %2090 = vmatpush3.bf16.msra.mxu1 %v693_v7 }
  0xa6   : > { %2092 = vmatmul.mubr.msk.bf16.vlgmr.msra.gmra.mrb[0].mxu1 %vm621_vm1, %v2202_v8 }
  0xa7   : > { %2095 = vmatprep.mubr.msk.bf16.mxu1 %vm2416_vm0, %v2415_v1 }
  0xae   : > { %2096 = vmatmul.mubr.msk.bf16.gmra.mrb[4].mxu1 %vm621_vm1, %v2203_v9 }
  0xaf   : > { %2099 = vmatprep.mubr.msk.bf16.mxu1 %vm2416_vm0, %v2415_v1 }
  0xb6   : > { %2100 = vmatmul.mubr.msk.bf16.gmra.mrb[8].mxu1 %vm621_vm1, %v2204_v10 }
  0xb7   : > { %1044 = vmatprep.mubr.bf16.mxu1 %v2414_v0 }
 0x11b   : > { %v2733_v15 = vpop.permute.xlu1 %588  ;;  %v2735_v16 = vpop.permute.xlu0 %578 }
 0x11c   : > { %v597_v25 = vmul.f32 %v2735_v16, %v569_v17  ;;  %v596_v26 = vmul.f32 %v2735_v16, %v568_v18  ;;  %v601_v31 = vmul.f32 %v2733_v15, %v573_v21  ;;  %v600_v35 = vmul.f32 %v2733_v15, %v572_v27 }
 0x11f   : > { %v2737_v23 = vpop.permute.xlu1 %593  ;;  %v2739_v24 = vpop.permute.xlu0 %583 }
 0x120   : > { %v599_v29 = vmul.f32 %v2739_v24, %v571_v19  ;;  %v598_v30 = vmul.f32 %v2739_v24, %v570_v20  ;;  %v603_v32 = vmul.f32 %v2737_v23, %v575_v22  ;;  %v602_v36 = vmul.f32 %v2737_v23, %v574_v28 }
 0x122   : > { %v605_v33 = vpack.c.bf16 %v599_v29, %v597_v25  ;;  %v604_v34 = vpack.c.bf16 %v598_v30, %v596_v26  ;;  %v607_v37 = vpack.c.bf16 %v603_v32, %v601_v31  ;;  %v606_v39 = vpack.c.bf16 %v602_v36, %v600_v35 }
 0x124   : > { %631 = vmatprep.subr.bf16.mxu0 %v605_v33 }
 0x125   : > { %632 = vmatpush1.bf16.msra.mxu0 %v604_v34 }
 0x126   : > { %633 = vmatprep.subr.bf16.mxu0 %v607_v37 }
 0x129   : > { %634 = vmatpush1.bf16.msra.mxu0 %v606_v39 }
 0x12a   : > { %826 = vmatprep.subr.bf16.mxu0 %v2207_v38 }
 0x12c   : > { %1981 = vmatmul.mubr.msk.bf16.vlgmr.msra.gmra.mrb[0].mxu0 %vm621_vm1, %v2202_v8 }
 0x12d   : > { %673 = vmatprep.mubr.bf16.mxu0 %v2414_v0  ;;  %827 = vmatpush1.bf16.msra.mxu0 %v2205_v40 }
 0x12e   : > { %828 = vmatprep.subr.bf16.mxu0 %v2210_v41 }
 0x131   : > { %829 = vmatpush1.bf16.msra.mxu0 %v2208_v42 }
 0x132   : > { %830 = vmatprep.subr.bf16.mxu0 %v2213_v43 }
 0x134   : > { %1982 = vmatmul.mubr.msk.bf16.gmra.mrb[4].mxu0 %vm621_vm1, %v2203_v9 }
 0x135   : > { %683 = vmatprep.mubr.bf16.mxu0 %v2414_v0  ;;  %831 = vmatpush1.bf16.msra.mxu0 %v2211_v44 }
 0x136   : > { %832 = vmatprep.subr.bf16.mxu0 %v2216_v45 }
 0x139   : > { %833 = vmatpush1.bf16.msra.mxu0 %v2214_v46 }
 0x13c   : > { %1983 = vmatmul.mubr.msk.bf16.gmra.mrb[8].mxu0 %vm621_vm1, %v2204_v10 }
 0x13d   : > { %858 = vmatprep.mubr.bf16.mxu0 %v2414_v0 }
 0x144   : > { %1998 = vmatmul.mubr.msk.bf16.vlgmr.msra.gmra.mrb[12].mxu0 %vm816_vm2, %v2217_v47 }
 0x145   : > { %868 = vmatprep.mubr.bf16.mxu0 %v2414_v0 }
 0x14c   : > { %1999 = vmatmul.mubr.msk.bf16.gmra.mrb[16].mxu0 %vm816_vm2, %v2218_v48  ;;  %v1186_v48 = vld [vmem:[%s3105_s3] sm:$0xff] }
 0x14d   : > { %878 = vmatprep.mubr.bf16.mxu0 %v2414_v0 }
 0x154   : > { %2000 = vmatmul.mubr.msk.bf16.gmra.mrb[20].mxu0 %vm816_vm2, %v2219_v49  ;;  %v1187_v49 = vld [vmem:[%s3105_s3 + $0x8] sm:$0xff] }
 0x179   : > { %v728_v50 = vpop.f32.mrb[0].mxu1 }
 0x17a   : > { %889 = vperm.xlu0 %2180, %v728_v50   ;;  %v2093_v51 = vpop.f32.mrb[1].mxu1  ;;  %v1290_v50 = vsub.f32 1.0, %v1186_v48 }
 0x17b   : > { %v731_v52 = vpop.f32.mrb[2].mxu1  ;;  %v1291_v51 = vsub.f32 1.0, %v1187_v49 }
 0x17c   : > { %894 = vperm.xlu1 %2181, %v731_v52   ;;  %v2094_v53 = vpop.f32.mrb[3].mxu1  ;;  %v1188_v52 = vld [vmem:[%s3105_s3 + $0x10] sm:$0xff] }
 0x17d   : > { %v1292_v53 = vsub.f32 1.0, %v1188_v52 }
 0x181   : > { %v736_v54 = vpop.f32.mrb[4].mxu1 }
 0x182   : > { %899 = vperm.xlu0 %2180, %v736_v54   ;;  %v2097_v55 = vpop.f32.mrb[5].mxu1  ;;  %v1189_v54 = vld [vmem:[%s3105_s3 + $0x18] sm:$0xff] }
 0x183   : > { %v739_v56 = vpop.f32.mrb[6].mxu1  ;;  %v1293_v55 = vsub.f32 1.0, %v1189_v54 }
 0x184   : > { %904 = vperm.xlu1 %2181, %v739_v56   ;;  %v2098_v57 = vpop.f32.mrb[7].mxu1 }
 0x189   : > { %v744_v58 = vpop.f32.mrb[8].mxu1 }
 0x18a   : > { %909 = vperm.xlu0 %2180, %v744_v58   ;;  %v2101_v59 = vpop.f32.mrb[9].mxu1 }
 0x18b   : > { %v747_v60 = vpop.f32.mrb[10].mxu1 }
 0x18c   : > { %v2102_v61 = vpop.f32.mrb[11].mxu1 }
 0x1f9   : > { %v890_v14 = vpop.permute.xlu0 %889 }
 0x1fb   : > { %v895_v18 = vpop.permute.xlu1 %894 }
 0x1ff   : > { %v2771_v62 = vpop.f32.mrb[0].mxu0 }
 0x200   : > { %v2773_v63 = vpop.f32.mrb[1].mxu0 }
 0x201   : > { %v2775_v1 = vpop.f32.mrb[2].mxu0  ;;  %v900_v30 = vpop.permute.xlu0 %899 }
 0x202   : > { %v972_v2 = vpack.c.bf16 %v2775_v1, %v2771_v62  ;;  %v2779_v3 = vpop.f32.mrb[3].mxu0 }
 0x203   : > { %v905_v32 = vpop.permute.xlu1 %904 }
 0x207   : > { %v2781_v4 = vpop.f32.mrb[4].mxu0 }
 0x208   : > { %v2783_v5 = vpop.f32.mrb[5].mxu0 }
 0x209   : > { %v2785_v6 = vpop.f32.mrb[6].mxu0  ;;  %v910_v41 = vpop.permute.xlu0 %909 }
 0x20a   : > { %v975_v7 = vpack.c.bf16 %v2785_v6, %v2781_v4  ;;  %v2789_v8 = vpop.f32.mrb[7].mxu0 }
 0x20f   : > { %v2791_v9 = vpop.f32.mrb[8].mxu0 }
 0x210   : > { %v2793_v10 = vpop.f32.mrb[9].mxu0  ;;  %v978_v62 = vpack.c.bf16 %v2791_v9, %v2791_v9 }
 0x211   : > { %v689_v11 = vpop.f32.mrb[10].mxu0 }
 0x212   : > { %v690_v12 = vpop.f32.mrb[11].mxu0 }
 0x217   : > { %v860_v13 = vpop.f32.mrb[12].mxu0 }
 0x218   : > { %v862_v17 = vpop.f32.mrb[13].mxu0  ;;  %v912_v20 = vmul.f32 %v890_v14, %v860_v13 }
 0x219   : > { %v864_v19 = vpop.f32.mrb[14].mxu0  ;;  %v913_v25 = vmul.f32 %v890_v14, %v862_v17 }
 0x21a   : > { %v914_v21 = vmul.f32 %v895_v18, %v864_v19  ;;  %v866_v22 = vpop.f32.mrb[15].mxu0 }
 0x21b   : > { %v915_v26 = vmul.f32 %v895_v18, %v866_v22 }
 0x21c   : > { %v2182_v27 = vpack.i.bf16 %v914_v21, %v912_v20 }
 0x21d   : > { %v2192_v28 = vpack.i.bf16 %v915_v26, %v913_v25  ;;  %v2220_v26 = vld [vmem:[%s440_s16] sm:$0xff]  }
 0x21e   : > { %2183 = vrot.lane.b32.xlu1 %v2182_v27, %s2417_s7 }
 0x21f   : > { %v870_v29 = vpop.f32.mrb[16].mxu0 }
 0x220   : > { %v872_v31 = vpop.f32.mrb[17].mxu0  ;;  %v916_v34 = vmul.f32 %v900_v30, %v870_v29 }
 0x221   : > { %v874_v33 = vpop.f32.mrb[18].mxu0  ;;  %v917_v37 = vmul.f32 %v900_v30, %v872_v31  ;;  %v2221_v30 = vld [vmem:[%s440_s16 + $0x8] sm:$0xff]   ;;  %s2878_s16 = scalar_lea.vmem [#allocation9], %s2685_s30  ;;  %s1977_s30 = sshll.u32 %s2711_s27, 3 }
 0x222   : > { %v918_v35 = vmul.f32 %v905_v32, %v874_v33  ;;  %v876_v36 = vpop.f32.mrb[19].mxu0  ;;  %s553_s11 = scalar_lea.vmem %s3112_s10, %s1977_s30  ;;  %s3133_s27 = sld [smem:[#allocation19_spill]] (%p3132_p9) }
 0x223   : > { %v919_v38 = vmul.f32 %v905_v32, %v876_v36 }
 0x224   : > { %v2187_v39 = vpack.i.bf16 %v918_v35, %v916_v34 }
 0x225   : > { %v2197_v40 = vpack.i.bf16 %v919_v38, %v917_v37 }
 0x226   : > { %2188 = vrot.lane.b32.xlu0 %v2187_v39, %s2417_s7 }
 0x227   : > { %v880_v42 = vpop.f32.mrb[20].mxu0 }
 0x228   : > { %v920_v43 = vmul.f32 %v910_v41, %v880_v42  ;;  %v882_v44 = vpop.f32.mrb[21].mxu0  ;;  %s1555_s28 = scalar_lea.vmem (%p3132_p9), %s3133_s27, %s2023_s8 }
 0x229   : > { %v884_v45 = vpop.f32.mrb[22].mxu0  ;;  %v921_v47 = vmul.f32 %v910_v41, %v882_v44 }
 0x22a   : > { %2193 = vrot.lane.b32.xlu0 %v2192_v28, %s2417_s7  ;;  %948 = vrot.lane.b32.xlu1 %v920_v43, %s2417_s7  ;;  %v885_v46 = vpop.f32.mrb[23].mxu0 }
 0x22e   : > { %2198 = vrot.lane.b32.xlu1 %v2197_v40, %s2417_s7  ;;  %950 = vrot.lane.b32.xlu0 %v921_v47, %s2417_s7 }
 0x232   : > { %1192 = vperm.xlu1 %2181, %v1186_v48   ;;  %1197 = vperm.xlu0 %2180, %v1187_v49  }
 0x236   : > { %1296 = vperm.xlu1 %2181, %v1290_v50   ;;  %1301 = vperm.xlu0 %2180, %v1291_v51  }
 0x23a   : > { %1202 = vperm.xlu1 %2181, %v1188_v52   ;;  %1306 = vperm.xlu0 %2180, %v1292_v53  }
 0x23e   : > { %1207 = vperm.xlu1 %2181, %v1189_v54   ;;  %1311 = vperm.xlu0 %2180, %v1293_v55  }
 0x290   : > { %v2184_v56 = vpop.permute.xlu1 %2183 }
 0x291   : > { %v2186_v57 = vunpack.i.h.bf16 %v2184_v56  ;;  %v2185_v58 = vunpack.i.l.bf16 %v2184_v56 }
 0x293   : > { %v967_v59 = vsel %vm816_vm2, %v2773_v63, %v2185_v58  ;;  %v968_v60 = vsel %vm816_vm2, %v2779_v3, %v2186_v57 }
 0x294   : > { %v973_v61 = vpack.c.bf16 %v968_v60, %v967_v59 }
 0x296   : > { %1012 = vmatprep.subr.bf16.mxu1 %v973_v61 }
 0x297   : > { %1013 = vmatpush1.bf16.msra.mxu1 %v972_v2 }
 0x298   : > { %v2189_v11 = vpop.permute.xlu0 %2188 }
 0x299   : > { %v2191_v12 = vunpack.i.h.bf16 %v2189_v11  ;;  %v2190_v13 = vunpack.i.l.bf16 %v2189_v11 }
 0x29b   : > { %v969_v14 = vsel %vm816_vm2, %v2783_v5, %v2190_v13  ;;  %v970_v17 = vsel %vm816_vm2, %v2789_v8, %v2191_v12 }
 0x29c   : > { %v2194_v18 = vpop.permute.xlu0 %2193  ;;  %v949_v63 = vpop.permute.xlu1 %948  ;;  %v976_v19 = vpack.c.bf16 %v970_v17, %v969_v14 }
 0x29d   : > { %v2196_v20 = vunpack.i.h.bf16 %v2194_v18  ;;  %v2195_v3 = vunpack.i.l.bf16 %v2194_v18  ;;  %v971_v21 = vsel %vm816_vm2, %v2793_v10, %v949_v63  ;;  %v1004_v10 = vsel %vm1002_vm3, %v978_v62, 0 }
 0x29e   : > { %v979_v1 = vpack.c.bf16 %v971_v21, %v971_v21  ;;  %1014 = vmatprep.subr.bf16.mxu1 %v976_v19 }
 0x29f   : > { %1015 = vmatpush1.bf16.msra.mxu1 %v975_v7  ;;  %v952_v2 = vsel %vm816_vm2, %v2185_v58, %v2195_v3  ;;  %v953_v5 = vsel %vm816_vm2, %v2186_v57, %v2196_v20 }
 0x2a0   : > { %2003 = vmatprep.subr.msk.bf16.mxu1 %vm1002_vm3, %v979_v1  ;;  %v2199_v8 = vpop.permute.xlu1 %2198  ;;  %v974_v9 = vpack.c.bf16 %v953_v5, %v952_v2  ;;  %v951_v7 = vpop.permute.xlu0 %950 }
 0x2a1   : > { %v2201_v22 = vunpack.i.h.bf16 %v2199_v8  ;;  %v2200_v25 = vunpack.i.l.bf16 %v2199_v8  ;;  %v956_v28 = vsel %vm816_vm2, %v949_v63, %v951_v7 }
 0x2a2   : > { %v980_v29 = vpack.c.bf16 %v956_v28, %v956_v28 }
 0x2a3   : > { %1017 = vmatpush1.bf16.msra.mxu1 %v1004_v10  ;;  %v954_v4 = vsel %vm816_vm2, %v2190_v13, %v2200_v25  ;;  %v955_v6 = vsel %vm816_vm2, %v2191_v12, %v2201_v22 }
 0x2a4   : > { %2103 = vmatprep.subr.bf16.mxu1 %v974_v9  ;;  %v977_v27 = vpack.c.bf16 %v955_v6, %v954_v4  ;;  %v1010_v31 = vsel %vm1002_vm3, %v980_v29, 0 }
 0x2a6   : > { %2004 = vmatmul.mubr.msk.bf16.vlgmr.msra.gmra.mrb[12].mxu1 %vm995_vm4, %v2220_v26 }
 0x2a7   : > { %2104 = vmatpush3.bf16.msra.mxu1 %v974_v9  ;;  %1054 = vmatprep.mubr.bf16.mxu1 %v2414_v0 }
 0x2a8   : > { %2105 = vmatprep.subr.bf16.mxu1 %v977_v27 }
 0x2ab   : > { %2106 = vmatpush3.bf16.msra.mxu1 %v977_v27 }
 0x2ac   : > { %2113 = vmatprep.subr.msk.bf16.mxu1 %vm1002_vm3, %v980_v29 }
 0x2ae   : > { %2005 = vmatmul.mubr.msk.bf16.gmra.mrb[16].mxu1 %vm995_vm4, %v2221_v30 }
 0x2af   : > { %2108 = vmatpush3.bf16.msra.mxu1 %v1010_v31  ;;  %2109 = vmatprep.mubr.msk.bf16.mxu1 %vm995_vm4, %v2220_v26 }
 0x2b1   : > { %v2849_v32 = vpop.permute.xlu1 %1192  ;;  %v2851_v33 = vpop.permute.xlu0 %1197 }
 0x2b5   : > { %v2853_v34 = vpop.permute.xlu1 %1296  ;;  %v2856_v37 = vpop.permute.xlu0 %1301 }
 0x2b6   : > { %2110 = vmatmul.mubr.msk.bf16.vlgmr.msra.gmra.mrb[20].mxu1 %vm995_vm4, %v2221_v30  ;;  %vm1460_vm4 = vcmask 516096  }
 0x2b9   : > { %v2875_v51 = vpop.permute.xlu1 %1202  ;;  %v2881_v52 = vpop.permute.xlu0 %1306 }
 0x2bd   : > { %v1208_v2 = vpop.permute.xlu1 %1207  ;;  %v1312_v22 = vpop.permute.xlu0 %1311 }
 0x379   : > { %v1046_v0 = vpop.f32.mrb[12].mxu1 }
 0x37a   : > { %v1114_v35 = vmul.f32 %v1046_v0, %v2735_v16  ;;  %v1048_v36 = vpop.f32.mrb[13].mxu1 }
 0x37b   : > { %v1050_v38 = vpop.f32.mrb[14].mxu1  ;;  %v1115_v43 = vmul.f32 %v1048_v36, %v2735_v16 }
 0x37c   : > { %v2859_v39 = vmul.f32 %v2849_v32, %v1114_v35  ;;  %v2862_v40 = vmul.f32 %v2853_v34, %v1114_v35  ;;  %v1117_v41 = vmul.f32 %v1050_v38, %v2739_v24  ;;  %v1052_v42 = vpop.f32.mrb[15].mxu1 }
 0x37d   : > { %v1118_v44 = vmul.f32 %v1052_v42, %v2739_v24 }
 0x37e   : > { %v1231_v45 = vmul.f32 %v2859_v39, %v1114_v35  ;;  %v1335_v46 = vmul.f32 %v2862_v40, %v1114_v35  ;;  %v2047_v47 = vpack.c.bf16 %v1117_v41, %v1114_v35  ;;  %v2870_v48 = vmul.f32 %v2851_v33, %v1117_v41 }
 0x37f   : > { %v2873_v49 = vmul.f32 %v2856_v37, %v1117_v41  ;;  %v2057_v50 = vpack.c.bf16 %v1118_v44, %v1115_v43 }
 0x380   : > { %2048 = vst [vmem:[%s2878_s16] sm:$0xff] %v2047_v47   ;;  %v1235_v53 = vsel %vm816_vm2, %v1231_v45, 0.0  ;;  %v1232_v54 = vmul.f32 %v2870_v48, %v1117_v41  ;;  %v1339_v57 = vsel %vm816_vm2, %v1335_v46, 0.0  ;;  %v1428_v58 = vsel %vm1414_vm5, %v1231_v45, 0.0 }
 0x381   : > { %v1336_v55 = vmul.f32 %v2873_v49, %v1117_v41  ;;  %2058 = vst [vmem:[%s2887_s20] sm:$0xff] %v2057_v50   ;;  %v1056_v56 = vpop.f32.mrb[16].mxu1  ;;  %v1481_v59 = vsel %vm1414_vm5, %v1335_v46, 0.0 }
 0x382   : > { %v1120_v60 = vmul.f32 %v1056_v56, %v2733_v15  ;;  %v1058_v61 = vpop.f32.mrb[17].mxu1  ;;  %v1236_v11 = vsel %vm816_vm2, %v1232_v54, 0.0  ;;  %v1429_v13 = vsel %vm1414_vm5, %v1232_v54, 0.0 }
 0x383   : > { %v1340_v12 = vsel %vm816_vm2, %v1336_v55, 0.0  ;;  %v1482_v14 = vsel %vm1414_vm5, %v1336_v55, 0.0  ;;  %v1060_v17 = vpop.f32.mrb[18].mxu1  ;;  %v1237_v18 = vadd.f32 %v1236_v11, %v1235_v53  ;;  %v1430_v19 = vadd.f32 %v1429_v13, %v1428_v58 }
 0x384   : > { %v1341_v63 = vadd.f32 %v1340_v12, %v1339_v57  ;;  %v1483_v20 = vadd.f32 %v1482_v14, %v1481_v59  ;;  %v1062_v3 = vpop.f32.mrb[19].mxu1  ;;  %v2899_v21 = vmul.f32 %v2875_v51, %v1120_v60  ;;  %v2902_v62 = vmul.f32 %v2881_v52, %v1120_v60 }
 0x385   : > { %v1123_v1 = vmul.f32 %v1060_v17, %v2737_v23  ;;  %v1121_v5 = vmul.f32 %v1058_v61, %v2733_v15  ;;  %v1124_v8 = vmul.f32 %v1062_v3, %v2737_v23 }
 0x386   : > { %v1233_v25 = vmul.f32 %v2899_v21, %v1120_v60  ;;  %v1337_v10 = vmul.f32 %v2902_v62, %v1120_v60 }
 0x387   : > { %v2052_v9 = vpack.c.bf16 %v1123_v1, %v1120_v60  ;;  %v2909_v26 = vmul.f32 %v1208_v2, %v1123_v1  ;;  %v2911_v4 = vmul.f32 %v1312_v22, %v1123_v1  ;;  %v2062_v6 = vpack.c.bf16 %v1124_v8, %v1121_v5 }
 0x388   : > { %v1238_v7 = vsel %vm816_vm2, %v1233_v25, 0.0  ;;  %v1342_v27 = vsel %vm816_vm2, %v1337_v10, 0.0  ;;  %v1431_v28 = vsel %vm1414_vm5, %v1233_v25, 0.0  ;;  %v1484_v29 = vsel %vm1414_vm5, %v1337_v10, 0.0 }
 0x389   : > { %2074 = vst [vmem:[%s2878_s16 + $0x8] sm:$0xff] %v2052_v9   ;;  %v2111_v30 = vpop.f32.mrb[20].mxu1  ;;  %v1239_v31 = vadd.f32 %v1238_v7, %v1237_v18  ;;  %v1343_v0 = vadd.f32 %v1342_v27, %v1341_v63  ;;  %v1432_v35 = vadd.f32 %v1431_v28, %v1430_v19  ;;  %v1485_v36 = vadd.f32 %v1484_v29, %v1483_v20 }
 0x38a   : > { %2075 = vst [vmem:[%s2887_s20 + $0x8] sm:$0xff] %v2062_v6   ;;  %v1099_v38 = vpop.f32.mrb[21].mxu1  ;;  %v1234_v41 = vmul.f32 %v2909_v26, %v1123_v1  ;;  %v1338_v42 = vmul.f32 %v2911_v4, %v1123_v1 }
 0x38b   : > { %v2922_v43 = vmul.f32 %v1099_v38, %v2735_v16  ;;  %v2112_v44 = vpop.f32.mrb[22].mxu1  ;;  %v2935_v16 = vmul.f32 %v2111_v30, %v2733_v15 }
 0x38c   : > { %v1102_v45 = vpop.f32.mrb[23].mxu1  ;;  %v1240_v46 = vsel %vm816_vm2, %v1234_v41, 0.0  ;;  %v1344_v47 = vsel %vm816_vm2, %v1338_v42, 0.0  ;;  %v1433_v50 = vsel %vm1414_vm5, %v1234_v41, 0.0  ;;  %v1486_v53 = vsel %vm1414_vm5, %v1338_v42, 0.0 }
 0x38d   : > { %1398 = vrot.lane.b32.xlu1 %v2922_v43, %s2417_s7  ;;  %v1241_v54 = vadd.f32 %v1240_v46, %v1239_v31  ;;  %v1345_v55 = vadd.f32 %v1344_v47, %v1343_v0  ;;  %v2930_v56 = vadd.f32 %v1433_v50, %v1432_v35  ;;  %v2932_v57 = vadd.f32 %v1486_v53, %v1485_v36 }
 0x38e   : > { %v2938_v58 = vmul.f32 %v2112_v44, %v2737_v23  ;;  %v1255_v61 = vmul.f32 %v2849_v32, %v2922_v43  ;;  %v1359_v13 = vmul.f32 %v2853_v34, %v2922_v43  ;;  %v1257_v15 = vmul.f32 %v2875_v51, %v2935_v16 }
 0x38f   : > { %v1242_v59 = vrot.slane %v1241_v54, 4  ;;  %v1346_v60 = vrot.slane %v1345_v55, 4  ;;  %v1119_v14 = vmul.f32 %v1102_v45, %v2739_v24  ;;  %v1361_v32 = vmul.f32 %v2881_v52, %v2935_v16 }
 0x390   : > { %v2072_v23 = vpack.c.bf16 %v2938_v58, %v2935_v16  ;;  %v1259_v18 = vmul.f32 %v1255_v61, %v2922_v43  ;;  %v1258_v63 = vmul.f32 %v1208_v2, %v2938_v58  ;;  %v1363_v52 = vmul.f32 %v1359_v13, %v2922_v43 }
 0x391   : > { %1402 = vrot.lane.b32.xlu1 %v2935_v16, %s2417_s7  ;;  %v1243_v11 = vadd.f32 %v1242_v59, %v1241_v54  ;;  %v1347_v12 = vadd.f32 %v1346_v60, %v1345_v55  ;;  %v2067_v34 = vpack.c.bf16 %v1119_v14, %v2922_v43  ;;  %v1256_v51 = vmul.f32 %v2851_v33, %v1119_v14 }
 0x392   : > { %2076 = vst [vmem:[%s2956_s22 + $0x8] sm:$0xff] %v2072_v23   ;;  %v1360_v24 = vmul.f32 %v2856_v37, %v1119_v14  ;;  %1400 = vrot.lane.b32.xlu0 %v1119_v14, %s2417_s7  ;;  %v1362_v20 = vmul.f32 %v1312_v22, %v2938_v58  ;;  %v1261_v3 = vmul.f32 %v1257_v15, %v2935_v16  ;;  %v1263_v37 = vsel %vm816_vm2, %v1259_v18, 0.0 }
 0x393   : > { %v1244_v17 = vrot.slane %v1243_v11, 2  ;;  %v1348_v19 = vrot.slane %v1347_v12, 2  ;;  %2068 = vst [vmem:[%s2956_s22] sm:$0xff] %v2067_v34   ;;  %v1260_v1 = vmul.f32 %v1256_v51, %v1119_v14  ;;  %v1365_v8 = vmul.f32 %v1361_v32, %v2935_v16 }
 0x394   : > { %v1364_v2 = vmul.f32 %v1360_v24, %v1119_v14  ;;  %v1262_v33 = vmul.f32 %v1258_v63, %v2938_v58  ;;  %v1366_v22 = vmul.f32 %v1362_v20, %v2938_v58  ;;  %v1367_v6 = vsel %vm816_vm2, %v1363_v52, 0.0 }
 0x395   : > { %v1245_v5 = vadd.f32 %v1244_v17, %v1243_v11  ;;  %v1349_v25 = vadd.f32 %v1348_v19, %v1347_v12  ;;  %v1264_v10 = vsel %vm816_vm2, %v1260_v1, 0.0  ;;  %v1266_v27 = vsel %vm816_vm2, %v1261_v3, 0.0 }
 0x396   : > { %1404 = vrot.lane.b32.xlu0 %v2938_v58, %s2417_s7  ;;  %v1265_v9 = vadd.f32 %v1264_v10, %v1263_v37  ;;  %v1368_v7 = vsel %vm816_vm2, %v1364_v2, 0.0  ;;  %v1370_v31 = vsel %vm816_vm2, %v1365_v8, 0.0  ;;  %v1268_v0 = vsel %vm816_vm2, %v1262_v33, 0.0 }
 0x397   : > { %v1369_v28 = vadd.f32 %v1368_v7, %v1367_v6  ;;  %v1246_v29 = vrot.slane %v1245_v5, 1  ;;  %v1350_v36 = vrot.slane %v1349_v25, 1  ;;  %v1372_v41 = vsel %vm816_vm2, %v1366_v22, 0.0 }
 0x398   : > { %v1267_v30 = vadd.f32 %v1266_v27, %v1265_v9  ;;  %v1214_v46 = vmul.f32 %v2859_v39, %v2922_v43  ;;  %v1215_v47 = vmul.f32 %v2870_v48, %v1119_v14  ;;  %v1216_v53 = vmul.f32 %v2899_v21, %v2935_v16 }
 0x399   : > { %v1371_v35 = vadd.f32 %v1370_v31, %v1369_v28  ;;  %v2980_v44 = vadd.f32 %v1246_v29, %v1245_v5  ;;  %v1217_v54 = vmul.f32 %v2909_v26, %v2938_v58  ;;  %v1318_v55 = vmul.f32 %v2862_v40, %v2922_v43 }
 0x39a   : > { %v1269_v38 = vadd.f32 %v1268_v0, %v1267_v30  ;;  %v2991_v59 = vadd.f32 %v1350_v36, %v1349_v25  ;;  %v1218_v11 = vsel %vm816_vm2, %v1214_v46, 0.0  ;;  %v1219_v12 = vsel %vm816_vm2, %v1215_v47, 0.0 }
 0x39b   : > { %v1373_v42 = vadd.f32 %v1372_v41, %v1371_v35  ;;  %2222 = vrsqrt.f32 %v2980_v44  ;;  %v1220_v15 = vadd.f32 %v1219_v12, %v1218_v11  ;;  %v1221_v23 = vsel %vm816_vm2, %v1216_v53, 0.0 }
 0x39c   : > { %v1270_v45 = vrot.slane %v1269_v38, 4  ;;  %v1319_v32 = vmul.f32 %v2873_v49, %v1119_v14  ;;  %v1320_v43 = vmul.f32 %v2902_v62, %v2935_v16  ;;  %v1321_v18 = vmul.f32 %v2911_v4, %v2938_v58 }
 0x39d   : > { %v1374_v50 = vrot.slane %v1373_v42, 4  ;;  %2224 = vrsqrt.f32 %v2991_v59  ;;  %v1222_v19 = vadd.f32 %v1221_v23, %v1220_v15  ;;  %v1223_v51 = vsel %vm816_vm2, %v1217_v54, 0.0 }
 0x39e   : > { %v1271_v60 = vadd.f32 %v1270_v45, %v1269_v38  ;;  %v1322_v24 = vsel %vm816_vm2, %v1318_v55, 0.0  ;;  %v1323_v52 = vsel %vm816_vm2, %v1319_v32, 0.0  ;;  %v1325_v16 = vsel %vm816_vm2, %v1320_v43, 0.0 }
 0x39f   : > { %v1375_v61 = vadd.f32 %v1374_v50, %v1373_v42  ;;  %v1224_v3 = vadd.f32 %v1223_v51, %v1222_v19  ;;  %v1324_v14 = vadd.f32 %v1323_v52, %v1322_v24  ;;  %v1327_v8 = vsel %vm816_vm2, %v1321_v18, 0.0 }
 0x3a0   : > { %v1272_v13 = vrot.slane %v1271_v60, 2  ;;  %vm1250_vm6 = vcmp.eq.f32.partialorder %v2980_v44, inf  ;;  %vm1252_vm7 = vcmp.eq.f32.partialorder %v2980_v44, 0.0  ;;  %v1253_v27 = vand.u32 2147483648, %v2980_v44 }
 0x3a1   : > { %v1376_v17 = vrot.slane %v1375_v61, 2  ;;  %v1326_v58 = vadd.f32 %v1325_v16, %v1324_v14  ;;  %v1225_v22 = vrot.slane %v1224_v3, 4  ;;  %vm1354_vm8 = vcmp.eq.f32.partialorder %v2991_v59, inf }
 0x3a2   : > { %v1273_v63 = vadd.f32 %v1272_v13, %v1271_v60  ;;  %vm1356_vm9 = vcmp.eq.f32.partialorder %v2991_v59, 0.0  ;;  %v1357_v28 = vand.u32 2147483648, %v2991_v59  ;;  %v1435_v51 = vrot.slane %v2930_v56, 4 }
 0x3a3   : > { %v1377_v34 = vadd.f32 %v1376_v17, %v1375_v61  ;;  %v1328_v33 = vadd.f32 %v1327_v8, %v1326_v58  ;;  %v1226_v38 = vadd.f32 %v1225_v22, %v1224_v3  ;;  %v1488_v24 = vrot.slane %v2932_v57, 4 }
 0x3a4   : > { %v1274_v20 = vrot.slane %v1273_v63, 1 }
 0x3a5   : > { %v1378_v1 = vrot.slane %v1377_v34, 1  ;;  %v2223_v25 = vpop.eup %2222  ;;  %v1329_v6 = vrot.slane %v1328_v33, 4  ;;  %v1227_v61 = vrot.slane %v1226_v38, 2  ;;  %v1489_v3 = vadd.f32 %v1488_v24, %v2932_v57 }
 0x3a6   : > { %v1275_v2 = vadd.f32 %v1274_v20, %v1273_v63  ;;  %v1249_v10 = vmul.f32 %v2223_v25, %v2980_v44  ;;  %v1436_v20 = vadd.f32 %v1435_v51, %v2930_v56 }
 0x3a7   : > { %v1379_v5 = vadd.f32 %v1378_v1, %v1377_v34  ;;  %v2225_v37 = vpop.eup %2224  ;;  %v1330_v45 = vadd.f32 %v1329_v6, %v1328_v33  ;;  %v1490_v33 = vrot.slane %v1489_v3, 2 }
 0x3a8   : > { %2226 = vrsqrt.f32 %v1275_v2  ;;  %v1353_v9 = vmul.f32 %v2225_v37, %v2991_v59  ;;  %vm1278_vm10 = vcmp.eq.f32.partialorder %v1275_v2, inf  ;;  %v1251_v31 = vsel %vm1250_vm6, %v2980_v44, %v1249_v10 }
 0x3a9   : > { %2228 = vrsqrt.f32 %v1379_v5  ;;  %vm1280_vm11 = vcmp.eq.f32.partialorder %v1275_v2, 0.0  ;;  %v1281_v35 = vand.u32 2147483648, %v1275_v2  ;;  %vm1382_vm12 = vcmp.eq.f32.partialorder %v1379_v5, inf }
 0x3aa   : > { %v1355_v0 = vsel %vm1354_vm8, %v2991_v59, %v1353_v9  ;;  %v1385_v42 = vand.u32 2147483648, %v1379_v5  ;;  %v1254_v47 = vsel %vm1252_vm7, %v1253_v27, %v1251_v31  ;;  %vm1384_vm13 = vcmp.eq.f32.partialorder %v1379_v5, 0.0 }
 0x3ab   : > { %v1358_v55 = vsel %vm1356_vm9, %v1357_v28, %v1355_v0  ;;  %v1331_v12 = vrot.slane %v1330_v45, 2  ;;  %v1228_v44 = vadd.f32 %v1227_v61, %v1226_v38  ;;  %v1437_v25 = vrot.slane %v1436_v20, 2 }
 0x3ac   : > { %v1491_v27 = vadd.f32 %v1490_v33, %v1489_v3  ;;  %vm1524_vm6 = vcmask 1041408   ;;  %vm1526_vm7 = vcmask 1042432  }
 0x3ad   : > { %v1332_v15 = vadd.f32 %v1331_v12, %v1330_v45  ;;  %v1229_v23 = vrot.slane %v1228_v44, 1  ;;  %v1438_v22 = vadd.f32 %v1437_v25, %v1436_v20 }
 0x3af   : > { %v1333_v17 = vrot.slane %v1332_v15, 1  ;;  %v1230_v32 = vadd.f32 %v1229_v23, %v1228_v44  ;;  %v1439_v0 = vrot.slane %v1438_v22, 1 }
 0x3b1   : > { %v1334_v18 = vadd.f32 %v1333_v17, %v1332_v15 }
 0x3b2   : > { %v2227_v7 = vpop.eup %2226 }
 0x3b3   : > { %v2229_v29 = vpop.eup %2228  ;;  %v1277_v30 = vmul.f32 %v2227_v7, %v1275_v2 }
 0x3b4   : > { %v1381_v36 = vmul.f32 %v2229_v29, %v1379_v5 }
 0x3b5   : > { %v1279_v41 = vsel %vm1278_vm10, %v1275_v2, %v1277_v30 }
 0x3b6   : > { %v1282_v46 = vsel %vm1280_vm11, %v1281_v35, %v1279_v41  ;;  %v1383_v50 = vsel %vm1382_vm12, %v1379_v5, %v1381_v36  ;;  %v1492_v35 = vrot.slane %v1491_v27, 1  ;;  %v1440_v36 = vadd.f32 %v1439_v0, %v1438_v22  ;;  %v1577_v22 = vld [vmem:[%s2878_s16 + $0xc] sm:$0xf] (%p3132_p9) }
 0x3b7   : > { %1449 = vrot.lane.b32.xlu1 %v1282_v46, %s2417_s7  ;;  %v1283_v53 = vmul.f32 %v1282_v46, %v1254_v47  ;;  %v1386_v54 = vsel %vm1384_vm13, %v1385_v42, %v1383_v50  ;;  %1578 = vst [vmem:[%s1555_s28 + $0x3c] sm:$0xf] (%p3132_p9), %v1577_v22 }
 0x3b8   : > { %1502 = vrot.lane.b32.xlu0 %v1386_v54, %s2417_s7  ;;  %v1387_v60 = vmul.f32 %v1386_v54, %v1358_v55  ;;  %v1493_v38 = vadd.f32 %v1492_v35, %v1491_v27  ;;  %vm1443_vm14 = vcmp.eq.f32.partialorder %v1440_v36, inf  ;;  %vm1445_vm0 = vcmp.eq.f32.partialorder %v1440_v36, 0.0 }
 0x3b9   : > { %v1284_v11 = vmax.f32 %v1283_v53, 1e-08  ;;  %v1446_v53 = vand.u32 2147483648, %v1440_v36 }
 0x3ba   : > { %v1388_v13 = vmax.f32 %v1387_v60, 1e-08  ;;  %vm1496_vm15 = vcmp.eq.f32.partialorder %v1493_v38, inf  ;;  %v1499_v60 = vand.u32 2147483648, %v1493_v38  ;;  %vm1498_vm1 = vcmp.eq.f32.partialorder %v1493_v38, 0.0 }
 0x3bb   : > { %2230 = vrcp.f32 %v1284_v11 }
 0x3bc   : > { %2232 = vrcp.f32 %v1388_v13 }
 0x3bd   : > { %2234 = vrsqrt.f32 %v1440_v36 }
 0x3be   : > { %2236 = vrsqrt.f32 %v1493_v38 }
 0x3c5   : > { %v2231_v43 = vpop.eup %2230 }
 0x3c6   : > { %v2233_v63 = vpop.eup %2232  ;;  %v3024_v19 = vmul.f32 %v2231_v43, %v1230_v32 }
 0x3c7   : > { %v3026_v59 = vmul.f32 %v2233_v63, %v1334_v18  ;;  %v2235_v41 = vpop.eup %2234 }
 0x3c8   : > { %v1442_v42 = vmul.f32 %v2235_v41, %v1440_v36 }
 0x3ca   : > { %v1444_v47 = vsel %vm1443_vm14, %v1440_v36, %v1442_v42 }
 0x3cb   : > { %v1447_v11 = vsel %vm1445_vm0, %v1446_v53, %v1444_v47 }
 0x3ff   : > { %v1399_v34 = vpop.permute.xlu1 %1398 }
 0x400   : > { %v1410_v14 = vmul.f32 %v1399_v34, %v2859_v39  ;;  %v1464_v1 = vmul.f32 %v1399_v34, %v2862_v40 }
 0x402   : > { %v1415_v37 = vsel %vm1414_vm5, %v1410_v14, 0.0  ;;  %v1468_v56 = vsel %vm1414_vm5, %v1464_v1, 0.0 }
 0x403   : > { %v1403_v52 = vpop.permute.xlu1 %1402 }
 0x404   : > { %v1412_v2 = vmul.f32 %v1403_v52, %v2899_v21  ;;  %v1466_v16 = vmul.f32 %v1403_v52, %v2902_v62  ;;  %v1401_v5 = vpop.permute.xlu0 %1400 }
 0x405   : > { %v1411_v58 = vmul.f32 %v1401_v5, %v2870_v48  ;;  %v1465_v8 = vmul.f32 %v1401_v5, %v2873_v49 }
 0x406   : > { %v1418_v40 = vsel %vm1414_vm5, %v1412_v2, 0.0  ;;  %v1471_v21 = vsel %vm1414_vm5, %v1466_v16, 0.0  ;;  %v1287_v2 = vsel %vm816_vm2, %v3024_v19, 0.0  ;;  %v1391_v16 = vsel %vm816_vm2, %v3026_v59, 0.0 }
 0x407   : > { %v1416_v57 = vsel %vm1414_vm5, %v1411_v58, 0.0  ;;  %v1469_v39 = vsel %vm1414_vm5, %v1465_v8, 0.0 }
 0x408   : > { %v1417_v62 = vadd.f32 %v1416_v57, %v1415_v37  ;;  %v1470_v10 = vadd.f32 %v1469_v39, %v1468_v56  ;;  %v1405_v9 = vpop.permute.xlu0 %1404 }
 0x409   : > { %v1413_v48 = vmul.f32 %v1405_v9, %v2909_v26  ;;  %v1467_v49 = vmul.f32 %v1405_v9, %v2911_v4  ;;  %v2237_v26 = vpop.eup %2236  ;;  %v1571_v9 = vld [vmem:[%s2878_s16] sm:$0xf] (%p3132_p9) }
 0x40a   : > { %v1419_v6 = vadd.f32 %v1418_v40, %v1417_v62  ;;  %v1472_v7 = vadd.f32 %v1471_v21, %v1470_v10  ;;  %v1495_v45 = vmul.f32 %v2237_v26, %v1493_v38  ;;  %1572 = vst [vmem:[%s1555_s28] sm:$0xf] (%p3132_p9), %v1571_v9 }
 0x40b   : > { %v1420_v28 = vsel %vm1414_vm5, %v1413_v48, 0.0  ;;  %v1473_v29 = vsel %vm1414_vm5, %v1467_v49, 0.0  ;;  %vm1522_vm5 = vcmask 1040384   ;;  %v1573_v48 = vld [vmem:[%s2878_s16 + $0x4] sm:$0xf] (%p3132_p9) }
 0x40c   : > { %v1421_v30 = vadd.f32 %v1420_v28, %v1419_v6  ;;  %v1474_v31 = vadd.f32 %v1473_v29, %v1472_v7  ;;  %v1497_v54 = vsel %vm1496_vm15, %v1493_v38, %v1495_v45  ;;  %v1575_v49 = vld [vmem:[%s2878_s16 + $0x8] sm:$0xf] (%p3132_p9)  ;;  %1574 = vst [vmem:[%s1555_s28 + $0x14] sm:$0xf] (%p3132_p9), %v1573_v48 }
 0x40d   : > { %v1500_v13 = vsel %vm1498_vm1, %v1499_v60, %v1497_v54  ;;  %1576 = vst [vmem:[%s1555_s28 + $0x28] sm:$0xf] (%p3132_p9), %v1575_v49 }
 0x40e   : > { %v1422_v4 = vrot.slane %v1421_v30, 4  ;;  %v1475_v46 = vrot.slane %v1474_v31, 4 }
 0x410   : > { %v1423_v50 = vadd.f32 %v1422_v4, %v1421_v30  ;;  %v1476_v55 = vadd.f32 %v1475_v46, %v1474_v31 }
 0x412   : > { %v1424_v15 = vrot.slane %v1423_v50, 2  ;;  %v1477_v17 = vrot.slane %v1476_v55, 2 }
 0x414   : > { %v1425_v18 = vadd.f32 %v1424_v15, %v1423_v50  ;;  %v1478_v63 = vadd.f32 %v1477_v17, %v1476_v55 }
 0x416   : > { %v1426_v34 = vrot.slane %v1425_v18, 1  ;;  %v1479_v51 = vrot.slane %v1478_v63, 1 }
 0x418   : > { %v1427_v24 = vadd.f32 %v1426_v34, %v1425_v18  ;;  %v1480_v20 = vadd.f32 %v1479_v51, %v1478_v63 }
 0x429   : > { %v1450_v61 = vpop.permute.xlu1 %1449 }
 0x42a   : > { %v1452_v12 = vmul.f32 %v1450_v61, %v1447_v11  ;;  %v1503_v44 = vpop.permute.xlu0 %1502 }
 0x42b   : > { %v1505_v23 = vmul.f32 %v1503_v44, %v1500_v13 }
 0x42c   : > { %v1453_v32 = vmax.f32 %v1452_v12, 1e-08 }
 0x42d   : > { %v1506_v43 = vmax.f32 %v1505_v23, 1e-08 }
 0x42e   : > { %2238 = vrcp.f32 %v1453_v32 }
 0x42f   : > { %2240 = vrcp.f32 %v1506_v43 }
 0x438   : > { %v2239_v52 = vpop.eup %2238 }
 0x439   : > { %v2241_v3 = vpop.eup %2240  ;;  %v1455_v14 = vmul.f32 %v2239_v52, %v1427_v24 }
 0x43a   : > { %v1508_v1 = vmul.f32 %v2241_v3, %v1480_v20 }
 0x43b   : > { %1457 = vrot.lane.b32.xlu1 %v1455_v14, %s2417_s7 }
 0x43c   : > { %1510 = vrot.lane.b32.xlu0 %v1508_v1, %s2417_s7 }
 0x45b   : > { %1288 = vadd.xlane.f32.xlu0 %v1287_v2 }
 0x45f   : > { %1392 = vadd.xlane.f32.xlu0 %v1391_v16 }
 0x4ad   : > { %v1458_v5 = vpop.permute.xlu1 %1457 }
 0x4ae   : > { %v1461_v58 = vsel %vm1460_vm4, %v1458_v5, 0.0  ;;  %v1511_v8 = vpop.permute.xlu0 %1510 }
 0x4af   : > { %1462 = vadd.xlane.f32.xlu1 %v1461_v58  ;;  %v1513_v25 = vsel %vm1460_vm4, %v1511_v8, 0.0 }
 0x4b3   : > { %1514 = vadd.xlane.f32.xlu1 %v1513_v25 }
 0x4e8   : > { %v1289_v33 = vpop.xlane.xlu0 %1288 }
 0x4ec   : > { %v1393_v56 = vpop.xlane.xlu0 %1392 }
 0x4ed   : > { %v1523_v39 = vsel %vm1522_vm5, %v1289_v33, %v1393_v56 }
 0x53c   : > { %v1463_v37 = vpop.xlane.xlu1 %1462 }
 0x53d   : > { %v1517_v57 = vrot.slane %v1463_v37, 6 }
 0x53f   : > { %v1525_v59 = vsel %vm1524_vm6, %v1523_v39, %v1517_v57 }
 0x540   : > { %v1515_v19 = vpop.xlane.xlu1 %1514 }
 0x541   : > { %v1520_v40 = vrot.slane %v1515_v19, 5 }
 0x543   : > { %v1527_v21 = vsel %vm1526_vm7, %v1525_v59, %v1520_v40 }
 0x544   : > { %v1528_v62 = vsel %vm1002_vm3, %v1527_v21, 0.0 }
 0x545   : > { %1531 = vperm.xlu0 %2180, %v1528_v62  }
 0x5bf   : > { %1553 = sbr.rel (!%p3132_p9) target bundleno = 1478 (0x5c6), region = 68 }
 0x5c4   : > { %v1532_v10 = vpop.permute.xlu0 %1531 }
 0x5c5   : > { %1534 = vst [vmem:[%s553_s11] sm:$0xff] %v1532_v10 }
 0x5c6 PF: > { %p3134_p3 = scmp.ne.s32.totalorder %s3125_s23, 0 }
 0x5c7   : > { %s2024_s7 = sshll.u32 (%p3134_p3), %s2492_s17, 2  ;;  %v1627_v6 = vld [vmem:[%s2887_s20] sm:$0xf] (%p3134_p3)  ;;  %v1629_v7 = vld [vmem:[%s2887_s20 + $0x4] sm:$0xf] (%p3134_p3)  ;;  %s3135_s29 = sld [smem:[#allocation20_spill]] (%p3134_p3) }
 0x5c8   : > { %1609 = sbr.rel (!%p3134_p3) target bundleno = 1488 (0x5d0), region = 109  ;;  %v1631_v27 = vld [vmem:[%s2887_s20 + $0x8] sm:$0xf] (%p3134_p3)  ;;  %v1633_v28 = vld [vmem:[%s2887_s20 + $0xc] sm:$0xf] (%p3134_p3) }
 0x5cd   : > { %s1611_s19 = scalar_lea.vmem (%p3134_p3), %s3135_s29, %s2024_s7 }
 0x5ce   : > { %1628 = vst [vmem:[%s1611_s19] sm:$0xf] (%p3134_p3), %v1627_v6  ;;  %1630 = vst [vmem:[%s1611_s19 + $0x14] sm:$0xf] (%p3134_p3), %v1629_v7 }
 0x5cf   : > { %1632 = vst [vmem:[%s1611_s19 + $0x28] sm:$0xf] %v1631_v27  ;;  %1634 = vst [vmem:[%s1611_s19 + $0x3c] sm:$0xf] %v1633_v28 }
 0x5d0 PF: > { %p3136_p6 = scmp.ne.s32.totalorder %s3125_s23, 0 }
 0x5d1   : > { %s2025_s4 = sshll.u32 (%p3136_p6), %s2492_s17, 2  ;;  %v1683_v29 = vld [vmem:[%s2956_s22] sm:$0xf] (%p3136_p6)  ;;  %v1685_v30 = vld [vmem:[%s2956_s22 + $0x4] sm:$0xf] (%p3136_p6)  ;;  %s3137_s13 = sld [smem:[#allocation21_spill]] (%p3136_p6) }
 0x5d2   : > { %1665 = sbr.rel (!%p3136_p6) target bundleno = 1498 (0x5da), region = 150  ;;  %v1687_v31 = vld [vmem:[%s2956_s22 + $0x8] sm:$0xf] (%p3136_p6)  ;;  %v1689_v0 = vld [vmem:[%s2956_s22 + $0xc] sm:$0xf] (%p3136_p6) }
 0x5d7   : > { %s1667_s16 = scalar_lea.vmem (%p3136_p6), %s3137_s13, %s2025_s4 }
 0x5d8   : > { %1684 = vst [vmem:[%s1667_s16] sm:$0xf] (%p3136_p6), %v1683_v29  ;;  %1686 = vst [vmem:[%s1667_s16 + $0x14] sm:$0xf] (%p3136_p6), %v1685_v30 }
 0x5d9   : > { %1688 = vst [vmem:[%s1667_s16 + $0x28] sm:$0xf] %v1687_v31  ;;  %1690 = vst [vmem:[%s1667_s16 + $0x3c] sm:$0xf] %v1689_v0 }
 0x5da PF: > { %s3138_s16 = sld [smem:[#allocation16_spill]]  ;;  %s3139_s23 = sld [smem:[#allocation15_spill]] }
 0x5db   : > { %s3140_s15 = sld [smem:[#allocation17_spill]]  ;;  %s3141_s13 = smov %s2396_s14 }
 0x5e0   : > { %p27_p13 = scmp.ge.s32.totalorder %s3138_s16, 7   ;;  %s3142_s14 = smov %s3139_s23 }
 0x5e2   :  { %29 = sbr.rel (!%p27_p13) target bundleno = 12 (0xc), region = 290 }
 0x5e9   :  { %1755 = vsyncpa [#allocation3], 1 }
 0x5ea   :  { %1757 = vsyncpa [#allocation3 + $0x1], 1 }
 0x5eb   :  { %1758 = vsyncpa [#allocation5], 1 }
 0x5ec   :  { %1760 = vsyncpa [#allocation5 + $0x1], 1 }
 0x5ed   :  { %1761 = vsyncpa [#allocation8], 1 }
 0x5ee   :  { %1763 = vsyncpa [#allocation8 + $0x1], 1 }

// kernel: net_forward.3
= control target key start
LH: loop header
LB: loop body
LE: loop exit
PB: predicated region body
PF: predicated region fallthrough
CT: control target
= control target key end

     0   :  { %s25734_s0 = inlined_call_operand.vmem [shape: bf16[32,640], index: 0, kind: input, shape index: {}]   ;;  %s25735_s1 = inlined_call_operand.vmem [shape: bf16[32,640], index: 1, kind: input, shape index: {}]   ;;  %s25736_s2 = inlined_call_operand.vmem [shape: bf16[32,640], index: 2, kind: input, shape index: {}]   ;;  %s25737_s3 = inlined_call_operand.vmem [shape: bf16[8,32], index: 3, kind: input, shape index: {}]   ;;  %s25738_s4 = inlined_call_operand.vmem [shape: bf16[8,32], index: 4, kind: input, shape index: {}]   ;;  %s25739_s5 = inlined_call_operand.vmem [shape: bf16[640,640], index: 5, kind: input, shape index: {}]   ;;  %s25740_s6 = inlined_call_operand.vmem [shape: f32[1,640], index: 6, kind: input, shape index: {}]   ;;  %s25741_s7 = inlined_call_operand.vmem [shape: bf16[640,640], index: 7, kind: input, shape index: {}]   ;;  %s25742_s8 = inlined_call_operand.vmem [shape: f32[1,640], index: 8, kind: input, shape index: {}]   ;;  %s25743_s9 = inlined_call_operand.vmem [shape: bf16[640,320], index: 9, kind: input, shape index: {}]   ;;  %s25744_s10 = inlined_call_operand.vmem [shape: bf16[320,128], index: 10, kind: input, shape index: {}]   ;;  %s25745_s11 = inlined_call_operand.vmem [shape: bf16[3,640,320], index: 11, kind: input, shape index: {}]   ;;  %s25746_s12 = inlined_call_operand.vmem [shape: f32[3,1,320], index: 12, kind: input, shape index: {}]   ;;  %s25747_s13 = inlined_call_operand.vmem [shape: bf16[3,640,320], index: 13, kind: input, shape index: {}]   ;;  %s25748_s14 = inlined_call_operand.vmem [shape: f32[3,1,320], index: 14, kind: input, shape index: {}]   ;;  %s25749_s15 = inlined_call_operand.vmem [shape: bf16[3,320,320], index: 15, kind: input, shape index: {}]   ;;  %s25750_s16 = inlined_call_operand.vmem [shape: bf16[3,320,128], index: 16, kind: input, shape index: {}]   ;;  %s25751_s17 = inlined_call_operand.hbm [shape: f32[8,128], index: 17, kind: output, shape index: {0}]   ;;  %s25752_s18 = inlined_call_operand.hbm [shape: f32[8,128], index: 18, kind: output, shape index: {1}]   ;;  %s25753_s19 = inlined_call_operand.hbm [shape: f32[8,128], index: 19, kind: output, shape index: {2}]   ;;  %s25754_s20 = inlined_call_operand.hbm [shape: f32[8,128], index: 20, kind: output, shape index: {3}]  }
   0x1   :  { %25760 = sst [smem:[#allocation12_spill]] %s25734_s0 }
   0x2   :  { %25761 = sst [smem:[#allocation13_spill]] %s25735_s1 }
   0x3   :  { %25762 = sst [smem:[#allocation14_spill]] %s25736_s2 }
   0x4   :  { %25763 = sst [smem:[#allocation15_spill]] %s25737_s3 }
   0x5   :  { %25764 = sst [smem:[#allocation16_spill]] %s25738_s4 }
   0x6   :  { %26 = vsyncpa [#allocation3], 0 }
   0x7   :  { %27 = vsyncpa [#allocation5], 0  ;;  %v18254_v0 = vld [vmem:[%s25739_s5 + $0x4] ss:$20 sps:$4 sm:$0xff]   ;;  %v18256_v1 = vld [vmem:[%s25739_s5 + $0xc] ss:$20 sps:$4 sm:$0xff]  }
   0x8   :  { %1876 = vmatprep.subr.bf16.mxu0 %v18254_v0  ;;  %v18258_v2 = vld [vmem:[%s25739_s5] ss:$20 sps:$4 sm:$0xff]   ;;  %v18259_v3 = vld [vmem:[%s25739_s5 + $0x8] ss:$20 sps:$4 sm:$0xff]   ;;  %2005 = vmatprep.subr.bf16.mxu1 %v18256_v1  ;;  %v18265_v7 = vld [vmem:[%s25739_s5 + $0x30] ss:$20 sps:$4 sm:$0xff]  }
   0x9   :  { %v18260_v4 = vld [vmem:[%s25739_s5 + $0x2c] ss:$20 sps:$4 sm:$0xff]   ;;  %1877 = vmatpush1.bf16.msra.mxu0 %v18258_v2  ;;  %2006 = vmatpush1.bf16.msra.mxu1 %v18259_v3  ;;  %v18262_v5 = vld [vmem:[%s25739_s5 + $0x34] ss:$20 sps:$4 sm:$0xff]   ;;  %v18268_v9 = vld [vmem:[%s25739_s5 + $0x5c] ss:$20 sps:$4 sm:$0xff]  }
   0xa   :  { %v18264_v6 = vld [vmem:[%s25739_s5 + $0x28] ss:$20 sps:$4 sm:$0xff]   ;;  %1878 = vmatprep.subr.bf16.mxu0 %v18260_v4  ;;  %2007 = vmatprep.subr.bf16.mxu1 %v18262_v5  ;;  %v18270_v10 = vld [vmem:[%s25739_s5 + $0x50] ss:$20 sps:$4 sm:$0xff]   ;;  %v18271_v11 = vld [vmem:[%s25739_s5 + $0x58] ss:$20 sps:$4 sm:$0xff]  }
   0xb   :  { %v18266_v8 = vld [vmem:[%s25739_s5 + $0x54] ss:$20 sps:$4 sm:$0xff]   ;;  %v18272_v12 = vld [vmem:[%s25739_s5 + $0x7c] ss:$20 sps:$4 sm:$0xff]   ;;  %v18274_v13 = vld [vmem:[%s25739_s5 + $0x84] ss:$20 sps:$4 sm:$0xff]  }
   0xc   :  { %v18276_v14 = vld [vmem:[%s25739_s5 + $0x78] ss:$20 sps:$4 sm:$0xff]   ;;  %v18277_v15 = vld [vmem:[%s25739_s5 + $0x80] ss:$20 sps:$4 sm:$0xff]   ;;  %v18283_v19 = vld [vmem:[%s25739_s5 + $0xa8] ss:$20 sps:$4 sm:$0xff]  }
   0xd   :  { %1879 = vmatpush1.bf16.msra.mxu0 %v18264_v6  ;;  %2008 = vmatpush1.bf16.msra.mxu1 %v18265_v7  ;;  %v18278_v16 = vld [vmem:[%s25739_s5 + $0xa4] ss:$20 sps:$4 sm:$0xff]   ;;  %v18280_v17 = vld [vmem:[%s25739_s5 + $0xac] ss:$20 sps:$4 sm:$0xff]   ;;  %v18286_v21 = vld [vmem:[%s25739_s5 + $0xd4] ss:$20 sps:$4 sm:$0xff]  }
   0xe   :  { %1880 = vmatprep.subr.bf16.mxu0 %v18266_v8  ;;  %2009 = vmatprep.subr.bf16.mxu1 %v18268_v9  ;;  %v18282_v18 = vld [vmem:[%s25739_s5 + $0xa0] ss:$20 sps:$4 sm:$0xff]   ;;  %v18288_v22 = vld [vmem:[%s25739_s5 + $0xc8] ss:$20 sps:$4 sm:$0xff]   ;;  %v18289_v23 = vld [vmem:[%s25739_s5 + $0xd0] ss:$20 sps:$4 sm:$0xff]  }
   0xf   :  { %v18284_v20 = vld [vmem:[%s25739_s5 + $0xcc] ss:$20 sps:$4 sm:$0xff]   ;;  %v18290_v24 = vld [vmem:[%s25739_s5 + $0xf4] ss:$20 sps:$4 sm:$0xff]   ;;  %v18292_v25 = vld [vmem:[%s25739_s5 + $0xfc] ss:$20 sps:$4 sm:$0xff]  }
  0x10   :  { %v18294_v26 = vld [vmem:[%s25739_s5 + $0xf0] ss:$20 sps:$4 sm:$0xff]   ;;  %v18295_v27 = vld [vmem:[%s25739_s5 + $0xf8] ss:$20 sps:$4 sm:$0xff]   ;;  %v18301_v31 = vld [vmem:[%s25739_s5 + $0x120] ss:$20 sps:$4 sm:$0xff]  }
  0x11   :  { %1881 = vmatpush1.bf16.msra.mxu0 %v18270_v10  ;;  %2010 = vmatpush1.bf16.msra.mxu1 %v18271_v11  ;;  %v18296_v28 = vld [vmem:[%s25739_s5 + $0x11c] ss:$20 sps:$4 sm:$0xff]   ;;  %v18298_v29 = vld [vmem:[%s25739_s5 + $0x124] ss:$20 sps:$4 sm:$0xff]   ;;  %v18304_v33 = vld [vmem:[%s25739_s5 + $0x14c] ss:$20 sps:$4 sm:$0xff]  }
  0x12   :  { %1882 = vmatprep.subr.bf16.mxu0 %v18272_v12  ;;  %2011 = vmatprep.subr.bf16.mxu1 %v18274_v13  ;;  %v18300_v30 = vld [vmem:[%s25739_s5 + $0x118] ss:$20 sps:$4 sm:$0xff]   ;;  %v18306_v34 = vld [vmem:[%s25739_s5 + $0x140] ss:$20 sps:$4 sm:$0xff]   ;;  %v18307_v35 = vld [vmem:[%s25739_s5 + $0x148] ss:$20 sps:$4 sm:$0xff]  }
  0x13   :  { %v18302_v32 = vld [vmem:[%s25739_s5 + $0x144] ss:$20 sps:$4 sm:$0xff]   ;;  %v18308_v36 = vld [vmem:[%s25739_s5 + $0x16c] ss:$20 sps:$4 sm:$0xff]   ;;  %v18310_v37 = vld [vmem:[%s25739_s5 + $0x174] ss:$20 sps:$4 sm:$0xff]  }
  0x14   :  { %v18312_v38 = vld [vmem:[%s25739_s5 + $0x168] ss:$20 sps:$4 sm:$0xff]   ;;  %v18313_v39 = vld [vmem:[%s25739_s5 + $0x170] ss:$20 sps:$4 sm:$0xff]   ;;  %v18319_v43 = vld [vmem:[%s25739_s5 + $0x198] ss:$20 sps:$4 sm:$0xff]  }
  0x15   :  { %1883 = vmatpush1.bf16.msra.mxu0 %v18276_v14  ;;  %2012 = vmatpush1.bf16.msra.mxu1 %v18277_v15  ;;  %v18314_v40 = vld [vmem:[%s25739_s5 + $0x194] ss:$20 sps:$4 sm:$0xff]   ;;  %v18316_v41 = vld [vmem:[%s25739_s5 + $0x19c] ss:$20 sps:$4 sm:$0xff]   ;;  %v18322_v45 = vld [vmem:[%s25739_s5 + $0x1c4] ss:$20 sps:$4 sm:$0xff]  }
  0x16   :  { %1884 = vmatprep.subr.bf16.mxu0 %v18278_v16  ;;  %2013 = vmatprep.subr.bf16.mxu1 %v18280_v17  ;;  %v18318_v42 = vld [vmem:[%s25739_s5 + $0x190] ss:$20 sps:$4 sm:$0xff]   ;;  %v18324_v46 = vld [vmem:[%s25739_s5 + $0x1b8] ss:$20 sps:$4 sm:$0xff]   ;;  %s25765_s3 = sld [smem:[#allocation12_spill]]  ;;  %vm20413_vm0 = vmmov 0  }
  0x17   :  { %v18320_v44 = vld [vmem:[%s25739_s5 + $0x1bc] ss:$20 sps:$4 sm:$0xff]   ;;  %v18325_v48 = vld [vmem:[%s25739_s5 + $0x1c0] ss:$20 sps:$4 sm:$0xff]   ;;  %v18326_v49 = vld [vmem:[%s25739_s5 + $0x1e4] ss:$20 sps:$4 sm:$0xff]  }
  0x18   :  { %v18328_v50 = vld [vmem:[%s25739_s5 + $0x1ec] ss:$20 sps:$4 sm:$0xff]   ;;  %v18331_v52 = vld [vmem:[%s25739_s5 + $0x1e8] ss:$20 sps:$4 sm:$0xff]   ;;  %v18337_v56 = vld [vmem:[%s25739_s5 + $0x210] ss:$20 sps:$4 sm:$0xff]  }
  0x19   :  { %1885 = vmatpush1.bf16.msra.mxu0 %v18282_v18  ;;  %2014 = vmatpush1.bf16.msra.mxu1 %v18283_v19  ;;  %v18330_v51 = vld [vmem:[%s25739_s5 + $0x1e0] ss:$20 sps:$4 sm:$0xff]   ;;  %v18336_v55 = vld [vmem:[%s25739_s5 + $0x208] ss:$20 sps:$4 sm:$0xff]   ;;  %v18342_v59 = vld [vmem:[%s25739_s5 + $0x230] ss:$20 sps:$4 sm:$0xff]  }
  0x1a   :  { %1886 = vmatprep.subr.bf16.mxu0 %v18284_v20  ;;  %2015 = vmatprep.subr.bf16.mxu1 %v18286_v21  ;;  %v18332_v53 = vld [vmem:[%s25739_s5 + $0x20c] ss:$20 sps:$4 sm:$0xff]   ;;  %v18334_v54 = vld [vmem:[%s25739_s5 + $0x214] ss:$20 sps:$4 sm:$0xff]   ;;  %v18340_v58 = vld [vmem:[%s25739_s5 + $0x23c] ss:$20 sps:$4 sm:$0xff]  }
  0x1b   :  { %v18338_v57 = vld [vmem:[%s25739_s5 + $0x234] ss:$20 sps:$4 sm:$0xff]   ;;  %v18343_v60 = vld [vmem:[%s25739_s5 + $0x238] ss:$20 sps:$4 sm:$0xff]   ;;  %v18344_v61 = vld [vmem:[%s25739_s5 + $0x25c] ss:$20 sps:$4 sm:$0xff]  }
  0x1c   :  { %v20667_v47 = vld [vmem:[%s25765_s3 + $0x4] ss:$20 sps:$4 sm:$0xff]   ;;  %v18349_v0 = vld [vmem:[%s25739_s5 + $0x260] ss:$20 sps:$4 sm:$0xff]   ;;  %v18355_v4 = vld [vmem:[%s25739_s5 + $0x288] ss:$20 sps:$4 sm:$0xff]  }
  0x1d   :  { %1887 = vmatpush1.bf16.msra.mxu0 %v18288_v22  ;;  %2016 = vmatpush1.bf16.msra.mxu1 %v18289_v23  ;;  %v18346_v62 = vld [vmem:[%s25739_s5 + $0x264] ss:$20 sps:$4 sm:$0xff]   ;;  %v18357_v2 = vld [vmem:[%s25739_s5 + $0x28c] ss:$20 sps:$4 sm:$0xff]   ;;  %v18364_v7 = vld [vmem:[%s25739_s5 + $0x2b4] ss:$20 sps:$4 sm:$0xff]  }
  0x1e   :  { %1888 = vmatprep.subr.bf16.mxu0 %v18290_v24  ;;  %2017 = vmatprep.subr.bf16.mxu1 %v18292_v25  ;;  %v18348_v63 = vld [vmem:[%s25739_s5 + $0x258] ss:$20 sps:$4 sm:$0xff]   ;;  %v18352_v3 = vld [vmem:[%s25739_s5 + $0x280] ss:$20 sps:$4 sm:$0xff]   ;;  %v18359_v8 = vld [vmem:[%s25739_s5 + $0x2a8] ss:$20 sps:$4 sm:$0xff]  }
  0x1f   :  { %1908 = vmatprep.mubr.bf16.mxu0 %v20667_v47  ;;  %2037 = vmatprep.mubr.bf16.mxu1 %v20667_v47  ;;  %v18354_v1 = vld [vmem:[%s25739_s5 + $0x284] ss:$20 sps:$4 sm:$0xff]   ;;  %v20737_v5 = vld [vmem:[%s25765_s3] ss:$20 sps:$4 sm:$0xff]   ;;  %v18370_v11 = vld [vmem:[%s25739_s5 + $0x2dc] ss:$20 sps:$4 sm:$0xff]  }
  0x20   :  { %v18361_v6 = vld [vmem:[%s25739_s5 + $0x2ac] ss:$20 sps:$4 sm:$0xff]   ;;  %v18362_v9 = vld [vmem:[%s25739_s5 + $0x2b0] ss:$20 sps:$4 sm:$0xff]   ;;  %v18367_v10 = vld [vmem:[%s25739_s5 + $0x2d4] ss:$20 sps:$4 sm:$0xff]  }
  0x21   :  { %1889 = vmatpush1.bf16.msra.mxu0 %v18294_v26  ;;  %2018 = vmatpush1.bf16.msra.mxu1 %v18295_v27  ;;  %v18365_v12 = vld [vmem:[%s25739_s5 + $0x2d0] ss:$20 sps:$4 sm:$0xff]   ;;  %v18368_v13 = vld [vmem:[%s25739_s5 + $0x2d8] ss:$20 sps:$4 sm:$0xff]   ;;  %v18374_v17 = vld [vmem:[%s25739_s5 + $0x300] ss:$20 sps:$4 sm:$0xff]  }
  0x22   :  { %1890 = vmatprep.subr.bf16.mxu0 %v18296_v28  ;;  %2019 = vmatprep.subr.bf16.mxu1 %v18298_v29  ;;  %v18373_v14 = vld [vmem:[%s25739_s5 + $0x2fc] ss:$20 sps:$4 sm:$0xff]   ;;  %v18376_v15 = vld [vmem:[%s25739_s5 + $0x304] ss:$20 sps:$4 sm:$0xff]   ;;  %v18382_v19 = vld [vmem:[%s25739_s5 + $0x32c] ss:$20 sps:$4 sm:$0xff]  }
  0x23   :  { %v18371_v16 = vld [vmem:[%s25739_s5 + $0x2f8] ss:$20 sps:$4 sm:$0xff]   ;;  %v18377_v20 = vld [vmem:[%s25739_s5 + $0x320] ss:$20 sps:$4 sm:$0xff]   ;;  %v18380_v21 = vld [vmem:[%s25739_s5 + $0x328] ss:$20 sps:$4 sm:$0xff]  }
  0x24   :  { %v18379_v18 = vld [vmem:[%s25739_s5 + $0x324] ss:$20 sps:$4 sm:$0xff]   ;;  %v18385_v22 = vld [vmem:[%s25739_s5 + $0x34c] ss:$20 sps:$4 sm:$0xff]   ;;  %v18388_v23 = vld [vmem:[%s25739_s5 + $0x354] ss:$20 sps:$4 sm:$0xff]  }
  0x25   :  { %1891 = vmatpush1.bf16.msra.mxu0 %v18300_v30  ;;  %2020 = vmatpush1.bf16.msra.mxu1 %v18301_v31  ;;  %v18383_v24 = vld [vmem:[%s25739_s5 + $0x348] ss:$20 sps:$4 sm:$0xff]   ;;  %v18386_v25 = vld [vmem:[%s25739_s5 + $0x350] ss:$20 sps:$4 sm:$0xff]   ;;  %v18392_v29 = vld [vmem:[%s25739_s5 + $0x378] ss:$20 sps:$4 sm:$0xff]  }
  0x26   :  { %1892 = vmatprep.subr.bf16.mxu0 %v18302_v32  ;;  %2021 = vmatprep.subr.bf16.mxu1 %v18304_v33  ;;  %v18391_v26 = vld [vmem:[%s25739_s5 + $0x374] ss:$20 sps:$4 sm:$0xff]   ;;  %v18394_v27 = vld [vmem:[%s25739_s5 + $0x37c] ss:$20 sps:$4 sm:$0xff]   ;;  %v20816_v30 = vld [vmem:[%s25765_s3 + $0xc] ss:$20 sps:$4 sm:$0xff]  }
  0x27   :  { %v18389_v28 = vld [vmem:[%s25739_s5 + $0x370] ss:$20 sps:$4 sm:$0xff]   ;;  %v18395_v33 = vld [vmem:[%s25739_s5 + $0x398] ss:$20 sps:$4 sm:$0xff]   ;;  %s25766_s1 = sld [smem:[#allocation15_spill]]  ;;  %vm3740_vm1 = vcmask 261120  }
  0x28   :  { %v18397_v31 = vld [vmem:[%s25739_s5 + $0x39c] ss:$20 sps:$4 sm:$0xff]   ;;  %v18400_v32 = vld [vmem:[%s25739_s5 + $0x3a4] ss:$20 sps:$4 sm:$0xff]  }
  0x29   :  { %1893 = vmatpush1.bf16.msra.mxu0 %v18306_v34  ;;  %2022 = vmatpush1.bf16.msra.mxu1 %v18307_v35  ;;  %v18398_v34 = vld [vmem:[%s25739_s5 + $0x3a0] ss:$20 sps:$4 sm:$0xff]   ;;  %v18403_v35 = vld [vmem:[%s25739_s5 + $0x3c4] ss:$20 sps:$4 sm:$0xff]  }
  0x2a   :  { %1894 = vmatprep.subr.bf16.mxu0 %v18308_v36  ;;  %2023 = vmatprep.subr.bf16.mxu1 %v18310_v37  ;;  %v18406_v36 = vld [vmem:[%s25739_s5 + $0x3cc] ss:$20 sps:$4 sm:$0xff]  }
  0x2b   :  { %v18401_v37 = vld [vmem:[%s25739_s5 + $0x3c0] ss:$20 sps:$4 sm:$0xff]  }
  0x2d   :  { %1895 = vmatpush1.bf16.msra.mxu0 %v18312_v38  ;;  %2024 = vmatpush1.bf16.msra.mxu1 %v18313_v39  ;;  %v18404_v38 = vld [vmem:[%s25739_s5 + $0x3c8] ss:$20 sps:$4 sm:$0xff]   ;;  %v18409_v39 = vld [vmem:[%s25739_s5 + $0x3ec] ss:$20 sps:$4 sm:$0xff]  }
  0x2e   :  { %1896 = vmatprep.subr.bf16.mxu0 %v18314_v40  ;;  %2025 = vmatprep.subr.bf16.mxu1 %v18316_v41  ;;  %v18412_v40 = vld [vmem:[%s25739_s5 + $0x3f4] ss:$20 sps:$4 sm:$0xff]  }
  0x2f   :  { %v18407_v41 = vld [vmem:[%s25739_s5 + $0x3e8] ss:$20 sps:$4 sm:$0xff]  }
  0x31   :  { %1897 = vmatpush1.bf16.msra.mxu0 %v18318_v42  ;;  %2026 = vmatpush1.bf16.msra.mxu1 %v18319_v43  ;;  %v18410_v42 = vld [vmem:[%s25739_s5 + $0x3f0] ss:$20 sps:$4 sm:$0xff]   ;;  %v18415_v43 = vld [vmem:[%s25739_s5 + $0x414] ss:$20 sps:$4 sm:$0xff]  }
  0x32   :  { %1898 = vmatprep.subr.bf16.mxu0 %v18320_v44  ;;  %2027 = vmatprep.subr.bf16.mxu1 %v18322_v45  ;;  %v18418_v44 = vld [vmem:[%s25739_s5 + $0x41c] ss:$20 sps:$4 sm:$0xff]  }
  0x33   :  { %v18413_v45 = vld [vmem:[%s25739_s5 + $0x410] ss:$20 sps:$4 sm:$0xff]  }
  0x35   :  { %1899 = vmatpush1.bf16.msra.mxu0 %v18324_v46  ;;  %2028 = vmatpush1.bf16.msra.mxu1 %v18325_v48  ;;  %v18416_v46 = vld [vmem:[%s25739_s5 + $0x418] ss:$20 sps:$4 sm:$0xff]   ;;  %v18421_v48 = vld [vmem:[%s25739_s5 + $0x43c] ss:$20 sps:$4 sm:$0xff]  }
  0x36   :  { %1900 = vmatprep.subr.bf16.mxu0 %v18326_v49  ;;  %2029 = vmatprep.subr.bf16.mxu1 %v18328_v50  ;;  %v18424_v49 = vld [vmem:[%s25739_s5 + $0x444] ss:$20 sps:$4 sm:$0xff]  }
  0x37   :  { %v18419_v50 = vld [vmem:[%s25739_s5 + $0x438] ss:$20 sps:$4 sm:$0xff]  }
  0x39   :  { %1901 = vmatpush1.bf16.msra.mxu0 %v18330_v51  ;;  %2030 = vmatpush1.bf16.msra.mxu1 %v18331_v52  ;;  %v18422_v51 = vld [vmem:[%s25739_s5 + $0x440] ss:$20 sps:$4 sm:$0xff]   ;;  %v18427_v52 = vld [vmem:[%s25739_s5 + $0x464] ss:$20 sps:$4 sm:$0xff]  }
  0x3a   :  { %1902 = vmatprep.subr.bf16.mxu0 %v18332_v53  ;;  %2031 = vmatprep.subr.bf16.mxu1 %v18334_v54  ;;  %v18430_v53 = vld [vmem:[%s25739_s5 + $0x46c] ss:$20 sps:$4 sm:$0xff]  }
  0x3b   :  { %v18425_v54 = vld [vmem:[%s25739_s5 + $0x460] ss:$20 sps:$4 sm:$0xff]  }
  0x3d   :  { %1903 = vmatpush1.bf16.msra.mxu0 %v18336_v55  ;;  %2032 = vmatpush1.bf16.msra.mxu1 %v18337_v56  ;;  %v18428_v55 = vld [vmem:[%s25739_s5 + $0x468] ss:$20 sps:$4 sm:$0xff]   ;;  %v18433_v56 = vld [vmem:[%s25739_s5 + $0x48c] ss:$20 sps:$4 sm:$0xff]  }
  0x3e   :  { %1904 = vmatprep.subr.bf16.mxu0 %v18338_v57  ;;  %2033 = vmatprep.subr.bf16.mxu1 %v18340_v58  ;;  %v18436_v57 = vld [vmem:[%s25739_s5 + $0x494] ss:$20 sps:$4 sm:$0xff]  }
  0x3f   :  { %v18431_v58 = vld [vmem:[%s25739_s5 + $0x488] ss:$20 sps:$4 sm:$0xff]  }
  0x41   :  { %1905 = vmatpush1.bf16.msra.mxu0 %v18342_v59  ;;  %2034 = vmatpush1.bf16.msra.mxu1 %v18343_v60  ;;  %v18434_v59 = vld [vmem:[%s25739_s5 + $0x490] ss:$20 sps:$4 sm:$0xff]   ;;  %v18439_v60 = vld [vmem:[%s25739_s5 + $0x4b4] ss:$20 sps:$4 sm:$0xff]  }
  0x42   :  { %1906 = vmatprep.subr.bf16.mxu0 %v18344_v61  ;;  %2035 = vmatprep.subr.bf16.mxu1 %v18346_v62  ;;  %v18442_v61 = vld [vmem:[%s25739_s5 + $0x4bc] ss:$20 sps:$4 sm:$0xff]  }
  0x43   :  { %v18437_v62 = vld [vmem:[%s25739_s5 + $0x4b0] ss:$20 sps:$4 sm:$0xff]  }
  0x45   :  { %1907 = vmatpush1.bf16.msra.mxu0 %v18348_v63  ;;  %2036 = vmatpush1.bf16.msra.mxu1 %v18349_v0  ;;  %v18440_v63 = vld [vmem:[%s25739_s5 + $0x4b8] ss:$20 sps:$4 sm:$0xff]   ;;  %v18445_v0 = vld [vmem:[%s25739_s5 + $0x4dc] ss:$20 sps:$4 sm:$0xff]  }
  0x46   :  { %1919 = vmatprep.subr.bf16.mxu0 %v18354_v1  ;;  %2048 = vmatprep.subr.bf16.mxu1 %v18357_v2  ;;  %v18448_v1 = vld [vmem:[%s25739_s5 + $0x4e4] ss:$20 sps:$4 sm:$0xff]  }
  0x47   :  { %v18443_v2 = vld [vmem:[%s25739_s5 + $0x4d8] ss:$20 sps:$4 sm:$0xff]  }
  0x48   :  { %1909 = vmatmul.mubr.bf16.vlgmr.msra.gmra.mrb[0].mxu0 %v20737_v5  ;;  %2038 = vmatmul.mubr.bf16.vlgmr.msra.gmra.mrb[0].mxu1 %v20737_v5 }
  0x49   :  { %1920 = vmatpush1.bf16.msra.mxu0 %v18352_v3  ;;  %2049 = vmatpush1.bf16.msra.mxu1 %v18355_v4  ;;  %v18446_v3 = vld [vmem:[%s25739_s5 + $0x4e0] ss:$20 sps:$4 sm:$0xff]   ;;  %v18454_v4 = vld [vmem:[%s25739_s5 + $0x504] ss:$20 sps:$4 sm:$0xff]  }
  0x4a   :  { %1921 = vmatprep.subr.bf16.mxu0 %v18361_v6  ;;  %2050 = vmatprep.subr.bf16.mxu1 %v18364_v7  ;;  %v20934_v6 = vld [vmem:[%s25765_s3 + $0x8] ss:$20 sps:$4 sm:$0xff]   ;;  %v18457_v7 = vld [vmem:[%s25739_s5 + $0x50c] ss:$20 sps:$4 sm:$0xff]  }
  0x4b   :  { %1951 = vmatprep.mubr.bf16.mxu0 %v20816_v30  ;;  %2080 = vmatprep.mubr.bf16.mxu1 %v20816_v30 }
  0x4d   :  { %1922 = vmatpush1.bf16.msra.mxu0 %v18359_v8  ;;  %2051 = vmatpush1.bf16.msra.mxu1 %v18362_v9  ;;  %v18452_v8 = vld [vmem:[%s25739_s5 + $0x500] ss:$20 sps:$4 sm:$0xff]   ;;  %v18455_v9 = vld [vmem:[%s25739_s5 + $0x508] ss:$20 sps:$4 sm:$0xff]  }
  0x4e   :  { %1923 = vmatprep.subr.bf16.mxu0 %v18367_v10  ;;  %2052 = vmatprep.subr.bf16.mxu1 %v18370_v11  ;;  %v18460_v10 = vld [vmem:[%s25739_s5 + $0x52c] ss:$20 sps:$4 sm:$0xff]   ;;  %v18463_v11 = vld [vmem:[%s25739_s5 + $0x534] ss:$20 sps:$4 sm:$0xff]  }
  0x51   :  { %1924 = vmatpush1.bf16.msra.mxu0 %v18365_v12  ;;  %2053 = vmatpush1.bf16.msra.mxu1 %v18368_v13  ;;  %v18458_v12 = vld [vmem:[%s25739_s5 + $0x528] ss:$20 sps:$4 sm:$0xff]   ;;  %v18461_v13 = vld [vmem:[%s25739_s5 + $0x530] ss:$20 sps:$4 sm:$0xff]  }
  0x52   :  { %1925 = vmatprep.subr.bf16.mxu0 %v18373_v14  ;;  %2054 = vmatprep.subr.bf16.mxu1 %v18376_v15  ;;  %v18466_v14 = vld [vmem:[%s25739_s5 + $0x554] ss:$20 sps:$4 sm:$0xff]   ;;  %v18469_v15 = vld [vmem:[%s25739_s5 + $0x55c] ss:$20 sps:$4 sm:$0xff]  }
  0x55   :  { %1926 = vmatpush1.bf16.msra.mxu0 %v18371_v16  ;;  %2055 = vmatpush1.bf16.msra.mxu1 %v18374_v17  ;;  %v18464_v16 = vld [vmem:[%s25739_s5 + $0x550] ss:$20 sps:$4 sm:$0xff]   ;;  %v20411_v17 = vmov 0  }
  0x56   :  { %1927 = vmatprep.subr.bf16.mxu0 %v18379_v18  ;;  %2056 = vmatprep.subr.bf16.mxu1 %v18382_v19  ;;  %v18467_v18 = vld [vmem:[%s25739_s5 + $0x558] ss:$20 sps:$4 sm:$0xff]   ;;  %v18472_v19 = vld [vmem:[%s25739_s5 + $0x57c] ss:$20 sps:$4 sm:$0xff]  }
  0x59   :  { %1928 = vmatpush1.bf16.msra.mxu0 %v18377_v20  ;;  %2057 = vmatpush1.bf16.msra.mxu1 %v18380_v21  ;;  %v18475_v20 = vld [vmem:[%s25739_s5 + $0x584] ss:$20 sps:$4 sm:$0xff]  }
  0x5a   :  { %1929 = vmatprep.subr.bf16.mxu0 %v18385_v22  ;;  %2058 = vmatprep.subr.bf16.mxu1 %v18388_v23  ;;  %v18470_v21 = vld [vmem:[%s25739_s5 + $0x578] ss:$20 sps:$4 sm:$0xff]   ;;  %v18473_v22 = vld [vmem:[%s25739_s5 + $0x580] ss:$20 sps:$4 sm:$0xff]  }
  0x5b   :  { %v18478_v23 = vld [vmem:[%s25739_s5 + $0x5a4] ss:$20 sps:$4 sm:$0xff]  }
  0x5d   :  { %1930 = vmatpush1.bf16.msra.mxu0 %v18383_v24  ;;  %2059 = vmatpush1.bf16.msra.mxu1 %v18386_v25  ;;  %v18481_v24 = vld [vmem:[%s25739_s5 + $0x5ac] ss:$20 sps:$4 sm:$0xff]  }
  0x5e   :  { %1931 = vmatprep.subr.bf16.mxu0 %v18391_v26  ;;  %2060 = vmatprep.subr.bf16.mxu1 %v18394_v27  ;;  %v18476_v25 = vld [vmem:[%s25739_s5 + $0x5a0] ss:$20 sps:$4 sm:$0xff]   ;;  %v18479_v26 = vld [vmem:[%s25739_s5 + $0x5a8] ss:$20 sps:$4 sm:$0xff]  }
  0x5f   :  { %v18484_v27 = vld [vmem:[%s25739_s5 + $0x5cc] ss:$20 sps:$4 sm:$0xff]  }
  0x61   :  { %1932 = vmatpush1.bf16.msra.mxu0 %v18389_v28  ;;  %2061 = vmatpush1.bf16.msra.mxu1 %v18392_v29  ;;  %v18487_v28 = vld [vmem:[%s25739_s5 + $0x5d4] ss:$20 sps:$4 sm:$0xff]  }
  0x62   :  { %1933 = vmatprep.subr.bf16.mxu0 %v18397_v31  ;;  %2062 = vmatprep.subr.bf16.mxu1 %v18400_v32  ;;  %v18482_v29 = vld [vmem:[%s25739_s5 + $0x5c8] ss:$20 sps:$4 sm:$0xff]   ;;  %v18485_v31 = vld [vmem:[%s25739_s5 + $0x5d0] ss:$20 sps:$4 sm:$0xff]  }
  0x63   :  { %v18490_v32 = vld [vmem:[%s25739_s5 + $0x5f4] ss:$20 sps:$4 sm:$0xff]  }
  0x65   :  { %1934 = vmatpush1.bf16.msra.mxu0 %v18395_v33  ;;  %2063 = vmatpush1.bf16.msra.mxu1 %v18398_v34  ;;  %v18493_v33 = vld [vmem:[%s25739_s5 + $0x5fc] ss:$20 sps:$4 sm:$0xff]  }
  0x66   :  { %1935 = vmatprep.subr.bf16.mxu0 %v18403_v35  ;;  %2064 = vmatprep.subr.bf16.mxu1 %v18406_v36  ;;  %v18488_v34 = vld [vmem:[%s25739_s5 + $0x5f0] ss:$20 sps:$4 sm:$0xff]   ;;  %v18491_v35 = vld [vmem:[%s25739_s5 + $0x5f8] ss:$20 sps:$4 sm:$0xff]  }
  0x67   :  { %v18496_v36 = vld [vmem:[%s25739_s5 + $0x61c] ss:$20 sps:$4 sm:$0xff]  }
  0x69   :  { %1936 = vmatpush1.bf16.msra.mxu0 %v18401_v37  ;;  %2065 = vmatpush1.bf16.msra.mxu1 %v18404_v38  ;;  %v18499_v37 = vld [vmem:[%s25739_s5 + $0x624] ss:$20 sps:$4 sm:$0xff]  }
  0x6a   :  { %1937 = vmatprep.subr.bf16.mxu0 %v18409_v39  ;;  %2066 = vmatprep.subr.bf16.mxu1 %v18412_v40  ;;  %v18494_v38 = vld [vmem:[%s25739_s5 + $0x618] ss:$20 sps:$4 sm:$0xff]   ;;  %v18497_v39 = vld [vmem:[%s25739_s5 + $0x620] ss:$20 sps:$4 sm:$0xff]   ;;  %v18501_v40 = vld [vmem:[%s25739_s5 + $0x150] ss:$20 sps:$4 sm:$0xff]  }
  0x6d   :  { %1938 = vmatpush1.bf16.msra.mxu0 %v18407_v41  ;;  %2067 = vmatpush1.bf16.msra.mxu1 %v18410_v42  ;;  %v18502_v41 = vld [vmem:[%s25739_s5 + $0x3d0] ss:$20 sps:$4 sm:$0xff]  }
  0x6e   :  { %1939 = vmatprep.subr.bf16.mxu0 %v18415_v43  ;;  %2068 = vmatprep.subr.bf16.mxu1 %v18418_v44  ;;  %v21042_v42 = vld [vmem:[%s25765_s3 + $0x10] ss:$20 sps:$4 sm:$0xff]  }
  0x6f   :  { %v18503_v43 = vld [vmem:[%s25739_s5 + $0x10] ss:$20 sps:$4 sm:$0xff]  }
  0x70   :  { %v18504_v44 = vld [vmem:[%s25739_s5 + $0x290] ss:$20 sps:$4 sm:$0xff]  }
  0x71   :  { %1940 = vmatpush1.bf16.msra.mxu0 %v18413_v45  ;;  %2069 = vmatpush1.bf16.msra.mxu1 %v18416_v46  ;;  %v18505_v45 = vld [vmem:[%s25739_s5 + $0x178] ss:$20 sps:$4 sm:$0xff]  }
  0x72   :  { %1941 = vmatprep.subr.bf16.mxu0 %v18421_v48  ;;  %2070 = vmatprep.subr.bf16.mxu1 %v18424_v49  ;;  %v18506_v46 = vld [vmem:[%s25739_s5 + $0x3f8] ss:$20 sps:$4 sm:$0xff]  }
  0x73   :  { %v18507_v48 = vld [vmem:[%s25739_s5 + $0x38] ss:$20 sps:$4 sm:$0xff]  }
  0x74   :  { %v18508_v49 = vld [vmem:[%s25739_s5 + $0x2b8] ss:$20 sps:$4 sm:$0xff]  }
  0x75   :  { %1942 = vmatpush1.bf16.msra.mxu0 %v18419_v50  ;;  %2071 = vmatpush1.bf16.msra.mxu1 %v18422_v51  ;;  %v18509_v50 = vld [vmem:[%s25739_s5 + $0x1a0] ss:$20 sps:$4 sm:$0xff]  }
  0x76   :  { %1943 = vmatprep.subr.bf16.mxu0 %v18427_v52  ;;  %2072 = vmatprep.subr.bf16.mxu1 %v18430_v53  ;;  %v18510_v51 = vld [vmem:[%s25739_s5 + $0x420] ss:$20 sps:$4 sm:$0xff]  }
  0x77   :  { %v18511_v52 = vld [vmem:[%s25739_s5 + $0x60] ss:$20 sps:$4 sm:$0xff]  }
  0x78   :  { %v18512_v53 = vld [vmem:[%s25739_s5 + $0x2e0] ss:$20 sps:$4 sm:$0xff]  }
  0x79   :  { %1944 = vmatpush1.bf16.msra.mxu0 %v18425_v54  ;;  %2073 = vmatpush1.bf16.msra.mxu1 %v18428_v55  ;;  %v18513_v54 = vld [vmem:[%s25739_s5 + $0x1c8] ss:$20 sps:$4 sm:$0xff]  }
  0x7a   :  { %1945 = vmatprep.subr.bf16.mxu0 %v18433_v56  ;;  %2074 = vmatprep.subr.bf16.mxu1 %v18436_v57  ;;  %v18516_v55 = vld [vmem:[%s25739_s5 + $0x308] ss:$20 sps:$4 sm:$0xff]   ;;  %v18517_v56 = vld [vmem:[%s25739_s5 + $0x1f0] ss:$20 sps:$4 sm:$0xff]  }
  0x7b   :  { %v18518_v57 = vld [vmem:[%s25739_s5 + $0x470] ss:$20 sps:$4 sm:$0xff]  }
  0x7d   :  { %1946 = vmatpush1.bf16.msra.mxu0 %v18431_v58  ;;  %2075 = vmatpush1.bf16.msra.mxu1 %v18434_v59  ;;  %v18519_v58 = vld [vmem:[%s25739_s5 + $0xb0] ss:$20 sps:$4 sm:$0xff]  }
  0x7e   :  { %1947 = vmatprep.subr.bf16.mxu0 %v18439_v60  ;;  %2076 = vmatprep.subr.bf16.mxu1 %v18442_v61  ;;  %v18520_v59 = vld [vmem:[%s25739_s5 + $0x330] ss:$20 sps:$4 sm:$0xff]   ;;  %v18521_v60 = vld [vmem:[%s25739_s5 + $0x218] ss:$20 sps:$4 sm:$0xff]  }
  0x7f   :  { %v18522_v61 = vld [vmem:[%s25739_s5 + $0x498] ss:$20 sps:$4 sm:$0xff]  }
  0x81   :  { %1948 = vmatpush1.bf16.msra.mxu0 %v18437_v62  ;;  %2077 = vmatpush1.bf16.msra.mxu1 %v18440_v63  ;;  %v18523_v62 = vld [vmem:[%s25739_s5 + $0xd8] ss:$20 sps:$4 sm:$0xff]  }
  0x82   :  { %1949 = vmatprep.subr.bf16.mxu0 %v18445_v0  ;;  %2078 = vmatprep.subr.bf16.mxu1 %v18448_v1  ;;  %v18524_v63 = vld [vmem:[%s25739_s5 + $0x358] ss:$20 sps:$4 sm:$0xff]   ;;  %v18525_v0 = vld [vmem:[%s25739_s5 + $0x240] ss:$20 sps:$4 sm:$0xff]  }
  0x83   :  { %v18526_v1 = vld [vmem:[%s25739_s5 + $0x4c0] ss:$20 sps:$4 sm:$0xff]  }
  0x85   :  { %1950 = vmatpush1.bf16.msra.mxu0 %v18443_v2  ;;  %2079 = vmatpush1.bf16.msra.mxu1 %v18446_v3  ;;  %v18527_v2 = vld [vmem:[%s25739_s5 + $0x100] ss:$20 sps:$4 sm:$0xff]  }
  0x86   :  { %1962 = vmatprep.subr.bf16.mxu0 %v18454_v4  ;;  %2091 = vmatprep.subr.bf16.mxu1 %v18457_v7  ;;  %v18528_v3 = vld [vmem:[%s25739_s5 + $0x380] ss:$20 sps:$4 sm:$0xff]   ;;  %v18529_v4 = vld [vmem:[%s25739_s5 + $0x268] ss:$20 sps:$4 sm:$0xff]  }
  0x87   :  { %v18530_v7 = vld [vmem:[%s25739_s5 + $0x4e8] ss:$20 sps:$4 sm:$0xff]  }
  0x88   :  { %1952 = vmatmul.mubr.bf16.vlgmr.msra.gmra.mrb[0].mxu0 %v20934_v6  ;;  %2081 = vmatmul.mubr.bf16.vlgmr.msra.gmra.mrb[0].mxu1 %v20934_v6 }
  0x89   :  { %1963 = vmatpush1.bf16.msra.mxu0 %v18452_v8  ;;  %2092 = vmatpush1.bf16.msra.mxu1 %v18455_v9  ;;  %v18531_v8 = vld [vmem:[%s25739_s5 + $0x128] ss:$20 sps:$4 sm:$0xff]  }
  0x8a   :  { %1964 = vmatprep.subr.bf16.mxu0 %v18460_v10  ;;  %2093 = vmatprep.subr.bf16.mxu1 %v18463_v11  ;;  %v18532_v9 = vld [vmem:[%s25739_s5 + $0x3a8] ss:$20 sps:$4 sm:$0xff]   ;;  %v18535_v10 = vld [vmem:[%s25741_s7 + $0x4] ss:$20 sps:$4 sm:$0xff]   ;;  %v18533_v11 = vld [vmem:[%s25741_s7] ss:$20 sps:$4 sm:$0xff]  }
  0x8b   :  { %1994 = vmatprep.mubr.bf16.mxu0 %v20411_v17  ;;  %2123 = vmatprep.mubr.bf16.mxu1 %v20411_v17 }
  0x8d   :  { %1965 = vmatpush1.bf16.msra.mxu0 %v18458_v12  ;;  %2094 = vmatpush1.bf16.msra.mxu1 %v18461_v13  ;;  %v18536_v12 = vld [vmem:[%s25739_s5 + $0x510] ss:$20 sps:$4 sm:$0xff]   ;;  %v20412_v13 = vmov 0.0  }
  0x8e   :  { %1966 = vmatprep.subr.bf16.mxu0 %v18466_v14  ;;  %2095 = vmatprep.subr.bf16.mxu1 %v18469_v15  ;;  %v18539_v14 = vld [vmem:[%s25741_s7 + $0x2c] ss:$20 sps:$4 sm:$0xff]  }
  0x8f   :  { %v21154_v15 = vld [vmem:[%s25765_s3 + $0x2c] ss:$20 sps:$4 sm:$0xff]  }
  0x91   :  { %1967 = vmatpush1.bf16.msra.mxu0 %v18464_v16  ;;  %2096 = vmatpush1.bf16.msra.mxu1 %v18467_v18  ;;  %v18537_v16 = vld [vmem:[%s25741_s7 + $0x28] ss:$20 sps:$4 sm:$0xff]   ;;  %v18540_v18 = vld [vmem:[%s25739_s5 + $0x538] ss:$20 sps:$4 sm:$0xff]  }
  0x92   :  { %1968 = vmatprep.subr.bf16.mxu0 %v18472_v19  ;;  %2097 = vmatprep.subr.bf16.mxu1 %v18475_v20  ;;  %v18543_v19 = vld [vmem:[%s25741_s7 + $0x54] ss:$20 sps:$4 sm:$0xff]   ;;  %v18547_v20 = vld [vmem:[%s25741_s7 + $0x7c] ss:$20 sps:$4 sm:$0xff]  }
  0x95   :  { %1969 = vmatpush1.bf16.msra.mxu0 %v18470_v21  ;;  %2098 = vmatpush1.bf16.msra.mxu1 %v18473_v22  ;;  %v18545_v21 = vld [vmem:[%s25741_s7 + $0x78] ss:$20 sps:$4 sm:$0xff]   ;;  %v18548_v22 = vld [vmem:[%s25739_s5 + $0x588] ss:$20 sps:$4 sm:$0xff]  }
  0x96   :  { %1970 = vmatprep.subr.bf16.mxu0 %v18478_v23  ;;  %2099 = vmatprep.subr.bf16.mxu1 %v18481_v24  ;;  %v18551_v23 = vld [vmem:[%s25741_s7 + $0xa4] ss:$20 sps:$4 sm:$0xff]   ;;  %v18549_v24 = vld [vmem:[%s25741_s7 + $0xa0] ss:$20 sps:$4 sm:$0xff]  }
  0x99   :  { %1971 = vmatpush1.bf16.msra.mxu0 %v18476_v25  ;;  %2100 = vmatpush1.bf16.msra.mxu1 %v18479_v26  ;;  %v18552_v25 = vld [vmem:[%s25739_s5 + $0x5b0] ss:$20 sps:$4 sm:$0xff]   ;;  %v18555_v26 = vld [vmem:[%s25741_s7 + $0xcc] ss:$20 sps:$4 sm:$0xff]  }
  0x9a   :  { %1972 = vmatprep.subr.bf16.mxu0 %v18484_v27  ;;  %2101 = vmatprep.subr.bf16.mxu1 %v18487_v28  ;;  %v18553_v27 = vld [vmem:[%s25741_s7 + $0xc8] ss:$20 sps:$4 sm:$0xff]   ;;  %v18556_v28 = vld [vmem:[%s25739_s5 + $0x5d8] ss:$20 sps:$4 sm:$0xff]  }
  0x9d   :  { %1973 = vmatpush1.bf16.msra.mxu0 %v18482_v29  ;;  %2102 = vmatpush1.bf16.msra.mxu1 %v18485_v31  ;;  %v18559_v29 = vld [vmem:[%s25741_s7 + $0xf4] ss:$20 sps:$4 sm:$0xff]   ;;  %v18557_v31 = vld [vmem:[%s25741_s7 + $0xf0] ss:$20 sps:$4 sm:$0xff]  }
  0x9e   :  { %1974 = vmatprep.subr.bf16.mxu0 %v18490_v32  ;;  %2103 = vmatprep.subr.bf16.mxu1 %v18493_v33  ;;  %v18560_v32 = vld [vmem:[%s25739_s5 + $0x600] ss:$20 sps:$4 sm:$0xff]   ;;  %v18563_v33 = vld [vmem:[%s25741_s7 + $0x11c] ss:$20 sps:$4 sm:$0xff]  }
  0xa1   :  { %1975 = vmatpush1.bf16.msra.mxu0 %v18488_v34  ;;  %2104 = vmatpush1.bf16.msra.mxu1 %v18491_v35  ;;  %v18561_v34 = vld [vmem:[%s25741_s7 + $0x118] ss:$20 sps:$4 sm:$0xff]   ;;  %v18564_v35 = vld [vmem:[%s25739_s5 + $0x628] ss:$20 sps:$4 sm:$0xff]  }
  0xa2   :  { %1976 = vmatprep.subr.bf16.mxu0 %v18496_v36  ;;  %2105 = vmatprep.subr.bf16.mxu1 %v18499_v37  ;;  %v18567_v36 = vld [vmem:[%s25741_s7 + $0x144] ss:$20 sps:$4 sm:$0xff]   ;;  %v18570_v37 = vld [vmem:[%s25741_s7 + $0xc] ss:$20 sps:$4 sm:$0xff]  }
  0xa5   :  { %1977 = vmatpush1.bf16.msra.mxu0 %v18494_v38  ;;  %2106 = vmatpush1.bf16.msra.mxu1 %v18497_v39  ;;  %v18565_v38 = vld [vmem:[%s25741_s7 + $0x140] ss:$20 sps:$4 sm:$0xff]   ;;  %v18568_v39 = vld [vmem:[%s25741_s7 + $0x8] ss:$20 sps:$4 sm:$0xff]  }
  0xa6   :  { %17089 = vmatprep.subr.bf16.mxu0 %v18501_v40  ;;  %17111 = vmatprep.subr.bf16.mxu1 %v18502_v41  ;;  %v18573_v40 = vld [vmem:[%s25741_s7 + $0x16c] ss:$20 sps:$4 sm:$0xff]   ;;  %v18576_v41 = vld [vmem:[%s25741_s7 + $0x34] ss:$20 sps:$4 sm:$0xff]  }
  0xa8   :  { %1995 = vmatmul.mubr.bf16.vlgmr.msra.gmra.mrb[0].mxu0 %v21042_v42  ;;  %2124 = vmatmul.mubr.bf16.vlgmr.msra.gmra.mrb[0].mxu1 %v21042_v42 }
  0xa9   :  { %17090 = vmatpush3.bf16.msra.mxu0 %v18503_v43  ;;  %17112 = vmatpush3.bf16.msra.mxu1 %v18504_v44  ;;  %v18571_v43 = vld [vmem:[%s25741_s7 + $0x168] ss:$20 sps:$4 sm:$0xff]   ;;  %v18574_v44 = vld [vmem:[%s25741_s7 + $0x30] ss:$20 sps:$4 sm:$0xff]  }
  0xaa   :  { %17091 = vmatprep.subr.bf16.mxu0 %v18505_v45  ;;  %17113 = vmatprep.subr.bf16.mxu1 %v18506_v46  ;;  %v18579_v45 = vld [vmem:[%s25741_s7 + $0x194] ss:$20 sps:$4 sm:$0xff]   ;;  %v18577_v46 = vld [vmem:[%s25741_s7 + $0x190] ss:$20 sps:$4 sm:$0xff]  }
  0xab   :  { %2166 = vmatprep.mubr.bf16.mxu0 %v20667_v47  ;;  %2207 = vmatprep.mubr.bf16.mxu1 %v20816_v30  ;;  %v18514_v47 = vld [vmem:[%s25739_s5 + $0x448] ss:$20 sps:$4 sm:$0xff]  }
  0xac   :  { %v18515_v30 = vld [vmem:[%s25739_s5 + $0x88] ss:$20 sps:$4 sm:$0xff]  }
  0xad   :  { %17092 = vmatpush3.bf16.msra.mxu0 %v18507_v48  ;;  %17114 = vmatpush3.bf16.msra.mxu1 %v18508_v49  ;;  %v18580_v48 = vld [vmem:[%s25741_s7 + $0x58] ss:$20 sps:$4 sm:$0xff]   ;;  %v18585_v49 = vld [vmem:[%s25741_s7 + $0x1bc] ss:$20 sps:$4 sm:$0xff]  }
  0xae   :  { %17093 = vmatprep.subr.bf16.mxu0 %v18509_v50  ;;  %17115 = vmatprep.subr.bf16.mxu1 %v18510_v51  ;;  %v18588_v50 = vld [vmem:[%s25741_s7 + $0x84] ss:$20 sps:$4 sm:$0xff]  }
  0xaf   :  { %v18583_v51 = vld [vmem:[%s25741_s7 + $0x1b8] ss:$20 sps:$4 sm:$0xff]  }
  0xb1   :  { %17094 = vmatpush3.bf16.msra.mxu0 %v18511_v52  ;;  %17116 = vmatpush3.bf16.msra.mxu1 %v18512_v53  ;;  %v18586_v52 = vld [vmem:[%s25741_s7 + $0x80] ss:$20 sps:$4 sm:$0xff]   ;;  %v18591_v53 = vld [vmem:[%s25741_s7 + $0x1e4] ss:$20 sps:$4 sm:$0xff]  }
  0xb2   :  { %17095 = vmatprep.subr.bf16.mxu0 %v18513_v54  ;;  %17117 = vmatprep.subr.bf16.mxu1 %v18514_v47  ;;  %v18594_v54 = vld [vmem:[%s25741_s7 + $0xac] ss:$20 sps:$4 sm:$0xff]  }
  0xb3   :  { %v18589_v47 = vld [vmem:[%s25741_s7 + $0x1e0] ss:$20 sps:$4 sm:$0xff]  }
  0xb5   :  { %17096 = vmatpush3.bf16.msra.mxu0 %v18515_v30  ;;  %17118 = vmatpush3.bf16.msra.mxu1 %v18516_v55  ;;  %v18592_v30 = vld [vmem:[%s25741_s7 + $0xa8] ss:$20 sps:$4 sm:$0xff]   ;;  %v18597_v55 = vld [vmem:[%s25741_s7 + $0x20c] ss:$20 sps:$4 sm:$0xff]  }
  0xb6   :  { %17097 = vmatprep.subr.bf16.mxu0 %v18517_v56  ;;  %17119 = vmatprep.subr.bf16.mxu1 %v18518_v57  ;;  %v18600_v56 = vld [vmem:[%s25741_s7 + $0xd4] ss:$20 sps:$4 sm:$0xff]  }
  0xb7   :  { %v18595_v57 = vld [vmem:[%s25741_s7 + $0x208] ss:$20 sps:$4 sm:$0xff]  }
  0xb9   :  { %17098 = vmatpush3.bf16.msra.mxu0 %v18519_v58  ;;  %17120 = vmatpush3.bf16.msra.mxu1 %v18520_v59  ;;  %v18598_v58 = vld [vmem:[%s25741_s7 + $0xd0] ss:$20 sps:$4 sm:$0xff]   ;;  %v18603_v59 = vld [vmem:[%s25741_s7 + $0x234] ss:$20 sps:$4 sm:$0xff]  }
  0xba   :  { %17099 = vmatprep.subr.bf16.mxu0 %v18521_v60  ;;  %17121 = vmatprep.subr.bf16.mxu1 %v18522_v61  ;;  %v18606_v60 = vld [vmem:[%s25741_s7 + $0xfc] ss:$20 sps:$4 sm:$0xff]  }
  0xbb   :  { %v18601_v61 = vld [vmem:[%s25741_s7 + $0x230] ss:$20 sps:$4 sm:$0xff]  }
  0xbd   :  { %17100 = vmatpush3.bf16.msra.mxu0 %v18523_v62  ;;  %17122 = vmatpush3.bf16.msra.mxu1 %v18524_v63  ;;  %v18604_v62 = vld [vmem:[%s25741_s7 + $0xf8] ss:$20 sps:$4 sm:$0xff]   ;;  %v18609_v63 = vld [vmem:[%s25741_s7 + $0x25c] ss:$20 sps:$4 sm:$0xff]  }
  0xbe   :  { %17101 = vmatprep.subr.bf16.mxu0 %v18525_v0  ;;  %17123 = vmatprep.subr.bf16.mxu1 %v18526_v1  ;;  %v18612_v0 = vld [vmem:[%s25741_s7 + $0x124] ss:$20 sps:$4 sm:$0xff]  }
  0xbf   :  { %v18607_v1 = vld [vmem:[%s25741_s7 + $0x258] ss:$20 sps:$4 sm:$0xff]  }
  0xc1   :  { %17102 = vmatpush3.bf16.msra.mxu0 %v18527_v2  ;;  %17124 = vmatpush3.bf16.msra.mxu1 %v18528_v3  ;;  %v18610_v2 = vld [vmem:[%s25741_s7 + $0x120] ss:$20 sps:$4 sm:$0xff]   ;;  %v18618_v3 = vld [vmem:[%s25741_s7 + $0x284] ss:$20 sps:$4 sm:$0xff]  }
  0xc2   :  { %17103 = vmatprep.subr.bf16.mxu0 %v18529_v4  ;;  %17125 = vmatprep.subr.bf16.mxu1 %v18530_v7  ;;  %v18621_v4 = vld [vmem:[%s25741_s7 + $0x14c] ss:$20 sps:$4 sm:$0xff]   ;;  %v21335_v7 = vld [vmem:[%s25765_s3 + $0x28] ss:$20 sps:$4 sm:$0xff]  }
  0xc5   :  { %17104 = vmatpush3.bf16.msra.mxu0 %v18531_v8  ;;  %17126 = vmatpush3.bf16.msra.mxu1 %v18532_v9  ;;  %v18616_v8 = vld [vmem:[%s25741_s7 + $0x280] ss:$20 sps:$4 sm:$0xff]   ;;  %v785_v9 = vlaneseq }
  0xc6   :  { %17779 = vmatprep.subr.bf16.mxu0 %v20412_v13  ;;  %3349 = vmatprep.subr.bf16.mxu1 %v18535_v10  ;;  %v18619_v10 = vld [vmem:[%s25741_s7 + $0x148] ss:$20 sps:$4 sm:$0xff]  }
  0xc8   :  { %2167 = vmatmul.mubr.bf16.vlgmr.msra.gmra.mrb[4].mxu0 %v20737_v5  ;;  %2208 = vmatmul.mubr.bf16.vlgmr.msra.gmra.mrb[4].mxu1 %v20934_v6  ;;  %v18541_v5 = vld [vmem:[%s25741_s7 + $0x50] ss:$20 sps:$4 sm:$0xff]   ;;  %v18544_v6 = vld [vmem:[%s25739_s5 + $0x560] ss:$20 sps:$4 sm:$0xff]  }
  0xc9   :  { %17780 = vmatpush3.bf16.msra.mxu0 %v18536_v12  ;;  %3350 = vmatpush1.bf16.msra.mxu1 %v18533_v11  ;;  %v18624_v11 = vld [vmem:[%s25741_s7 + $0x2ac] ss:$20 sps:$4 sm:$0xff]   ;;  %v18627_v12 = vld [vmem:[%s25741_s7 + $0x174] ss:$20 sps:$4 sm:$0xff]  }
  0xca   :  { %17781 = vmatprep.subr.bf16.mxu0 %v20412_v13  ;;  %3351 = vmatprep.subr.bf16.mxu1 %v18539_v14  ;;  %v18622_v14 = vld [vmem:[%s25741_s7 + $0x2a8] ss:$20 sps:$4 sm:$0xff]  }
  0xcb   :  { %17795 = vmatprep.mubr.msk.bf16.mxu0 %vm20413_vm0, %v20412_v13  ;;  %3381 = vmatprep.mubr.bf16.mxu1 %v21154_v15 }
  0xcd   :  { %17782 = vmatpush3.bf16.msra.mxu0 %v18540_v18  ;;  %3352 = vmatpush1.bf16.msra.mxu1 %v18537_v16  ;;  %v21358_v16 = vld [vmem:[%s25765_s3 + $0x34] ss:$20 sps:$4 sm:$0xff]   ;;  %v21361_v18 = vshrl.u32 %v785_v9, 7  ;;  %v18703_v9 = vld [vmem:[%s25741_s7 + $0x378] ss:$20 sps:$4 sm:$0xff]  }
  0xce   :  { %17783 = vmatprep.subr.bf16.mxu0 %v20412_v13  ;;  %3353 = vmatprep.subr.bf16.mxu1 %v18543_v19  ;;  %v18630_v19 = vld [vmem:[%s25741_s7 + $0x2d4] ss:$20 sps:$4 sm:$0xff]  }
  0xd1   :  { %17784 = vmatpush3.bf16.msra.mxu0 %v18544_v6  ;;  %3354 = vmatpush1.bf16.msra.mxu1 %v18541_v5  ;;  %v18633_v5 = vld [vmem:[%s25741_s7 + $0x19c] ss:$20 sps:$4 sm:$0xff]  }
  0xd2   :  { %17785 = vmatprep.subr.bf16.mxu0 %v20412_v13  ;;  %3355 = vmatprep.subr.bf16.mxu1 %v18547_v20  ;;  %v18628_v6 = vld [vmem:[%s25741_s7 + $0x2d0] ss:$20 sps:$4 sm:$0xff]   ;;  %v799_v20 = vsub.s32 3, %v21361_v18 }
  0xd5   :  { %17786 = vmatpush3.bf16.msra.mxu0 %v18548_v22  ;;  %3356 = vmatpush1.bf16.msra.mxu1 %v18545_v21  ;;  %v18631_v21 = vld [vmem:[%s25741_s7 + $0x198] ss:$20 sps:$4 sm:$0xff]   ;;  %v18636_v22 = vld [vmem:[%s25741_s7 + $0x2fc] ss:$20 sps:$4 sm:$0xff]  }
  0xd6   :  { %17787 = vmatprep.subr.bf16.mxu0 %v20412_v13  ;;  %3357 = vmatprep.subr.bf16.mxu1 %v18551_v23  ;;  %v18639_v23 = vld [vmem:[%s25741_s7 + $0x1c4] ss:$20 sps:$4 sm:$0xff]  }
  0xd9   :  { %17788 = vmatpush3.bf16.msra.mxu0 %v18552_v25  ;;  %3358 = vmatpush1.bf16.msra.mxu1 %v18549_v24  ;;  %v18634_v24 = vld [vmem:[%s25741_s7 + $0x2f8] ss:$20 sps:$4 sm:$0xff]   ;;  %v21389_v25 = vld [vmem:[%s25740_s6] sm:$0x1f] }
  0xda   :  { %17789 = vmatprep.subr.bf16.mxu0 %v20412_v13  ;;  %3359 = vmatprep.subr.bf16.mxu1 %v18555_v26  ;;  %v18637_v26 = vld [vmem:[%s25741_s7 + $0x1c0] ss:$20 sps:$4 sm:$0xff]  }
  0xdd   :  { %17790 = vmatpush3.bf16.msra.mxu0 %v18556_v28  ;;  %3360 = vmatpush1.bf16.msra.mxu1 %v18553_v27  ;;  %v21397_v27 = vrot.slane %v21389_v25, %v799_v20  ;;  %v18642_v28 = vld [vmem:[%s25741_s7 + $0x324] ss:$20 sps:$4 sm:$0xff]  }
  0xde   :  { %17791 = vmatprep.subr.bf16.mxu0 %v20412_v13  ;;  %3361 = vmatprep.subr.bf16.mxu1 %v18559_v29  ;;  %v18645_v29 = vld [vmem:[%s25741_s7 + $0x1ec] ss:$20 sps:$4 sm:$0xff]  }
  0xe1   :  { %17792 = vmatpush3.bf16.msra.mxu0 %v18560_v32  ;;  %3362 = vmatpush1.bf16.msra.mxu1 %v18557_v31  ;;  %v18640_v31 = vld [vmem:[%s25741_s7 + $0x320] ss:$20 sps:$4 sm:$0xff]   ;;  %v18643_v32 = vld [vmem:[%s25741_s7 + $0x1e8] ss:$20 sps:$4 sm:$0xff]  }
  0xe2   :  { %17793 = vmatprep.subr.bf16.mxu0 %v20412_v13  ;;  %3363 = vmatprep.subr.bf16.mxu1 %v18563_v33  ;;  %v18648_v33 = vld [vmem:[%s25741_s7 + $0x34c] ss:$20 sps:$4 sm:$0xff]  }
  0xe5   :  { %17794 = vmatpush3.bf16.msra.mxu0 %v18564_v35  ;;  %3364 = vmatpush1.bf16.msra.mxu1 %v18561_v34  ;;  %v18651_v34 = vld [vmem:[%s25741_s7 + $0x214] ss:$20 sps:$4 sm:$0xff]  }
  0xe6   :  { %3365 = vmatprep.subr.bf16.mxu1 %v18567_v36  ;;  %3478 = vmatprep.subr.bf16.mxu0 %v18570_v37  ;;  %v18646_v35 = vld [vmem:[%s25741_s7 + $0x348] ss:$20 sps:$4 sm:$0xff]   ;;  %v18649_v36 = vld [vmem:[%s25741_s7 + $0x210] ss:$20 sps:$4 sm:$0xff]  }
  0xe7   :  { %v18654_v37 = vld [vmem:[%s25741_s7 + $0x374] ss:$20 sps:$4 sm:$0xff]  }
  0xe8   :  { %17796 = vmatmul.mubr.bf16.vlgmr.msra.gmra.mrb[8].mxu0 %v21042_v42  ;;  %v18582_v42 = vld [vmem:[%s25741_s7 + $0x5c] ss:$20 sps:$4 sm:$0xff]  }
  0xe9   :  { %3366 = vmatpush1.bf16.msra.mxu1 %v18565_v38  ;;  %3479 = vmatpush1.bf16.msra.mxu0 %v18568_v39  ;;  %v18657_v38 = vld [vmem:[%s25741_s7 + $0x23c] ss:$20 sps:$4 sm:$0xff]  }
  0xea   :  { %3367 = vmatprep.subr.bf16.mxu1 %v18573_v40  ;;  %3480 = vmatprep.subr.bf16.mxu0 %v18576_v41  ;;  %v18652_v39 = vld [vmem:[%s25741_s7 + $0x370] ss:$20 sps:$4 sm:$0xff]   ;;  %v18655_v40 = vld [vmem:[%s25741_s7 + $0x238] ss:$20 sps:$4 sm:$0xff]  }
  0xeb   :  { %3510 = vmatprep.mubr.bf16.mxu0 %v21154_v15  ;;  %v18625_v15 = vld [vmem:[%s25741_s7 + $0x170] ss:$20 sps:$4 sm:$0xff]  }
  0xec   :  { %v18660_v41 = vld [vmem:[%s25741_s7 + $0x39c] ss:$20 sps:$4 sm:$0xff]  }
  0xed   :  { %3368 = vmatpush1.bf16.msra.mxu1 %v18571_v43  ;;  %3481 = vmatpush1.bf16.msra.mxu0 %v18574_v44  ;;  %v18663_v43 = vld [vmem:[%s25741_s7 + $0x264] ss:$20 sps:$4 sm:$0xff]  }
  0xee   :  { %3369 = vmatprep.subr.bf16.mxu1 %v18579_v45  ;;  %3482 = vmatprep.subr.bf16.mxu0 %v18582_v42  ;;  %v18658_v44 = vld [vmem:[%s25741_s7 + $0x398] ss:$20 sps:$4 sm:$0xff]   ;;  %v18661_v45 = vld [vmem:[%s25741_s7 + $0x260] ss:$20 sps:$4 sm:$0xff]  }
  0xef   :  { %v18666_v42 = vld [vmem:[%s25741_s7 + $0x3c4] ss:$20 sps:$4 sm:$0xff]  }
  0xf1   :  { %3370 = vmatpush1.bf16.msra.mxu1 %v18577_v46  ;;  %3483 = vmatpush1.bf16.msra.mxu0 %v18580_v48  ;;  %v18669_v46 = vld [vmem:[%s25741_s7 + $0x28c] ss:$20 sps:$4 sm:$0xff]  }
  0xf2   :  { %3371 = vmatprep.subr.bf16.mxu1 %v18585_v49  ;;  %3484 = vmatprep.subr.bf16.mxu0 %v18588_v50  ;;  %v18664_v48 = vld [vmem:[%s25741_s7 + $0x3c0] ss:$20 sps:$4 sm:$0xff]   ;;  %v18667_v49 = vld [vmem:[%s25741_s7 + $0x288] ss:$20 sps:$4 sm:$0xff]  }
  0xf3   :  { %v18672_v50 = vld [vmem:[%s25741_s7 + $0x3ec] ss:$20 sps:$4 sm:$0xff]  }
  0xf5   :  { %3372 = vmatpush1.bf16.msra.mxu1 %v18583_v51  ;;  %3485 = vmatpush1.bf16.msra.mxu0 %v18586_v52  ;;  %v18675_v51 = vld [vmem:[%s25741_s7 + $0x2b4] ss:$20 sps:$4 sm:$0xff]  }
  0xf6   :  { %3373 = vmatprep.subr.bf16.mxu1 %v18591_v53  ;;  %3486 = vmatprep.subr.bf16.mxu0 %v18594_v54  ;;  %v18670_v52 = vld [vmem:[%s25741_s7 + $0x3e8] ss:$20 sps:$4 sm:$0xff]   ;;  %v18673_v53 = vld [vmem:[%s25741_s7 + $0x2b0] ss:$20 sps:$4 sm:$0xff]  }
  0xf7   :  { %v18678_v54 = vld [vmem:[%s25741_s7 + $0x414] ss:$20 sps:$4 sm:$0xff]  }
  0xf9   :  { %3374 = vmatpush1.bf16.msra.mxu1 %v18589_v47  ;;  %3487 = vmatpush1.bf16.msra.mxu0 %v18592_v30  ;;  %v18681_v47 = vld [vmem:[%s25741_s7 + $0x2dc] ss:$20 sps:$4 sm:$0xff]  }
  0xfa   :  { %3375 = vmatprep.subr.bf16.mxu1 %v18597_v55  ;;  %3488 = vmatprep.subr.bf16.mxu0 %v18600_v56  ;;  %v18676_v30 = vld [vmem:[%s25741_s7 + $0x410] ss:$20 sps:$4 sm:$0xff]   ;;  %v18679_v55 = vld [vmem:[%s25741_s7 + $0x2d8] ss:$20 sps:$4 sm:$0xff]  }
  0xfb   :  { %v18684_v56 = vld [vmem:[%s25741_s7 + $0x43c] ss:$20 sps:$4 sm:$0xff]  }
  0xfd   :  { %3376 = vmatpush1.bf16.msra.mxu1 %v18595_v57  ;;  %3489 = vmatpush1.bf16.msra.mxu0 %v18598_v58  ;;  %v18687_v57 = vld [vmem:[%s25741_s7 + $0x304] ss:$20 sps:$4 sm:$0xff]  }
  0xfe   :  { %3377 = vmatprep.subr.bf16.mxu1 %v18603_v59  ;;  %3490 = vmatprep.subr.bf16.mxu0 %v18606_v60  ;;  %v18682_v58 = vld [vmem:[%s25741_s7 + $0x438] ss:$20 sps:$4 sm:$0xff]   ;;  %v18685_v59 = vld [vmem:[%s25741_s7 + $0x300] ss:$20 sps:$4 sm:$0xff]  }
  0xff   :  { %v18690_v60 = vld [vmem:[%s25741_s7 + $0x464] ss:$20 sps:$4 sm:$0xff]  }
 0x101   :  { %3378 = vmatpush1.bf16.msra.mxu1 %v18601_v61  ;;  %3491 = vmatpush1.bf16.msra.mxu0 %v18604_v62  ;;  %v18693_v61 = vld [vmem:[%s25741_s7 + $0x32c] ss:$20 sps:$4 sm:$0xff]  }
 0x102   :  { %3379 = vmatprep.subr.bf16.mxu1 %v18609_v63  ;;  %3492 = vmatprep.subr.bf16.mxu0 %v18612_v0  ;;  %v18688_v62 = vld [vmem:[%s25741_s7 + $0x460] ss:$20 sps:$4 sm:$0xff]   ;;  %v18691_v63 = vld [vmem:[%s25741_s7 + $0x328] ss:$20 sps:$4 sm:$0xff]  }
 0x103   :  { %v18696_v0 = vld [vmem:[%s25741_s7 + $0x48c] ss:$20 sps:$4 sm:$0xff]  }
 0x105   :  { %3380 = vmatpush1.bf16.msra.mxu1 %v18607_v1  ;;  %3493 = vmatpush1.bf16.msra.mxu0 %v18610_v2  ;;  %v18699_v1 = vld [vmem:[%s25741_s7 + $0x354] ss:$20 sps:$4 sm:$0xff]  }
 0x106   :  { %3392 = vmatprep.subr.bf16.mxu1 %v18618_v3  ;;  %3494 = vmatprep.subr.bf16.mxu0 %v18621_v4  ;;  %v18694_v2 = vld [vmem:[%s25741_s7 + $0x488] ss:$20 sps:$4 sm:$0xff]   ;;  %v18697_v3 = vld [vmem:[%s25741_s7 + $0x350] ss:$20 sps:$4 sm:$0xff]  }
 0x107   :  { %v18702_v4 = vld [vmem:[%s25741_s7 + $0x4b4] ss:$20 sps:$4 sm:$0xff]  }
 0x108   :  { %3382 = vmatmul.mubr.bf16.vlgmr.msra.gmra.mrb[8].mxu1 %v21335_v7 }
 0x109   :  { %3393 = vmatpush1.bf16.msra.mxu1 %v18616_v8  ;;  %3495 = vmatpush1.bf16.msra.mxu0 %v18619_v10  ;;  %v18700_v8 = vld [vmem:[%s25741_s7 + $0x4b0] ss:$20 sps:$4 sm:$0xff]  }
 0x10a   :  { %3394 = vmatprep.subr.bf16.mxu1 %v18624_v11  ;;  %3496 = vmatprep.subr.bf16.mxu0 %v18627_v12  ;;  %v18708_v10 = vld [vmem:[%s25741_s7 + $0x4dc] ss:$20 sps:$4 sm:$0xff]   ;;  %v18711_v11 = vld [vmem:[%s25741_s7 + $0x3a4] ss:$20 sps:$4 sm:$0xff]  }
 0x10b   :  { %3424 = vmatprep.mubr.bf16.mxu1 %v21358_v16  ;;  %v18706_v12 = vld [vmem:[%s25741_s7 + $0x4d8] ss:$20 sps:$4 sm:$0xff]  }
 0x10d   :  { %3395 = vmatpush1.bf16.msra.mxu1 %v18622_v14  ;;  %3497 = vmatpush1.bf16.msra.mxu0 %v18625_v15  ;;  %v18709_v14 = vld [vmem:[%s25741_s7 + $0x3a0] ss:$20 sps:$4 sm:$0xff]   ;;  %v18717_v15 = vld [vmem:[%s25741_s7 + $0x504] ss:$20 sps:$4 sm:$0xff]  }
 0x10e   :  { %3396 = vmatprep.subr.bf16.mxu1 %v18630_v19  ;;  %3498 = vmatprep.subr.bf16.mxu0 %v18633_v5  ;;  %v18720_v19 = vld [vmem:[%s25741_s7 + $0x3cc] ss:$20 sps:$4 sm:$0xff]  }
 0x10f   :  { %v18715_v5 = vld [vmem:[%s25741_s7 + $0x500] ss:$20 sps:$4 sm:$0xff]  }
 0x111   :  { %3397 = vmatpush1.bf16.msra.mxu1 %v18628_v6  ;;  %3499 = vmatpush1.bf16.msra.mxu0 %v18631_v21  ;;  %v18718_v6 = vld [vmem:[%s25741_s7 + $0x3c8] ss:$20 sps:$4 sm:$0xff]   ;;  %v18723_v21 = vld [vmem:[%s25741_s7 + $0x52c] ss:$20 sps:$4 sm:$0xff]  }
 0x112   :  { %3398 = vmatprep.subr.bf16.mxu1 %v18636_v22  ;;  %3500 = vmatprep.subr.bf16.mxu0 %v18639_v23  ;;  %v18726_v22 = vld [vmem:[%s25741_s7 + $0x3f4] ss:$20 sps:$4 sm:$0xff]  }
 0x113   :  { %v18721_v23 = vld [vmem:[%s25741_s7 + $0x528] ss:$20 sps:$4 sm:$0xff]  }
 0x115   :  { %3399 = vmatpush1.bf16.msra.mxu1 %v18634_v24  ;;  %3501 = vmatpush1.bf16.msra.mxu0 %v18637_v26  ;;  %v18724_v24 = vld [vmem:[%s25741_s7 + $0x3f0] ss:$20 sps:$4 sm:$0xff]   ;;  %v18729_v26 = vld [vmem:[%s25741_s7 + $0x554] ss:$20 sps:$4 sm:$0xff]  }
 0x116   :  { %3400 = vmatprep.subr.bf16.mxu1 %v18642_v28  ;;  %3502 = vmatprep.subr.bf16.mxu0 %v18645_v29  ;;  %v18732_v28 = vld [vmem:[%s25741_s7 + $0x41c] ss:$20 sps:$4 sm:$0xff]  }
 0x117   :  { %v18727_v29 = vld [vmem:[%s25741_s7 + $0x550] ss:$20 sps:$4 sm:$0xff]  }
 0x119   :  { %3401 = vmatpush1.bf16.msra.mxu1 %v18640_v31  ;;  %3503 = vmatpush1.bf16.msra.mxu0 %v18643_v32  ;;  %v18730_v31 = vld [vmem:[%s25741_s7 + $0x418] ss:$20 sps:$4 sm:$0xff]   ;;  %v18735_v32 = vld [vmem:[%s25741_s7 + $0x57c] ss:$20 sps:$4 sm:$0xff]  }
 0x11a   :  { %3402 = vmatprep.subr.bf16.mxu1 %v18648_v33  ;;  %3504 = vmatprep.subr.bf16.mxu0 %v18651_v34  ;;  %v18738_v33 = vld [vmem:[%s25741_s7 + $0x444] ss:$20 sps:$4 sm:$0xff]  }
 0x11b   :  { %v18733_v34 = vld [vmem:[%s25741_s7 + $0x578] ss:$20 sps:$4 sm:$0xff]  }
 0x11d   :  { %3403 = vmatpush1.bf16.msra.mxu1 %v18646_v35  ;;  %3505 = vmatpush1.bf16.msra.mxu0 %v18649_v36  ;;  %v18736_v35 = vld [vmem:[%s25741_s7 + $0x440] ss:$20 sps:$4 sm:$0xff]   ;;  %v18741_v36 = vld [vmem:[%s25741_s7 + $0x5a4] ss:$20 sps:$4 sm:$0xff]  }
 0x11e   :  { %3404 = vmatprep.subr.bf16.mxu1 %v18654_v37  ;;  %3506 = vmatprep.subr.bf16.mxu0 %v18657_v38  ;;  %v18744_v37 = vld [vmem:[%s25741_s7 + $0x46c] ss:$20 sps:$4 sm:$0xff]  }
 0x11f   :  { %v18739_v38 = vld [vmem:[%s25741_s7 + $0x5a0] ss:$20 sps:$4 sm:$0xff]  }
 0x121   :  { %3405 = vmatpush1.bf16.msra.mxu1 %v18652_v39  ;;  %3507 = vmatpush1.bf16.msra.mxu0 %v18655_v40  ;;  %v18742_v39 = vld [vmem:[%s25741_s7 + $0x468] ss:$20 sps:$4 sm:$0xff]   ;;  %v18747_v40 = vld [vmem:[%s25741_s7 + $0x5cc] ss:$20 sps:$4 sm:$0xff]  }
 0x122   :  { %3406 = vmatprep.subr.bf16.mxu1 %v18660_v41  ;;  %3508 = vmatprep.subr.bf16.mxu0 %v18663_v43  ;;  %v18750_v41 = vld [vmem:[%s25741_s7 + $0x494] ss:$20 sps:$4 sm:$0xff]  }
 0x123   :  { %v18745_v43 = vld [vmem:[%s25741_s7 + $0x5c8] ss:$20 sps:$4 sm:$0xff]  }
 0x125   :  { %3407 = vmatpush1.bf16.msra.mxu1 %v18658_v44  ;;  %3509 = vmatpush1.bf16.msra.mxu0 %v18661_v45  ;;  %v18748_v44 = vld [vmem:[%s25741_s7 + $0x490] ss:$20 sps:$4 sm:$0xff]   ;;  %v18753_v45 = vld [vmem:[%s25741_s7 + $0x5f4] ss:$20 sps:$4 sm:$0xff]  }
 0x126   :  { %3408 = vmatprep.subr.bf16.mxu1 %v18666_v42  ;;  %3521 = vmatprep.subr.bf16.mxu0 %v18669_v46  ;;  %v18756_v42 = vld [vmem:[%s25741_s7 + $0x4bc] ss:$20 sps:$4 sm:$0xff]  }
 0x127   :  { %v18751_v46 = vld [vmem:[%s25741_s7 + $0x5f0] ss:$20 sps:$4 sm:$0xff]  }
 0x128   :  { %3511 = vmatmul.mubr.bf16.vlgmr.msra.gmra.mrb[12].mxu0 %v21335_v7  ;;  %v18705_v7 = vld [vmem:[%s25741_s7 + $0x37c] ss:$20 sps:$4 sm:$0xff]  }
 0x129   :  { %3409 = vmatpush1.bf16.msra.mxu1 %v18664_v48  ;;  %3522 = vmatpush1.bf16.msra.mxu0 %v18667_v49  ;;  %v18754_v48 = vld [vmem:[%s25741_s7 + $0x4b8] ss:$20 sps:$4 sm:$0xff]   ;;  %v18759_v49 = vld [vmem:[%s25741_s7 + $0x61c] ss:$20 sps:$4 sm:$0xff]  }
 0x12a   :  { %3410 = vmatprep.subr.bf16.mxu1 %v18672_v50  ;;  %3523 = vmatprep.subr.bf16.mxu0 %v18675_v51  ;;  %v18762_v50 = vld [vmem:[%s25741_s7 + $0x4e4] ss:$20 sps:$4 sm:$0xff]  }
 0x12b   :  { %3553 = vmatprep.mubr.bf16.mxu0 %v21358_v16  ;;  %v21551_v16 = vld [vmem:[%s25765_s3 + $0x30] ss:$20 sps:$4 sm:$0xff]   ;;  %v18757_v51 = vld [vmem:[%s25741_s7 + $0x618] ss:$20 sps:$4 sm:$0xff]  }
 0x12d   :  { %3411 = vmatpush1.bf16.msra.mxu1 %v18670_v52  ;;  %3524 = vmatpush1.bf16.msra.mxu0 %v18673_v53  ;;  %v18760_v52 = vld [vmem:[%s25741_s7 + $0x4e0] ss:$20 sps:$4 sm:$0xff]  }
 0x12e   :  { %3412 = vmatprep.subr.bf16.mxu1 %v18678_v54  ;;  %3525 = vmatprep.subr.bf16.mxu0 %v18681_v47  ;;  %v18766_v53 = vld [vmem:[%s25741_s7 + $0x50c] ss:$20 sps:$4 sm:$0xff]   ;;  %v18767_v54 = vld [vmem:[%s25741_s7 + $0x150] ss:$20 sps:$4 sm:$0xff]  }
 0x12f   :  { %v21657_v47 = vld [vmem:[%s25765_s3 + $0x38] ss:$20 sps:$4 sm:$0xff]  }
 0x131   :  { %3413 = vmatpush1.bf16.msra.mxu1 %v18676_v30  ;;  %3526 = vmatpush1.bf16.msra.mxu0 %v18679_v55  ;;  %v18764_v30 = vld [vmem:[%s25741_s7 + $0x508] ss:$20 sps:$4 sm:$0xff]   ;;  %v18768_v55 = vld [vmem:[%s25741_s7 + $0x10] ss:$20 sps:$4 sm:$0xff]  }
 0x132   :  { %3414 = vmatprep.subr.bf16.mxu1 %v18684_v56  ;;  %3527 = vmatprep.subr.bf16.mxu0 %v18687_v57  ;;  %v18771_v56 = vld [vmem:[%s25741_s7 + $0x534] ss:$20 sps:$4 sm:$0xff]   ;;  %v18772_v57 = vld [vmem:[%s25741_s7 + $0x178] ss:$20 sps:$4 sm:$0xff]  }
 0x135   :  { %3415 = vmatpush1.bf16.msra.mxu1 %v18682_v58  ;;  %3528 = vmatpush1.bf16.msra.mxu0 %v18685_v59  ;;  %v18769_v58 = vld [vmem:[%s25741_s7 + $0x530] ss:$20 sps:$4 sm:$0xff]   ;;  %v18773_v59 = vld [vmem:[%s25741_s7 + $0x38] ss:$20 sps:$4 sm:$0xff]  }
 0x136   :  { %3416 = vmatprep.subr.bf16.mxu1 %v18690_v60  ;;  %3529 = vmatprep.subr.bf16.mxu0 %v18693_v61  ;;  %v21678_v60 = vsub.s32 0, %v21361_v18  ;;  %v18776_v61 = vld [vmem:[%s25741_s7 + $0x55c] ss:$20 sps:$4 sm:$0xff]  }
 0x139   :  { %3417 = vmatpush1.bf16.msra.mxu1 %v18688_v62  ;;  %3530 = vmatpush1.bf16.msra.mxu0 %v18691_v63  ;;  %v18777_v62 = vld [vmem:[%s25741_s7 + $0x1a0] ss:$20 sps:$4 sm:$0xff]   ;;  %v18774_v63 = vld [vmem:[%s25741_s7 + $0x558] ss:$20 sps:$4 sm:$0xff]  }
 0x13a   :  { %3418 = vmatprep.subr.bf16.mxu1 %v18696_v0  ;;  %3531 = vmatprep.subr.bf16.mxu0 %v18699_v1  ;;  %v18778_v0 = vld [vmem:[%s25741_s7 + $0x60] ss:$20 sps:$4 sm:$0xff]  }
 0x13b   :  { %v20296_v1 = vld [vmem:[%s25765_s3 + $0x2c] ss:$20 sps:$4 sm:$0xff]  }
 0x13d   :  { %3419 = vmatpush1.bf16.msra.mxu1 %v18694_v2  ;;  %3532 = vmatpush1.bf16.msra.mxu0 %v18697_v3  ;;  %v18781_v2 = vld [vmem:[%s25741_s7 + $0x584] ss:$20 sps:$4 sm:$0xff]   ;;  %v18782_v3 = vld [vmem:[%s25741_s7 + $0x1c8] ss:$20 sps:$4 sm:$0xff]  }
 0x13e   :  { %3420 = vmatprep.subr.bf16.mxu1 %v18702_v4  ;;  %3533 = vmatprep.subr.bf16.mxu0 %v18705_v7  ;;  %v18779_v4 = vld [vmem:[%s25741_s7 + $0x580] ss:$20 sps:$4 sm:$0xff]   ;;  %v18783_v7 = vld [vmem:[%s25741_s7 + $0x88] ss:$20 sps:$4 sm:$0xff]  }
 0x141   :  { %3421 = vmatpush1.bf16.msra.mxu1 %v18700_v8  ;;  %3534 = vmatpush1.bf16.msra.mxu0 %v18703_v9  ;;  %v18786_v8 = vld [vmem:[%s25741_s7 + $0x5ac] ss:$20 sps:$4 sm:$0xff]   ;;  %v18787_v9 = vld [vmem:[%s25741_s7 + $0x1f0] ss:$20 sps:$4 sm:$0xff]  }
 0x142   :  { %3422 = vmatprep.subr.bf16.mxu1 %v18708_v10  ;;  %3535 = vmatprep.subr.bf16.mxu0 %v18711_v11  ;;  %v21717_v10 = vsub.s32 2, %v21361_v18  ;;  %v21720_v11 = vsub.s32 1, %v21361_v18 }
 0x145   :  { %3423 = vmatpush1.bf16.msra.mxu1 %v18706_v12  ;;  %3536 = vmatpush1.bf16.msra.mxu0 %v18709_v14  ;;  %v18784_v12 = vld [vmem:[%s25741_s7 + $0x5a8] ss:$20 sps:$4 sm:$0xff]   ;;  %v18788_v14 = vld [vmem:[%s25741_s7 + $0xb0] ss:$20 sps:$4 sm:$0xff]  }
 0x146   :  { %3435 = vmatprep.subr.bf16.mxu1 %v18717_v15  ;;  %3537 = vmatprep.subr.bf16.mxu0 %v18720_v19  ;;  %v18791_v15 = vld [vmem:[%s25741_s7 + $0x5d4] ss:$20 sps:$4 sm:$0xff]   ;;  %v18789_v19 = vld [vmem:[%s25741_s7 + $0x5d0] ss:$20 sps:$4 sm:$0xff]  }
 0x148   :  { %3425 = vmatmul.mubr.bf16.vlgmr.msra.gmra.mrb[8].mxu1 %v21551_v16 }
 0x149   :  { %3436 = vmatpush1.bf16.msra.mxu1 %v18715_v5  ;;  %3538 = vmatpush1.bf16.msra.mxu0 %v18718_v6  ;;  %v18793_v5 = vld [vmem:[%s25741_s7 + $0xd8] ss:$20 sps:$4 sm:$0xff]   ;;  %v796_v6 = vrot.slane %v21389_v25, %v21717_v10 }
 0x14a   :  { %3437 = vmatprep.subr.bf16.mxu1 %v18723_v21  ;;  %3539 = vmatprep.subr.bf16.mxu0 %v18726_v22  ;;  %v18796_v21 = vld [vmem:[%s25741_s7 + $0x5fc] ss:$20 sps:$4 sm:$0xff]   ;;  %v18797_v22 = vld [vmem:[%s25741_s7 + $0x240] ss:$20 sps:$4 sm:$0xff]  }
 0x14b   :  { %3467 = vmatprep.mubr.bf16.mxu1 %v20411_v17 }
 0x14d   :  { %3438 = vmatpush1.bf16.msra.mxu1 %v18721_v23  ;;  %3540 = vmatpush1.bf16.msra.mxu0 %v18724_v24  ;;  %v788_v23 = vrot.slane %v21389_v25, %v21678_v60  ;;  %v18798_v25 = vld [vmem:[%s25741_s7 + $0x100] ss:$20 sps:$4 sm:$0xff]  }
 0x14e   :  { %3439 = vmatprep.subr.bf16.mxu1 %v18729_v26  ;;  %3541 = vmatprep.subr.bf16.mxu0 %v18732_v28  ;;  %v21753_v28 = vld [vmem:[%s25740_s6] sm:$0x1f]  ;;  %s25767_s6 = sld [smem:[#allocation16_spill]] }
 0x151   :  { %3440 = vmatpush1.bf16.msra.mxu1 %v18727_v29  ;;  %3542 = vmatpush1.bf16.msra.mxu0 %v18730_v31  ;;  %v792_v29 = vrot.slane %v21753_v28, %v21720_v11  ;;  %v18794_v31 = vld [vmem:[%s25741_s7 + $0x5f8] ss:$20 sps:$4 sm:$0xff]  }
 0x152   :  { %3441 = vmatprep.subr.bf16.mxu1 %v18735_v32  ;;  %3543 = vmatprep.subr.bf16.mxu0 %v18738_v33 }
 0x155   :  { %3442 = vmatpush1.bf16.msra.mxu1 %v18733_v34  ;;  %3544 = vmatpush1.bf16.msra.mxu0 %v18736_v35  ;;  %v18801_v35 = vld [vmem:[%s25741_s7 + $0x624] ss:$20 sps:$4 sm:$0xff]  }
 0x156   :  { %3443 = vmatprep.subr.bf16.mxu1 %v18741_v36  ;;  %3545 = vmatprep.subr.bf16.mxu0 %v18744_v37  ;;  %v18802_v36 = vld [vmem:[%s25741_s7 + $0x268] ss:$20 sps:$4 sm:$0xff]  }
 0x159   :  { %3444 = vmatpush1.bf16.msra.mxu1 %v18739_v38  ;;  %3546 = vmatpush1.bf16.msra.mxu0 %v18742_v39 }
 0x15a   :  { %3445 = vmatprep.subr.bf16.mxu1 %v18747_v40  ;;  %3547 = vmatprep.subr.bf16.mxu0 %v18750_v41 }
 0x15d   :  { %3446 = vmatpush1.bf16.msra.mxu1 %v18745_v43  ;;  %3548 = vmatpush1.bf16.msra.mxu0 %v18748_v44 }
 0x15e   :  { %3447 = vmatprep.subr.bf16.mxu1 %v18753_v45  ;;  %3549 = vmatprep.subr.bf16.mxu0 %v18756_v42 }
 0x161   :  { %3448 = vmatpush1.bf16.msra.mxu1 %v18751_v46  ;;  %3550 = vmatpush1.bf16.msra.mxu0 %v18754_v48 }
 0x162   :  { %3449 = vmatprep.subr.bf16.mxu1 %v18759_v49  ;;  %3551 = vmatprep.subr.bf16.mxu0 %v18762_v50  ;;  %v18799_v49 = vld [vmem:[%s25741_s7 + $0x620] ss:$20 sps:$4 sm:$0xff]   ;;  %v18803_v50 = vld [vmem:[%s25741_s7 + $0x128] ss:$20 sps:$4 sm:$0xff]  }
 0x165   :  { %3450 = vmatpush1.bf16.msra.mxu1 %v18757_v51  ;;  %3552 = vmatpush1.bf16.msra.mxu0 %v18760_v52 }
 0x166   :  { %3564 = vmatprep.subr.bf16.mxu0 %v18766_v53  ;;  %17142 = vmatprep.subr.bf16.mxu1 %v18767_v54  ;;  %v18804_v53 = vld [vmem:[%s25741_s7 + $0x3d0] ss:$20 sps:$4 sm:$0xff]  }
 0x168   :  { %3468 = vmatmul.mubr.bf16.vlgmr.msra.gmra.mrb[8].mxu1 %v21657_v47  ;;  %3554 = vmatmul.mubr.bf16.vlgmr.msra.gmra.mrb[12].mxu0 %v21551_v16  ;;  %v18792_v16 = vld [vmem:[%s25741_s7 + $0x218] ss:$20 sps:$4 sm:$0xff]  }
 0x169   :  { %3565 = vmatpush1.bf16.msra.mxu0 %v18764_v30  ;;  %17143 = vmatpush3.bf16.msra.mxu1 %v18768_v55  ;;  %v18806_v55 = vld [vmem:[%s25741_s7 + $0x510] ss:$20 sps:$4 sm:$0xff]  }
 0x16a   :  { %3566 = vmatprep.subr.bf16.mxu0 %v18771_v56  ;;  %17144 = vmatprep.subr.bf16.mxu1 %v18772_v57  ;;  %v18807_v56 = vld [vmem:[%s25741_s7 + $0x3f8] ss:$20 sps:$4 sm:$0xff]  }
 0x16b   :  { %3596 = vmatprep.mubr.bf16.mxu0 %v20411_v17  ;;  %3639 = vmatprep.mubr.bf16.mxu1 %v20296_v1  ;;  %v18808_v57 = vld [vmem:[%s25741_s7 + $0x2b8] ss:$20 sps:$4 sm:$0xff]   ;;  %v18813_v1 = vld [vmem:[%s25741_s7 + $0x448] ss:$20 sps:$4 sm:$0xff]  }
 0x16d   :  { %3567 = vmatpush1.bf16.msra.mxu0 %v18769_v58  ;;  %17145 = vmatpush3.bf16.msra.mxu1 %v18773_v59  ;;  %v18809_v58 = vld [vmem:[%s25741_s7 + $0x538] ss:$20 sps:$4 sm:$0xff]   ;;  %v20298_v59 = vld [vmem:[%s25765_s3 + $0x28] ss:$20 sps:$4 sm:$0xff]  }
 0x16e   :  { %3568 = vmatprep.subr.bf16.mxu0 %v18776_v61  ;;  %17146 = vmatprep.subr.bf16.mxu1 %v18777_v62  ;;  %v18810_v61 = vld [vmem:[%s25741_s7 + $0x420] ss:$20 sps:$4 sm:$0xff]  }
 0x16f   :  { %v18811_v62 = vld [vmem:[%s25741_s7 + $0x2e0] ss:$20 sps:$4 sm:$0xff]  }
 0x171   :  { %3569 = vmatpush1.bf16.msra.mxu0 %v18774_v63  ;;  %17147 = vmatpush3.bf16.msra.mxu1 %v18778_v0  ;;  %v18812_v63 = vld [vmem:[%s25741_s7 + $0x560] ss:$20 sps:$4 sm:$0xff]  }
 0x172   :  { %3570 = vmatprep.subr.bf16.mxu0 %v18781_v2  ;;  %17148 = vmatprep.subr.bf16.mxu1 %v18782_v3  ;;  %v20299_v0 = vld [vmem:[%s25765_s3 + $0x34] ss:$20 sps:$4 sm:$0xff]  }
 0x173   :  { %v18814_v2 = vld [vmem:[%s25741_s7 + $0x308] ss:$20 sps:$4 sm:$0xff]  }
 0x174   :  { %v18815_v3 = vld [vmem:[%s25741_s7 + $0x588] ss:$20 sps:$4 sm:$0xff]  }
 0x175   :  { %3571 = vmatpush1.bf16.msra.mxu0 %v18779_v4  ;;  %17149 = vmatpush3.bf16.msra.mxu1 %v18783_v7  ;;  %v18816_v4 = vld [vmem:[%s25741_s7 + $0x470] ss:$20 sps:$4 sm:$0xff]  }
 0x176   :  { %3572 = vmatprep.subr.bf16.mxu0 %v18786_v8  ;;  %17150 = vmatprep.subr.bf16.mxu1 %v18787_v9  ;;  %v18817_v7 = vld [vmem:[%s25741_s7 + $0x330] ss:$20 sps:$4 sm:$0xff]   ;;  %v18819_v9 = vld [vmem:[%s25741_s7 + $0x498] ss:$20 sps:$4 sm:$0xff]  }
 0x177   :  { %v18818_v8 = vld [vmem:[%s25741_s7 + $0x5b0] ss:$20 sps:$4 sm:$0xff]  }
 0x179   :  { %3573 = vmatpush1.bf16.msra.mxu0 %v18784_v12  ;;  %17151 = vmatpush3.bf16.msra.mxu1 %v18788_v14  ;;  %v803_v12 = vsub.s32 4, %v21361_v18  ;;  %v18820_v14 = vld [vmem:[%s25741_s7 + $0x358] ss:$20 sps:$4 sm:$0xff]   ;;  %v65_v18 = vld [vmem:[%s25767_s6] sm:$0xf] }
 0x17a   :  { %3574 = vmatprep.subr.bf16.mxu0 %v18791_v15  ;;  %17152 = vmatprep.subr.bf16.mxu1 %v18792_v16  ;;  %v18821_v15 = vld [vmem:[%s25741_s7 + $0x5d8] ss:$20 sps:$4 sm:$0xff]   ;;  %v18822_v16 = vld [vmem:[%s25741_s7 + $0x4c0] ss:$20 sps:$4 sm:$0xff]  }
 0x17b   :  { %v1996_v24 = vpop.f32.mrb[0].mxu0  ;;  %v2125_v26 = vpop.f32.mrb[0].mxu1 }
 0x17c   :  { %v18111_v32 = vadd.f32 %v2125_v26, %v796_v6  ;;  %v1998_v33 = vpop.f32.mrb[1].mxu0  ;;  %v2127_v34 = vpop.f32.mrb[1].mxu1  ;;  %v18107_v40 = vadd.f32 %v1996_v24, %v788_v23  ;;  %v18825_v26 = vld [vmem:[%s25741_s7 + $0x4e8] ss:$20 sps:$4 sm:$0xff]  }
 0x17d   :  { %v18112_v37 = vadd.f32 %v2127_v34, %v21397_v27  ;;  %v2000_v38 = vpop.f32.mrb[2].mxu0  ;;  %v2129_v39 = vpop.f32.mrb[2].mxu1  ;;  %3575 = vmatpush1.bf16.msra.mxu0 %v18789_v19  ;;  %17153 = vmatpush3.bf16.msra.mxu1 %v18793_v5  ;;  %v18108_v42 = vadd.f32 %v1998_v33, %v792_v29  ;;  %v804_v5 = vrot.slane %v21753_v28, %v803_v12 }
 0x17e   :  { %v18109_v41 = vadd.f32 %v2000_v38, %v788_v23  ;;  %v18113_v43 = vadd.f32 %v2129_v39, %v796_v6  ;;  %v2002_v44 = vpop.f32.mrb[3].mxu0  ;;  %v2131_v45 = vpop.f32.mrb[3].mxu1  ;;  %3576 = vmatprep.subr.bf16.mxu0 %v18796_v21  ;;  %17154 = vmatprep.subr.bf16.mxu1 %v18797_v22  ;;  %v18823_v21 = vld [vmem:[%s25741_s7 + $0x380] ss:$20 sps:$4 sm:$0xff]   ;;  %v18827_v38 = vld [vmem:[%s25741_s7 + $0x628] ss:$20 sps:$4 sm:$0xff]  }
 0x17f   :  { %v18110_v46 = vadd.f32 %v2002_v44, %v792_v29  ;;  %v18114_v48 = vadd.f32 %v2131_v45, %v21397_v27  ;;  %v18805_v27 = vld [vmem:[%s25741_s7 + $0x290] ss:$20 sps:$4 sm:$0xff]   ;;  %v18824_v22 = vld [vmem:[%s25741_s7 + $0x600] ss:$20 sps:$4 sm:$0xff]  }
 0x180   :  { %v21777_v51 = vpack.c.bf16 %v18109_v41, %v18107_v40  ;;  %v21779_v52 = vpack.c.bf16 %v18113_v43, %v18111_v32  ;;  %v20300_v43 = vld [vmem:[%s25765_s3 + $0x30] ss:$20 sps:$4 sm:$0xff]  }
 0x181   :  { %v21784_v54 = vpack.c.bf16 %v18110_v46, %v18108_v42  ;;  %v21786_v30 = vpack.c.bf16 %v18114_v48, %v18112_v37  ;;  %3577 = vmatpush1.bf16.msra.mxu0 %v18794_v31  ;;  %17155 = vmatpush3.bf16.msra.mxu1 %v18798_v25  ;;  %v18826_v37 = vld [vmem:[%s25741_s7 + $0x3a8] ss:$20 sps:$4 sm:$0xff]  }
 0x182   :  { %3578 = vmatprep.subr.bf16.mxu0 %v18801_v35  ;;  %17156 = vmatprep.subr.bf16.mxu1 %v18802_v36 }
 0x185   :  { %3579 = vmatpush1.bf16.msra.mxu0 %v18799_v49  ;;  %17157 = vmatpush3.bf16.msra.mxu1 %v18803_v50 }
 0x186   :  { %17164 = vmatprep.subr.bf16.mxu0 %v18804_v53  ;;  %17799 = vmatprep.subr.bf16.mxu1 %v20412_v13 }
 0x188   :  { %3597 = vmatmul.mubr.bf16.vlgmr.msra.gmra.mrb[12].mxu0 %v21657_v47  ;;  %3640 = vmatmul.mubr.bf16.vlgmr.msra.gmra.mrb[12].mxu1 %v20298_v59 }
 0x189   :  { %17165 = vmatpush3.bf16.msra.mxu0 %v18805_v27  ;;  %17800 = vmatpush3.bf16.msra.mxu1 %v18806_v55 }
 0x18a   :  { %17166 = vmatprep.subr.bf16.mxu0 %v18807_v56  ;;  %17801 = vmatprep.subr.bf16.mxu1 %v20412_v13 }
 0x18b   :  { %3680 = vmatprep.mubr.bf16.mxu0 %v20299_v0  ;;  %17815 = vmatprep.mubr.msk.bf16.mxu1 %vm20413_vm0, %v20412_v13 }
 0x18d   :  { %17167 = vmatpush3.bf16.msra.mxu0 %v18808_v57  ;;  %17802 = vmatpush3.bf16.msra.mxu1 %v18809_v58 }
 0x18e   :  { %17168 = vmatprep.subr.bf16.mxu0 %v18810_v61  ;;  %17803 = vmatprep.subr.bf16.mxu1 %v20412_v13 }
 0x191   :  { %17169 = vmatpush3.bf16.msra.mxu0 %v18811_v62  ;;  %17804 = vmatpush3.bf16.msra.mxu1 %v18812_v63 }
 0x192   :  { %17170 = vmatprep.subr.bf16.mxu0 %v18813_v1  ;;  %17805 = vmatprep.subr.bf16.mxu1 %v20412_v13 }
 0x195   :  { %17171 = vmatpush3.bf16.msra.mxu0 %v18814_v2  ;;  %17806 = vmatpush3.bf16.msra.mxu1 %v18815_v3  ;;  %v21897_v2 = vld [vmem:[%s25766_s1] sm:$0xf] }
 0x196   :  { %17172 = vmatprep.subr.bf16.mxu0 %v18816_v4  ;;  %17807 = vmatprep.subr.bf16.mxu1 %v20412_v13 }
 0x199   :  { %17173 = vmatpush3.bf16.msra.mxu0 %v18817_v7  ;;  %17808 = vmatpush3.bf16.msra.mxu1 %v18818_v8 }
 0x19a   :  { %17174 = vmatprep.subr.bf16.mxu0 %v18819_v9  ;;  %17809 = vmatprep.subr.bf16.mxu1 %v20412_v13 }
 0x19b   :  { %v17105_v19 = vpop.f32.mrb[4].mxu0  ;;  %v17127_v6 = vpop.f32.mrb[4].mxu1 }
 0x19c   :  { %v17106_v23 = vpop.f32.mrb[5].mxu0  ;;  %v17128_v24 = vpop.f32.mrb[5].mxu1 }
 0x19d   :  { %v17107_v29 = vadd.f32 %v17106_v23, %v17105_v19  ;;  %v17108_v31 = vpop.f32.mrb[6].mxu0  ;;  %17175 = vmatpush3.bf16.msra.mxu0 %v18820_v14  ;;  %17810 = vmatpush3.bf16.msra.mxu1 %v18821_v15  ;;  %v17129_v28 = vadd.f32 %v17128_v24, %v17127_v6  ;;  %v17130_v25 = vpop.f32.mrb[6].mxu1 }
 0x19e   :  { %v17109_v32 = vpop.f32.mrb[7].mxu0  ;;  %v17131_v33 = vpop.f32.mrb[7].mxu1  ;;  %17176 = vmatprep.subr.bf16.mxu0 %v18822_v16  ;;  %17811 = vmatprep.subr.bf16.mxu1 %v20412_v13 }
 0x19f   :  { %v2169_v34 = vadd.f32 %v17107_v29, %v804_v5  ;;  %v17110_v35 = vadd.f32 %v17109_v32, %v17108_v31  ;;  %v17132_v36 = vadd.f32 %v17131_v33, %v17130_v25 }
 0x1a1   :  { %v2172_v39 = vadd.f32 %v17110_v35, %v804_v5  ;;  %17177 = vmatpush3.bf16.msra.mxu0 %v18823_v21  ;;  %17812 = vmatpush3.bf16.msra.mxu1 %v18824_v22  ;;  %v2210_v40 = vadd.f32 %v17129_v28, %v2169_v34 }
 0x1a2   :  { %17178 = vmatprep.subr.bf16.mxu0 %v18825_v26  ;;  %17813 = vmatprep.subr.bf16.mxu1 %v20412_v13 }
 0x1a3   :  { %v2213_v41 = vadd.f32 %v17132_v36, %v2172_v39 }
 0x1a5   :  { %17179 = vmatpush3.bf16.msra.mxu0 %v18826_v37  ;;  %17814 = vmatpush3.bf16.msra.mxu1 %v18827_v38 }
 0x1a6   :  { %3744 = vmatprep.subr.bf16.mxu1 %v21784_v54  ;;  %17819 = vmatprep.subr.bf16.mxu0 %v20412_v13 }
 0x1a8   :  { %3681 = vmatmul.mubr.bf16.vlgmr.msra.gmra.mrb[16].mxu0 %v20300_v43  ;;  %17816 = vmatmul.mubr.bf16.vlgmr.msra.gmra.mrb[16].mxu1 %v21657_v47  ;;  %v583_v47 = vld [vmem:[%s25742_s8] sm:$0x1f]  ;;  %v18855_v43 = vld [vmem:[%s25743_s9 + $0xc8] ss:$12 sps:$4 sm:$0xff]  }
 0x1a9   :  { %3745 = vmatpush1.bf16.msra.mxu1 %v21777_v51  ;;  %3776 = vmatprep.mubr.bf16.mxu1 %v20411_v17  ;;  %v2261_v53 = vrot.slane %v583_v47, %v21678_v60  ;;  %v2265_v55 = vrot.slane %v583_v47, %v21720_v11  ;;  %v2273_v3 = vrot.slane %v583_v47, %v799_v20 }
 0x1aa   :  { %17823 = vmatprep.mubr.msk.bf16.mxu0 %vm20413_vm0, %v20412_v13  ;;  %v2269_v4 = vrot.slane %v583_v47, %v21717_v10  ;;  %v2277_v9 = vrot.slane %v583_v47, %v803_v12  ;;  %v18836_v47 = vld [vmem:[%s25743_s9 + $0x34] ss:$12 sps:$4 sm:$0xff]  }
 0x1bb   :  { %v2250_v44 = vpop.f32.mrb[8].mxu0 }
 0x1bc   :  { %v2251_v45 = vadd.f32 %v2250_v44, %v2210_v40  ;;  %v17797_v42 = vpop.f32.mrb[9].mxu0 }
 0x1bd   :  { %v2253_v46 = vpop.f32.mrb[10].mxu0  ;;  %v18856_v42 = vld [vmem:[%s25743_s9 + $0x8] ss:$12 sps:$4 sm:$0xff]  }
 0x1be   :  { %v2254_v48 = vadd.f32 %v2253_v46, %v2213_v41  ;;  %v17798_v49 = vpop.f32.mrb[11].mxu0  ;;  %v18860_v46 = vld [vmem:[%s25743_s9 + $0xe0] ss:$12 sps:$4 sm:$0xff]  }
 0x1bf   :  { %v18861_v49 = vld [vmem:[%s25743_s9 + $0x20] ss:$12 sps:$4 sm:$0xff]  }
 0x1c0   :  { %v3734_v50 = vpack.c.bf16 %v2254_v48, %v2251_v45  ;;  %v18830_v48 = vld [vmem:[%s25743_s9 + $0x4] ss:$12 sps:$4 sm:$0xff]  }
 0x1c2   :  { %17820 = vmatpush3.bf16.msra.mxu0 %v3734_v50 }
 0x1c3   :  { %17821 = vmatprep.subr.bf16.mxu0 %v20412_v13 }
 0x23b   :  { %v3469_v27 = vpop.f32.mrb[8].mxu1 }
 0x23c   :  { %v3471_v56 = vpop.f32.mrb[9].mxu1  ;;  %v18115_v58 = vadd.f32 %v3469_v27, %v2261_v53  ;;  %v18839_v27 = vld [vmem:[%s25743_s9 + $0x4c] ss:$12 sps:$4 sm:$0xff]  }
 0x23d   :  { %v3473_v57 = vpop.f32.mrb[10].mxu1  ;;  %v18116_v62 = vadd.f32 %v3471_v56, %v2265_v55  ;;  %v18842_v56 = vld [vmem:[%s25743_s9 + $0x64] ss:$12 sps:$4 sm:$0xff]  }
 0x23e   :  { %v18117_v59 = vadd.f32 %v3473_v57, %v2261_v53  ;;  %v3475_v61 = vpop.f32.mrb[11].mxu1  ;;  %v18834_v53 = vld [vmem:[%s25743_s9 + $0x30] ss:$12 sps:$4 sm:$0xff]   ;;  %v18865_v57 = vld [vmem:[%s25743_s9 + $0xf8] ss:$12 sps:$4 sm:$0xff]  }
 0x23f   :  { %v18118_v63 = vadd.f32 %v3475_v61, %v2265_v55  ;;  %v18837_v55 = vld [vmem:[%s25743_s9 + $0x48] ss:$12 sps:$4 sm:$0xff]  }
 0x240   :  { %v3735_v0 = vpack.c.bf16 %v18117_v59, %v18115_v58  ;;  %v18866_v58 = vld [vmem:[%s25743_s9 + $0x38] ss:$12 sps:$4 sm:$0xff]   ;;  %v18840_v59 = vld [vmem:[%s25743_s9 + $0x60] ss:$12 sps:$4 sm:$0xff]   ;;  %v18845_v61 = vld [vmem:[%s25743_s9 + $0x7c] ss:$12 sps:$4 sm:$0xff]  }
 0x241   :  { %v3736_v1 = vpack.c.bf16 %v18118_v63, %v18116_v62  ;;  %v18870_v62 = vld [vmem:[%s25743_s9 + $0x110] ss:$12 sps:$4 sm:$0xff]  }
 0x242   :  { %v18871_v63 = vld [vmem:[%s25743_s9 + $0x50] ss:$12 sps:$4 sm:$0xff]  }
 0x243   :  { %3746 = vmatprep.subr.bf16.mxu1 %v3736_v1 }
 0x244   :  { %3747 = vmatpush1.bf16.msra.mxu1 %v3735_v0 }
 0x245   :  { %3785 = vmatprep.subr.bf16.mxu1 %v21786_v30 }
 0x247   :  { %15057 = vmatmul.mubr.msk.bf16.vlgmr.msra.gmra.mrb[20].mxu1 %vm3740_vm1, %v21897_v2 }
 0x248   :  { %3786 = vmatpush1.bf16.msra.mxu1 %v21779_v52  ;;  %3817 = vmatprep.mubr.bf16.mxu1 %v20411_v17 }
 0x25b   :  { %v3598_v7 = vpop.f32.mrb[12].mxu0  ;;  %v17158_v8 = vpop.f32.mrb[12].mxu1 }
 0x25c   :  { %v3600_v14 = vpop.f32.mrb[13].mxu0  ;;  %v17159_v15 = vpop.f32.mrb[13].mxu1  ;;  %v18119_v21 = vadd.f32 %v3598_v7, %v2269_v4  ;;  %v18849_v7 = vld [vmem:[%s25743_s9 + $0xa8] ss:$12 sps:$4 sm:$0xff]  }
 0x25d   :  { %v18120_v16 = vadd.f32 %v3600_v14, %v2273_v3  ;;  %v3602_v19 = vpop.f32.mrb[14].mxu0  ;;  %v17160_v5 = vadd.f32 %v17159_v15, %v17158_v8  ;;  %v17161_v6 = vpop.f32.mrb[14].mxu1  ;;  %v18854_v8 = vld [vmem:[%s25743_s9 + $0xc4] ss:$12 sps:$4 sm:$0xff]   ;;  %v18859_v14 = vld [vmem:[%s25743_s9 + $0xdc] ss:$12 sps:$4 sm:$0xff]  }
 0x25e   :  { %v18121_v22 = vadd.f32 %v3602_v19, %v2269_v4  ;;  %v3604_v23 = vpop.f32.mrb[15].mxu0  ;;  %v17162_v24 = vpop.f32.mrb[15].mxu1  ;;  %v18851_v4 = vld [vmem:[%s25743_s9 + $0xac] ss:$12 sps:$4 sm:$0xff]   ;;  %v18862_v19 = vld [vmem:[%s25743_s9 + $0xf0] ss:$12 sps:$4 sm:$0xff]  }
 0x25f   :  { %v18122_v26 = vadd.f32 %v3604_v23, %v2273_v3  ;;  %v3642_v29 = vadd.f32 %v17160_v5, %v2277_v9  ;;  %v17163_v20 = vadd.f32 %v17162_v24, %v17161_v6  ;;  %v18846_v3 = vld [vmem:[%s25743_s9 + $0x90] ss:$12 sps:$4 sm:$0xff]   ;;  %v18857_v15 = vld [vmem:[%s25743_s9 + $0xd8] ss:$12 sps:$4 sm:$0xff]   ;;  %v18876_v6 = vld [vmem:[%s25743_s9 + $0x68] ss:$12 sps:$4 sm:$0xff]  }
 0x260   :  { %v3737_v31 = vpack.c.bf16 %v18121_v22, %v18119_v21  ;;  %v18869_v5 = vld [vmem:[%s25743_s9 + $0x10c] ss:$12 sps:$4 sm:$0xff]   ;;  %v18867_v21 = vld [vmem:[%s25743_s9 + $0x108] ss:$12 sps:$4 sm:$0xff]   ;;  %v18874_v22 = vld [vmem:[%s25743_s9 + $0x124] ss:$12 sps:$4 sm:$0xff]  }
 0x261   :  { %v3738_v28 = vpack.c.bf16 %v18122_v26, %v18120_v16  ;;  %v3645_v25 = vadd.f32 %v17163_v20, %v2277_v9  ;;  %v18852_v9 = vld [vmem:[%s25743_s9 + $0xc0] ss:$12 sps:$4 sm:$0xff]   ;;  %v18879_v20 = vld [vmem:[%s25743_s9 + $0x13c] ss:$12 sps:$4 sm:$0xff]  }
 0x262   :  { %v18864_v16 = vld [vmem:[%s25743_s9 + $0xf4] ss:$12 sps:$4 sm:$0xff]  }
 0x263   :  { %3787 = vmatprep.subr.bf16.mxu1 %v3738_v28  ;;  %v18880_v23 = vld [vmem:[%s25743_s9 + $0x140] ss:$12 sps:$4 sm:$0xff]  }
 0x264   :  { %3788 = vmatpush1.bf16.msra.mxu1 %v3737_v31  ;;  %v18881_v24 = vld [vmem:[%s25743_s9 + $0x80] ss:$12 sps:$4 sm:$0xff]  }
 0x265   :  { %3869 = vmatprep.subr.bf16.mxu1 %v21784_v54  ;;  %v18872_v26 = vld [vmem:[%s25743_s9 + $0x120] ss:$12 sps:$4 sm:$0xff]  }
 0x267   :  { %15058 = vmatmul.mubr.msk.bf16.vlgmr.msra.gmra.mrb[24].mxu1 %vm3740_vm1, %v21897_v2 }
 0x268   :  { %3870 = vmatpush1.bf16.msra.mxu1 %v21777_v51  ;;  %3901 = vmatprep.mubr.bf16.mxu1 %v20411_v17 }
 0x269   :  { %3871 = vmatprep.subr.bf16.mxu1 %v3736_v1  ;;  %v18843_v1 = vld [vmem:[%s25743_s9 + $0x78] ss:$12 sps:$4 sm:$0xff]  }
 0x26c   :  { %3872 = vmatpush1.bf16.msra.mxu1 %v3735_v0  ;;  %v18875_v0 = vld [vmem:[%s25743_s9 + $0x128] ss:$12 sps:$4 sm:$0xff]  }
 0x26d   :  { %17827 = vmatprep.subr.bf16.mxu1 %v20412_v13 }
 0x26f   :  { %15060 = vmatmul.mubr.msk.bf16.vlgmr.msra.gmra.mrb[28].mxu1 %vm3740_vm1, %v65_v18 }
 0x270   :  { %17828 = vmatpush3.bf16.msra.mxu1 %v3734_v50  ;;  %17831 = vmatprep.mubr.msk.bf16.mxu1 %vm20413_vm0, %v20412_v13  ;;  %v18833_v50 = vld [vmem:[%s25743_s9 + $0x1c] ss:$12 sps:$4 sm:$0xff]  }
 0x271   :  { %17829 = vmatprep.subr.bf16.mxu1 %v20412_v13 }
 0x27b   :  { %v17180_v54 = vpop.f32.mrb[16].mxu0  ;;  %v3723_v51 = vpop.f32.mrb[16].mxu1 }
 0x27c   :  { %v17181_v12 = vpop.f32.mrb[17].mxu0  ;;  %v17817_v32 = vpop.f32.mrb[17].mxu1 }
 0x27d   :  { %v17182_v33 = vadd.f32 %v17181_v12, %v17180_v54  ;;  %v17183_v34 = vpop.f32.mrb[18].mxu0  ;;  %v3726_v35 = vpop.f32.mrb[18].mxu1  ;;  %v18891_v54 = vld [vmem:[%s25743_s9 + $0xb0] ss:$12 sps:$4 sm:$0xff]   ;;  %v18889_v12 = vld [vmem:[%s25743_s9 + $0x16c] ss:$12 sps:$4 sm:$0xff]  }
 0x27e   :  { %v17184_v36 = vpop.f32.mrb[19].mxu0  ;;  %v17818_v37 = vpop.f32.mrb[19].mxu1  ;;  %v18887_v32 = vld [vmem:[%s25743_s9 + $0x168] ss:$12 sps:$4 sm:$0xff]  }
 0x27f   :  { %v17185_v38 = vadd.f32 %v17184_v36, %v17183_v34  ;;  %v3683_v39 = vadd.f32 %v17182_v33, %v3642_v29  ;;  %v18885_v29 = vld [vmem:[%s25743_s9 + $0x158] ss:$12 sps:$4 sm:$0xff]   ;;  %v18895_v33 = vld [vmem:[%s25743_s9 + $0x248] ss:$12 sps:$4 sm:$0xff]  }
 0x280   :  { %v18894_v34 = vld [vmem:[%s25743_s9 + $0x184] ss:$12 sps:$4 sm:$0xff]  }
 0x281   :  { %v3724_v40 = vadd.f32 %v3723_v51, %v3683_v39  ;;  %v3686_v41 = vadd.f32 %v17185_v38, %v3645_v25  ;;  %v18884_v25 = vld [vmem:[%s25743_s9 + $0x154] ss:$12 sps:$4 sm:$0xff]   ;;  %v18882_v51 = vld [vmem:[%s25743_s9 + $0x150] ss:$12 sps:$4 sm:$0xff]  }
 0x283   :  { %v3727_v44 = vadd.f32 %v3726_v35, %v3686_v41 }
 0x285   :  { %v3739_v45 = vpack.c.bf16 %v3727_v44, %v3724_v40 }
 0x287   :  { %17822 = vmatpush3.bf16.msra.mxu0 %v3739_v45  ;;  %17830 = vmatpush3.bf16.msra.mxu1 %v3739_v45 }
 0x288   :  { %3910 = vmatprep.subr.bf16.mxu0 %v21786_v30  ;;  %17201 = vmatprep.subr.bf16.mxu1 %v18855_v43  ;;  %v18828_v30 = vld [vmem:[%s25743_s9] ss:$12 sps:$4 sm:$0xff]  }
 0x28a   :  { %17824 = vmatmul.mubr.msk.bf16.vlgmr.msra.gmra.mrb[20].mxu0 %vm3740_vm1, %v21897_v2  ;;  %17832 = vmatmul.mubr.msk.bf16.vlgmr.msra.gmra.mrb[32].mxu1 %vm3740_vm1, %v65_v18  ;;  %v18848_v2 = vld [vmem:[%s25743_s9 + $0x94] ss:$12 sps:$4 sm:$0xff]  }
 0x28b   :  { %3911 = vmatpush1.bf16.msra.mxu0 %v21779_v52  ;;  %3942 = vmatprep.mubr.bf16.mxu0 %v20411_v17  ;;  %v18831_v52 = vld [vmem:[%s25743_s9 + $0x18] ss:$12 sps:$4 sm:$0xff]  }
 0x28c   :  { %3912 = vmatprep.subr.bf16.mxu0 %v3738_v28  ;;  %17202 = vmatpush3.bf16.msra.mxu1 %v18856_v42  ;;  %v18877_v28 = vld [vmem:[%s25743_s9 + $0x138] ss:$12 sps:$4 sm:$0xff]  }
 0x28d   :  { %17203 = vmatprep.subr.bf16.mxu1 %v18860_v46 }
 0x28f   :  { %3913 = vmatpush1.bf16.msra.mxu0 %v3737_v31  ;;  %v18886_v31 = vld [vmem:[%s25743_s9 + $0x98] ss:$12 sps:$4 sm:$0xff]  }
 0x290   :  { %4641 = vmatprep.subr.bf16.mxu0 %v18830_v48  ;;  %17204 = vmatpush3.bf16.msra.mxu1 %v18861_v49  ;;  %v18892_v49 = vld [vmem:[%s25743_s9 + $0x180] ss:$12 sps:$4 sm:$0xff]  }
 0x291   :  { %17205 = vmatprep.subr.bf16.mxu1 %v18865_v57  ;;  %v18903_v57 = vld [vmem:[%s25743_s9 + $0x1b4] ss:$12 sps:$4 sm:$0xff]  }
 0x292   :  { %15061 = vmatmul.mubr.msk.bf16.vlgmr.msra.gmra.mrb[24].mxu0 %vm3740_vm1, %v65_v18  ;;  %v18890_v18 = vld [vmem:[%s25743_s9 + $0x170] ss:$12 sps:$4 sm:$0xff]  }
 0x293   :  { %4642 = vmatpush1.bf16.msra.mxu0 %v18828_v30  ;;  %v18899_v30 = vld [vmem:[%s25743_s9 + $0x188] ss:$12 sps:$4 sm:$0xff]  }
 0x294   :  { %4643 = vmatprep.subr.bf16.mxu0 %v18833_v50  ;;  %17206 = vmatpush3.bf16.msra.mxu1 %v18866_v58  ;;  %v18905_v58 = vld [vmem:[%s25743_s9 + $0x278] ss:$12 sps:$4 sm:$0xff]  }
 0x295   :  { %17207 = vmatprep.subr.bf16.mxu1 %v18870_v62  ;;  %v18908_v62 = vld [vmem:[%s25743_s9 + $0x1cc] ss:$12 sps:$4 sm:$0xff]  }
 0x297   :  { %4644 = vmatpush1.bf16.msra.mxu0 %v18831_v52  ;;  %v18898_v52 = vld [vmem:[%s25743_s9 + $0x19c] ss:$12 sps:$4 sm:$0xff]  }
 0x298   :  { %4645 = vmatprep.subr.bf16.mxu0 %v18836_v47  ;;  %17208 = vmatpush3.bf16.msra.mxu1 %v18871_v63  ;;  %v18900_v47 = vld [vmem:[%s25743_s9 + $0x260] ss:$12 sps:$4 sm:$0xff]   ;;  %v18910_v63 = vld [vmem:[%s25743_s9 + $0x290] ss:$12 sps:$4 sm:$0xff]  }
 0x299   :  { %17209 = vmatprep.subr.bf16.mxu1 %v18875_v0  ;;  %v18906_v0 = vld [vmem:[%s25743_s9 + $0x1c8] ss:$12 sps:$4 sm:$0xff]  }
 0x29b   :  { %4646 = vmatpush1.bf16.msra.mxu0 %v18834_v53 }
 0x29c   :  { %4647 = vmatprep.subr.bf16.mxu0 %v18839_v27  ;;  %17210 = vmatpush3.bf16.msra.mxu1 %v18876_v6  ;;  %v18929_v6 = vld [vmem:[%s25743_s9 + $0x218] ss:$12 sps:$4 sm:$0xff]  }
 0x29d   :  { %17211 = vmatprep.subr.bf16.mxu1 %v18880_v23  ;;  %v18930_v23 = vld [vmem:[%s25743_s9 + $0x2f0] ss:$12 sps:$4 sm:$0xff]  }
 0x29f   :  { %4648 = vmatpush1.bf16.msra.mxu0 %v18837_v55  ;;  %v18896_v55 = vld [vmem:[%s25743_s9 + $0x198] ss:$12 sps:$4 sm:$0xff]  }
 0x2a0   :  { %4649 = vmatprep.subr.bf16.mxu0 %v18842_v56  ;;  %17212 = vmatpush3.bf16.msra.mxu1 %v18881_v24  ;;  %v18904_v56 = vld [vmem:[%s25743_s9 + $0x1a0] ss:$12 sps:$4 sm:$0xff]  }
 0x2a1   :  { %17213 = vmatprep.subr.bf16.mxu1 %v18885_v29 }
 0x2a3   :  { %4650 = vmatpush1.bf16.msra.mxu0 %v18840_v59  ;;  %v18901_v59 = vld [vmem:[%s25743_s9 + $0x1b0] ss:$12 sps:$4 sm:$0xff]  }
 0x2a4   :  { %4651 = vmatprep.subr.bf16.mxu0 %v18845_v61  ;;  %17214 = vmatpush3.bf16.msra.mxu1 %v18886_v31  ;;  %v18909_v61 = vld [vmem:[%s25743_s9 + $0x1b8] ss:$12 sps:$4 sm:$0xff]  }
 0x2a5   :  { %17215 = vmatprep.subr.bf16.mxu1 %v18890_v18 }
 0x2a7   :  { %4652 = vmatpush1.bf16.msra.mxu0 %v18843_v1  ;;  %v18914_v1 = vld [vmem:[%s25743_s9 + $0x1d0] ss:$12 sps:$4 sm:$0xff]  }
 0x2a8   :  { %4653 = vmatprep.subr.bf16.mxu0 %v18848_v2  ;;  %17216 = vmatpush3.bf16.msra.mxu1 %v18891_v54  ;;  %v18913_v2 = vld [vmem:[%s25743_s9 + $0x1e4] ss:$12 sps:$4 sm:$0xff]  }
 0x2a9   :  { %17223 = vmatprep.subr.bf16.mxu1 %v18895_v33 }
 0x2ab   :  { %4654 = vmatpush1.bf16.msra.mxu0 %v18846_v3  ;;  %v18915_v3 = vld [vmem:[%s25743_s9 + $0x2a8] ss:$12 sps:$4 sm:$0xff]  }
 0x2ac   :  { %4655 = vmatprep.subr.bf16.mxu0 %v18851_v4  ;;  %v18911_v4 = vld [vmem:[%s25743_s9 + $0x1e0] ss:$12 sps:$4 sm:$0xff]  }
 0x2af   :  { %4656 = vmatpush1.bf16.msra.mxu0 %v18849_v7  ;;  %v18919_v7 = vld [vmem:[%s25743_s9 + $0x1e8] ss:$12 sps:$4 sm:$0xff]  }
 0x2b0   :  { %4657 = vmatprep.subr.bf16.mxu0 %v18854_v8  ;;  %v18918_v8 = vld [vmem:[%s25743_s9 + $0x1fc] ss:$12 sps:$4 sm:$0xff]  }
 0x2b3   :  { %4658 = vmatpush1.bf16.msra.mxu0 %v18852_v9  ;;  %v18920_v9 = vld [vmem:[%s25743_s9 + $0x2c0] ss:$12 sps:$4 sm:$0xff]  }
 0x2b4   :  { %4659 = vmatprep.subr.bf16.mxu0 %v18859_v14  ;;  %v18916_v14 = vld [vmem:[%s25743_s9 + $0x1f8] ss:$12 sps:$4 sm:$0xff]  }
 0x2b7   :  { %4660 = vmatpush1.bf16.msra.mxu0 %v18857_v15  ;;  %v18924_v15 = vld [vmem:[%s25743_s9 + $0x200] ss:$12 sps:$4 sm:$0xff]  }
 0x2b8   :  { %4661 = vmatprep.subr.bf16.mxu0 %v18864_v16  ;;  %v18923_v16 = vld [vmem:[%s25743_s9 + $0x214] ss:$12 sps:$4 sm:$0xff]  }
 0x2bb   :  { %4662 = vmatpush1.bf16.msra.mxu0 %v18862_v19  ;;  %v18925_v19 = vld [vmem:[%s25743_s9 + $0x2d8] ss:$12 sps:$4 sm:$0xff]  }
 0x2bc   :  { %4663 = vmatprep.subr.bf16.mxu0 %v18869_v5  ;;  %v18921_v5 = vld [vmem:[%s25743_s9 + $0x210] ss:$12 sps:$4 sm:$0xff]  }
 0x2bf   :  { %4664 = vmatpush1.bf16.msra.mxu0 %v18867_v21 }
 0x2c0   :  { %4665 = vmatprep.subr.bf16.mxu0 %v18874_v22  ;;  %v18928_v22 = vld [vmem:[%s25743_s9 + $0x22c] ss:$12 sps:$4 sm:$0xff]  }
 0x2c3   :  { %4666 = vmatpush1.bf16.msra.mxu0 %v18872_v26 }
 0x2c4   :  { %4667 = vmatprep.subr.bf16.mxu0 %v18879_v20 }
 0x2c7   :  { %4668 = vmatpush1.bf16.msra.mxu0 %v18877_v28 }
 0x2c8   :  { %4669 = vmatprep.subr.bf16.mxu0 %v18884_v25 }
 0x2cb   :  { %4670 = vmatpush1.bf16.msra.mxu0 %v18882_v51 }
 0x2cc   :  { %4671 = vmatprep.subr.bf16.mxu0 %v18889_v12 }
 0x2cf   :  { %4672 = vmatpush1.bf16.msra.mxu0 %v18887_v32 }
 0x2d0   :  { %4682 = vmatprep.subr.bf16.mxu0 %v18894_v34 }
 0x31a   :  { %v3778_v35 = vpop.f32.mrb[20].mxu1 }
 0x31b   :  { %v3780_v36 = vpop.f32.mrb[21].mxu1 }
 0x31c   :  { %v3782_v37 = vpop.f32.mrb[22].mxu1 }
 0x31d   :  { %v3783_v38 = vpop.f32.mrb[23].mxu1 }
 0x33a   :  { %v22079_v39 = vpop.f32.mrb[24].mxu1 }
 0x33b   :  { %v22081_v40 = vpop.f32.mrb[25].mxu1 }
 0x33c   :  { %v3823_v41 = vpop.f32.mrb[26].mxu1 }
 0x33d   :  { %v3824_v43 = vpop.f32.mrb[27].mxu1 }
 0x342   :  { %v3903_v44 = vpop.f32.mrb[28].mxu1 }
 0x343   :  { %v3991_v45 = vmul.f32 %v3903_v44, %v3778_v35  ;;  %v3905_v42 = vpop.f32.mrb[29].mxu1 }
 0x344   :  { %v3992_v46 = vmul.f32 %v3905_v42, %v3780_v36  ;;  %v3907_v48 = vpop.f32.mrb[30].mxu1 }
 0x345   :  { %v3908_v50 = vpop.f32.mrb[31].mxu1  ;;  %v3996_v27 = vpack.c.bf16 %v3991_v45, %v3991_v45 }
 0x346   :  { %v3997_v53 = vpack.c.bf16 %v3992_v46, %v3992_v46 }
 0x348   :  { %4673 = vmatprep.mubr.bf16.mxu0 %v3997_v53  ;;  %4796 = vmatprep.mubr.bf16.mxu1 %v3997_v53 }
 0x349   :  { %4674 = vmatmul.mubr.bf16.vlgmr.msra.gmra.mrb[28].mxu0 %v3996_v27  ;;  %4797 = vmatmul.mubr.bf16.vlgmr.msra.gmra.mrb[36].mxu1 %v3996_v27 }
 0x34a   :  { %4683 = vmatpush1.bf16.msra.mxu0 %v18892_v49  ;;  %17224 = vmatpush3.bf16.msra.mxu1 %v18899_v30 }
 0x34b   :  { %4684 = vmatprep.subr.bf16.mxu0 %v18898_v52  ;;  %17225 = vmatprep.subr.bf16.mxu1 %v18900_v47 }
 0x34e   :  { %4685 = vmatpush1.bf16.msra.mxu0 %v18896_v55  ;;  %17226 = vmatpush3.bf16.msra.mxu1 %v18904_v56 }
 0x34f   :  { %4686 = vmatprep.subr.bf16.mxu0 %v18903_v57  ;;  %17227 = vmatprep.subr.bf16.mxu1 %v18905_v58 }
 0x352   :  { %4687 = vmatpush1.bf16.msra.mxu0 %v18901_v59  ;;  %17228 = vmatpush3.bf16.msra.mxu1 %v18909_v61 }
 0x353   :  { %4688 = vmatprep.subr.bf16.mxu0 %v18908_v62  ;;  %17229 = vmatprep.subr.bf16.mxu1 %v18910_v63 }
 0x356   :  { %4689 = vmatpush1.bf16.msra.mxu0 %v18906_v0  ;;  %17230 = vmatpush3.bf16.msra.mxu1 %v18914_v1 }
 0x357   :  { %4690 = vmatprep.subr.bf16.mxu0 %v18913_v2  ;;  %17231 = vmatprep.subr.bf16.mxu1 %v18915_v3 }
 0x35a   :  { %4691 = vmatpush1.bf16.msra.mxu0 %v18911_v4  ;;  %17232 = vmatpush3.bf16.msra.mxu1 %v18919_v7 }
 0x35b   :  { %4692 = vmatprep.subr.bf16.mxu0 %v18918_v8  ;;  %17233 = vmatprep.subr.bf16.mxu1 %v18920_v9 }
 0x35d   :  { %v3860_v21 = vpop.f32.mrb[20].mxu0  ;;  %v3985_v24 = vpop.f32.mrb[32].mxu1 }
 0x35e   :  { %4693 = vmatpush1.bf16.msra.mxu0 %v18916_v14  ;;  %17234 = vmatpush3.bf16.msra.mxu1 %v18924_v15  ;;  %v17825_v26 = vpop.f32.mrb[21].mxu0  ;;  %v22167_v29 = vmul.f32 %v3985_v24, %v3860_v21  ;;  %v17833_v20 = vpop.f32.mrb[33].mxu1 }
 0x35f   :  { %4694 = vmatprep.subr.bf16.mxu0 %v18923_v16  ;;  %v3863_v31 = vpop.f32.mrb[22].mxu0  ;;  %17235 = vmatprep.subr.bf16.mxu1 %v18925_v19  ;;  %v3988_v28 = vpop.f32.mrb[34].mxu1 }
 0x360   :  { %v17826_v25 = vpop.f32.mrb[23].mxu0  ;;  %v17834_v18 = vpop.f32.mrb[35].mxu1 }
 0x361   :  { %28 = vsyncpa [#allocation8], 0  ;;  %v18926_v54 = vld [vmem:[%s25743_s9 + $0x228] ss:$12 sps:$4 sm:$0xff]   ;;  %v18934_v51 = vld [vmem:[%s25743_s9 + $0x230] ss:$12 sps:$4 sm:$0xff]   ;;  %v4000_v3 = vpack.c.bf16 %v22167_v29, %v22167_v29 }
 0x362   :  { %4695 = vmatpush1.bf16.msra.mxu0 %v18921_v5  ;;  %17236 = vmatpush3.bf16.msra.mxu1 %v18929_v6  ;;  %v18933_v12 = vld [vmem:[%s25743_s9 + $0x244] ss:$12 sps:$4 sm:$0xff]   ;;  %v18931_v35 = vld [vmem:[%s25743_s9 + $0x240] ss:$12 sps:$4 sm:$0xff]   ;;  %v18937_v38 = vld [vmem:[%s25743_s9 + $0x25c] ss:$12 sps:$4 sm:$0xff]  }
 0x363   :  { %4696 = vmatprep.subr.bf16.mxu0 %v18928_v22  ;;  %17237 = vmatprep.subr.bf16.mxu1 %v18930_v23  ;;  %v18941_v45 = vld [vmem:[%s25743_s9 + $0x274] ss:$12 sps:$4 sm:$0xff]   ;;  %v18939_v46 = vld [vmem:[%s25743_s9 + $0x270] ss:$12 sps:$4 sm:$0xff]   ;;  %v18945_v48 = vld [vmem:[%s25743_s9 + $0x28c] ss:$12 sps:$4 sm:$0xff]  }
 0x364   :  { %v18942_v42 = vld [vmem:[%s25743_s9 + $0x320] ss:$12 sps:$4 sm:$0xff]   ;;  %v18946_v49 = vld [vmem:[%s25743_s9 + $0x338] ss:$12 sps:$4 sm:$0xff]   ;;  %v18943_v30 = vld [vmem:[%s25743_s9 + $0x288] ss:$12 sps:$4 sm:$0xff]  }
 0x365   :  { %v3944_v32 = vpop.f32.mrb[24].mxu0  ;;  %v18949_v50 = vld [vmem:[%s25743_s9 + $0x2a4] ss:$12 sps:$4 sm:$0xff]   ;;  %v18947_v47 = vld [vmem:[%s25743_s9 + $0x2a0] ss:$12 sps:$4 sm:$0xff]   ;;  %s25768_s23 = sld [smem:[#allocation13_spill]] }
 0x366   :  { %v3993_v33 = vmul.f32 %v3944_v32, %v22079_v39  ;;  %4697 = vmatpush1.bf16.msra.mxu0 %v18926_v54  ;;  %v3946_v34 = vpop.f32.mrb[25].mxu0  ;;  %17238 = vmatpush3.bf16.msra.mxu1 %v18934_v51  ;;  %v18938_v39 = vld [vmem:[%s25743_s9 + $0x308] ss:$12 sps:$4 sm:$0xff]   ;;  %v18950_v52 = vld [vmem:[%s25743_s9 + $0x350] ss:$12 sps:$4 sm:$0xff]   ;;  %vm5010_vm2 = vcmask 523264  }
 0x367   :  { %v3994_v36 = vmul.f32 %v3946_v34, %v22081_v40  ;;  %4698 = vmatprep.subr.bf16.mxu0 %v18933_v12  ;;  %17835 = vmatprep.subr.bf16.mxu1 %v20412_v13  ;;  %v3948_v37 = vpop.f32.mrb[26].mxu0  ;;  %v18935_v40 = vld [vmem:[%s25743_s9 + $0x258] ss:$12 sps:$4 sm:$0xff]   ;;  %v18953_v53 = vld [vmem:[%s25743_s9 + $0x2bc] ss:$12 sps:$4 sm:$0xff]  }
 0x368   :  { %v3949_v41 = vpop.f32.mrb[27].mxu0  ;;  %v3998_v44 = vpack.c.bf16 %v3993_v33, %v3993_v33  ;;  %v18954_v27 = vld [vmem:[%s25743_s9 + $0x368] ss:$12 sps:$4 sm:$0xff]   ;;  %v18951_v55 = vld [vmem:[%s25743_s9 + $0x2b8] ss:$12 sps:$4 sm:$0xff]  }
 0x369   :  { %v3999_v43 = vpack.c.bf16 %v3994_v36, %v3994_v36  ;;  %v18957_v56 = vld [vmem:[%s25743_s9 + $0x2d4] ss:$12 sps:$4 sm:$0xff]   ;;  %v18955_v58 = vld [vmem:[%s25743_s9 + $0x2d0] ss:$12 sps:$4 sm:$0xff]   ;;  %v18961_v59 = vld [vmem:[%s25743_s9 + $0x2ec] ss:$12 sps:$4 sm:$0xff]  }
 0x36a   :  { %4699 = vmatpush1.bf16.msra.mxu0 %v18931_v35  ;;  %v18958_v57 = vld [vmem:[%s25743_s9 + $0x380] ss:$12 sps:$4 sm:$0xff]   ;;  %v18962_v61 = vld [vmem:[%s25743_s9 + $0x398] ss:$12 sps:$4 sm:$0xff]   ;;  %v18959_v62 = vld [vmem:[%s25743_s9 + $0x2e8] ss:$12 sps:$4 sm:$0xff]  }
 0x36b   :  { %4714 = vmatprep.mubr.bf16.mxu0 %v3999_v43  ;;  %4836 = vmatprep.mubr.bf16.mxu1 %v3999_v43  ;;  %v18965_v63 = vld [vmem:[%s25743_s9 + $0x304] ss:$12 sps:$4 sm:$0xff]   ;;  %v18963_v1 = vld [vmem:[%s25743_s9 + $0x300] ss:$12 sps:$4 sm:$0xff]   ;;  %v18969_v2 = vld [vmem:[%s25743_s9 + $0x31c] ss:$12 sps:$4 sm:$0xff]  }
 0x36c   :  { %4700 = vmatprep.subr.bf16.mxu0 %v18937_v38  ;;  %4837 = vmatmul.mubr.bf16.vlgmr.msra.gmra.mrb[40].mxu1 %v3998_v44  ;;  %v18966_v0 = vld [vmem:[%s25743_s9 + $0x3b0] ss:$12 sps:$4 sm:$0xff]   ;;  %v18967_v4 = vld [vmem:[%s25743_s9 + $0x318] ss:$12 sps:$4 sm:$0xff]   ;;  %v18972_v7 = vld [vmem:[%s25743_s9 + $0x334] ss:$12 sps:$4 sm:$0xff]  }
 0x36d   :  { %17836 = vmatpush3.bf16.msra.mxu1 %v18938_v39  ;;  %17851 = vmatprep.mubr.msk.bf16.mxu1 %vm20413_vm0, %v20412_v13  ;;  %v18970_v8 = vld [vmem:[%s25743_s9 + $0x330] ss:$12 sps:$4 sm:$0xff]   ;;  %v18975_v9 = vld [vmem:[%s25743_s9 + $0x34c] ss:$12 sps:$4 sm:$0xff]   ;;  %v18973_v14 = vld [vmem:[%s25743_s9 + $0x348] ss:$12 sps:$4 sm:$0xff]  }
 0x36e   :  { %4701 = vmatpush1.bf16.msra.mxu0 %v18935_v40  ;;  %17837 = vmatprep.subr.bf16.mxu1 %v20412_v13  ;;  %v18978_v15 = vld [vmem:[%s25743_s9 + $0x364] ss:$12 sps:$4 sm:$0xff]   ;;  %v18976_v16 = vld [vmem:[%s25743_s9 + $0x360] ss:$12 sps:$4 sm:$0xff]   ;;  %v18981_v19 = vld [vmem:[%s25743_s9 + $0x37c] ss:$12 sps:$4 sm:$0xff]  }
 0x36f   :  { %4702 = vmatprep.subr.bf16.mxu0 %v18941_v45  ;;  %v18979_v5 = vld [vmem:[%s25743_s9 + $0x378] ss:$12 sps:$4 sm:$0xff]   ;;  %v18984_v6 = vld [vmem:[%s25743_s9 + $0x394] ss:$12 sps:$4 sm:$0xff]   ;;  %v18982_v21 = vld [vmem:[%s25743_s9 + $0x390] ss:$12 sps:$4 sm:$0xff]  }
 0x370   :  { %v18987_v22 = vld [vmem:[%s25743_s9 + $0x3ac] ss:$12 sps:$4 sm:$0xff]   ;;  %v18985_v23 = vld [vmem:[%s25743_s9 + $0x3a8] ss:$12 sps:$4 sm:$0xff]   ;;  %v18994_v25 = vld [vmem:[%s25745_s11 + $0x110] ss:$12 sps:$4 sm:$0xff]  }
 0x371   :  { %17838 = vmatpush3.bf16.msra.mxu1 %v18942_v42  ;;  %v18988_v24 = vld [vmem:[%s25745_s11 + $0xc8] ss:$12 sps:$4 sm:$0xff]   ;;  %v18990_v29 = vld [vmem:[%s25745_s11 + $0xe0] ss:$12 sps:$4 sm:$0xff]   ;;  %v18992_v31 = vld [vmem:[%s25745_s11 + $0xf8] ss:$12 sps:$4 sm:$0xff]  }
 0x372   :  { %4703 = vmatpush1.bf16.msra.mxu0 %v18939_v46  ;;  %17839 = vmatprep.subr.bf16.mxu1 %v20412_v13  ;;  %v18989_v26 = vld [vmem:[%s25745_s11 + $0x8] ss:$12 sps:$4 sm:$0xff]   ;;  %v18991_v20 = vld [vmem:[%s25745_s11 + $0x20] ss:$12 sps:$4 sm:$0xff]   ;;  %v18993_v28 = vld [vmem:[%s25745_s11 + $0x38] ss:$12 sps:$4 sm:$0xff]  }
 0x373   :  { %4704 = vmatprep.subr.bf16.mxu0 %v18945_v48  ;;  %v18995_v18 = vld [vmem:[%s25745_s11 + $0x50] ss:$12 sps:$4 sm:$0xff]   ;;  %v18996_v54 = vld [vmem:[%s25745_s11 + $0x128] ss:$12 sps:$4 sm:$0xff]   ;;  %v18998_v12 = vld [vmem:[%s25745_s11 + $0x140] ss:$12 sps:$4 sm:$0xff]  }
 0x374   :  { %v18997_v51 = vld [vmem:[%s25745_s11 + $0x68] ss:$12 sps:$4 sm:$0xff]   ;;  %v18999_v32 = vld [vmem:[%s25745_s11 + $0x80] ss:$12 sps:$4 sm:$0xff]   ;;  %v19000_v33 = vld [vmem:[%s25745_s11 + $0x158] ss:$12 sps:$4 sm:$0xff]  }
 0x375   :  { %17840 = vmatpush3.bf16.msra.mxu1 %v18946_v49  ;;  %v19001_v34 = vld [vmem:[%s25745_s11 + $0x98] ss:$12 sps:$4 sm:$0xff]   ;;  %v19002_v35 = vld [vmem:[%s25745_s11 + $0x170] ss:$12 sps:$4 sm:$0xff]   ;;  %v19006_v38 = vld [vmem:[%s25745_s11 + $0x248] ss:$12 sps:$4 sm:$0xff]  }
 0x376   :  { %4705 = vmatpush1.bf16.msra.mxu0 %v18943_v30  ;;  %17841 = vmatprep.subr.bf16.mxu1 %v20412_v13  ;;  %v19003_v36 = vld [vmem:[%s25745_s11 + $0xb0] ss:$12 sps:$4 sm:$0xff]   ;;  %v22361_v37 = vld [vmem:[%s25768_s23 + $0x4] ss:$20 sps:$4 sm:$0xff]   ;;  %v22370_v41 = vld [vmem:[%s25768_s23] ss:$20 sps:$4 sm:$0xff]  }
 0x377   :  { %4706 = vmatprep.subr.bf16.mxu0 %v18949_v50  ;;  %v19008_v43 = vld [vmem:[%s25745_s11 + $0x188] ss:$12 sps:$4 sm:$0xff]   ;;  %v19009_v39 = vld [vmem:[%s25745_s11 + $0x260] ss:$12 sps:$4 sm:$0xff]   ;;  %v19011_v40 = vld [vmem:[%s25745_s11 + $0x278] ss:$12 sps:$4 sm:$0xff]  }
 0x378   :  { %v19012_v45 = vld [vmem:[%s25745_s11 + $0x1b8] ss:$12 sps:$4 sm:$0xff]   ;;  %v19013_v42 = vld [vmem:[%s25745_s11 + $0x290] ss:$12 sps:$4 sm:$0xff]   ;;  %v19015_v48 = vld [vmem:[%s25745_s11 + $0x2a8] ss:$12 sps:$4 sm:$0xff]  }
 0x379   :  { %17842 = vmatpush3.bf16.msra.mxu1 %v18950_v52  ;;  %v19014_v46 = vld [vmem:[%s25745_s11 + $0x1d0] ss:$12 sps:$4 sm:$0xff]   ;;  %v19016_v49 = vld [vmem:[%s25745_s11 + $0x1e8] ss:$12 sps:$4 sm:$0xff]   ;;  %v19017_v30 = vld [vmem:[%s25745_s11 + $0x2c0] ss:$12 sps:$4 sm:$0xff]  }
 0x37a   :  { %4707 = vmatpush1.bf16.msra.mxu0 %v18947_v47  ;;  %17843 = vmatprep.subr.bf16.mxu1 %v20412_v13  ;;  %v19018_v50 = vld [vmem:[%s25745_s11 + $0x200] ss:$12 sps:$4 sm:$0xff]   ;;  %v19019_v52 = vld [vmem:[%s25745_s11 + $0x2d8] ss:$12 sps:$4 sm:$0xff]   ;;  %s25769_s9 = sld [smem:[#allocation14_spill]] }
 0x37b   :  { %4708 = vmatprep.subr.bf16.mxu0 %v18953_v53  ;;  %v19020_v47 = vld [vmem:[%s25745_s11 + $0x218] ss:$12 sps:$4 sm:$0xff]   ;;  %v19021_v53 = vld [vmem:[%s25745_s11 + $0x2f0] ss:$12 sps:$4 sm:$0xff]  }
 0x37d   :  { %17844 = vmatpush3.bf16.msra.mxu1 %v18954_v27  ;;  %v19022_v27 = vld [vmem:[%s25744_s10 + $0x40] sm:$0xff]  }
 0x37e   :  { %4709 = vmatpush1.bf16.msra.mxu0 %v18951_v55  ;;  %17845 = vmatprep.subr.bf16.mxu1 %v20412_v13  ;;  %v19024_v55 = vld [vmem:[%s25744_s10] sm:$0xff]  }
 0x37f   :  { %4710 = vmatprep.subr.bf16.mxu0 %v18957_v56  ;;  %v19023_v56 = vld [vmem:[%s25745_s11 + $0x230] ss:$12 sps:$4 sm:$0xff]  }
 0x381   :  { %17846 = vmatpush3.bf16.msra.mxu1 %v18958_v57  ;;  %v22427_v57 = vld [vmem:[%s25768_s23 + $0xc] ss:$20 sps:$4 sm:$0xff]  }
 0x382   :  { %4711 = vmatpush1.bf16.msra.mxu0 %v18955_v58  ;;  %17847 = vmatprep.subr.bf16.mxu1 %v20412_v13  ;;  %v19027_v58 = vld [vmem:[%s25744_s10 + $0x48] sm:$0xff]  }
 0x383   :  { %4712 = vmatprep.subr.bf16.mxu0 %v18961_v59  ;;  %v22436_v59 = vld [vmem:[%s25768_s23 + $0x8] ss:$20 sps:$4 sm:$0xff]  }
 0x385   :  { %17848 = vmatpush3.bf16.msra.mxu1 %v18962_v61  ;;  %v19030_v61 = vld [vmem:[%s25744_s10 + $0x8] sm:$0xff]  }
 0x386   :  { %4713 = vmatpush1.bf16.msra.mxu0 %v18959_v62  ;;  %17849 = vmatprep.subr.bf16.mxu1 %v20412_v13  ;;  %v19031_v62 = vld [vmem:[%s25744_s10 + $0x50] sm:$0xff]  }
 0x387   :  { %4723 = vmatprep.subr.bf16.mxu0 %v18965_v63  ;;  %v19029_v63 = vld [vmem:[%s25745_s11 + $0x308] ss:$12 sps:$4 sm:$0xff]  }
 0x389   :  { %4715 = vmatmul.mubr.bf16.vlgmr.msra.gmra.mrb[28].mxu0 %v3998_v44  ;;  %17850 = vmatpush3.bf16.msra.mxu1 %v18966_v0  ;;  %v19010_v44 = vld [vmem:[%s25745_s11 + $0x1a0] ss:$12 sps:$4 sm:$0xff]   ;;  %v19033_v0 = vld [vmem:[%s25744_s10 + $0x10] sm:$0xff]  }
 0x38a   :  { %4724 = vmatpush1.bf16.msra.mxu0 %v18963_v1  ;;  %4755 = vmatprep.mubr.bf16.mxu0 %v20411_v17  ;;  %v19034_v1 = vld [vmem:[%s25744_s10 + $0x58] sm:$0xff]  }
 0x38b   :  { %4725 = vmatprep.subr.bf16.mxu0 %v18969_v2  ;;  %17254 = vmatprep.subr.bf16.mxu1 %v19022_v27  ;;  %v19032_v2 = vld [vmem:[%s25745_s11 + $0x320] ss:$12 sps:$4 sm:$0xff]   ;;  %v19120_v27 = vld [vmem:[%s25747_s13 + $0x124] ss:$12 sps:$4 sm:$0xff]  }
 0x38c   :  { %17852 = vmatmul.mubr.bf16.vlgmr.msra.gmra.mrb[44].mxu1 %v4000_v3 }
 0x38d   :  { %17255 = vmatpush3.bf16.msra.mxu1 %v19024_v55  ;;  %v19118_v55 = vld [vmem:[%s25747_s13 + $0x120] ss:$12 sps:$4 sm:$0xff]  }
 0x38e   :  { %4726 = vmatpush1.bf16.msra.mxu0 %v18967_v4  ;;  %17256 = vmatprep.subr.bf16.mxu1 %v19027_v58  ;;  %v19037_v4 = vld [vmem:[%s25744_s10 + $0x60] sm:$0xff]  }
 0x38f   :  { %4727 = vmatprep.subr.bf16.mxu0 %v18972_v7  ;;  %v19035_v7 = vld [vmem:[%s25745_s11 + $0x338] ss:$12 sps:$4 sm:$0xff]  }
 0x390   :  { %v19124_v58 = vld [vmem:[%s25747_s13 + $0x138] ss:$12 sps:$4 sm:$0xff]  }
 0x391   :  { %17257 = vmatpush3.bf16.msra.mxu1 %v19030_v61  ;;  %v19132_v61 = vld [vmem:[%s25747_s13 + $0x154] ss:$12 sps:$4 sm:$0xff]  }
 0x392   :  { %4728 = vmatpush1.bf16.msra.mxu0 %v18970_v8  ;;  %17258 = vmatprep.subr.bf16.mxu1 %v19031_v62  ;;  %v19039_v8 = vld [vmem:[%s25744_s10 + $0x20] sm:$0xff]   ;;  %v19130_v62 = vld [vmem:[%s25747_s13 + $0x150] ss:$12 sps:$4 sm:$0xff]  }
 0x393   :  { %4729 = vmatprep.subr.bf16.mxu0 %v18975_v9  ;;  %v19040_v9 = vld [vmem:[%s25744_s10 + $0x68] sm:$0xff]  }
 0x395   :  { %17259 = vmatpush3.bf16.msra.mxu1 %v19033_v0 }
 0x396   :  { %4730 = vmatpush1.bf16.msra.mxu0 %v18973_v14  ;;  %17260 = vmatprep.subr.bf16.mxu1 %v19034_v1  ;;  %v19038_v14 = vld [vmem:[%s25745_s11 + $0x350] ss:$12 sps:$4 sm:$0xff]   ;;  %v19138_v1 = vld [vmem:[%s25747_s13 + $0x16c] ss:$12 sps:$4 sm:$0xff]  }
 0x397   :  { %4731 = vmatprep.subr.bf16.mxu0 %v18978_v15  ;;  %v19042_v15 = vld [vmem:[%s25744_s10 + $0x28] sm:$0xff]  }
 0x39a   :  { %4732 = vmatpush1.bf16.msra.mxu0 %v18976_v16  ;;  %v19043_v16 = vld [vmem:[%s25744_s10 + $0x70] sm:$0xff]  }
 0x39b   :  { %4733 = vmatprep.subr.bf16.mxu0 %v18981_v19  ;;  %v19041_v19 = vld [vmem:[%s25745_s11 + $0x368] ss:$12 sps:$4 sm:$0xff]  }
 0x39e   :  { %4734 = vmatpush1.bf16.msra.mxu0 %v18979_v5  ;;  %v19045_v5 = vld [vmem:[%s25744_s10 + $0x30] sm:$0xff]  }
 0x39f   :  { %4735 = vmatprep.subr.bf16.mxu0 %v18984_v6  ;;  %v19044_v6 = vld [vmem:[%s25745_s11 + $0x380] ss:$12 sps:$4 sm:$0xff]  }
 0x3a2   :  { %4736 = vmatpush1.bf16.msra.mxu0 %v18982_v21  ;;  %v19046_v21 = vld [vmem:[%s25744_s10 + $0x78] sm:$0xff]  }
 0x3a3   :  { %4737 = vmatprep.subr.bf16.mxu0 %v18987_v22  ;;  %v19048_v22 = vld [vmem:[%s25744_s10 + $0x38] sm:$0xff]  }
 0x3a6   :  { %4738 = vmatpush1.bf16.msra.mxu0 %v18985_v23  ;;  %v19047_v23 = vld [vmem:[%s25745_s11 + $0x398] ss:$12 sps:$4 sm:$0xff]  }
 0x3a7   :  { %17281 = vmatprep.subr.bf16.mxu0 %v18988_v24  ;;  %v19049_v24 = vld [vmem:[%s25745_s11 + $0x3b0] ss:$12 sps:$4 sm:$0xff]  }
 0x3a9   :  { %4756 = vmatmul.mubr.bf16.vlgmr.msra.gmra.mrb[28].mxu0 %v4000_v3  ;;  %v19036_v3 = vld [vmem:[%s25744_s10 + $0x18] sm:$0xff]  }
 0x3aa   :  { %17282 = vmatpush3.bf16.msra.mxu0 %v18989_v26  ;;  %6380 = vmatprep.mubr.bf16.mxu0 %v22361_v37  ;;  %v19053_v26 = vld [vmem:[%s25747_s13 + $0x4] ss:$12 sps:$4 sm:$0xff]  }
 0x3ab   :  { %17283 = vmatprep.subr.bf16.mxu0 %v18990_v29  ;;  %17261 = vmatpush3.bf16.msra.mxu1 %v19036_v3  ;;  %v22519_v29 = vld [vmem:[%s25768_s23 + $0x10] ss:$20 sps:$4 sm:$0xff]  }
 0x3ac   :  { %17262 = vmatprep.subr.bf16.mxu1 %v19037_v4 }
 0x3ae   :  { %17284 = vmatpush3.bf16.msra.mxu0 %v18991_v20  ;;  %v19051_v20 = vld [vmem:[%s25747_s13] ss:$12 sps:$4 sm:$0xff]  }
 0x3af   :  { %17285 = vmatprep.subr.bf16.mxu0 %v18992_v31  ;;  %17263 = vmatpush3.bf16.msra.mxu1 %v19039_v8  ;;  %v19058_v31 = vld [vmem:[%s25747_s13 + $0x1c] ss:$12 sps:$4 sm:$0xff]  }
 0x3b0   :  { %17264 = vmatprep.subr.bf16.mxu1 %v19040_v9  ;;  %v22618_v9 = vld [vmem:[%s25768_s23 + $0x2c] ss:$20 sps:$4 sm:$0xff]  }
 0x3b2   :  { %17286 = vmatpush3.bf16.msra.mxu0 %v18993_v28  ;;  %v19056_v28 = vld [vmem:[%s25747_s13 + $0x18] ss:$12 sps:$4 sm:$0xff]  }
 0x3b3   :  { %17287 = vmatprep.subr.bf16.mxu0 %v18994_v25  ;;  %17265 = vmatpush3.bf16.msra.mxu1 %v19042_v15  ;;  %v19062_v25 = vld [vmem:[%s25747_s13 + $0x34] ss:$12 sps:$4 sm:$0xff]   ;;  %v22626_v15 = vld [vmem:[%s25768_s23 + $0x28] ss:$20 sps:$4 sm:$0xff]  }
 0x3b4   :  { %17266 = vmatprep.subr.bf16.mxu1 %v19043_v16  ;;  %v19144_v16 = vld [vmem:[%s25747_s13 + $0x180] ss:$12 sps:$4 sm:$0xff]  }
 0x3b6   :  { %17288 = vmatpush3.bf16.msra.mxu0 %v18995_v18  ;;  %v19060_v18 = vld [vmem:[%s25747_s13 + $0x30] ss:$12 sps:$4 sm:$0xff]  }
 0x3b7   :  { %17289 = vmatprep.subr.bf16.mxu0 %v18996_v54  ;;  %17267 = vmatpush3.bf16.msra.mxu1 %v19045_v5  ;;  %v19066_v54 = vld [vmem:[%s25747_s13 + $0x4c] ss:$12 sps:$4 sm:$0xff]  }
 0x3b8   :  { %17268 = vmatprep.subr.bf16.mxu1 %v19046_v21  ;;  %v19151_v5 = vld [vmem:[%s25747_s13 + $0x198] ss:$12 sps:$4 sm:$0xff]   ;;  %v19157_v21 = vld [vmem:[%s25747_s13 + $0x1b0] ss:$12 sps:$4 sm:$0xff]  }
 0x3ba   :  { %17290 = vmatpush3.bf16.msra.mxu0 %v18997_v51  ;;  %v19064_v51 = vld [vmem:[%s25747_s13 + $0x48] ss:$12 sps:$4 sm:$0xff]  }
 0x3bb   :  { %17291 = vmatprep.subr.bf16.mxu0 %v18998_v12  ;;  %17269 = vmatpush3.bf16.msra.mxu1 %v19048_v22  ;;  %v19072_v12 = vld [vmem:[%s25747_s13 + $0x64] ss:$12 sps:$4 sm:$0xff]   ;;  %v19165_v22 = vld [vmem:[%s25747_s13 + $0x1cc] ss:$12 sps:$4 sm:$0xff]  }
 0x3bc   :  { %17855 = vmatprep.subr.bf16.mxu1 %v20412_v13 }
 0x3be   :  { %17292 = vmatpush3.bf16.msra.mxu0 %v18999_v32  ;;  %v19070_v32 = vld [vmem:[%s25747_s13 + $0x60] ss:$12 sps:$4 sm:$0xff]  }
 0x3bf   :  { %17293 = vmatprep.subr.bf16.mxu0 %v19000_v33  ;;  %v19078_v33 = vld [vmem:[%s25747_s13 + $0x7c] ss:$12 sps:$4 sm:$0xff]  }
 0x3c2   :  { %17294 = vmatpush3.bf16.msra.mxu0 %v19001_v34  ;;  %v19076_v34 = vld [vmem:[%s25747_s13 + $0x78] ss:$12 sps:$4 sm:$0xff]  }
 0x3c3   :  { %17295 = vmatprep.subr.bf16.mxu0 %v19002_v35 }
 0x3c6   :  { %17296 = vmatpush3.bf16.msra.mxu0 %v19003_v36  ;;  %v19084_v36 = vld [vmem:[%s25747_s13 + $0x94] ss:$12 sps:$4 sm:$0xff]  }
 0x3c7   :  { %17303 = vmatprep.subr.bf16.mxu0 %v19006_v38 }
 0x3c9   :  { %6381 = vmatmul.mubr.bf16.vlgmr.msra.gmra.mrb[32].mxu0 %v22370_v41 }
 0x3ca   :  { %17304 = vmatpush3.bf16.msra.mxu0 %v19008_v43  ;;  %6421 = vmatprep.mubr.bf16.mxu0 %v22427_v57 }
 0x3cb   :  { %17305 = vmatprep.subr.bf16.mxu0 %v19009_v39 }
 0x3ce   :  { %17306 = vmatpush3.bf16.msra.mxu0 %v19010_v44  ;;  %v19082_v44 = vld [vmem:[%s25747_s13 + $0x90] ss:$12 sps:$4 sm:$0xff]  }
 0x3cf   :  { %17307 = vmatprep.subr.bf16.mxu0 %v19011_v40 }
 0x3d2   :  { %17308 = vmatpush3.bf16.msra.mxu0 %v19012_v45  ;;  %v19090_v45 = vld [vmem:[%s25747_s13 + $0xac] ss:$12 sps:$4 sm:$0xff]  }
 0x3d3   :  { %17309 = vmatprep.subr.bf16.mxu0 %v19013_v42  ;;  %v19088_v42 = vld [vmem:[%s25747_s13 + $0xa8] ss:$12 sps:$4 sm:$0xff]  }
 0x3d6   :  { %17310 = vmatpush3.bf16.msra.mxu0 %v19014_v46  ;;  %v19096_v46 = vld [vmem:[%s25747_s13 + $0xc4] ss:$12 sps:$4 sm:$0xff]  }
 0x3d7   :  { %17311 = vmatprep.subr.bf16.mxu0 %v19015_v48  ;;  %v19094_v48 = vld [vmem:[%s25747_s13 + $0xc0] ss:$12 sps:$4 sm:$0xff]  }
 0x3da   :  { %17312 = vmatpush3.bf16.msra.mxu0 %v19016_v49  ;;  %v19102_v49 = vld [vmem:[%s25747_s13 + $0xdc] ss:$12 sps:$4 sm:$0xff]  }
 0x3db   :  { %17313 = vmatprep.subr.bf16.mxu0 %v19017_v30  ;;  %v19100_v30 = vld [vmem:[%s25747_s13 + $0xd8] ss:$12 sps:$4 sm:$0xff]  }
 0x3de   :  { %17314 = vmatpush3.bf16.msra.mxu0 %v19018_v50  ;;  %v19108_v50 = vld [vmem:[%s25747_s13 + $0xf4] ss:$12 sps:$4 sm:$0xff]  }
 0x3df   :  { %17315 = vmatprep.subr.bf16.mxu0 %v19019_v52  ;;  %v19106_v52 = vld [vmem:[%s25747_s13 + $0xf0] ss:$12 sps:$4 sm:$0xff]  }
 0x3e2   :  { %17316 = vmatpush3.bf16.msra.mxu0 %v19020_v47  ;;  %v19114_v47 = vld [vmem:[%s25747_s13 + $0x10c] ss:$12 sps:$4 sm:$0xff]  }
 0x3e3   :  { %17317 = vmatprep.subr.bf16.mxu0 %v19021_v53  ;;  %v19112_v53 = vld [vmem:[%s25747_s13 + $0x108] ss:$12 sps:$4 sm:$0xff]  }
 0x3e6   :  { %17318 = vmatpush3.bf16.msra.mxu0 %v19023_v56  ;;  %v19126_v56 = vld [vmem:[%s25747_s13 + $0x13c] ss:$12 sps:$4 sm:$0xff]  }
 0x3e7   :  { %17867 = vmatprep.subr.bf16.mxu0 %v20412_v13 }
 0x3e9   :  { %6422 = vmatmul.mubr.bf16.vlgmr.msra.gmra.mrb[36].mxu0 %v22436_v59 }
 0x3ea   :  { %17868 = vmatpush3.bf16.msra.mxu0 %v19029_v63  ;;  %17883 = vmatprep.mubr.msk.bf16.mxu0 %vm20413_vm0, %v20412_v13 }
 0x3eb   :  { %17869 = vmatprep.subr.bf16.mxu0 %v20412_v13 }
 0x3ee   :  { %17870 = vmatpush3.bf16.msra.mxu0 %v19032_v2 }
 0x3ef   :  { %17871 = vmatprep.subr.bf16.mxu0 %v20412_v13 }
 0x3f2   :  { %17872 = vmatpush3.bf16.msra.mxu0 %v19035_v7  ;;  %v19136_v7 = vld [vmem:[%s25747_s13 + $0x168] ss:$12 sps:$4 sm:$0xff]  }
 0x3f3   :  { %17873 = vmatprep.subr.bf16.mxu0 %v20412_v13 }
 0x3f6   :  { %17874 = vmatpush3.bf16.msra.mxu0 %v19038_v14  ;;  %v19146_v14 = vld [vmem:[%s25747_s13 + $0x184] ss:$12 sps:$4 sm:$0xff]  }
 0x3f7   :  { %17875 = vmatprep.subr.bf16.mxu0 %v20412_v13 }
 0x3fa   :  { %17876 = vmatpush3.bf16.msra.mxu0 %v19041_v19  ;;  %v19153_v19 = vld [vmem:[%s25747_s13 + $0x19c] ss:$12 sps:$4 sm:$0xff]  }
 0x3fb   :  { %17877 = vmatprep.subr.bf16.mxu0 %v20412_v13 }
 0x3fe   :  { %17878 = vmatpush3.bf16.msra.mxu0 %v19044_v6  ;;  %v19159_v6 = vld [vmem:[%s25747_s13 + $0x1b4] ss:$12 sps:$4 sm:$0xff]  }
 0x3ff   :  { %17879 = vmatprep.subr.bf16.mxu0 %v20412_v13 }
 0x402   :  { %17880 = vmatpush3.bf16.msra.mxu0 %v19047_v23  ;;  %v19163_v23 = vld [vmem:[%s25747_s13 + $0x1c8] ss:$12 sps:$4 sm:$0xff]  }
 0x403   :  { %17881 = vmatprep.subr.bf16.mxu0 %v20412_v13 }
 0x406   :  { %17882 = vmatpush3.bf16.msra.mxu0 %v19049_v24  ;;  %v19171_v24 = vld [vmem:[%s25747_s13 + $0x1e4] ss:$12 sps:$4 sm:$0xff]  }
 0x407   :  { %7153 = vmatprep.subr.bf16.mxu0 %v19053_v26  ;;  %v19169_v26 = vld [vmem:[%s25747_s13 + $0x1e0] ss:$12 sps:$4 sm:$0xff]  }
 0x409   :  { %17884 = vmatmul.mubr.bf16.vlgmr.msra.gmra.mrb[40].mxu0 %v22519_v29 }
 0x40a   :  { %7154 = vmatpush1.bf16.msra.mxu0 %v19051_v20  ;;  %7185 = vmatprep.mubr.bf16.mxu0 %v22618_v9  ;;  %v19177_v20 = vld [vmem:[%s25747_s13 + $0x1fc] ss:$12 sps:$4 sm:$0xff]  }
 0x40b   :  { %7155 = vmatprep.subr.bf16.mxu0 %v19058_v31  ;;  %v19175_v31 = vld [vmem:[%s25747_s13 + $0x1f8] ss:$12 sps:$4 sm:$0xff]  }
 0x40e   :  { %7156 = vmatpush1.bf16.msra.mxu0 %v19056_v28  ;;  %v19183_v28 = vld [vmem:[%s25747_s13 + $0x214] ss:$12 sps:$4 sm:$0xff]  }
 0x40f   :  { %7157 = vmatprep.subr.bf16.mxu0 %v19062_v25  ;;  %v19181_v25 = vld [vmem:[%s25747_s13 + $0x210] ss:$12 sps:$4 sm:$0xff]  }
 0x412   :  { %7158 = vmatpush1.bf16.msra.mxu0 %v19060_v18 }
 0x413   :  { %7159 = vmatprep.subr.bf16.mxu0 %v19066_v54 }
 0x416   :  { %7160 = vmatpush1.bf16.msra.mxu0 %v19064_v51 }
 0x417   :  { %7161 = vmatprep.subr.bf16.mxu0 %v19072_v12  ;;  %v19189_v12 = vld [vmem:[%s25747_s13 + $0x22c] ss:$12 sps:$4 sm:$0xff]  }
 0x41a   :  { %7162 = vmatpush1.bf16.msra.mxu0 %v19070_v32 }
 0x41b   :  { %7163 = vmatprep.subr.bf16.mxu0 %v19078_v33 }
 0x41c   :  { %v17217_v35 = vpop.f32.mrb[36].mxu1 }
 0x41d   :  { %v17218_v38 = vpop.f32.mrb[37].mxu1 }
 0x41e   :  { %v17219_v43 = vadd.f32 %v17218_v38, %v17217_v35  ;;  %v17220_v39 = vpop.f32.mrb[38].mxu1  ;;  %7164 = vmatpush1.bf16.msra.mxu0 %v19076_v34  ;;  %v19187_v34 = vld [vmem:[%s25747_s13 + $0x228] ss:$12 sps:$4 sm:$0xff]   ;;  %v19195_v35 = vld [vmem:[%s25747_s13 + $0x244] ss:$12 sps:$4 sm:$0xff]  }
 0x41f   :  { %v17221_v40 = vpop.f32.mrb[39].mxu1  ;;  %7165 = vmatprep.subr.bf16.mxu0 %v19084_v36  ;;  %v19193_v36 = vld [vmem:[%s25747_s13 + $0x240] ss:$12 sps:$4 sm:$0xff]   ;;  %v19201_v38 = vld [vmem:[%s25747_s13 + $0x25c] ss:$12 sps:$4 sm:$0xff]  }
 0x420   :  { %v19207_v39 = vld [vmem:[%s25747_s13 + $0x274] ss:$12 sps:$4 sm:$0xff]   ;;  %v19213_v40 = vld [vmem:[%s25747_s13 + $0x28c] ss:$12 sps:$4 sm:$0xff]  }
 0x422   :  { %7166 = vmatpush1.bf16.msra.mxu0 %v19082_v44  ;;  %v19205_v44 = vld [vmem:[%s25747_s13 + $0x270] ss:$12 sps:$4 sm:$0xff]  }
 0x423   :  { %7167 = vmatprep.subr.bf16.mxu0 %v19090_v45  ;;  %v19211_v45 = vld [vmem:[%s25747_s13 + $0x288] ss:$12 sps:$4 sm:$0xff]  }
 0x426   :  { %7168 = vmatpush1.bf16.msra.mxu0 %v19088_v42  ;;  %v19219_v42 = vld [vmem:[%s25747_s13 + $0x2a4] ss:$12 sps:$4 sm:$0xff]  }
 0x427   :  { %7169 = vmatprep.subr.bf16.mxu0 %v19096_v46  ;;  %v19217_v46 = vld [vmem:[%s25747_s13 + $0x2a0] ss:$12 sps:$4 sm:$0xff]  }
 0x42a   :  { %7170 = vmatpush1.bf16.msra.mxu0 %v19094_v48  ;;  %v19225_v48 = vld [vmem:[%s25747_s13 + $0x2bc] ss:$12 sps:$4 sm:$0xff]  }
 0x42b   :  { %7171 = vmatprep.subr.bf16.mxu0 %v19102_v49  ;;  %v19223_v49 = vld [vmem:[%s25747_s13 + $0x2b8] ss:$12 sps:$4 sm:$0xff]  }
 0x42e   :  { %7172 = vmatpush1.bf16.msra.mxu0 %v19100_v30 }
 0x42f   :  { %7173 = vmatprep.subr.bf16.mxu0 %v19108_v50  ;;  %v19231_v50 = vld [vmem:[%s25747_s13 + $0x2d4] ss:$12 sps:$4 sm:$0xff]  }
 0x432   :  { %7174 = vmatpush1.bf16.msra.mxu0 %v19106_v52 }
 0x433   :  { %7175 = vmatprep.subr.bf16.mxu0 %v19114_v47 }
 0x436   :  { %7176 = vmatpush1.bf16.msra.mxu0 %v19112_v53 }
 0x437   :  { %7177 = vmatprep.subr.bf16.mxu0 %v19120_v27 }
 0x43a   :  { %7178 = vmatpush1.bf16.msra.mxu0 %v19118_v55  ;;  %v19229_v55 = vld [vmem:[%s25747_s13 + $0x2d0] ss:$12 sps:$4 sm:$0xff]  }
 0x43b   :  { %7179 = vmatprep.subr.bf16.mxu0 %v19126_v56 }
 0x43e   :  { %7180 = vmatpush1.bf16.msra.mxu0 %v19124_v58 }
 0x43f   :  { %v17239_v63 = vpop.f32.mrb[40].mxu1  ;;  %7181 = vmatprep.subr.bf16.mxu0 %v19132_v61  ;;  %v19050_v61 = vld [vmem:[%s25744_s10 + $0x80] sm:$0xff]  }
 0x440   :  { %v17240_v0 = vpop.f32.mrb[41].mxu1 }
 0x441   :  { %v17241_v2 = vadd.f32 %v17240_v0, %v17239_v63  ;;  %v17242_v3 = vpop.f32.mrb[42].mxu1  ;;  %v19235_v0 = vld [vmem:[%s25747_s13 + $0x2e8] ss:$12 sps:$4 sm:$0xff]  }
 0x442   :  { %v17243_v4 = vpop.f32.mrb[43].mxu1  ;;  %7182 = vmatpush1.bf16.msra.mxu0 %v19130_v62  ;;  %v19237_v62 = vld [vmem:[%s25747_s13 + $0x2ec] ss:$12 sps:$4 sm:$0xff]   ;;  %v19245_v3 = vld [vmem:[%s25747_s13 + $0x304] ss:$12 sps:$4 sm:$0xff]  }
 0x443   :  { %v4839_v8 = vadd.f32 %v17241_v2, %v17219_v43  ;;  %7183 = vmatprep.subr.bf16.mxu0 %v19138_v1  ;;  %v19199_v43 = vld [vmem:[%s25747_s13 + $0x258] ss:$12 sps:$4 sm:$0xff]   ;;  %v19055_v1 = vld [vmem:[%s25744_s10 + $0x88] sm:$0xff]  }
 0x444   :  { %v22736_v2 = vld [vmem:[%s25768_s23 + $0x34] ss:$20 sps:$4 sm:$0xff]   ;;  %v22745_v4 = vld [vmem:[%s25768_s23 + $0x30] ss:$20 sps:$4 sm:$0xff]  }
 0x446   :  { %7184 = vmatpush1.bf16.msra.mxu0 %v19136_v7  ;;  %v19243_v7 = vld [vmem:[%s25747_s13 + $0x300] ss:$12 sps:$4 sm:$0xff]  }
 0x447   :  { %7196 = vmatprep.subr.bf16.mxu0 %v19146_v14  ;;  %v19252_v14 = vld [vmem:[%s25747_s13 + $0x31c] ss:$12 sps:$4 sm:$0xff]  }
 0x449   :  { %7186 = vmatmul.mubr.bf16.vlgmr.msra.gmra.mrb[44].mxu0 %v22626_v15 }
 0x44a   :  { %7197 = vmatpush1.bf16.msra.mxu0 %v19144_v16  ;;  %7228 = vmatprep.mubr.bf16.mxu0 %v22736_v2  ;;  %v19250_v16 = vld [vmem:[%s25747_s13 + $0x318] ss:$12 sps:$4 sm:$0xff]  }
 0x44b   :  { %7198 = vmatprep.subr.bf16.mxu0 %v19153_v19  ;;  %v19063_v19 = vld [vmem:[%s25744_s10 + $0x98] sm:$0xff]  }
 0x44e   :  { %7199 = vmatpush1.bf16.msra.mxu0 %v19151_v5  ;;  %v19258_v5 = vld [vmem:[%s25747_s13 + $0x334] ss:$12 sps:$4 sm:$0xff]  }
 0x44f   :  { %7200 = vmatprep.subr.bf16.mxu0 %v19159_v6 }
 0x452   :  { %7201 = vmatpush1.bf16.msra.mxu0 %v19157_v21  ;;  %v19069_v21 = vld [vmem:[%s25745_s11 + $0x4] ss:$12 sps:$4 sm:$0xff]  }
 0x453   :  { %7202 = vmatprep.subr.bf16.mxu0 %v19165_v22  ;;  %v19256_v22 = vld [vmem:[%s25747_s13 + $0x330] ss:$12 sps:$4 sm:$0xff]  }
 0x456   :  { %7203 = vmatpush1.bf16.msra.mxu0 %v19163_v23  ;;  %v19067_v23 = vld [vmem:[%s25745_s11] ss:$12 sps:$4 sm:$0xff]  }
 0x457   :  { %7204 = vmatprep.subr.bf16.mxu0 %v19171_v24  ;;  %v19264_v24 = vld [vmem:[%s25747_s13 + $0x34c] ss:$12 sps:$4 sm:$0xff]  }
 0x45a   :  { %7205 = vmatpush1.bf16.msra.mxu0 %v19169_v26 }
 0x45b   :  { %7206 = vmatprep.subr.bf16.mxu0 %v19177_v20  ;;  %v19075_v20 = vld [vmem:[%s25745_s11 + $0x1c] ss:$12 sps:$4 sm:$0xff]  }
 0x45e   :  { %7207 = vmatpush1.bf16.msra.mxu0 %v19175_v31  ;;  %v19262_v31 = vld [vmem:[%s25747_s13 + $0x348] ss:$12 sps:$4 sm:$0xff]  }
 0x45f   :  { %v4878_v18 = vpop.f32.mrb[44].mxu1  ;;  %7208 = vmatprep.subr.bf16.mxu0 %v19183_v28  ;;  %v19073_v28 = vld [vmem:[%s25745_s11 + $0x18] ss:$12 sps:$4 sm:$0xff]  }
 0x460   :  { %v22669_v54 = vadd.f32 %v4878_v18, %v4839_v8  ;;  %v17853_v51 = vpop.f32.mrb[45].mxu1  ;;  %v19059_v8 = vld [vmem:[%s25744_s10 + $0x90] sm:$0xff]  }
 0x461   :  { %v4881_v32 = vpop.f32.mrb[46].mxu1  ;;  %v19081_v18 = vld [vmem:[%s25745_s11 + $0x34] ss:$12 sps:$4 sm:$0xff]   ;;  %v19276_v51 = vld [vmem:[%s25747_s13 + $0x37c] ss:$12 sps:$4 sm:$0xff]  }
 0x462   :  { %v17854_v33 = vpop.f32.mrb[47].mxu1  ;;  %7209 = vmatpush1.bf16.msra.mxu0 %v19181_v25  ;;  %v4886_v6 = vmax.f32 %v22669_v54, 0.0  ;;  %v19270_v25 = vld [vmem:[%s25747_s13 + $0x364] ss:$12 sps:$4 sm:$0xff]   ;;  %v19268_v54 = vld [vmem:[%s25747_s13 + $0x360] ss:$12 sps:$4 sm:$0xff]  }
 0x463   :  { %7210 = vmatprep.subr.bf16.mxu0 %v19189_v12  ;;  %v19087_v12 = vld [vmem:[%s25745_s11 + $0x4c] ss:$12 sps:$4 sm:$0xff]   ;;  %v19085_v33 = vld [vmem:[%s25745_s11 + $0x48] ss:$12 sps:$4 sm:$0xff]  }
 0x464   :  { %v4889_v26 = vpack.c.bf16 %v4886_v6, %v4886_v6  ;;  %v19274_v32 = vld [vmem:[%s25747_s13 + $0x378] ss:$12 sps:$4 sm:$0xff]   ;;  %v19178_v6 = vld [vmem:[%s25745_s11 + $0x1b0] ss:$12 sps:$4 sm:$0xff]  }
 0x466   :  { %7211 = vmatpush1.bf16.msra.mxu0 %v19187_v34  ;;  %v19282_v34 = vld [vmem:[%s25747_s13 + $0x394] ss:$12 sps:$4 sm:$0xff]  }
 0x467   :  { %7212 = vmatprep.subr.bf16.mxu0 %v19195_v35  ;;  %v19093_v35 = vld [vmem:[%s25745_s11 + $0x64] ss:$12 sps:$4 sm:$0xff]  }
 0x46a   :  { %7213 = vmatpush1.bf16.msra.mxu0 %v19193_v36  ;;  %v19280_v36 = vld [vmem:[%s25747_s13 + $0x390] ss:$12 sps:$4 sm:$0xff]  }
 0x46b   :  { %7214 = vmatprep.subr.bf16.mxu0 %v19201_v38  ;;  %v19091_v38 = vld [vmem:[%s25745_s11 + $0x60] ss:$12 sps:$4 sm:$0xff]  }
 0x46e   :  { %7215 = vmatpush1.bf16.msra.mxu0 %v19199_v43  ;;  %v19288_v43 = vld [vmem:[%s25747_s13 + $0x3ac] ss:$12 sps:$4 sm:$0xff]  }
 0x46f   :  { %7216 = vmatprep.subr.bf16.mxu0 %v19207_v39  ;;  %v19099_v39 = vld [vmem:[%s25745_s11 + $0x7c] ss:$12 sps:$4 sm:$0xff]  }
 0x472   :  { %7217 = vmatpush1.bf16.msra.mxu0 %v19205_v44  ;;  %v19286_v44 = vld [vmem:[%s25747_s13 + $0x3a8] ss:$12 sps:$4 sm:$0xff]  }
 0x473   :  { %7218 = vmatprep.subr.bf16.mxu0 %v19213_v40  ;;  %v19097_v40 = vld [vmem:[%s25745_s11 + $0x78] ss:$12 sps:$4 sm:$0xff]  }
 0x476   :  { %7219 = vmatpush1.bf16.msra.mxu0 %v19211_v45  ;;  %v19105_v45 = vld [vmem:[%s25745_s11 + $0x94] ss:$12 sps:$4 sm:$0xff]  }
 0x477   :  { %7220 = vmatprep.subr.bf16.mxu0 %v19219_v42  ;;  %v22848_v42 = vld [vmem:[%s25768_s23 + $0x38] ss:$20 sps:$4 sm:$0xff]  }
 0x47a   :  { %7221 = vmatpush1.bf16.msra.mxu0 %v19217_v46  ;;  %v19103_v46 = vld [vmem:[%s25745_s11 + $0x90] ss:$12 sps:$4 sm:$0xff]  }
 0x47b   :  { %7222 = vmatprep.subr.bf16.mxu0 %v19225_v48  ;;  %v19111_v48 = vld [vmem:[%s25745_s11 + $0xac] ss:$12 sps:$4 sm:$0xff]  }
 0x47c   :  { %v4757_v30 = vpop.f32.mrb[28].mxu0 }
 0x47d   :  { %v4884_v52 = vmax.f32 %v4757_v30, 0.0  ;;  %v4759_v47 = vpop.f32.mrb[29].mxu0  ;;  %v19117_v30 = vld [vmem:[%s25745_s11 + $0xc4] ss:$12 sps:$4 sm:$0xff]  }
 0x47e   :  { %v4885_v53 = vmax.f32 %v4759_v47, 0.0  ;;  %v4761_v27 = vpop.f32.mrb[30].mxu0  ;;  %7223 = vmatpush1.bf16.msra.mxu0 %v19223_v49  ;;  %v19109_v49 = vld [vmem:[%s25745_s11 + $0xa8] ss:$12 sps:$4 sm:$0xff]   ;;  %v19121_v47 = vld [vmem:[%s25745_s11 + $0xd8] ss:$12 sps:$4 sm:$0xff]  }
 0x47f   :  { %v4762_v56 = vpop.f32.mrb[31].mxu0  ;;  %7224 = vmatprep.subr.bf16.mxu0 %v19231_v50  ;;  %v4887_v63 = vpack.c.bf16 %v4884_v52, %v4884_v52  ;;  %v19115_v50 = vld [vmem:[%s25745_s11 + $0xc0] ss:$12 sps:$4 sm:$0xff]   ;;  %v19123_v52 = vld [vmem:[%s25745_s11 + $0xdc] ss:$12 sps:$4 sm:$0xff]  }
 0x480   :  { %v4888_v58 = vpack.c.bf16 %v4885_v53, %v4885_v53  ;;  %v19129_v53 = vld [vmem:[%s25745_s11 + $0xf4] ss:$12 sps:$4 sm:$0xff]   ;;  %v19127_v27 = vld [vmem:[%s25745_s11 + $0xf0] ss:$12 sps:$4 sm:$0xff]  }
 0x481   :  { %v19133_v56 = vld [vmem:[%s25745_s11 + $0x108] ss:$12 sps:$4 sm:$0xff]  }
 0x482   :  { %5046 = vmatprep.mubr.bf16.mxu1 %v4888_v58  ;;  %7225 = vmatpush1.bf16.msra.mxu0 %v19229_v55  ;;  %v19135_v55 = vld [vmem:[%s25745_s11 + $0x10c] ss:$12 sps:$4 sm:$0xff]   ;;  %v19141_v58 = vld [vmem:[%s25745_s11 + $0x124] ss:$12 sps:$4 sm:$0xff]  }
 0x483   :  { %5047 = vmatmul.mubr.bf16.vlgmr.msra.gmra.mrb[48].mxu1 %v4887_v63  ;;  %7226 = vmatprep.subr.bf16.mxu0 %v19237_v62  ;;  %v19149_v62 = vld [vmem:[%s25745_s11 + $0x13c] ss:$12 sps:$4 sm:$0xff]   ;;  %v19147_v63 = vld [vmem:[%s25745_s11 + $0x138] ss:$12 sps:$4 sm:$0xff]  }
 0x484   :  { %17856 = vmatpush3.bf16.msra.mxu1 %v19050_v61  ;;  %17863 = vmatprep.mubr.msk.bf16.mxu1 %vm20413_vm0, %v20412_v13  ;;  %v19139_v61 = vld [vmem:[%s25745_s11 + $0x120] ss:$12 sps:$4 sm:$0xff]  }
 0x485   :  { %17857 = vmatprep.subr.bf16.mxu1 %v20412_v13 }
 0x486   :  { %7227 = vmatpush1.bf16.msra.mxu0 %v19235_v0  ;;  %v19156_v0 = vld [vmem:[%s25745_s11 + $0x154] ss:$12 sps:$4 sm:$0xff]  }
 0x487   :  { %7239 = vmatprep.subr.bf16.mxu0 %v19245_v3  ;;  %v19162_v3 = vld [vmem:[%s25745_s11 + $0x16c] ss:$12 sps:$4 sm:$0xff]  }
 0x488   :  { %17858 = vmatpush3.bf16.msra.mxu1 %v19055_v1  ;;  %v19154_v1 = vld [vmem:[%s25745_s11 + $0x150] ss:$12 sps:$4 sm:$0xff]  }
 0x489   :  { %17859 = vmatprep.subr.bf16.mxu1 %v20412_v13  ;;  %7229 = vmatmul.mubr.bf16.vlgmr.msra.gmra.mrb[44].mxu0 %v22745_v4 }
 0x48a   :  { %7240 = vmatpush1.bf16.msra.mxu0 %v19243_v7  ;;  %7271 = vmatprep.mubr.bf16.mxu0 %v20411_v17  ;;  %v19160_v7 = vld [vmem:[%s25745_s11 + $0x168] ss:$12 sps:$4 sm:$0xff]  }
 0x48b   :  { %7241 = vmatprep.subr.bf16.mxu0 %v19252_v14  ;;  %v19166_v14 = vld [vmem:[%s25745_s11 + $0x180] ss:$12 sps:$4 sm:$0xff]  }
 0x48c   :  { %17860 = vmatpush3.bf16.msra.mxu1 %v19059_v8  ;;  %v19168_v8 = vld [vmem:[%s25745_s11 + $0x184] ss:$12 sps:$4 sm:$0xff]  }
 0x48d   :  { %17861 = vmatprep.subr.bf16.mxu1 %v20412_v13 }
 0x48e   :  { %7242 = vmatpush1.bf16.msra.mxu0 %v19250_v16  ;;  %v19174_v16 = vld [vmem:[%s25745_s11 + $0x19c] ss:$12 sps:$4 sm:$0xff]  }
 0x48f   :  { %7243 = vmatprep.subr.bf16.mxu0 %v19258_v5  ;;  %v19180_v5 = vld [vmem:[%s25745_s11 + $0x1b4] ss:$12 sps:$4 sm:$0xff]  }
 0x490   :  { %17862 = vmatpush3.bf16.msra.mxu1 %v19063_v19  ;;  %v19172_v19 = vld [vmem:[%s25745_s11 + $0x198] ss:$12 sps:$4 sm:$0xff]  }
 0x491   :  { %6219 = vmatprep.subr.bf16.mxu1 %v19069_v21  ;;  %v19192_v21 = vld [vmem:[%s25745_s11 + $0x1e4] ss:$12 sps:$4 sm:$0xff]  }
 0x492   :  { %7244 = vmatpush1.bf16.msra.mxu0 %v19256_v22  ;;  %v19190_v22 = vld [vmem:[%s25745_s11 + $0x1e0] ss:$12 sps:$4 sm:$0xff]  }
 0x493   :  { %17864 = vmatmul.mubr.msk.bf16.vlgmr.msra.gmra.mrb[52].mxu1 %vm5010_vm2, %v4889_v26  ;;  %7245 = vmatprep.subr.bf16.mxu0 %v19264_v24  ;;  %v19196_v24 = vld [vmem:[%s25745_s11 + $0x1f8] ss:$12 sps:$4 sm:$0xff]   ;;  %v19204_v26 = vld [vmem:[%s25745_s11 + $0x214] ss:$12 sps:$4 sm:$0xff]  }
 0x494   :  { %6220 = vmatpush1.bf16.msra.mxu1 %v19067_v23  ;;  %6251 = vmatprep.mubr.bf16.mxu1 %v22361_v37  ;;  %v19079_v37 = vld [vmem:[%s25745_s11 + $0x30] ss:$12 sps:$4 sm:$0xff]  }
 0x495   :  { %6221 = vmatprep.subr.bf16.mxu1 %v19075_v20  ;;  %v19198_v23 = vld [vmem:[%s25745_s11 + $0x1fc] ss:$12 sps:$4 sm:$0xff]  }
 0x496   :  { %7246 = vmatpush1.bf16.msra.mxu0 %v19262_v31  ;;  %v19202_v20 = vld [vmem:[%s25745_s11 + $0x210] ss:$12 sps:$4 sm:$0xff]   ;;  %v19210_v31 = vld [vmem:[%s25745_s11 + $0x22c] ss:$12 sps:$4 sm:$0xff]  }
 0x497   :  { %7247 = vmatprep.subr.bf16.mxu0 %v19270_v25  ;;  %v19216_v25 = vld [vmem:[%s25745_s11 + $0x244] ss:$12 sps:$4 sm:$0xff]  }
 0x498   :  { %6222 = vmatpush1.bf16.msra.mxu1 %v19073_v28  ;;  %v19208_v28 = vld [vmem:[%s25745_s11 + $0x228] ss:$12 sps:$4 sm:$0xff]  }
 0x499   :  { %6223 = vmatprep.subr.bf16.mxu1 %v19081_v18  ;;  %v19214_v18 = vld [vmem:[%s25745_s11 + $0x240] ss:$12 sps:$4 sm:$0xff]  }
 0x49a   :  { %7248 = vmatpush1.bf16.msra.mxu0 %v19268_v54  ;;  %v19222_v54 = vld [vmem:[%s25745_s11 + $0x25c] ss:$12 sps:$4 sm:$0xff]  }
 0x49b   :  { %7249 = vmatprep.subr.bf16.mxu0 %v19276_v51 }
 0x49c   :  { %6224 = vmatpush1.bf16.msra.mxu1 %v19079_v37  ;;  %v19220_v37 = vld [vmem:[%s25745_s11 + $0x258] ss:$12 sps:$4 sm:$0xff]   ;;  %v17297_v51 = vpop.f32.mrb[32].mxu0 }
 0x49d   :  { %6225 = vmatprep.subr.bf16.mxu1 %v19087_v12  ;;  %v19228_v12 = vld [vmem:[%s25745_s11 + $0x274] ss:$12 sps:$4 sm:$0xff]  }
 0x49e   :  { %7250 = vmatpush1.bf16.msra.mxu0 %v19274_v32  ;;  %v22977_v32 = vld [vmem:[%s25746_s12] sm:$0x7] }
 0x49f   :  { %7251 = vmatprep.subr.bf16.mxu0 %v19282_v34  ;;  %v5549_v34 = vrot.slane %v22977_v32, %v21717_v10 }
 0x4a0   :  { %6226 = vmatpush1.bf16.msra.mxu1 %v19085_v33  ;;  %v17298_v33 = vpop.f32.mrb[33].mxu0 }
 0x4a1   :  { %6227 = vmatprep.subr.bf16.mxu1 %v19093_v35  ;;  %v17299_v35 = vadd.f32 %v17298_v33, %v17297_v51  ;;  %v19302_v51 = vld [vmem:[%s25747_s13 + $0xc8] ss:$12 sps:$4 sm:$0xff]   ;;  %v19304_v33 = vld [vmem:[%s25747_s13 + $0xe0] ss:$12 sps:$4 sm:$0xff]  }
 0x4a2   :  { %7252 = vmatpush1.bf16.msra.mxu0 %v19280_v36  ;;  %v19226_v36 = vld [vmem:[%s25745_s11 + $0x270] ss:$12 sps:$4 sm:$0xff]  }
 0x4a3   :  { %7253 = vmatprep.subr.bf16.mxu0 %v19288_v43  ;;  %v19234_v43 = vld [vmem:[%s25745_s11 + $0x28c] ss:$12 sps:$4 sm:$0xff]  }
 0x4a4   :  { %6228 = vmatpush1.bf16.msra.mxu1 %v19091_v38  ;;  %v17300_v38 = vpop.f32.mrb[34].mxu0 }
 0x4a5   :  { %6229 = vmatprep.subr.bf16.mxu1 %v19099_v39  ;;  %v17301_v39 = vpop.f32.mrb[35].mxu0 }
 0x4a6   :  { %7254 = vmatpush1.bf16.msra.mxu0 %v19286_v44  ;;  %v6383_v44 = vadd.f32 %v17299_v35, %v5549_v34  ;;  %v19306_v35 = vld [vmem:[%s25747_s13 + $0xf8] ss:$12 sps:$4 sm:$0xff]  }
 0x4a8   :  { %6230 = vmatpush1.bf16.msra.mxu1 %v19097_v40  ;;  %v17302_v40 = vadd.f32 %v17301_v39, %v17300_v38  ;;  %v19310_v38 = vld [vmem:[%s25747_s13 + $0x128] ss:$12 sps:$4 sm:$0xff]   ;;  %v19312_v39 = vld [vmem:[%s25747_s13 + $0x140] ss:$12 sps:$4 sm:$0xff]  }
 0x4a9   :  { %6231 = vmatprep.subr.bf16.mxu1 %v19105_v45  ;;  %7272 = vmatmul.mubr.bf16.vlgmr.msra.gmra.mrb[44].mxu0 %v22848_v42 }
 0x4aa   :  { %7524 = vmatprep.mubr.bf16.mxu0 %v20411_v17 }
 0x4ac   :  { %6232 = vmatpush1.bf16.msra.mxu1 %v19103_v46 }
 0x4ad   :  { %6233 = vmatprep.subr.bf16.mxu1 %v19111_v48  ;;  %v19232_v48 = vld [vmem:[%s25745_s11 + $0x288] ss:$12 sps:$4 sm:$0xff]  }
 0x4b0   :  { %6234 = vmatpush1.bf16.msra.mxu1 %v19109_v49  ;;  %v6386_v49 = vadd.f32 %v17302_v40, %v5549_v34  ;;  %v19305_v34 = vld [vmem:[%s25747_s13 + $0x20] ss:$12 sps:$4 sm:$0xff]   ;;  %v19314_v40 = vld [vmem:[%s25747_s13 + $0x158] ss:$12 sps:$4 sm:$0xff]  }
 0x4b1   :  { %6235 = vmatprep.subr.bf16.mxu1 %v19117_v30 }
 0x4b4   :  { %6236 = vmatpush1.bf16.msra.mxu1 %v19115_v50 }
 0x4b5   :  { %6237 = vmatprep.subr.bf16.mxu1 %v19123_v52  ;;  %v19240_v52 = vld [vmem:[%s25745_s11 + $0x2a4] ss:$12 sps:$4 sm:$0xff]  }
 0x4b8   :  { %6238 = vmatpush1.bf16.msra.mxu1 %v19121_v47 }
 0x4b9   :  { %6239 = vmatprep.subr.bf16.mxu1 %v19129_v53 }
 0x4bc   :  { %6240 = vmatpush1.bf16.msra.mxu1 %v19127_v27  ;;  %v17319_v45 = vpop.f32.mrb[36].mxu0 }
 0x4bd   :  { %6241 = vmatprep.subr.bf16.mxu1 %v19135_v55  ;;  %v17320_v46 = vpop.f32.mrb[37].mxu0 }
 0x4be   :  { %v17321_v30 = vadd.f32 %v17320_v46, %v17319_v45  ;;  %v17322_v50 = vpop.f32.mrb[38].mxu0  ;;  %v19315_v45 = vld [vmem:[%s25747_s13 + $0x98] ss:$12 sps:$4 sm:$0xff]   ;;  %v19316_v46 = vld [vmem:[%s25747_s13 + $0x170] ss:$12 sps:$4 sm:$0xff]  }
 0x4bf   :  { %v17323_v47 = vpop.f32.mrb[39].mxu0 }
 0x4c0   :  { %6242 = vmatpush1.bf16.msra.mxu1 %v19133_v56  ;;  %v17324_v53 = vadd.f32 %v17323_v47, %v17322_v50  ;;  %v6424_v27 = vadd.f32 %v17321_v30, %v6383_v44  ;;  %v19313_v44 = vld [vmem:[%s25747_s13 + $0x80] ss:$12 sps:$4 sm:$0xff]   ;;  %v19319_v30 = vld [vmem:[%s25747_s13 + $0x188] ss:$12 sps:$4 sm:$0xff]   ;;  %v19322_v47 = vld [vmem:[%s25747_s13 + $0x278] ss:$12 sps:$4 sm:$0xff]  }
 0x4c1   :  { %6243 = vmatprep.subr.bf16.mxu1 %v19141_v58  ;;  %v19238_v58 = vld [vmem:[%s25745_s11 + $0x2a0] ss:$12 sps:$4 sm:$0xff]  }
 0x4c2   :  { %v19320_v50 = vld [vmem:[%s25747_s13 + $0x260] ss:$12 sps:$4 sm:$0xff]  }
 0x4c4   :  { %6244 = vmatpush1.bf16.msra.mxu1 %v19139_v61 }
 0x4c5   :  { %6245 = vmatprep.subr.bf16.mxu1 %v19149_v62  ;;  %v6427_v62 = vadd.f32 %v17324_v53, %v6386_v49  ;;  %v19318_v49 = vld [vmem:[%s25747_s13 + $0x248] ss:$12 sps:$4 sm:$0xff]  }
 0x4c8   :  { %6246 = vmatpush1.bf16.msra.mxu1 %v19147_v63 }
 0x4c9   :  { %6247 = vmatprep.subr.bf16.mxu1 %v19156_v0  ;;  %v19248_v0 = vld [vmem:[%s25745_s11 + $0x2bc] ss:$12 sps:$4 sm:$0xff]  }
 0x4cc   :  { %6248 = vmatpush1.bf16.msra.mxu1 %v19154_v1 }
 0x4cd   :  { %6249 = vmatprep.subr.bf16.mxu1 %v19162_v3 }
 0x4d0   :  { %6250 = vmatpush1.bf16.msra.mxu1 %v19160_v7  ;;  %v19246_v7 = vld [vmem:[%s25745_s11 + $0x2b8] ss:$12 sps:$4 sm:$0xff]  }
 0x4d1   :  { %6262 = vmatprep.subr.bf16.mxu1 %v19168_v8 }
 0x4d3   :  { %6252 = vmatmul.mubr.bf16.vlgmr.msra.gmra.mrb[56].mxu1 %v22370_v41  ;;  %v19186_v41 = vld [vmem:[%s25745_s11 + $0x1cc] ss:$12 sps:$4 sm:$0xff]  }
 0x4d4   :  { %6263 = vmatpush1.bf16.msra.mxu1 %v19166_v14  ;;  %6294 = vmatprep.mubr.bf16.mxu1 %v22427_v57  ;;  %v19184_v57 = vld [vmem:[%s25745_s11 + $0x1c8] ss:$12 sps:$4 sm:$0xff]  }
 0x4d5   :  { %6264 = vmatprep.subr.bf16.mxu1 %v19174_v16  ;;  %v19255_v14 = vld [vmem:[%s25745_s11 + $0x2d4] ss:$12 sps:$4 sm:$0xff]   ;;  %v19253_v16 = vld [vmem:[%s25745_s11 + $0x2d0] ss:$12 sps:$4 sm:$0xff]  }
 0x4d8   :  { %6265 = vmatpush1.bf16.msra.mxu1 %v19172_v19  ;;  %v19261_v19 = vld [vmem:[%s25745_s11 + $0x2ec] ss:$12 sps:$4 sm:$0xff]  }
 0x4d9   :  { %6266 = vmatprep.subr.bf16.mxu1 %v19180_v5  ;;  %v19259_v5 = vld [vmem:[%s25745_s11 + $0x2e8] ss:$12 sps:$4 sm:$0xff]  }
 0x4dc   :  { %6267 = vmatpush1.bf16.msra.mxu1 %v19178_v6  ;;  %v6464_v55 = vpop.f32.mrb[40].mxu0  ;;  %v19267_v6 = vld [vmem:[%s25745_s11 + $0x304] ss:$12 sps:$4 sm:$0xff]  }
 0x4dd   :  { %6268 = vmatprep.subr.bf16.mxu1 %v19186_v41  ;;  %v17885_v56 = vpop.f32.mrb[41].mxu0  ;;  %v6465_v61 = vadd.f32 %v6464_v55, %v6424_v27  ;;  %v19265_v41 = vld [vmem:[%s25745_s11 + $0x300] ss:$12 sps:$4 sm:$0xff]  }
 0x4de   :  { %v6467_v63 = vpop.f32.mrb[42].mxu0 }
 0x4df   :  { %v17886_v1 = vpop.f32.mrb[43].mxu0  ;;  %v6468_v3 = vadd.f32 %v6467_v63, %v6427_v62  ;;  %v19326_v62 = vld [vmem:[%s25747_s13 + $0x2a8] ss:$12 sps:$4 sm:$0xff]  }
 0x4e0   :  { %6269 = vmatpush1.bf16.msra.mxu1 %v19184_v57  ;;  %v19273_v57 = vld [vmem:[%s25745_s11 + $0x31c] ss:$12 sps:$4 sm:$0xff]   ;;  %v19329_v1 = vld [vmem:[%s25747_s13 + $0x200] ss:$12 sps:$4 sm:$0xff]  }
 0x4e1   :  { %6270 = vmatprep.subr.bf16.mxu1 %v19192_v21  ;;  %v23002_v8 = vpack.c.bf16 %v6468_v3, %v6465_v61  ;;  %v19271_v21 = vld [vmem:[%s25745_s11 + $0x318] ss:$12 sps:$4 sm:$0xff]   ;;  %v19325_v61 = vld [vmem:[%s25747_s13 + $0x1d0] ss:$12 sps:$4 sm:$0xff]   ;;  %v19327_v63 = vld [vmem:[%s25747_s13 + $0x1e8] ss:$12 sps:$4 sm:$0xff]  }
 0x4e2   :  { %v19330_v3 = vld [vmem:[%s25747_s13 + $0x2d8] ss:$12 sps:$4 sm:$0xff]  }
 0x4e4   :  { %6271 = vmatpush1.bf16.msra.mxu1 %v19190_v22  ;;  %v19279_v22 = vld [vmem:[%s25745_s11 + $0x334] ss:$12 sps:$4 sm:$0xff]  }
 0x4e5   :  { %6272 = vmatprep.subr.bf16.mxu1 %v19198_v23  ;;  %v19277_v23 = vld [vmem:[%s25745_s11 + $0x330] ss:$12 sps:$4 sm:$0xff]  }
 0x4e8   :  { %6273 = vmatpush1.bf16.msra.mxu1 %v19196_v24  ;;  %v19283_v24 = vld [vmem:[%s25745_s11 + $0x348] ss:$12 sps:$4 sm:$0xff]  }
 0x4e9   :  { %6274 = vmatprep.subr.bf16.mxu1 %v19204_v26  ;;  %v19291_v26 = vld [vmem:[%s25745_s11 + $0x364] ss:$12 sps:$4 sm:$0xff]  }
 0x4ec   :  { %6275 = vmatpush1.bf16.msra.mxu1 %v19202_v20  ;;  %v19289_v20 = vld [vmem:[%s25745_s11 + $0x360] ss:$12 sps:$4 sm:$0xff]  }
 0x4ed   :  { %6276 = vmatprep.subr.bf16.mxu1 %v19210_v31  ;;  %v19295_v31 = vld [vmem:[%s25745_s11 + $0x37c] ss:$12 sps:$4 sm:$0xff]  }
 0x4f0   :  { %6277 = vmatpush1.bf16.msra.mxu1 %v19208_v28  ;;  %v19293_v28 = vld [vmem:[%s25745_s11 + $0x378] ss:$12 sps:$4 sm:$0xff]  }
 0x4f1   :  { %6278 = vmatprep.subr.bf16.mxu1 %v19216_v25  ;;  %v19298_v25 = vld [vmem:[%s25745_s11 + $0x394] ss:$12 sps:$4 sm:$0xff]  }
 0x4f4   :  { %6279 = vmatpush1.bf16.msra.mxu1 %v19214_v18  ;;  %v19296_v18 = vld [vmem:[%s25745_s11 + $0x390] ss:$12 sps:$4 sm:$0xff]  }
 0x4f5   :  { %6280 = vmatprep.subr.bf16.mxu1 %v19222_v54  ;;  %v19301_v54 = vld [vmem:[%s25745_s11 + $0x3ac] ss:$12 sps:$4 sm:$0xff]  }
 0x4f8   :  { %6281 = vmatpush1.bf16.msra.mxu1 %v19220_v37  ;;  %v19299_v37 = vld [vmem:[%s25745_s11 + $0x3a8] ss:$12 sps:$4 sm:$0xff]  }
 0x4f9   :  { %6282 = vmatprep.subr.bf16.mxu1 %v19228_v12  ;;  %v19303_v12 = vld [vmem:[%s25747_s13 + $0x8] ss:$12 sps:$4 sm:$0xff]  }
 0x4fc   :  { %6283 = vmatpush1.bf16.msra.mxu1 %v19226_v36  ;;  %v19307_v36 = vld [vmem:[%s25747_s13 + $0x38] ss:$12 sps:$4 sm:$0xff]  }
 0x4fd   :  { %6284 = vmatprep.subr.bf16.mxu1 %v19234_v43  ;;  %v19311_v43 = vld [vmem:[%s25747_s13 + $0x68] ss:$12 sps:$4 sm:$0xff]  }
 0x500   :  { %6285 = vmatpush1.bf16.msra.mxu1 %v19232_v48  ;;  %v19317_v48 = vld [vmem:[%s25747_s13 + $0xb0] ss:$12 sps:$4 sm:$0xff]  }
 0x501   :  { %6286 = vmatprep.subr.bf16.mxu1 %v19240_v52  ;;  %v19321_v52 = vld [vmem:[%s25747_s13 + $0x1a0] ss:$12 sps:$4 sm:$0xff]  }
 0x504   :  { %6287 = vmatpush1.bf16.msra.mxu1 %v19238_v58 }
 0x505   :  { %6288 = vmatprep.subr.bf16.mxu1 %v19248_v0  ;;  %v19328_v0 = vld [vmem:[%s25747_s13 + $0x2c0] ss:$12 sps:$4 sm:$0xff]  }
 0x508   :  { %6289 = vmatpush1.bf16.msra.mxu1 %v19246_v7 }
 0x509   :  { %6290 = vmatprep.subr.bf16.mxu1 %v19255_v14 }
 0x50c   :  { %6291 = vmatpush1.bf16.msra.mxu1 %v19253_v16 }
 0x50d   :  { %6292 = vmatprep.subr.bf16.mxu1 %v19261_v19 }
 0x510   :  { %6293 = vmatpush1.bf16.msra.mxu1 %v19259_v5  ;;  %v19331_v5 = vld [vmem:[%s25747_s13 + $0x218] ss:$12 sps:$4 sm:$0xff]  }
 0x511   :  { %6305 = vmatprep.subr.bf16.mxu1 %v19267_v6 }
 0x513   :  { %6295 = vmatmul.mubr.bf16.vlgmr.msra.gmra.mrb[56].mxu1 %v22436_v59  ;;  %v19285_v59 = vld [vmem:[%s25745_s11 + $0x34c] ss:$12 sps:$4 sm:$0xff]  }
 0x514   :  { %6306 = vmatpush1.bf16.msra.mxu1 %v19265_v41  ;;  %6337 = vmatprep.mubr.bf16.mxu1 %v20411_v17  ;;  %v19332_v41 = vld [vmem:[%s25747_s13 + $0x2f0] ss:$12 sps:$4 sm:$0xff]  }
 0x515   :  { %6307 = vmatprep.subr.bf16.mxu1 %v19273_v57  ;;  %v19333_v57 = vld [vmem:[%s25747_s13 + $0x230] ss:$12 sps:$4 sm:$0xff]  }
 0x518   :  { %6308 = vmatpush1.bf16.msra.mxu1 %v19271_v21  ;;  %v19334_v21 = vld [vmem:[%s25747_s13 + $0x308] ss:$12 sps:$4 sm:$0xff]  }
 0x519   :  { %6309 = vmatprep.subr.bf16.mxu1 %v19279_v22  ;;  %v19335_v22 = vld [vmem:[%s25747_s13 + $0x320] ss:$12 sps:$4 sm:$0xff]  }
 0x51c   :  { %6310 = vmatpush1.bf16.msra.mxu1 %v19277_v23  ;;  %v23180_v23 = vld [vmem:[%s25748_s14] sm:$0x7] }
 0x51d   :  { %6311 = vmatprep.subr.bf16.mxu1 %v19285_v59  ;;  %v6475_v59 = vrot.slane %v23180_v23, %v21678_v60 }
 0x520   :  { %6312 = vmatpush1.bf16.msra.mxu1 %v19283_v24  ;;  %v6479_v24 = vrot.slane %v23180_v23, %v21720_v11 }
 0x521   :  { %6313 = vmatprep.subr.bf16.mxu1 %v19291_v26  ;;  %v19337_v26 = vld [vmem:[%s25747_s13 + $0x350] ss:$12 sps:$4 sm:$0xff]  }
 0x524   :  { %6314 = vmatpush1.bf16.msra.mxu1 %v19289_v20 }
 0x525   :  { %6315 = vmatprep.subr.bf16.mxu1 %v19295_v31 }
 0x528   :  { %6316 = vmatpush1.bf16.msra.mxu1 %v19293_v28 }
 0x529   :  { %6317 = vmatprep.subr.bf16.mxu1 %v19298_v25 }
 0x52c   :  { %6318 = vmatpush1.bf16.msra.mxu1 %v19296_v18 }
 0x52d   :  { %6319 = vmatprep.subr.bf16.mxu1 %v19301_v54 }
 0x530   :  { %6320 = vmatpush1.bf16.msra.mxu1 %v19299_v37 }
 0x531   :  { %17334 = vmatprep.subr.bf16.mxu1 %v19302_v51  ;;  %v19338_v51 = vld [vmem:[%s25747_s13 + $0x368] ss:$12 sps:$4 sm:$0xff]  }
 0x533   :  { %6338 = vmatmul.mubr.bf16.vlgmr.msra.gmra.mrb[56].mxu1 %v22519_v29  ;;  %v19308_v29 = vld [vmem:[%s25747_s13 + $0x110] ss:$12 sps:$4 sm:$0xff]  }
 0x534   :  { %17335 = vmatpush3.bf16.msra.mxu1 %v19303_v12  ;;  %7314 = vmatprep.mubr.bf16.mxu1 %v22618_v9  ;;  %v19309_v9 = vld [vmem:[%s25747_s13 + $0x50] ss:$12 sps:$4 sm:$0xff]  }
 0x535   :  { %17336 = vmatprep.subr.bf16.mxu1 %v19304_v33 }
 0x538   :  { %17337 = vmatpush3.bf16.msra.mxu1 %v19305_v34 }
 0x539   :  { %17338 = vmatprep.subr.bf16.mxu1 %v19306_v35  ;;  %v19339_v35 = vld [vmem:[%s25747_s13 + $0x380] ss:$12 sps:$4 sm:$0xff]  }
 0x53c   :  { %17339 = vmatpush3.bf16.msra.mxu1 %v19307_v36  ;;  %v19340_v36 = vld [vmem:[%s25747_s13 + $0x398] ss:$12 sps:$4 sm:$0xff]  }
 0x53d   :  { %17340 = vmatprep.subr.bf16.mxu1 %v19308_v29  ;;  %v19341_v29 = vld [vmem:[%s25747_s13 + $0x3b0] ss:$12 sps:$4 sm:$0xff]  }
 0x540   :  { %17341 = vmatpush3.bf16.msra.mxu1 %v19309_v9  ;;  %v5541_v9 = vrot.slane %v22977_v32, %v21678_v60 }
 0x541   :  { %17342 = vmatprep.subr.bf16.mxu1 %v19310_v38 }
 0x544   :  { %17343 = vmatpush3.bf16.msra.mxu1 %v19311_v43  ;;  %v5545_v43 = vrot.slane %v22977_v32, %v21720_v11  ;;  %v19342_v32 = vld [vmem:[%s25749_s15] ss:$12 sps:$4 sm:$0xff]  }
 0x545   :  { %17344 = vmatprep.subr.bf16.mxu1 %v19312_v39 }
 0x548   :  { %17345 = vmatpush3.bf16.msra.mxu1 %v19313_v44 }
 0x549   :  { %17346 = vmatprep.subr.bf16.mxu1 %v19314_v40 }
 0x54c   :  { %17347 = vmatpush3.bf16.msra.mxu1 %v19315_v45 }
 0x54d   :  { %17348 = vmatprep.subr.bf16.mxu1 %v19316_v46 }
 0x550   :  { %17349 = vmatpush3.bf16.msra.mxu1 %v19317_v48 }
 0x551   :  { %17356 = vmatprep.subr.bf16.mxu1 %v19318_v49 }
 0x553   :  { %7315 = vmatmul.mubr.bf16.vlgmr.msra.gmra.mrb[60].mxu1 %v22626_v15  ;;  %v19323_v15 = vld [vmem:[%s25747_s13 + $0x1b8] ss:$12 sps:$4 sm:$0xff]  }
 0x554   :  { %17357 = vmatpush3.bf16.msra.mxu1 %v19319_v30  ;;  %7355 = vmatprep.mubr.bf16.mxu1 %v22736_v2  ;;  %v19324_v2 = vld [vmem:[%s25747_s13 + $0x290] ss:$12 sps:$4 sm:$0xff]  }
 0x555   :  { %17358 = vmatprep.subr.bf16.mxu1 %v19320_v50 }
 0x556   :  { %v17270_v53 = vpop.f32.mrb[48].mxu1 }
 0x557   :  { %v17271_v27 = vpop.f32.mrb[49].mxu1 }
 0x558   :  { %v17272_v55 = vadd.f32 %v17271_v27, %v17270_v53  ;;  %17359 = vmatpush3.bf16.msra.mxu1 %v19321_v52  ;;  %v17273_v56 = vpop.f32.mrb[50].mxu1  ;;  %v19347_v52 = vld [vmem:[%s25749_s15 + $0x1c] ss:$12 sps:$4 sm:$0xff]   ;;  %v23236_v53 = vld [vmem:[%s25767_s6] sm:$0xf] }
 0x559   :  { %v17274_v58 = vpop.f32.mrb[51].mxu1  ;;  %17360 = vmatprep.subr.bf16.mxu1 %v19322_v47  ;;  %v23229_v47 = vld [vmem:[%s25766_s1] sm:$0xf]  ;;  %v19345_v27 = vld [vmem:[%s25749_s15 + $0x18] ss:$12 sps:$4 sm:$0xff]  }
 0x55a   :  { %v19348_v56 = vld [vmem:[%s25749_s15 + $0x30] ss:$12 sps:$4 sm:$0xff]   ;;  %v19351_v58 = vld [vmem:[%s25749_s15 + $0x48] ss:$12 sps:$4 sm:$0xff]  }
 0x55c   :  { %17361 = vmatpush3.bf16.msra.mxu1 %v19323_v15  ;;  %v19353_v15 = vld [vmem:[%s25749_s15 + $0x4c] ss:$12 sps:$4 sm:$0xff]  }
 0x55d   :  { %17362 = vmatprep.subr.bf16.mxu1 %v19324_v2  ;;  %v19356_v2 = vld [vmem:[%s25749_s15 + $0x64] ss:$12 sps:$4 sm:$0xff]  }
 0x560   :  { %17363 = vmatpush3.bf16.msra.mxu1 %v19325_v61  ;;  %v19354_v61 = vld [vmem:[%s25749_s15 + $0x60] ss:$12 sps:$4 sm:$0xff]  }
 0x561   :  { %17364 = vmatprep.subr.bf16.mxu1 %v19326_v62  ;;  %v19359_v62 = vld [vmem:[%s25749_s15 + $0x7c] ss:$12 sps:$4 sm:$0xff]  }
 0x564   :  { %17365 = vmatpush3.bf16.msra.mxu1 %v19327_v63 }
 0x565   :  { %17366 = vmatprep.subr.bf16.mxu1 %v19328_v0 }
 0x566   :  { %v5088_v7 = vpop.f32.mrb[52].mxu1 }
 0x567   :  { %v5089_v14 = vadd.f32 %v17272_v55, %v5088_v7  ;;  %v17865_v16 = vpop.f32.mrb[53].mxu1  ;;  %v19350_v55 = vld [vmem:[%s25749_s15 + $0x34] ss:$12 sps:$4 sm:$0xff]   ;;  %v19357_v7 = vld [vmem:[%s25749_s15 + $0x78] ss:$12 sps:$4 sm:$0xff]  }
 0x568   :  { %v5091_v19 = vpop.f32.mrb[54].mxu1  ;;  %17367 = vmatpush3.bf16.msra.mxu1 %v19329_v1  ;;  %v19362_v16 = vld [vmem:[%s25749_s15 + $0x94] ss:$12 sps:$4 sm:$0xff]  }
 0x569   :  { %5094 = vst [vmem:[#allocation2] sm:$0xff] %v5089_v14  ;;  %v17866_v6 = vpop.f32.mrb[55].mxu1  ;;  %17368 = vmatprep.subr.bf16.mxu1 %v19330_v3 }
 0x56a   :  { %v19365_v6 = vld [vmem:[%s25749_s15 + $0xac] ss:$12 sps:$4 sm:$0xff]  }
 0x56c   :  { %17369 = vmatpush3.bf16.msra.mxu1 %v19331_v5  ;;  %v19360_v5 = vld [vmem:[%s25749_s15 + $0x90] ss:$12 sps:$4 sm:$0xff]  }
 0x56d   :  { %17370 = vmatprep.subr.bf16.mxu1 %v19332_v41  ;;  %v19363_v41 = vld [vmem:[%s25749_s15 + $0xa8] ss:$12 sps:$4 sm:$0xff]  }
 0x570   :  { %17371 = vmatpush3.bf16.msra.mxu1 %v19333_v57  ;;  %v19370_v57 = vld [vmem:[%s25749_s15 + $0xc4] ss:$12 sps:$4 sm:$0xff]  }
 0x571   :  { %17887 = vmatprep.subr.bf16.mxu1 %v20412_v13 }
 0x573   :  { %7356 = vmatmul.mubr.bf16.vlgmr.msra.gmra.mrb[64].mxu1 %v22745_v4  ;;  %v19336_v4 = vld [vmem:[%s25747_s13 + $0x338] ss:$12 sps:$4 sm:$0xff]  }
 0x574   :  { %17888 = vmatpush3.bf16.msra.mxu1 %v19334_v21  ;;  %17903 = vmatprep.mubr.msk.bf16.mxu1 %vm20413_vm0, %v20412_v13  ;;  %v19368_v21 = vld [vmem:[%s25749_s15 + $0xc0] ss:$12 sps:$4 sm:$0xff]  }
 0x575   :  { %17889 = vmatprep.subr.bf16.mxu1 %v20412_v13 }
 0x578   :  { %17890 = vmatpush3.bf16.msra.mxu1 %v19335_v22  ;;  %v19375_v22 = vld [vmem:[%s25749_s15 + $0xdc] ss:$12 sps:$4 sm:$0xff]  }
 0x579   :  { %17891 = vmatprep.subr.bf16.mxu1 %v20412_v13 }
 0x57c   :  { %17892 = vmatpush3.bf16.msra.mxu1 %v19336_v4  ;;  %v7273_v20 = vpop.f32.mrb[44].mxu0  ;;  %v19373_v4 = vld [vmem:[%s25749_s15 + $0xd8] ss:$12 sps:$4 sm:$0xff]  }
 0x57d   :  { %17893 = vmatprep.subr.bf16.mxu1 %v20412_v13  ;;  %v18127_v31 = vadd.f32 %v7273_v20, %v6475_v59  ;;  %v7275_v28 = vpop.f32.mrb[45].mxu0  ;;  %v19383_v20 = vld [vmem:[%s25749_s15 + $0x108] ss:$12 sps:$4 sm:$0xff]  }
 0x57e   :  { %v18128_v25 = vadd.f32 %v7275_v28, %v6479_v24  ;;  %v7277_v18 = vpop.f32.mrb[46].mxu0  ;;  %v6483_v28 = vrot.slane %v23180_v23, %v21717_v10  ;;  %v19393_v23 = vld [vmem:[%s25749_s15 + $0x138] ss:$12 sps:$4 sm:$0xff]  }
 0x57f   :  { %v18129_v54 = vadd.f32 %v7277_v18, %v6475_v59  ;;  %v7279_v37 = vpop.f32.mrb[47].mxu0  ;;  %v19380_v59 = vld [vmem:[%s25749_s15 + $0xf4] ss:$12 sps:$4 sm:$0xff]   ;;  %v19395_v18 = vld [vmem:[%s25749_s15 + $0x13c] ss:$12 sps:$4 sm:$0xff]  }
 0x580   :  { %17894 = vmatpush3.bf16.msra.mxu1 %v19337_v26  ;;  %v18130_v12 = vadd.f32 %v7279_v37, %v6479_v24  ;;  %v19378_v24 = vld [vmem:[%s25749_s15 + $0xf0] ss:$12 sps:$4 sm:$0xff]   ;;  %v19385_v26 = vld [vmem:[%s25749_s15 + $0x10c] ss:$12 sps:$4 sm:$0xff]  }
 0x581   :  { %17895 = vmatprep.subr.bf16.mxu1 %v20412_v13  ;;  %v7408_v33 = vpack.c.bf16 %v18129_v54, %v18127_v31  ;;  %v19390_v31 = vld [vmem:[%s25749_s15 + $0x124] ss:$12 sps:$4 sm:$0xff]  }
 0x582   :  { %v7409_v34 = vpack.c.bf16 %v18130_v12, %v18128_v25  ;;  %v19388_v25 = vld [vmem:[%s25749_s15 + $0x120] ss:$12 sps:$4 sm:$0xff]  }
 0x584   :  { %17896 = vmatpush3.bf16.msra.mxu1 %v19338_v51 }
 0x585   :  { %17897 = vmatprep.subr.bf16.mxu1 %v20412_v13 }
 0x588   :  { %17898 = vmatpush3.bf16.msra.mxu1 %v19339_v35 }
 0x589   :  { %17899 = vmatprep.subr.bf16.mxu1 %v20412_v13 }
 0x58c   :  { %17900 = vmatpush3.bf16.msra.mxu1 %v19340_v36 }
 0x58d   :  { %17901 = vmatprep.subr.bf16.mxu1 %v20412_v13 }
 0x590   :  { %17902 = vmatpush3.bf16.msra.mxu1 %v19341_v29 }
 0x593   :  { %17904 = vmatmul.mubr.bf16.vlgmr.msra.gmra.mrb[68].mxu1 %v22848_v42  ;;  %v19344_v42 = vld [vmem:[%s25749_s15 + $0x4] ss:$12 sps:$4 sm:$0xff]  }
 0x594   :  { %7443 = vmatprep.mubr.bf16.mxu1 %v20411_v17 }
 0x606   :  { %v6339_v38 = vpop.f32.mrb[56].mxu1 }
 0x607   :  { %v6341_v39 = vpop.f32.mrb[57].mxu1  ;;  %v18123_v40 = vadd.f32 %v6339_v38, %v5541_v9 }
 0x608   :  { %v6343_v44 = vpop.f32.mrb[58].mxu1  ;;  %v18124_v48 = vadd.f32 %v6341_v39, %v5545_v43 }
 0x609   :  { %v18125_v45 = vadd.f32 %v6343_v44, %v5541_v9  ;;  %v6345_v46 = vpop.f32.mrb[59].mxu1 }
 0x60a   :  { %v18126_v49 = vadd.f32 %v6345_v46, %v5545_v43 }
 0x60b   :  { %v7405_v30 = vpack.c.bf16 %v18125_v45, %v18123_v40 }
 0x60c   :  { %v7406_v50 = vpack.c.bf16 %v18126_v49, %v18124_v48  ;;  %v19398_v48 = vld [vmem:[%s25749_s15 + $0x150] ss:$12 sps:$4 sm:$0xff]   ;;  %v19400_v49 = vld [vmem:[%s25749_s15 + $0x154] ss:$12 sps:$4 sm:$0xff]  }
 0x60e   :  { %7411 = vmatprep.subr.bf16.mxu1 %v7406_v50  ;;  %7492 = vmatprep.subr.bf16.mxu0 %v7406_v50  ;;  %v19403_v50 = vld [vmem:[%s25749_s15 + $0x168] ss:$12 sps:$4 sm:$0xff]  }
 0x60f   :  { %7412 = vmatpush1.bf16.msra.mxu1 %v7405_v30  ;;  %7493 = vmatpush1.bf16.msra.mxu0 %v7405_v30  ;;  %v19405_v30 = vld [vmem:[%s25749_s15 + $0x16c] ss:$12 sps:$4 sm:$0xff]  }
 0x610   :  { %7413 = vmatprep.subr.bf16.mxu1 %v7409_v34  ;;  %7494 = vmatprep.subr.bf16.mxu0 %v7409_v34 }
 0x613   :  { %7414 = vmatpush1.bf16.msra.mxu1 %v7408_v33  ;;  %7495 = vmatpush1.bf16.msra.mxu0 %v7408_v33 }
 0x614   :  { %17907 = vmatprep.subr.bf16.mxu1 %v20412_v13  ;;  %7902 = vmatprep.subr.bf16.mxu0 %v19344_v42  ;;  %v19408_v42 = vld [vmem:[%s25749_s15 + $0x184] ss:$12 sps:$4 sm:$0xff]  }
 0x616   :  { %15454 = vmatmul.mubr.msk.bf16.vlgmr.msra.gmra.mrb[72].mxu1 %vm3740_vm1, %v23229_v47  ;;  %15456 = vmatmul.mubr.msk.bf16.vlgmr.msra.gmra.mrb[48].mxu0 %vm3740_vm1, %v23236_v53 }
 0x617   :  { %17908 = vmatpush3.bf16.msra.mxu1 %v23002_v8  ;;  %17911 = vmatprep.mubr.msk.bf16.mxu1 %vm20413_vm0, %v20412_v13 }
 0x618   :  { %17909 = vmatprep.subr.bf16.mxu1 %v20412_v13  ;;  %7903 = vmatpush1.bf16.msra.mxu0 %v19342_v32  ;;  %v19366_v32 = vld [vmem:[%s25749_s15 + $0xc8] ss:$12 sps:$4 sm:$0xff]  }
 0x619   :  { %7904 = vmatprep.subr.bf16.mxu0 %v19347_v52  ;;  %v19371_v52 = vld [vmem:[%s25749_s15 + $0xe0] ss:$12 sps:$4 sm:$0xff]  }
 0x61c   :  { %7905 = vmatpush1.bf16.msra.mxu0 %v19345_v27  ;;  %v19376_v27 = vld [vmem:[%s25749_s15 + $0xf8] ss:$12 sps:$4 sm:$0xff]  }
 0x61d   :  { %7906 = vmatprep.subr.bf16.mxu0 %v19350_v55  ;;  %v19377_v55 = vld [vmem:[%s25749_s15 + $0x38] ss:$12 sps:$4 sm:$0xff]  }
 0x620   :  { %7907 = vmatpush1.bf16.msra.mxu0 %v19348_v56  ;;  %v19382_v56 = vld [vmem:[%s25749_s15 + $0x50] ss:$12 sps:$4 sm:$0xff]  }
 0x621   :  { %7908 = vmatprep.subr.bf16.mxu0 %v19353_v15  ;;  %v19386_v15 = vld [vmem:[%s25749_s15 + $0x128] ss:$12 sps:$4 sm:$0xff]  }
 0x624   :  { %7909 = vmatpush1.bf16.msra.mxu0 %v19351_v58  ;;  %v19387_v58 = vld [vmem:[%s25749_s15 + $0x68] ss:$12 sps:$4 sm:$0xff]  }
 0x625   :  { %7910 = vmatprep.subr.bf16.mxu0 %v19356_v2  ;;  %v19391_v2 = vld [vmem:[%s25749_s15 + $0x140] ss:$12 sps:$4 sm:$0xff]  }
 0x626   :  { %v17350_v63 = vpop.f32.mrb[60].mxu1 }
 0x627   :  { %v17351_v0 = vpop.f32.mrb[61].mxu1 }
 0x628   :  { %v17352_v1 = vadd.f32 %v17351_v0, %v17350_v63  ;;  %v17353_v3 = vpop.f32.mrb[62].mxu1  ;;  %7911 = vmatpush1.bf16.msra.mxu0 %v19354_v61  ;;  %v19392_v61 = vld [vmem:[%s25749_s15 + $0x80] ss:$12 sps:$4 sm:$0xff]   ;;  %v19397_v63 = vld [vmem:[%s25749_s15 + $0x98] ss:$12 sps:$4 sm:$0xff]  }
 0x629   :  { %v17354_v14 = vpop.f32.mrb[63].mxu1  ;;  %7912 = vmatprep.subr.bf16.mxu0 %v19359_v62  ;;  %v19396_v62 = vld [vmem:[%s25749_s15 + $0x158] ss:$12 sps:$4 sm:$0xff]   ;;  %v19401_v0 = vld [vmem:[%s25749_s15 + $0x170] ss:$12 sps:$4 sm:$0xff]  }
 0x62a   :  { %v17355_v19 = vadd.f32 %v17354_v14, %v17353_v3  ;;  %v7317_v51 = vadd.f32 %v17352_v1, %v6483_v28  ;;  %v19402_v1 = vld [vmem:[%s25749_s15 + $0xb0] ss:$12 sps:$4 sm:$0xff]  }
 0x62c   :  { %7913 = vmatpush1.bf16.msra.mxu0 %v19357_v7  ;;  %v7320_v35 = vadd.f32 %v17355_v19, %v6483_v28  ;;  %v19416_v28 = vld [vmem:[%s25749_s15 + $0x1b4] ss:$12 sps:$4 sm:$0xff]  }
 0x62d   :  { %7914 = vmatprep.subr.bf16.mxu0 %v19362_v16 }
 0x630   :  { %7915 = vmatpush1.bf16.msra.mxu0 %v19360_v5 }
 0x631   :  { %7916 = vmatprep.subr.bf16.mxu0 %v19365_v6 }
 0x634   :  { %7917 = vmatpush1.bf16.msra.mxu0 %v19363_v41 }
 0x635   :  { %7918 = vmatprep.subr.bf16.mxu0 %v19370_v57 }
 0x638   :  { %7919 = vmatpush1.bf16.msra.mxu0 %v19368_v21 }
 0x639   :  { %7920 = vmatprep.subr.bf16.mxu0 %v19375_v22 }
 0x63c   :  { %7921 = vmatpush1.bf16.msra.mxu0 %v19373_v4 }
 0x63d   :  { %7922 = vmatprep.subr.bf16.mxu0 %v19380_v59  ;;  %v19406_v59 = vld [vmem:[%s25749_s15 + $0x180] ss:$12 sps:$4 sm:$0xff]  }
 0x640   :  { %7923 = vmatpush1.bf16.msra.mxu0 %v19378_v24  ;;  %v19409_v24 = vld [vmem:[%s25749_s15 + $0x188] ss:$12 sps:$4 sm:$0xff]  }
 0x641   :  { %7924 = vmatprep.subr.bf16.mxu0 %v19385_v26  ;;  %v19412_v26 = vld [vmem:[%s25749_s15 + $0x19c] ss:$12 sps:$4 sm:$0xff]  }
 0x644   :  { %7925 = vmatpush1.bf16.msra.mxu0 %v19383_v20  ;;  %v19410_v20 = vld [vmem:[%s25749_s15 + $0x198] ss:$12 sps:$4 sm:$0xff]  }
 0x645   :  { %7926 = vmatprep.subr.bf16.mxu0 %v19390_v31  ;;  %v19413_v31 = vld [vmem:[%s25749_s15 + $0x1a0] ss:$12 sps:$4 sm:$0xff]  }
 0x646   :  { %v17372_v54 = vpop.f32.mrb[64].mxu1 }
 0x647   :  { %v17373_v37 = vpop.f32.mrb[65].mxu1 }
 0x648   :  { %v17374_v12 = vadd.f32 %v17373_v37, %v17372_v54  ;;  %v17375_v33 = vpop.f32.mrb[66].mxu1  ;;  %7927 = vmatpush1.bf16.msra.mxu0 %v19388_v25  ;;  %v19414_v25 = vld [vmem:[%s25749_s15 + $0x1b0] ss:$12 sps:$4 sm:$0xff]   ;;  %v19420_v54 = vld [vmem:[%s25749_s15 + $0x1cc] ss:$12 sps:$4 sm:$0xff]  }
 0x649   :  { %v17376_v34 = vpop.f32.mrb[67].mxu1  ;;  %7928 = vmatprep.subr.bf16.mxu0 %v19395_v18  ;;  %v19417_v18 = vld [vmem:[%s25749_s15 + $0x1b8] ss:$12 sps:$4 sm:$0xff]   ;;  %v19418_v37 = vld [vmem:[%s25749_s15 + $0x1c8] ss:$12 sps:$4 sm:$0xff]  }
 0x64a   :  { %v17377_v36 = vadd.f32 %v17376_v34, %v17375_v33  ;;  %v7358_v29 = vadd.f32 %v17374_v12, %v7317_v51  ;;  %v19421_v51 = vld [vmem:[%s25749_s15 + $0x1d0] ss:$12 sps:$4 sm:$0xff]   ;;  %v19422_v12 = vld [vmem:[%s25750_s16 + $0x40] sm:$0xff]  }
 0x64c   :  { %v7361_v9 = vadd.f32 %v17377_v36, %v7320_v35  ;;  %7929 = vmatpush1.bf16.msra.mxu0 %v19393_v23 }
 0x64d   :  { %7930 = vmatprep.subr.bf16.mxu0 %v19400_v49  ;;  %v19426_v49 = vld [vmem:[%s25750_s16 + $0x50] sm:$0xff]  }
 0x650   :  { %7931 = vmatpush1.bf16.msra.mxu0 %v19398_v48  ;;  %v19435_v48 = vld [vmem:[%s25750_s16 + $0x88] sm:$0xff]  }
 0x651   :  { %7932 = vmatprep.subr.bf16.mxu0 %v19405_v30  ;;  %v19427_v30 = vld [vmem:[%s25750_s16 + $0x10] sm:$0xff]  }
 0x654   :  { %7933 = vmatpush1.bf16.msra.mxu0 %v19403_v50  ;;  %v19438_v50 = vld [vmem:[%s25750_s16 + $0x90] sm:$0xff]  }
 0x655   :  { %7943 = vmatprep.subr.bf16.mxu0 %v19408_v42  ;;  %v19428_v42 = vld [vmem:[%s25750_s16 + $0x58] sm:$0xff]  }
 0x666   :  { %v7398_v38 = vpop.f32.mrb[68].mxu1 }
 0x667   :  { %v7399_v43 = vadd.f32 %v7398_v38, %v7358_v29  ;;  %v17905_v39 = vpop.f32.mrb[69].mxu1 }
 0x668   :  { %v7401_v44 = vpop.f32.mrb[70].mxu1  ;;  %v19432_v39 = vld [vmem:[%s25750_s16 + $0x80] sm:$0xff]  }
 0x669   :  { %v7402_v40 = vadd.f32 %v7401_v44, %v7361_v9  ;;  %v17906_v45 = vpop.f32.mrb[71].mxu1 }
 0x66a   :  { %v19424_v45 = vld [vmem:[%s25750_s16 + $0x48] sm:$0xff]  }
 0x66b   :  { %v7410_v46 = vpack.c.bf16 %v7402_v40, %v7399_v43  ;;  %v19423_v43 = vld [vmem:[%s25750_s16] sm:$0xff]  }
 0x66d   :  { %17910 = vmatpush3.bf16.msra.mxu1 %v7410_v46 }
 0x66e   :  { %17915 = vmatprep.subr.bf16.mxu1 %v20412_v13 }
 0x670   :  { %17912 = vmatmul.mubr.msk.bf16.vlgmr.msra.gmra.mrb[76].mxu1 %vm3740_vm1, %v23229_v47  ;;  %v19372_v47 = vld [vmem:[%s25749_s15 + $0x20] ss:$12 sps:$4 sm:$0xff]  }
 0x671   :  { %17916 = vmatpush3.bf16.msra.mxu1 %v23002_v8  ;;  %17919 = vmatprep.mubr.msk.bf16.mxu1 %vm20413_vm0, %v20412_v13  ;;  %v19367_v8 = vld [vmem:[%s25749_s15 + $0x8] ss:$12 sps:$4 sm:$0xff]  }
 0x672   :  { %17917 = vmatprep.subr.bf16.mxu1 %v20412_v13 }
 0x675   :  { %17918 = vmatpush3.bf16.msra.mxu1 %v7410_v46  ;;  %v19425_v46 = vld [vmem:[%s25750_s16 + $0x8] sm:$0xff]  }
 0x676   :  { %17393 = vmatprep.subr.bf16.mxu1 %v19366_v32  ;;  %v19429_v32 = vld [vmem:[%s25750_s16 + $0x18] sm:$0xff]  }
 0x678   :  { %17920 = vmatmul.mubr.msk.bf16.vlgmr.msra.gmra.mrb[80].mxu1 %vm3740_vm1, %v23236_v53  ;;  %v19381_v53 = vld [vmem:[%s25749_s15 + $0x110] ss:$12 sps:$4 sm:$0xff]  }
 0x679   :  { %17394 = vmatpush3.bf16.msra.mxu1 %v19367_v8  ;;  %v19430_v8 = vld [vmem:[%s25750_s16 + $0x60] sm:$0xff]  }
 0x67a   :  { %17395 = vmatprep.subr.bf16.mxu1 %v19371_v52  ;;  %v19431_v52 = vld [vmem:[%s25750_s16 + $0x20] sm:$0xff]  }
 0x67d   :  { %17396 = vmatpush3.bf16.msra.mxu1 %v19372_v47  ;;  %v19433_v47 = vld [vmem:[%s25750_s16 + $0x68] sm:$0xff]  }
 0x67e   :  { %17397 = vmatprep.subr.bf16.mxu1 %v19376_v27  ;;  %v19434_v27 = vld [vmem:[%s25750_s16 + $0x28] sm:$0xff]  }
 0x681   :  { %17398 = vmatpush3.bf16.msra.mxu1 %v19377_v55  ;;  %v19436_v55 = vld [vmem:[%s25750_s16 + $0x70] sm:$0xff]  }
 0x682   :  { %17399 = vmatprep.subr.bf16.mxu1 %v19381_v53  ;;  %v19437_v53 = vld [vmem:[%s25750_s16 + $0x30] sm:$0xff]  }
 0x685   :  { %17400 = vmatpush3.bf16.msra.mxu1 %v19382_v56  ;;  %v19439_v56 = vld [vmem:[%s25750_s16 + $0x78] sm:$0xff]  }
 0x686   :  { %17401 = vmatprep.subr.bf16.mxu1 %v19386_v15  ;;  %v19440_v15 = vld [vmem:[%s25750_s16 + $0x38] sm:$0xff]  }
 0x689   :  { %17402 = vmatpush3.bf16.msra.mxu1 %v19387_v58  ;;  %v19441_v58 = vld [vmem:[%s25750_s16 + $0x98] sm:$0xff]  }
 0x68a   :  { %17403 = vmatprep.subr.bf16.mxu1 %v19391_v2  ;;  %v19444_v2 = vld [vmem:[%s25745_s11 + $0x3c4] ss:$12 sps:$4 sm:$0xff]  }
 0x68d   :  { %17404 = vmatpush3.bf16.msra.mxu1 %v19392_v61  ;;  %v19445_v61 = vld [vmem:[%s25745_s11 + $0x488] ss:$12 sps:$4 sm:$0xff]  }
 0x68e   :  { %17405 = vmatprep.subr.bf16.mxu1 %v19396_v62 }
 0x691   :  { %17406 = vmatpush3.bf16.msra.mxu1 %v19397_v63 }
 0x692   :  { %17407 = vmatprep.subr.bf16.mxu1 %v19401_v0 }
 0x695   :  { %17408 = vmatpush3.bf16.msra.mxu1 %v19402_v1 }
 0x696   :  { %17923 = vmatprep.subr.bf16.mxu1 %v20412_v13 }
 0x6e9   :  { %v7445_v3 = vpop.f32.mrb[72].mxu1  ;;  %v7526_v7 = vpop.f32.mrb[48].mxu0 }
 0x6ea   :  { %v7573_v14 = vmul.f32 %v7526_v7, %v7445_v3  ;;  %v7447_v16 = vpop.f32.mrb[73].mxu1  ;;  %v7528_v19 = vpop.f32.mrb[49].mxu0 }
 0x6eb   :  { %v7574_v5 = vmul.f32 %v7528_v19, %v7447_v16  ;;  %v7449_v6 = vpop.f32.mrb[74].mxu1  ;;  %v7530_v41 = vpop.f32.mrb[50].mxu0 }
 0x6ec   :  { %v7576_v57 = vpack.c.bf16 %v7573_v14, %v7573_v14  ;;  %v7450_v21 = vpop.f32.mrb[75].mxu1  ;;  %v7531_v22 = vpop.f32.mrb[51].mxu0 }
 0x6ed   :  { %v7577_v4 = vpack.c.bf16 %v7574_v5, %v7574_v5 }
 0x6ef   :  { %8016 = vmatprep.mubr.bf16.mxu1 %v7577_v4  ;;  %7934 = vmatprep.mubr.bf16.mxu0 %v7577_v4 }
 0x6f0   :  { %8017 = vmatmul.mubr.bf16.vlgmr.msra.gmra.mrb[84].mxu1 %v7576_v57  ;;  %7935 = vmatmul.mubr.bf16.vlgmr.msra.gmra.mrb[52].mxu0 %v7576_v57 }
 0x6f1   :  { %7944 = vmatpush1.bf16.msra.mxu0 %v19406_v59  ;;  %17924 = vmatpush3.bf16.msra.mxu1 %v19409_v24 }
 0x6f2   :  { %7945 = vmatprep.subr.bf16.mxu0 %v19412_v26  ;;  %17925 = vmatprep.subr.bf16.mxu1 %v20412_v13  ;;  %v19442_v26 = vld [vmem:[%s25745_s11 + $0x3c0] ss:$12 sps:$4 sm:$0xff]  }
 0x6f3   :  { %7975 = vmatprep.mubr.bf16.mxu0 %v20411_v17  ;;  %17931 = vmatprep.mubr.msk.bf16.mxu1 %vm20413_vm0, %v20412_v13 }
 0x6f5   :  { %7946 = vmatpush1.bf16.msra.mxu0 %v19410_v20  ;;  %17926 = vmatpush3.bf16.msra.mxu1 %v19413_v31  ;;  %v19446_v20 = vld [vmem:[%s25745_s11 + $0x3c8] ss:$12 sps:$4 sm:$0xff]  }
 0x6f6   :  { %7947 = vmatprep.subr.bf16.mxu0 %v19416_v28  ;;  %17927 = vmatprep.subr.bf16.mxu1 %v20412_v13 }
 0x6f9   :  { %7948 = vmatpush1.bf16.msra.mxu0 %v19414_v25  ;;  %17928 = vmatpush3.bf16.msra.mxu1 %v19417_v18  ;;  %v19449_v25 = vld [vmem:[%s25745_s11 + $0x3dc] ss:$12 sps:$4 sm:$0xff]   ;;  %v19450_v18 = vld [vmem:[%s25745_s11 + $0x4a0] ss:$12 sps:$4 sm:$0xff]  }
 0x6fa   :  { %7949 = vmatprep.subr.bf16.mxu0 %v19420_v54  ;;  %17929 = vmatprep.subr.bf16.mxu1 %v20412_v13  ;;  %v19447_v54 = vld [vmem:[%s25745_s11 + $0x3d8] ss:$12 sps:$4 sm:$0xff]  }
 0x6fd   :  { %7950 = vmatpush1.bf16.msra.mxu0 %v19418_v37  ;;  %17930 = vmatpush3.bf16.msra.mxu1 %v19421_v51  ;;  %v19451_v37 = vld [vmem:[%s25745_s11 + $0x3e0] ss:$12 sps:$4 sm:$0xff]  }
 0x6fe   :  { %17420 = vmatprep.subr.bf16.mxu1 %v19422_v12  ;;  %17935 = vmatprep.subr.bf16.mxu0 %v20412_v13  ;;  %v19454_v51 = vld [vmem:[%s25745_s11 + $0x3f4] ss:$12 sps:$4 sm:$0xff]   ;;  %v19455_v12 = vld [vmem:[%s25745_s11 + $0x4b8] ss:$12 sps:$4 sm:$0xff]  }
 0x743   :  { %v7486_v33 = vpop.f32.mrb[76].mxu1 }
 0x744   :  { %v17913_v23 = vpop.f32.mrb[77].mxu1 }
 0x745   :  { %v7489_v34 = vpop.f32.mrb[78].mxu1  ;;  %v19452_v23 = vld [vmem:[%s25745_s11 + $0x3f0] ss:$12 sps:$4 sm:$0xff]  }
 0x746   :  { %v17914_v35 = vpop.f32.mrb[79].mxu1  ;;  %v19456_v34 = vld [vmem:[%s25745_s11 + $0x3f8] ss:$12 sps:$4 sm:$0xff]  }
 0x747   :  { %v19459_v35 = vld [vmem:[%s25745_s11 + $0x40c] ss:$12 sps:$4 sm:$0xff]  }
 0x74b   :  { %v7567_v36 = vpop.f32.mrb[80].mxu1 }
 0x74c   :  { %v7575_v29 = vmul.f32 %v7567_v36, %v7486_v33  ;;  %v17921_v9 = vpop.f32.mrb[81].mxu1  ;;  %v20303_v33 = vld [vmem:[%s25768_s23 + $0x4] ss:$20 sps:$4 sm:$0xff]   ;;  %v19460_v36 = vld [vmem:[%s25745_s11 + $0x4d0] ss:$12 sps:$4 sm:$0xff]  }
 0x74d   :  { %v7570_v38 = vpop.f32.mrb[82].mxu1  ;;  %v19461_v9 = vld [vmem:[%s25745_s11 + $0x410] ss:$12 sps:$4 sm:$0xff]  }
 0x74e   :  { %v7578_v44 = vpack.c.bf16 %v7575_v29, %v7575_v29  ;;  %v17922_v40 = vpop.f32.mrb[83].mxu1  ;;  %v19457_v29 = vld [vmem:[%s25745_s11 + $0x408] ss:$12 sps:$4 sm:$0xff]   ;;  %v19464_v38 = vld [vmem:[%s25745_s11 + $0x424] ss:$12 sps:$4 sm:$0xff]  }
 0x74f   :  { %v19469_v40 = vld [vmem:[%s25745_s11 + $0x43c] ss:$12 sps:$4 sm:$0xff]  }
 0x750   :  { %15518 = vmatmul.mubr.msk.bf16.vlgmr.msra.gmra.mrb[52].mxu0 %vm5010_vm2, %v7578_v44  ;;  %17932 = vmatmul.mubr.msk.bf16.vlgmr.msra.gmra.mrb[88].mxu1 %vm5010_vm2, %v7578_v44  ;;  %v19466_v44 = vld [vmem:[%s25745_s11 + $0x428] ss:$12 sps:$4 sm:$0xff]  }
 0x751   :  { %17421 = vmatpush3.bf16.msra.mxu1 %v19423_v43  ;;  %17936 = vmatpush3.bf16.msra.mxu0 %v19432_v39  ;;  %v19465_v43 = vld [vmem:[%s25745_s11 + $0x4e8] ss:$12 sps:$4 sm:$0xff]   ;;  %v19462_v39 = vld [vmem:[%s25745_s11 + $0x420] ss:$12 sps:$4 sm:$0xff]  }
 0x752   :  { %17422 = vmatprep.subr.bf16.mxu1 %v19424_v45  ;;  %17937 = vmatprep.subr.bf16.mxu0 %v20412_v13  ;;  %v19470_v45 = vld [vmem:[%s25745_s11 + $0x500] ss:$12 sps:$4 sm:$0xff]  }
 0x753   :  { %17943 = vmatprep.mubr.msk.bf16.mxu0 %vm20413_vm0, %v20412_v13 }
 0x755   :  { %17423 = vmatpush3.bf16.msra.mxu1 %v19425_v46  ;;  %17938 = vmatpush3.bf16.msra.mxu0 %v19435_v48  ;;  %v19467_v46 = vld [vmem:[%s25745_s11 + $0x438] ss:$12 sps:$4 sm:$0xff]   ;;  %v19471_v48 = vld [vmem:[%s25745_s11 + $0x440] ss:$12 sps:$4 sm:$0xff]  }
 0x756   :  { %17424 = vmatprep.subr.bf16.mxu1 %v19426_v49  ;;  %17939 = vmatprep.subr.bf16.mxu0 %v20412_v13  ;;  %v19474_v49 = vld [vmem:[%s25745_s11 + $0x454] ss:$12 sps:$4 sm:$0xff]  }
 0x759   :  { %17425 = vmatpush3.bf16.msra.mxu1 %v19427_v30  ;;  %17940 = vmatpush3.bf16.msra.mxu0 %v19438_v50  ;;  %v19475_v30 = vld [vmem:[%s25745_s11 + $0x518] ss:$12 sps:$4 sm:$0xff]   ;;  %v19472_v50 = vld [vmem:[%s25745_s11 + $0x450] ss:$12 sps:$4 sm:$0xff]  }
 0x75a   :  { %17426 = vmatprep.subr.bf16.mxu1 %v19428_v42  ;;  %17941 = vmatprep.subr.bf16.mxu0 %v20412_v13  ;;  %v19476_v42 = vld [vmem:[%s25745_s11 + $0x458] ss:$12 sps:$4 sm:$0xff]  }
 0x75d   :  { %17427 = vmatpush3.bf16.msra.mxu1 %v19429_v32  ;;  %17942 = vmatpush3.bf16.msra.mxu0 %v19441_v58  ;;  %v19479_v32 = vld [vmem:[%s25745_s11 + $0x46c] ss:$12 sps:$4 sm:$0xff]  }
 0x75e   :  { %17428 = vmatprep.subr.bf16.mxu1 %v19430_v8  ;;  %17447 = vmatprep.subr.bf16.mxu0 %v19445_v61  ;;  %v19480_v8 = vld [vmem:[%s25745_s11 + $0x530] ss:$12 sps:$4 sm:$0xff]   ;;  %v19490_v58 = vld [vmem:[%s25745_s11 + $0x620] ss:$12 sps:$4 sm:$0xff]   ;;  %v19487_v61 = vld [vmem:[%s25745_s11 + $0x498] ss:$12 sps:$4 sm:$0xff]  }
 0x761   :  { %17429 = vmatpush3.bf16.msra.mxu1 %v19431_v52  ;;  %v19477_v52 = vld [vmem:[%s25745_s11 + $0x468] ss:$12 sps:$4 sm:$0xff]  }
 0x762   :  { %17430 = vmatprep.subr.bf16.mxu1 %v19433_v47  ;;  %v19481_v47 = vld [vmem:[%s25745_s11 + $0x470] ss:$12 sps:$4 sm:$0xff]  }
 0x765   :  { %17431 = vmatpush3.bf16.msra.mxu1 %v19434_v27  ;;  %v19484_v27 = vld [vmem:[%s25745_s11 + $0x484] ss:$12 sps:$4 sm:$0xff]  }
 0x766   :  { %17432 = vmatprep.subr.bf16.mxu1 %v19436_v55  ;;  %v19485_v55 = vld [vmem:[%s25745_s11 + $0x608] ss:$12 sps:$4 sm:$0xff]  }
 0x769   :  { %17433 = vmatpush3.bf16.msra.mxu1 %v19437_v53  ;;  %v19482_v53 = vld [vmem:[%s25745_s11 + $0x480] ss:$12 sps:$4 sm:$0xff]  }
 0x76a   :  { %17434 = vmatprep.subr.bf16.mxu1 %v19439_v56  ;;  %v19486_v56 = vld [vmem:[%s25745_s11 + $0x548] ss:$12 sps:$4 sm:$0xff]  }
 0x76d   :  { %17435 = vmatpush3.bf16.msra.mxu1 %v19440_v15  ;;  %v19489_v15 = vld [vmem:[%s25745_s11 + $0x49c] ss:$12 sps:$4 sm:$0xff]  }
 0x76e   :  { %9378 = vmatprep.subr.bf16.mxu1 %v19444_v2  ;;  %v23622_v2 = vld [vmem:[%s25768_s23] ss:$20 sps:$4 sm:$0xff]  }
 0x7c3   :  { %v17409_v62 = vpop.f32.mrb[84].mxu1 }
 0x7c4   :  { %v17410_v63 = vpop.f32.mrb[85].mxu1 }
 0x7c5   :  { %v17411_v0 = vadd.f32 %v17410_v63, %v17409_v62  ;;  %v17412_v1 = vpop.f32.mrb[86].mxu1  ;;  %v19491_v62 = vld [vmem:[%s25745_s11 + $0x560] ss:$12 sps:$4 sm:$0xff]  }
 0x7c6   :  { %v17413_v3 = vpop.f32.mrb[87].mxu1  ;;  %v19494_v63 = vld [vmem:[%s25745_s11 + $0x4b4] ss:$12 sps:$4 sm:$0xff]  }
 0x7c7   :  { %v23640_v1 = vld [vmem:[%s25768_s23 + $0xc] ss:$20 sps:$4 sm:$0xff]   ;;  %v19492_v3 = vld [vmem:[%s25745_s11 + $0x4b0] ss:$12 sps:$4 sm:$0xff]  }
 0x823   :  { %v7977_v7 = vpop.f32.mrb[52].mxu0  ;;  %v8058_v14 = vpop.f32.mrb[88].mxu1 }
 0x824   :  { %v8064_v16 = vmax.f32 %v7977_v7, 0.0  ;;  %v8059_v19 = vadd.f32 %v17411_v0, %v8058_v14  ;;  %v7979_v5 = vpop.f32.mrb[53].mxu0  ;;  %v17933_v6 = vpop.f32.mrb[89].mxu1  ;;  %v19495_v0 = vld [vmem:[%s25745_s11 + $0x638] ss:$12 sps:$4 sm:$0xff]  }
 0x825   :  { %v8065_v41 = vmax.f32 %v7979_v5, 0.0  ;;  %v7981_v57 = vpop.f32.mrb[54].mxu0  ;;  %v8061_v21 = vpop.f32.mrb[90].mxu1  ;;  %v19496_v7 = vld [vmem:[%s25745_s11 + $0x578] ss:$12 sps:$4 sm:$0xff]  }
 0x826   :  { %v8066_v22 = vmax.f32 %v8059_v19, 0.0  ;;  %v7982_v4 = vpop.f32.mrb[55].mxu0  ;;  %v17934_v59 = vpop.f32.mrb[91].mxu1  ;;  %v8067_v31 = vpack.c.bf16 %v8064_v16, %v8064_v16  ;;  %v19499_v14 = vld [vmem:[%s25745_s11 + $0x4cc] ss:$12 sps:$4 sm:$0xff]  }
 0x827   :  { %v8068_v24 = vpack.c.bf16 %v8065_v41, %v8065_v41  ;;  %v19500_v16 = vld [vmem:[%s25745_s11 + $0x650] ss:$12 sps:$4 sm:$0xff]   ;;  %v19497_v19 = vld [vmem:[%s25745_s11 + $0x4c8] ss:$12 sps:$4 sm:$0xff]   ;;  %v19502_v57 = vld [vmem:[%s25745_s11 + $0x4e0] ss:$12 sps:$4 sm:$0xff]  }
 0x828   :  { %v8069_v28 = vpack.c.bf16 %v8066_v22, %v8066_v22  ;;  %v19501_v5 = vld [vmem:[%s25745_s11 + $0x590] ss:$12 sps:$4 sm:$0xff]   ;;  %v19505_v41 = vld [vmem:[%s25745_s11 + $0x668] ss:$12 sps:$4 sm:$0xff]   ;;  %v19510_v4 = vld [vmem:[%s25745_s11 + $0x680] ss:$12 sps:$4 sm:$0xff]  }
 0x829   :  { %8225 = vmatprep.mubr.bf16.mxu1 %v8068_v24  ;;  %v19504_v6 = vld [vmem:[%s25745_s11 + $0x4e4] ss:$12 sps:$4 sm:$0xff]   ;;  %v19506_v21 = vld [vmem:[%s25745_s11 + $0x5a8] ss:$12 sps:$4 sm:$0xff]   ;;  %v19511_v24 = vld [vmem:[%s25745_s11 + $0x5c0] ss:$12 sps:$4 sm:$0xff]  }
 0x82a   :  { %8226 = vmatmul.mubr.bf16.vlgmr.msra.gmra.mrb[92].mxu1 %v8067_v31  ;;  %17944 = vmatmul.mubr.msk.bf16.vlgmr.msra.gmra.mrb[56].mxu0 %vm5010_vm2, %v8069_v28  ;;  %v19509_v22 = vld [vmem:[%s25745_s11 + $0x4fc] ss:$12 sps:$4 sm:$0xff]   ;;  %v19507_v59 = vld [vmem:[%s25745_s11 + $0x4f8] ss:$12 sps:$4 sm:$0xff]  }
 0x82b   :  { %9379 = vmatpush1.bf16.msra.mxu1 %v19442_v26  ;;  %17448 = vmatpush3.bf16.msra.mxu0 %v19446_v20  ;;  %v19514_v26 = vld [vmem:[%s25745_s11 + $0x514] ss:$12 sps:$4 sm:$0xff]   ;;  %v19515_v20 = vld [vmem:[%s25745_s11 + $0x698] ss:$12 sps:$4 sm:$0xff]   ;;  %v19512_v31 = vld [vmem:[%s25745_s11 + $0x510] ss:$12 sps:$4 sm:$0xff]  }
 0x82c   :  { %9380 = vmatprep.subr.bf16.mxu1 %v19449_v25  ;;  %17449 = vmatprep.subr.bf16.mxu0 %v19450_v18  ;;  %v19516_v28 = vld [vmem:[%s25745_s11 + $0x5d8] ss:$12 sps:$4 sm:$0xff]   ;;  %v19520_v18 = vld [vmem:[%s25745_s11 + $0x6b0] ss:$12 sps:$4 sm:$0xff]  }
 0x82d   :  { %9539 = vmatprep.mubr.bf16.mxu0 %v20303_v33  ;;  %9410 = vmatprep.mubr.bf16.mxu1 %v20303_v33  ;;  %v19519_v25 = vld [vmem:[%s25745_s11 + $0x52c] ss:$12 sps:$4 sm:$0xff]   ;;  %v19525_v33 = vld [vmem:[%s25745_s11 + $0x6c8] ss:$12 sps:$4 sm:$0xff]  }
 0x82f   :  { %9381 = vmatpush1.bf16.msra.mxu1 %v19447_v54  ;;  %17450 = vmatpush3.bf16.msra.mxu0 %v19451_v37  ;;  %v19517_v54 = vld [vmem:[%s25745_s11 + $0x528] ss:$12 sps:$4 sm:$0xff]   ;;  %v19521_v37 = vld [vmem:[%s25745_s11 + $0x5f0] ss:$12 sps:$4 sm:$0xff]  }
 0x830   :  { %9382 = vmatprep.subr.bf16.mxu1 %v19454_v51  ;;  %17451 = vmatprep.subr.bf16.mxu0 %v19455_v12  ;;  %v19524_v51 = vld [vmem:[%s25745_s11 + $0x544] ss:$12 sps:$4 sm:$0xff]   ;;  %v19522_v12 = vld [vmem:[%s25745_s11 + $0x540] ss:$12 sps:$4 sm:$0xff]  }
 0x833   :  { %9383 = vmatpush1.bf16.msra.mxu1 %v19452_v23  ;;  %17452 = vmatpush3.bf16.msra.mxu0 %v19456_v34  ;;  %v19528_v23 = vld [vmem:[%s25745_s11 + $0x55c] ss:$12 sps:$4 sm:$0xff]  }
 0x834   :  { %9384 = vmatprep.subr.bf16.mxu1 %v19459_v35  ;;  %17453 = vmatprep.subr.bf16.mxu0 %v19460_v36  ;;  %v23725_v34 = vld [vmem:[%s25768_s23 + $0x8] ss:$20 sps:$4 sm:$0xff]   ;;  %v19526_v35 = vld [vmem:[%s25745_s11 + $0x558] ss:$12 sps:$4 sm:$0xff]   ;;  %v19529_v36 = vld [vmem:[%s25745_s11 + $0x6e0] ss:$12 sps:$4 sm:$0xff]  }
 0x837   :  { %9385 = vmatpush1.bf16.msra.mxu1 %v19457_v29  ;;  %17454 = vmatpush3.bf16.msra.mxu0 %v19461_v9  ;;  %v19532_v29 = vld [vmem:[%s25745_s11 + $0x574] ss:$12 sps:$4 sm:$0xff]   ;;  %v19530_v9 = vld [vmem:[%s25745_s11 + $0x570] ss:$12 sps:$4 sm:$0xff]  }
 0x838   :  { %9386 = vmatprep.subr.bf16.mxu1 %v19464_v38  ;;  %17455 = vmatprep.subr.bf16.mxu0 %v19465_v43  ;;  %v19533_v38 = vld [vmem:[%s25745_s11 + $0x6f8] ss:$12 sps:$4 sm:$0xff]  }
 0x839   :  { %v19536_v43 = vld [vmem:[%s25745_s11 + $0x58c] ss:$12 sps:$4 sm:$0xff]  }
 0x83b   :  { %9387 = vmatpush1.bf16.msra.mxu1 %v19462_v39  ;;  %17456 = vmatpush3.bf16.msra.mxu0 %v19466_v44  ;;  %v19534_v39 = vld [vmem:[%s25745_s11 + $0x588] ss:$12 sps:$4 sm:$0xff]   ;;  %v19537_v44 = vld [vmem:[%s25745_s11 + $0x710] ss:$12 sps:$4 sm:$0xff]  }
 0x83c   :  { %9388 = vmatprep.subr.bf16.mxu1 %v19469_v40  ;;  %17457 = vmatprep.subr.bf16.mxu0 %v19470_v45  ;;  %v19540_v40 = vld [vmem:[%s25745_s11 + $0x5a4] ss:$12 sps:$4 sm:$0xff]   ;;  %v19538_v45 = vld [vmem:[%s25745_s11 + $0x5a0] ss:$12 sps:$4 sm:$0xff]  }
 0x83f   :  { %9389 = vmatpush1.bf16.msra.mxu1 %v19467_v46  ;;  %17458 = vmatpush3.bf16.msra.mxu0 %v19471_v48  ;;  %v19541_v46 = vld [vmem:[%s25745_s11 + $0x728] ss:$12 sps:$4 sm:$0xff]  }
 0x840   :  { %9390 = vmatprep.subr.bf16.mxu1 %v19474_v49  ;;  %17459 = vmatprep.subr.bf16.mxu0 %v19475_v30  ;;  %v19544_v48 = vld [vmem:[%s25745_s11 + $0x5bc] ss:$12 sps:$4 sm:$0xff]   ;;  %v19542_v49 = vld [vmem:[%s25745_s11 + $0x5b8] ss:$12 sps:$4 sm:$0xff]   ;;  %v19545_v30 = vld [vmem:[%s25745_s11 + $0x740] ss:$12 sps:$4 sm:$0xff]  }
 0x843   :  { %9391 = vmatpush1.bf16.msra.mxu1 %v19472_v50  ;;  %17460 = vmatpush3.bf16.msra.mxu0 %v19476_v42  ;;  %v19548_v50 = vld [vmem:[%s25745_s11 + $0x5d4] ss:$12 sps:$4 sm:$0xff]   ;;  %v19546_v42 = vld [vmem:[%s25745_s11 + $0x5d0] ss:$12 sps:$4 sm:$0xff]  }
 0x844   :  { %9392 = vmatprep.subr.bf16.mxu1 %v19479_v32  ;;  %17461 = vmatprep.subr.bf16.mxu0 %v19480_v8  ;;  %v19549_v32 = vld [vmem:[%s25745_s11 + $0x758] ss:$12 sps:$4 sm:$0xff]  }
 0x845   :  { %v19552_v8 = vld [vmem:[%s25745_s11 + $0x5ec] ss:$12 sps:$4 sm:$0xff]  }
 0x847   :  { %9393 = vmatpush1.bf16.msra.mxu1 %v19477_v52  ;;  %17462 = vmatpush3.bf16.msra.mxu0 %v19481_v47  ;;  %v19550_v52 = vld [vmem:[%s25745_s11 + $0x5e8] ss:$12 sps:$4 sm:$0xff]   ;;  %v19553_v47 = vld [vmem:[%s25745_s11 + $0x770] ss:$12 sps:$4 sm:$0xff]  }
 0x848   :  { %9394 = vmatprep.subr.bf16.mxu1 %v19484_v27  ;;  %17469 = vmatprep.subr.bf16.mxu0 %v19485_v55  ;;  %v19556_v27 = vld [vmem:[%s25745_s11 + $0x604] ss:$12 sps:$4 sm:$0xff]  }
 0x849   :  { %v19559_v55 = vld [vmem:[%s25747_s13 + $0x3c4] ss:$12 sps:$4 sm:$0xff]  }
 0x84a   :  { %9540 = vmatmul.mubr.bf16.vlgmr.msra.gmra.mrb[60].mxu0 %v23622_v2 }
 0x84b   :  { %9395 = vmatpush1.bf16.msra.mxu1 %v19482_v53  ;;  %17470 = vmatpush3.bf16.msra.mxu0 %v19486_v56  ;;  %v19554_v53 = vld [vmem:[%s25745_s11 + $0x600] ss:$12 sps:$4 sm:$0xff]  }
 0x84c   :  { %9396 = vmatprep.subr.bf16.mxu1 %v19489_v15  ;;  %17471 = vmatprep.subr.bf16.mxu0 %v19490_v58  ;;  %v19557_v56 = vld [vmem:[%s25747_s13 + $0x3c0] ss:$12 sps:$4 sm:$0xff]   ;;  %v19562_v15 = vld [vmem:[%s25745_s11 + $0x61c] ss:$12 sps:$4 sm:$0xff]  }
 0x84d   :  { %9580 = vmatprep.mubr.bf16.mxu0 %v23640_v1  ;;  %v19565_v58 = vld [vmem:[%s25747_s13 + $0x3dc] ss:$12 sps:$4 sm:$0xff]  }
 0x84f   :  { %9397 = vmatpush1.bf16.msra.mxu1 %v19487_v61  ;;  %17472 = vmatpush3.bf16.msra.mxu0 %v19491_v62  ;;  %v19560_v61 = vld [vmem:[%s25745_s11 + $0x618] ss:$12 sps:$4 sm:$0xff]  }
 0x850   :  { %9398 = vmatprep.subr.bf16.mxu1 %v19494_v63  ;;  %17473 = vmatprep.subr.bf16.mxu0 %v19495_v0  ;;  %v19563_v62 = vld [vmem:[%s25747_s13 + $0x3d8] ss:$12 sps:$4 sm:$0xff]   ;;  %v19568_v63 = vld [vmem:[%s25745_s11 + $0x634] ss:$12 sps:$4 sm:$0xff]  }
 0x851   :  { %v19571_v0 = vld [vmem:[%s25747_s13 + $0x3f4] ss:$12 sps:$4 sm:$0xff]  }
 0x853   :  { %9399 = vmatpush1.bf16.msra.mxu1 %v19492_v3  ;;  %17474 = vmatpush3.bf16.msra.mxu0 %v19496_v7  ;;  %v19566_v3 = vld [vmem:[%s25745_s11 + $0x630] ss:$12 sps:$4 sm:$0xff]  }
 0x854   :  { %9400 = vmatprep.subr.bf16.mxu1 %v19499_v14  ;;  %17475 = vmatprep.subr.bf16.mxu0 %v19500_v16  ;;  %v19569_v7 = vld [vmem:[%s25747_s13 + $0x3f0] ss:$12 sps:$4 sm:$0xff]   ;;  %v19574_v14 = vld [vmem:[%s25745_s11 + $0x64c] ss:$12 sps:$4 sm:$0xff]  }
 0x855   :  { %v19577_v16 = vld [vmem:[%s25747_s13 + $0x40c] ss:$12 sps:$4 sm:$0xff]  }
 0x857   :  { %9401 = vmatpush1.bf16.msra.mxu1 %v19497_v19  ;;  %17476 = vmatpush3.bf16.msra.mxu0 %v19501_v5  ;;  %v19572_v19 = vld [vmem:[%s25745_s11 + $0x648] ss:$12 sps:$4 sm:$0xff]  }
 0x858   :  { %9402 = vmatprep.subr.bf16.mxu1 %v19504_v6  ;;  %17477 = vmatprep.subr.bf16.mxu0 %v19505_v41  ;;  %v19575_v5 = vld [vmem:[%s25747_s13 + $0x408] ss:$12 sps:$4 sm:$0xff]   ;;  %v19580_v6 = vld [vmem:[%s25745_s11 + $0x664] ss:$12 sps:$4 sm:$0xff]  }
 0x859   :  { %v19583_v41 = vld [vmem:[%s25747_s13 + $0x424] ss:$12 sps:$4 sm:$0xff]  }
 0x85b   :  { %9403 = vmatpush1.bf16.msra.mxu1 %v19502_v57  ;;  %17478 = vmatpush3.bf16.msra.mxu0 %v19506_v21  ;;  %v19578_v57 = vld [vmem:[%s25745_s11 + $0x660] ss:$12 sps:$4 sm:$0xff]  }
 0x85c   :  { %9404 = vmatprep.subr.bf16.mxu1 %v19509_v22  ;;  %17479 = vmatprep.subr.bf16.mxu0 %v19510_v4  ;;  %v19581_v21 = vld [vmem:[%s25747_s13 + $0x420] ss:$12 sps:$4 sm:$0xff]   ;;  %v19586_v22 = vld [vmem:[%s25745_s11 + $0x67c] ss:$12 sps:$4 sm:$0xff]  }
 0x85d   :  { %v19589_v4 = vld [vmem:[%s25747_s13 + $0x43c] ss:$12 sps:$4 sm:$0xff]  }
 0x85f   :  { %9405 = vmatpush1.bf16.msra.mxu1 %v19507_v59  ;;  %17480 = vmatpush3.bf16.msra.mxu0 %v19511_v24  ;;  %v19584_v59 = vld [vmem:[%s25745_s11 + $0x678] ss:$12 sps:$4 sm:$0xff]  }
 0x860   :  { %9406 = vmatprep.subr.bf16.mxu1 %v19514_v26  ;;  %17481 = vmatprep.subr.bf16.mxu0 %v19515_v20  ;;  %v19587_v24 = vld [vmem:[%s25747_s13 + $0x438] ss:$12 sps:$4 sm:$0xff]   ;;  %v19592_v26 = vld [vmem:[%s25745_s11 + $0x694] ss:$12 sps:$4 sm:$0xff]  }
 0x861   :  { %v19595_v20 = vld [vmem:[%s25747_s13 + $0x454] ss:$12 sps:$4 sm:$0xff]  }
 0x863   :  { %9407 = vmatpush1.bf16.msra.mxu1 %v19512_v31  ;;  %17482 = vmatpush3.bf16.msra.mxu0 %v19516_v28  ;;  %v19590_v31 = vld [vmem:[%s25745_s11 + $0x690] ss:$12 sps:$4 sm:$0xff]  }
 0x864   :  { %9408 = vmatprep.subr.bf16.mxu1 %v19519_v25  ;;  %17483 = vmatprep.subr.bf16.mxu0 %v19520_v18  ;;  %v19593_v28 = vld [vmem:[%s25747_s13 + $0x450] ss:$12 sps:$4 sm:$0xff]   ;;  %v19598_v25 = vld [vmem:[%s25745_s11 + $0x6ac] ss:$12 sps:$4 sm:$0xff]  }
 0x865   :  { %v19601_v18 = vld [vmem:[%s25747_s13 + $0x46c] ss:$12 sps:$4 sm:$0xff]  }
 0x867   :  { %9409 = vmatpush1.bf16.msra.mxu1 %v19517_v54  ;;  %17484 = vmatpush3.bf16.msra.mxu0 %v19521_v37  ;;  %v19596_v54 = vld [vmem:[%s25745_s11 + $0x6a8] ss:$12 sps:$4 sm:$0xff]  }
 0x868   :  { %9421 = vmatprep.subr.bf16.mxu1 %v19524_v51  ;;  %17947 = vmatprep.subr.bf16.mxu0 %v20412_v13  ;;  %v19599_v37 = vld [vmem:[%s25747_s13 + $0x468] ss:$12 sps:$4 sm:$0xff]   ;;  %v19604_v51 = vld [vmem:[%s25745_s11 + $0x6c4] ss:$12 sps:$4 sm:$0xff]  }
 0x86a   :  { %9581 = vmatmul.mubr.bf16.vlgmr.msra.gmra.mrb[64].mxu0 %v23725_v34  ;;  %9411 = vmatmul.mubr.bf16.vlgmr.msra.gmra.mrb[96].mxu1 %v23622_v2  ;;  %v23820_v2 = vld [vmem:[%s25768_s23 + $0x10] ss:$20 sps:$4 sm:$0xff]  }
 0x86b   :  { %9422 = vmatpush1.bf16.msra.mxu1 %v19522_v12  ;;  %17948 = vmatpush3.bf16.msra.mxu0 %v19525_v33  ;;  %v19607_v12 = vld [vmem:[%s25747_s13 + $0x484] ss:$12 sps:$4 sm:$0xff]   ;;  %v19602_v33 = vld [vmem:[%s25745_s11 + $0x6c0] ss:$12 sps:$4 sm:$0xff]  }
 0x86c   :  { %9423 = vmatprep.subr.bf16.mxu1 %v19528_v23  ;;  %17949 = vmatprep.subr.bf16.mxu0 %v20412_v13  ;;  %v19605_v23 = vld [vmem:[%s25747_s13 + $0x480] ss:$12 sps:$4 sm:$0xff]  }
 0x86d   :  { %17963 = vmatprep.mubr.msk.bf16.mxu0 %vm20413_vm0, %v20412_v13  ;;  %9453 = vmatprep.mubr.bf16.mxu1 %v23640_v1  ;;  %v23838_v1 = vld [vmem:[%s25768_s23 + $0x2c] ss:$20 sps:$4 sm:$0xff]  }
 0x86f   :  { %9424 = vmatpush1.bf16.msra.mxu1 %v19526_v35  ;;  %17950 = vmatpush3.bf16.msra.mxu0 %v19529_v36  ;;  %v19610_v35 = vld [vmem:[%s25745_s11 + $0x6dc] ss:$12 sps:$4 sm:$0xff]  }
 0x870   :  { %9425 = vmatprep.subr.bf16.mxu1 %v19532_v29  ;;  %17951 = vmatprep.subr.bf16.mxu0 %v20412_v13  ;;  %v19613_v36 = vld [vmem:[%s25747_s13 + $0x49c] ss:$12 sps:$4 sm:$0xff]   ;;  %v19608_v29 = vld [vmem:[%s25745_s11 + $0x6d8] ss:$12 sps:$4 sm:$0xff]  }
 0x873   :  { %9426 = vmatpush1.bf16.msra.mxu1 %v19530_v9  ;;  %17952 = vmatpush3.bf16.msra.mxu0 %v19533_v38  ;;  %v19611_v9 = vld [vmem:[%s25747_s13 + $0x498] ss:$12 sps:$4 sm:$0xff]   ;;  %v19616_v38 = vld [vmem:[%s25745_s11 + $0x6f4] ss:$12 sps:$4 sm:$0xff]  }
 0x874   :  { %9427 = vmatprep.subr.bf16.mxu1 %v19536_v43  ;;  %17953 = vmatprep.subr.bf16.mxu0 %v20412_v13  ;;  %v19614_v43 = vld [vmem:[%s25745_s11 + $0x6f0] ss:$12 sps:$4 sm:$0xff]  }
 0x877   :  { %9428 = vmatpush1.bf16.msra.mxu1 %v19534_v39  ;;  %17954 = vmatpush3.bf16.msra.mxu0 %v19537_v44  ;;  %v19617_v39 = vld [vmem:[%s25747_s13 + $0x4b0] ss:$12 sps:$4 sm:$0xff]   ;;  %v19622_v44 = vld [vmem:[%s25745_s11 + $0x70c] ss:$12 sps:$4 sm:$0xff]  }
 0x878   :  { %9429 = vmatprep.subr.bf16.mxu1 %v19540_v40  ;;  %17955 = vmatprep.subr.bf16.mxu0 %v20412_v13  ;;  %v19625_v40 = vld [vmem:[%s25747_s13 + $0x4cc] ss:$12 sps:$4 sm:$0xff]  }
 0x87b   :  { %9430 = vmatpush1.bf16.msra.mxu1 %v19538_v45  ;;  %17956 = vmatpush3.bf16.msra.mxu0 %v19541_v46  ;;  %v19620_v45 = vld [vmem:[%s25745_s11 + $0x708] ss:$12 sps:$4 sm:$0xff]  }
 0x87c   :  { %9431 = vmatprep.subr.bf16.mxu1 %v19544_v48  ;;  %17957 = vmatprep.subr.bf16.mxu0 %v20412_v13  ;;  %v19623_v46 = vld [vmem:[%s25747_s13 + $0x4c8] ss:$12 sps:$4 sm:$0xff]   ;;  %v19628_v48 = vld [vmem:[%s25745_s11 + $0x724] ss:$12 sps:$4 sm:$0xff]  }
 0x87f   :  { %9432 = vmatpush1.bf16.msra.mxu1 %v19542_v49  ;;  %17958 = vmatpush3.bf16.msra.mxu0 %v19545_v30  ;;  %v19631_v49 = vld [vmem:[%s25747_s13 + $0x4e4] ss:$12 sps:$4 sm:$0xff]   ;;  %v19626_v30 = vld [vmem:[%s25745_s11 + $0x720] ss:$12 sps:$4 sm:$0xff]  }
 0x880   :  { %9433 = vmatprep.subr.bf16.mxu1 %v19548_v50  ;;  %17959 = vmatprep.subr.bf16.mxu0 %v20412_v13  ;;  %v19629_v50 = vld [vmem:[%s25747_s13 + $0x4e0] ss:$12 sps:$4 sm:$0xff]  }
 0x883   :  { %9434 = vmatpush1.bf16.msra.mxu1 %v19546_v42  ;;  %17960 = vmatpush3.bf16.msra.mxu0 %v19549_v32  ;;  %v19634_v42 = vld [vmem:[%s25745_s11 + $0x73c] ss:$12 sps:$4 sm:$0xff]  }
 0x884   :  { %9435 = vmatprep.subr.bf16.mxu1 %v19552_v8  ;;  %17961 = vmatprep.subr.bf16.mxu0 %v20412_v13  ;;  %v19637_v32 = vld [vmem:[%s25747_s13 + $0x4fc] ss:$12 sps:$4 sm:$0xff]   ;;  %v19632_v8 = vld [vmem:[%s25745_s11 + $0x738] ss:$12 sps:$4 sm:$0xff]  }
 0x887   :  { %9436 = vmatpush1.bf16.msra.mxu1 %v19550_v52  ;;  %17962 = vmatpush3.bf16.msra.mxu0 %v19553_v47  ;;  %v19635_v52 = vld [vmem:[%s25747_s13 + $0x4f8] ss:$12 sps:$4 sm:$0xff]   ;;  %v19640_v47 = vld [vmem:[%s25745_s11 + $0x754] ss:$12 sps:$4 sm:$0xff]  }
 0x888   :  { %9437 = vmatprep.subr.bf16.mxu1 %v19556_v27  ;;  %10286 = vmatprep.subr.bf16.mxu0 %v19559_v55  ;;  %v19643_v27 = vld [vmem:[%s25747_s13 + $0x514] ss:$12 sps:$4 sm:$0xff]   ;;  %v19638_v55 = vld [vmem:[%s25745_s11 + $0x750] ss:$12 sps:$4 sm:$0xff]  }
 0x88a   :  { %17964 = vmatmul.mubr.bf16.vlgmr.msra.gmra.mrb[68].mxu0 %v23820_v2 }
 0x88b   :  { %9438 = vmatpush1.bf16.msra.mxu1 %v19554_v53  ;;  %10287 = vmatpush1.bf16.msra.mxu0 %v19557_v56  ;;  %v19641_v53 = vld [vmem:[%s25747_s13 + $0x510] ss:$12 sps:$4 sm:$0xff]   ;;  %v19646_v56 = vld [vmem:[%s25745_s11 + $0x76c] ss:$12 sps:$4 sm:$0xff]  }
 0x88c   :  { %9439 = vmatprep.subr.bf16.mxu1 %v19562_v15  ;;  %10288 = vmatprep.subr.bf16.mxu0 %v19565_v58  ;;  %v19649_v15 = vld [vmem:[%s25747_s13 + $0x52c] ss:$12 sps:$4 sm:$0xff]   ;;  %v19644_v58 = vld [vmem:[%s25745_s11 + $0x768] ss:$12 sps:$4 sm:$0xff]  }
 0x88d   :  { %10318 = vmatprep.mubr.bf16.mxu0 %v23838_v1 }
 0x88f   :  { %9440 = vmatpush1.bf16.msra.mxu1 %v19560_v61  ;;  %10289 = vmatpush1.bf16.msra.mxu0 %v19563_v62  ;;  %v19647_v61 = vld [vmem:[%s25747_s13 + $0x528] ss:$12 sps:$4 sm:$0xff]   ;;  %v19652_v62 = vld [vmem:[%s25747_s13 + $0x544] ss:$12 sps:$4 sm:$0xff]  }
 0x890   :  { %9441 = vmatprep.subr.bf16.mxu1 %v19568_v63  ;;  %10290 = vmatprep.subr.bf16.mxu0 %v19571_v0  ;;  %v19653_v63 = vld [vmem:[%s25747_s13 + $0x488] ss:$12 sps:$4 sm:$0xff]   ;;  %v19650_v0 = vld [vmem:[%s25747_s13 + $0x540] ss:$12 sps:$4 sm:$0xff]  }
 0x893   :  { %9442 = vmatpush1.bf16.msra.mxu1 %v19566_v3  ;;  %10291 = vmatpush1.bf16.msra.mxu0 %v19569_v7  ;;  %v19654_v3 = vld [vmem:[%s25747_s13 + $0x3c8] ss:$12 sps:$4 sm:$0xff]  }
 0x894   :  { %9443 = vmatprep.subr.bf16.mxu1 %v19574_v14  ;;  %10292 = vmatprep.subr.bf16.mxu0 %v19577_v16  ;;  %v19657_v7 = vld [vmem:[%s25747_s13 + $0x55c] ss:$12 sps:$4 sm:$0xff]   ;;  %v19658_v14 = vld [vmem:[%s25747_s13 + $0x4a0] ss:$12 sps:$4 sm:$0xff]  }
 0x895   :  { %v24027_v16 = vld [vmem:[%s25768_s23 + $0x28] ss:$20 sps:$4 sm:$0xff]  }
 0x897   :  { %9444 = vmatpush1.bf16.msra.mxu1 %v19572_v19  ;;  %10293 = vmatpush1.bf16.msra.mxu0 %v19575_v5  ;;  %v19655_v19 = vld [vmem:[%s25747_s13 + $0x558] ss:$12 sps:$4 sm:$0xff]   ;;  %v19659_v5 = vld [vmem:[%s25747_s13 + $0x3e0] ss:$12 sps:$4 sm:$0xff]  }
 0x898   :  { %9445 = vmatprep.subr.bf16.mxu1 %v19580_v6  ;;  %10294 = vmatprep.subr.bf16.mxu0 %v19583_v41  ;;  %v19663_v6 = vld [vmem:[%s25747_s13 + $0x4b8] ss:$12 sps:$4 sm:$0xff]   ;;  %v24046_v41 = vld [vmem:[%s25768_s23 + $0x34] ss:$20 sps:$4 sm:$0xff]  }
 0x89b   :  { %9446 = vmatpush1.bf16.msra.mxu1 %v19578_v57  ;;  %10295 = vmatpush1.bf16.msra.mxu0 %v19581_v21  ;;  %v19660_v57 = vld [vmem:[%s25747_s13 + $0x570] ss:$12 sps:$4 sm:$0xff]   ;;  %v19664_v21 = vld [vmem:[%s25747_s13 + $0x3f8] ss:$12 sps:$4 sm:$0xff]  }
 0x89c   :  { %9447 = vmatprep.subr.bf16.mxu1 %v19586_v22  ;;  %10296 = vmatprep.subr.bf16.mxu0 %v19589_v4  ;;  %v19668_v22 = vld [vmem:[%s25747_s13 + $0x4d0] ss:$12 sps:$4 sm:$0xff]   ;;  %v19665_v4 = vld [vmem:[%s25747_s13 + $0x588] ss:$12 sps:$4 sm:$0xff]  }
 0x89f   :  { %9448 = vmatpush1.bf16.msra.mxu1 %v19584_v59  ;;  %10297 = vmatpush1.bf16.msra.mxu0 %v19587_v24  ;;  %v19669_v59 = vld [vmem:[%s25747_s13 + $0x410] ss:$12 sps:$4 sm:$0xff]  }
 0x8a0   :  { %9449 = vmatprep.subr.bf16.mxu1 %v19592_v26  ;;  %10298 = vmatprep.subr.bf16.mxu0 %v19595_v20  ;;  %v19672_v24 = vld [vmem:[%s25747_s13 + $0x5a4] ss:$12 sps:$4 sm:$0xff]   ;;  %v19673_v26 = vld [vmem:[%s25747_s13 + $0x4e8] ss:$12 sps:$4 sm:$0xff]   ;;  %v19670_v20 = vld [vmem:[%s25747_s13 + $0x5a0] ss:$12 sps:$4 sm:$0xff]  }
 0x8a3   :  { %9450 = vmatpush1.bf16.msra.mxu1 %v19590_v31  ;;  %10299 = vmatpush1.bf16.msra.mxu0 %v19593_v28  ;;  %v19674_v31 = vld [vmem:[%s25747_s13 + $0x428] ss:$12 sps:$4 sm:$0xff]  }
 0x8a4   :  { %9451 = vmatprep.subr.bf16.mxu1 %v19598_v25  ;;  %10300 = vmatprep.subr.bf16.mxu0 %v19601_v18  ;;  %v19677_v28 = vld [vmem:[%s25747_s13 + $0x5bc] ss:$12 sps:$4 sm:$0xff]   ;;  %v19678_v25 = vld [vmem:[%s25747_s13 + $0x500] ss:$12 sps:$4 sm:$0xff]   ;;  %v19675_v18 = vld [vmem:[%s25747_s13 + $0x5b8] ss:$12 sps:$4 sm:$0xff]  }
 0x8a7   :  { %9452 = vmatpush1.bf16.msra.mxu1 %v19596_v54  ;;  %10301 = vmatpush1.bf16.msra.mxu0 %v19599_v37  ;;  %v19679_v54 = vld [vmem:[%s25747_s13 + $0x440] ss:$12 sps:$4 sm:$0xff]  }
 0x8a8   :  { %9464 = vmatprep.subr.bf16.mxu1 %v19604_v51  ;;  %10302 = vmatprep.subr.bf16.mxu0 %v19607_v12  ;;  %v19682_v37 = vld [vmem:[%s25747_s13 + $0x5d4] ss:$12 sps:$4 sm:$0xff]   ;;  %v19683_v51 = vld [vmem:[%s25747_s13 + $0x518] ss:$12 sps:$4 sm:$0xff]   ;;  %v19680_v12 = vld [vmem:[%s25747_s13 + $0x5d0] ss:$12 sps:$4 sm:$0xff]  }
 0x8aa   :  { %9454 = vmatmul.mubr.bf16.vlgmr.msra.gmra.mrb[96].mxu1 %v23725_v34  ;;  %v19619_v34 = vld [vmem:[%s25747_s13 + $0x4b4] ss:$12 sps:$4 sm:$0xff]  }
 0x8ab   :  { %9465 = vmatpush1.bf16.msra.mxu1 %v19602_v33  ;;  %10303 = vmatpush1.bf16.msra.mxu0 %v19605_v23  ;;  %v19684_v33 = vld [vmem:[%s25747_s13 + $0x458] ss:$12 sps:$4 sm:$0xff]  }
 0x8ac   :  { %9466 = vmatprep.subr.bf16.mxu1 %v19610_v35  ;;  %10304 = vmatprep.subr.bf16.mxu0 %v19613_v36  ;;  %v19687_v23 = vld [vmem:[%s25747_s13 + $0x5ec] ss:$12 sps:$4 sm:$0xff]   ;;  %v19688_v35 = vld [vmem:[%s25747_s13 + $0x530] ss:$12 sps:$4 sm:$0xff]   ;;  %v19685_v36 = vld [vmem:[%s25747_s13 + $0x5e8] ss:$12 sps:$4 sm:$0xff]  }
 0x8ad   :  { %9496 = vmatprep.mubr.bf16.mxu1 %v20411_v17 }
 0x8af   :  { %9467 = vmatpush1.bf16.msra.mxu1 %v19608_v29  ;;  %10305 = vmatpush1.bf16.msra.mxu0 %v19611_v9  ;;  %v19689_v29 = vld [vmem:[%s25747_s13 + $0x470] ss:$12 sps:$4 sm:$0xff]  }
 0x8b0   :  { %9468 = vmatprep.subr.bf16.mxu1 %v19616_v38  ;;  %10306 = vmatprep.subr.bf16.mxu0 %v19619_v34  ;;  %v19692_v9 = vld [vmem:[%s25747_s13 + $0x604] ss:$12 sps:$4 sm:$0xff]   ;;  %v19693_v38 = vld [vmem:[%s25747_s13 + $0x608] ss:$12 sps:$4 sm:$0xff]   ;;  %v19690_v34 = vld [vmem:[%s25747_s13 + $0x600] ss:$12 sps:$4 sm:$0xff]  }
 0x8b3   :  { %9469 = vmatpush1.bf16.msra.mxu1 %v19614_v43  ;;  %10307 = vmatpush1.bf16.msra.mxu0 %v19617_v39  ;;  %v19694_v43 = vld [vmem:[%s25747_s13 + $0x548] ss:$12 sps:$4 sm:$0xff]  }
 0x8b4   :  { %9470 = vmatprep.subr.bf16.mxu1 %v19622_v44  ;;  %10308 = vmatprep.subr.bf16.mxu0 %v19625_v40  ;;  %v19697_v39 = vld [vmem:[%s25747_s13 + $0x61c] ss:$12 sps:$4 sm:$0xff]   ;;  %v19698_v44 = vld [vmem:[%s25747_s13 + $0x620] ss:$12 sps:$4 sm:$0xff]   ;;  %v19695_v40 = vld [vmem:[%s25747_s13 + $0x618] ss:$12 sps:$4 sm:$0xff]  }
 0x8b7   :  { %9471 = vmatpush1.bf16.msra.mxu1 %v19620_v45  ;;  %10309 = vmatpush1.bf16.msra.mxu0 %v19623_v46  ;;  %v19699_v45 = vld [vmem:[%s25747_s13 + $0x560] ss:$12 sps:$4 sm:$0xff]  }
 0x8b8   :  { %9472 = vmatprep.subr.bf16.mxu1 %v19628_v48  ;;  %10310 = vmatprep.subr.bf16.mxu0 %v19631_v49  ;;  %v19702_v46 = vld [vmem:[%s25747_s13 + $0x634] ss:$12 sps:$4 sm:$0xff]   ;;  %v19703_v48 = vld [vmem:[%s25747_s13 + $0x638] ss:$12 sps:$4 sm:$0xff]   ;;  %v19700_v49 = vld [vmem:[%s25747_s13 + $0x630] ss:$12 sps:$4 sm:$0xff]  }
 0x8bb   :  { %9473 = vmatpush1.bf16.msra.mxu1 %v19626_v30  ;;  %10311 = vmatpush1.bf16.msra.mxu0 %v19629_v50  ;;  %v19704_v30 = vld [vmem:[%s25747_s13 + $0x578] ss:$12 sps:$4 sm:$0xff]  }
 0x8bc   :  { %9474 = vmatprep.subr.bf16.mxu1 %v19634_v42  ;;  %10312 = vmatprep.subr.bf16.mxu0 %v19637_v32  ;;  %v19707_v50 = vld [vmem:[%s25747_s13 + $0x64c] ss:$12 sps:$4 sm:$0xff]   ;;  %v19708_v42 = vld [vmem:[%s25747_s13 + $0x650] ss:$12 sps:$4 sm:$0xff]   ;;  %v19705_v32 = vld [vmem:[%s25747_s13 + $0x648] ss:$12 sps:$4 sm:$0xff]  }
 0x8bf   :  { %9475 = vmatpush1.bf16.msra.mxu1 %v19632_v8  ;;  %10313 = vmatpush1.bf16.msra.mxu0 %v19635_v52  ;;  %v19709_v8 = vld [vmem:[%s25747_s13 + $0x590] ss:$12 sps:$4 sm:$0xff]  }
 0x8c0   :  { %9476 = vmatprep.subr.bf16.mxu1 %v19640_v47  ;;  %10314 = vmatprep.subr.bf16.mxu0 %v19643_v27  ;;  %v19712_v52 = vld [vmem:[%s25747_s13 + $0x664] ss:$12 sps:$4 sm:$0xff]   ;;  %v19713_v47 = vld [vmem:[%s25747_s13 + $0x668] ss:$12 sps:$4 sm:$0xff]   ;;  %v19710_v27 = vld [vmem:[%s25747_s13 + $0x660] ss:$12 sps:$4 sm:$0xff]  }
 0x8c3   :  { %9477 = vmatpush1.bf16.msra.mxu1 %v19638_v55  ;;  %10315 = vmatpush1.bf16.msra.mxu0 %v19641_v53  ;;  %v19714_v55 = vld [vmem:[%s25747_s13 + $0x5a8] ss:$12 sps:$4 sm:$0xff]  }
 0x8c4   :  { %9478 = vmatprep.subr.bf16.mxu1 %v19646_v56  ;;  %10316 = vmatprep.subr.bf16.mxu0 %v19649_v15  ;;  %v19717_v53 = vld [vmem:[%s25747_s13 + $0x67c] ss:$12 sps:$4 sm:$0xff]   ;;  %v19718_v56 = vld [vmem:[%s25747_s13 + $0x680] ss:$12 sps:$4 sm:$0xff]   ;;  %v19715_v15 = vld [vmem:[%s25747_s13 + $0x678] ss:$12 sps:$4 sm:$0xff]  }
 0x8c7   :  { %9479 = vmatpush1.bf16.msra.mxu1 %v19644_v58  ;;  %10317 = vmatpush1.bf16.msra.mxu0 %v19647_v61  ;;  %v19719_v58 = vld [vmem:[%s25747_s13 + $0x5c0] ss:$12 sps:$4 sm:$0xff]  }
 0x8c8   :  { %10329 = vmatprep.subr.bf16.mxu0 %v19652_v62  ;;  %17500 = vmatprep.subr.bf16.mxu1 %v19653_v63  ;;  %v19722_v61 = vld [vmem:[%s25747_s13 + $0x694] ss:$12 sps:$4 sm:$0xff]   ;;  %v19723_v62 = vld [vmem:[%s25747_s13 + $0x698] ss:$12 sps:$4 sm:$0xff]  }
 0x8ca   :  { %9497 = vmatmul.mubr.bf16.vlgmr.msra.gmra.mrb[96].mxu1 %v23820_v2  ;;  %10319 = vmatmul.mubr.bf16.vlgmr.msra.gmra.mrb[72].mxu0 %v24027_v16  ;;  %v19662_v2 = vld [vmem:[%s25747_s13 + $0x574] ss:$12 sps:$4 sm:$0xff]  }
 0x8cb   :  { %10330 = vmatpush1.bf16.msra.mxu0 %v19650_v0  ;;  %17501 = vmatpush3.bf16.msra.mxu1 %v19654_v3 }
 0x8cc   :  { %10331 = vmatprep.subr.bf16.mxu0 %v19657_v7  ;;  %17502 = vmatprep.subr.bf16.mxu1 %v19658_v14 }
 0x8cd   :  { %10447 = vmatprep.mubr.bf16.mxu1 %v23838_v1  ;;  %10361 = vmatprep.mubr.bf16.mxu0 %v24046_v41  ;;  %v19667_v1 = vld [vmem:[%s25747_s13 + $0x58c] ss:$12 sps:$4 sm:$0xff]  }
 0x8cf   :  { %10332 = vmatpush1.bf16.msra.mxu0 %v19655_v19  ;;  %17503 = vmatpush3.bf16.msra.mxu1 %v19659_v5  ;;  %v19720_v5 = vld [vmem:[%s25747_s13 + $0x690] ss:$12 sps:$4 sm:$0xff]  }
 0x8d0   :  { %10333 = vmatprep.subr.bf16.mxu0 %v19662_v2  ;;  %17504 = vmatprep.subr.bf16.mxu1 %v19663_v6  ;;  %v19724_v2 = vld [vmem:[%s25747_s13 + $0x5d8] ss:$12 sps:$4 sm:$0xff]  }
 0x8d3   :  { %10334 = vmatpush1.bf16.msra.mxu0 %v19660_v57  ;;  %17505 = vmatpush3.bf16.msra.mxu1 %v19664_v21  ;;  %v19727_v57 = vld [vmem:[%s25747_s13 + $0x6ac] ss:$12 sps:$4 sm:$0xff]   ;;  %v19728_v21 = vld [vmem:[%s25747_s13 + $0x6b0] ss:$12 sps:$4 sm:$0xff]  }
 0x8d4   :  { %10335 = vmatprep.subr.bf16.mxu0 %v19667_v1  ;;  %17506 = vmatprep.subr.bf16.mxu1 %v19668_v22  ;;  %v19725_v22 = vld [vmem:[%s25747_s13 + $0x6a8] ss:$12 sps:$4 sm:$0xff]  }
 0x8d7   :  { %10336 = vmatpush1.bf16.msra.mxu0 %v19665_v4  ;;  %17507 = vmatpush3.bf16.msra.mxu1 %v19669_v59  ;;  %v19729_v4 = vld [vmem:[%s25747_s13 + $0x5f0] ss:$12 sps:$4 sm:$0xff]  }
 0x8d8   :  { %10337 = vmatprep.subr.bf16.mxu0 %v19672_v24  ;;  %17508 = vmatprep.subr.bf16.mxu1 %v19673_v26  ;;  %v19732_v59 = vld [vmem:[%s25747_s13 + $0x6c4] ss:$12 sps:$4 sm:$0xff]   ;;  %v19730_v24 = vld [vmem:[%s25747_s13 + $0x6c0] ss:$12 sps:$4 sm:$0xff]   ;;  %v19733_v26 = vld [vmem:[%s25747_s13 + $0x6c8] ss:$12 sps:$4 sm:$0xff]  }
 0x8db   :  { %10338 = vmatpush1.bf16.msra.mxu0 %v19670_v20  ;;  %17509 = vmatpush3.bf16.msra.mxu1 %v19674_v31  ;;  %v19736_v20 = vld [vmem:[%s25747_s13 + $0x6dc] ss:$12 sps:$4 sm:$0xff]   ;;  %v20311_v31 = vld [vmem:[%s25768_s23 + $0x30] ss:$20 sps:$4 sm:$0xff]  }
 0x8dc   :  { %10339 = vmatprep.subr.bf16.mxu0 %v19677_v28  ;;  %17510 = vmatprep.subr.bf16.mxu1 %v19678_v25  ;;  %v19734_v28 = vld [vmem:[%s25747_s13 + $0x6d8] ss:$12 sps:$4 sm:$0xff]   ;;  %v19737_v25 = vld [vmem:[%s25747_s13 + $0x6e0] ss:$12 sps:$4 sm:$0xff]  }
 0x8df   :  { %10340 = vmatpush1.bf16.msra.mxu0 %v19675_v18  ;;  %17511 = vmatpush3.bf16.msra.mxu1 %v19679_v54  ;;  %v19740_v18 = vld [vmem:[%s25747_s13 + $0x6f4] ss:$12 sps:$4 sm:$0xff]   ;;  %v19738_v54 = vld [vmem:[%s25747_s13 + $0x6f0] ss:$12 sps:$4 sm:$0xff]  }
 0x8e0   :  { %10341 = vmatprep.subr.bf16.mxu0 %v19682_v37  ;;  %17512 = vmatprep.subr.bf16.mxu1 %v19683_v51  ;;  %v19741_v37 = vld [vmem:[%s25747_s13 + $0x6f8] ss:$12 sps:$4 sm:$0xff]  }
 0x8e1   :  { %v19744_v51 = vld [vmem:[%s25747_s13 + $0x70c] ss:$12 sps:$4 sm:$0xff]  }
 0x8e3   :  { %10342 = vmatpush1.bf16.msra.mxu0 %v19680_v12  ;;  %17513 = vmatpush3.bf16.msra.mxu1 %v19684_v33  ;;  %v19742_v12 = vld [vmem:[%s25747_s13 + $0x708] ss:$12 sps:$4 sm:$0xff]   ;;  %v19745_v33 = vld [vmem:[%s25747_s13 + $0x710] ss:$12 sps:$4 sm:$0xff]  }
 0x8e4   :  { %10343 = vmatprep.subr.bf16.mxu0 %v19687_v23  ;;  %17514 = vmatprep.subr.bf16.mxu1 %v19688_v35  ;;  %v19748_v23 = vld [vmem:[%s25747_s13 + $0x724] ss:$12 sps:$4 sm:$0xff]   ;;  %v19746_v35 = vld [vmem:[%s25747_s13 + $0x720] ss:$12 sps:$4 sm:$0xff]  }
 0x8e7   :  { %10344 = vmatpush1.bf16.msra.mxu0 %v19685_v36  ;;  %17515 = vmatpush3.bf16.msra.mxu1 %v19689_v29  ;;  %v19749_v36 = vld [vmem:[%s25747_s13 + $0x728] ss:$12 sps:$4 sm:$0xff]  }
 0x8e8   :  { %10345 = vmatprep.subr.bf16.mxu0 %v19692_v9  ;;  %17522 = vmatprep.subr.bf16.mxu1 %v19693_v38  ;;  %v19752_v29 = vld [vmem:[%s25747_s13 + $0x73c] ss:$12 sps:$4 sm:$0xff]   ;;  %v19750_v9 = vld [vmem:[%s25747_s13 + $0x738] ss:$12 sps:$4 sm:$0xff]   ;;  %v19753_v38 = vld [vmem:[%s25747_s13 + $0x740] ss:$12 sps:$4 sm:$0xff]  }
 0x8ea   :  { %10448 = vmatmul.mubr.bf16.vlgmr.msra.gmra.mrb[100].mxu1 %v24027_v16 }
 0x8eb   :  { %10346 = vmatpush1.bf16.msra.mxu0 %v19690_v34  ;;  %17523 = vmatpush3.bf16.msra.mxu1 %v19694_v43  ;;  %v19756_v34 = vld [vmem:[%s25747_s13 + $0x754] ss:$12 sps:$4 sm:$0xff]  }
 0x8ec   :  { %10347 = vmatprep.subr.bf16.mxu0 %v19697_v39  ;;  %17524 = vmatprep.subr.bf16.mxu1 %v19698_v44 }
 0x8ed   :  { %10488 = vmatprep.mubr.bf16.mxu1 %v24046_v41 }
 0x8ef   :  { %10348 = vmatpush1.bf16.msra.mxu0 %v19695_v40  ;;  %17525 = vmatpush3.bf16.msra.mxu1 %v19699_v45  ;;  %v19754_v45 = vld [vmem:[%s25747_s13 + $0x750] ss:$12 sps:$4 sm:$0xff]  }
 0x8f0   :  { %10349 = vmatprep.subr.bf16.mxu0 %v19702_v46  ;;  %17526 = vmatprep.subr.bf16.mxu1 %v19703_v48  ;;  %v19757_v46 = vld [vmem:[%s25747_s13 + $0x758] ss:$12 sps:$4 sm:$0xff]  }
 0x8f3   :  { %10350 = vmatpush1.bf16.msra.mxu0 %v19700_v49  ;;  %17527 = vmatpush3.bf16.msra.mxu1 %v19704_v30  ;;  %v19760_v49 = vld [vmem:[%s25747_s13 + $0x76c] ss:$12 sps:$4 sm:$0xff]  }
 0x8f4   :  { %10351 = vmatprep.subr.bf16.mxu0 %v19707_v50  ;;  %17528 = vmatprep.subr.bf16.mxu1 %v19708_v42  ;;  %v19758_v50 = vld [vmem:[%s25747_s13 + $0x768] ss:$12 sps:$4 sm:$0xff]   ;;  %v19761_v42 = vld [vmem:[%s25747_s13 + $0x770] ss:$12 sps:$4 sm:$0xff]  }
 0x8f7   :  { %10352 = vmatpush1.bf16.msra.mxu0 %v19705_v32  ;;  %17529 = vmatpush3.bf16.msra.mxu1 %v19709_v8  ;;  %v20312_v32 = vld [vmem:[%s25768_s23 + $0x38] ss:$20 sps:$4 sm:$0xff]   ;;  %v15701_v8 = vld [vmem:[%s25746_s12 + $0x3] sm:$0x7] }
 0x8f8   :  { %10353 = vmatprep.subr.bf16.mxu0 %v19712_v52  ;;  %17530 = vmatprep.subr.bf16.mxu1 %v19713_v47  ;;  %v8734_v52 = vrot.slane %v15701_v8, %v21717_v10 }
 0x8fb   :  { %10354 = vmatpush1.bf16.msra.mxu0 %v19710_v27  ;;  %17531 = vmatpush3.bf16.msra.mxu1 %v19714_v55 }
 0x8fc   :  { %10355 = vmatprep.subr.bf16.mxu0 %v19717_v53  ;;  %17532 = vmatprep.subr.bf16.mxu1 %v19718_v56 }
 0x8fd   :  { %v17436_v63 = vpop.f32.mrb[92].mxu1  ;;  %v8267_v0 = vpop.f32.mrb[56].mxu0 }
 0x8fe   :  { %v17437_v3 = vpop.f32.mrb[93].mxu1  ;;  %v17945_v7 = vpop.f32.mrb[57].mxu0 }
 0x8ff   :  { %v17438_v14 = vadd.f32 %v17437_v3, %v17436_v63  ;;  %10356 = vmatpush1.bf16.msra.mxu0 %v19715_v15  ;;  %17533 = vmatpush3.bf16.msra.mxu1 %v19719_v58  ;;  %v17439_v16 = vpop.f32.mrb[94].mxu1  ;;  %v8270_v19 = vpop.f32.mrb[58].mxu0 }
 0x900   :  { %v17440_v6 = vpop.f32.mrb[95].mxu1  ;;  %v17946_v41 = vpop.f32.mrb[59].mxu0  ;;  %10357 = vmatprep.subr.bf16.mxu0 %v19722_v61  ;;  %17534 = vmatprep.subr.bf16.mxu1 %v19723_v62 }
 0x901   :  { %v8268_v1 = vadd.f32 %v17438_v14, %v8267_v0  ;;  %v8730_v41 = vrot.slane %v15701_v8, %v21720_v11 }
 0x903   :  { %10358 = vmatpush1.bf16.msra.mxu0 %v19720_v5  ;;  %17535 = vmatpush3.bf16.msra.mxu1 %v19724_v2  ;;  %8273 = vst [vmem:[#allocation4] sm:$0xff] %v8268_v1  ;;  %v8726_v2 = vrot.slane %v15701_v8, %v21678_v60 }
 0x904   :  { %10359 = vmatprep.subr.bf16.mxu0 %v19727_v57  ;;  %17536 = vmatprep.subr.bf16.mxu1 %v19728_v21 }
 0x907   :  { %10360 = vmatpush1.bf16.msra.mxu0 %v19725_v22  ;;  %17537 = vmatpush3.bf16.msra.mxu1 %v19729_v4 }
 0x908   :  { %10372 = vmatprep.subr.bf16.mxu0 %v19732_v59  ;;  %17967 = vmatprep.subr.bf16.mxu1 %v20412_v13 }
 0x90a   :  { %10489 = vmatmul.mubr.bf16.vlgmr.msra.gmra.mrb[104].mxu1 %v20311_v31  ;;  %10362 = vmatmul.mubr.bf16.vlgmr.msra.gmra.mrb[72].mxu0 %v20311_v31 }
 0x90b   :  { %10373 = vmatpush1.bf16.msra.mxu0 %v19730_v24  ;;  %17968 = vmatpush3.bf16.msra.mxu1 %v19733_v26 }
 0x90c   :  { %10374 = vmatprep.subr.bf16.mxu0 %v19736_v20  ;;  %17969 = vmatprep.subr.bf16.mxu1 %v20412_v13 }
 0x90d   :  { %10404 = vmatprep.mubr.bf16.mxu0 %v20411_v17  ;;  %17983 = vmatprep.mubr.msk.bf16.mxu1 %vm20413_vm0, %v20412_v13 }
 0x90f   :  { %10375 = vmatpush1.bf16.msra.mxu0 %v19734_v28  ;;  %17970 = vmatpush3.bf16.msra.mxu1 %v19737_v25 }
 0x910   :  { %10376 = vmatprep.subr.bf16.mxu0 %v19740_v18  ;;  %17971 = vmatprep.subr.bf16.mxu1 %v20412_v13 }
 0x913   :  { %10377 = vmatpush1.bf16.msra.mxu0 %v19738_v54  ;;  %17972 = vmatpush3.bf16.msra.mxu1 %v19741_v37 }
 0x914   :  { %10378 = vmatprep.subr.bf16.mxu0 %v19744_v51  ;;  %17973 = vmatprep.subr.bf16.mxu1 %v20412_v13  ;;  %v15862_v51 = vld [vmem:[%s25748_s14 + $0x3] sm:$0x7] }
 0x917   :  { %10379 = vmatpush1.bf16.msra.mxu0 %v19742_v12  ;;  %17974 = vmatpush3.bf16.msra.mxu1 %v19745_v33  ;;  %v9642_v12 = vrot.slane %v15862_v51, %v21717_v10 }
 0x918   :  { %10380 = vmatprep.subr.bf16.mxu0 %v19748_v23  ;;  %17975 = vmatprep.subr.bf16.mxu1 %v20412_v13 }
 0x91b   :  { %10381 = vmatpush1.bf16.msra.mxu0 %v19746_v35  ;;  %17976 = vmatpush3.bf16.msra.mxu1 %v19749_v36 }
 0x91c   :  { %10382 = vmatprep.subr.bf16.mxu0 %v19752_v29  ;;  %17977 = vmatprep.subr.bf16.mxu1 %v20412_v13 }
 0x91d   :  { %v17463_v43 = vpop.f32.mrb[60].mxu0 }
 0x91e   :  { %v17464_v39 = vpop.f32.mrb[61].mxu0 }
 0x91f   :  { %v17465_v44 = vadd.f32 %v17464_v39, %v17463_v43  ;;  %v17466_v40 = vpop.f32.mrb[62].mxu0  ;;  %10383 = vmatpush1.bf16.msra.mxu0 %v19750_v9  ;;  %17978 = vmatpush3.bf16.msra.mxu1 %v19753_v38 }
 0x920   :  { %v17467_v48 = vpop.f32.mrb[63].mxu0  ;;  %10384 = vmatprep.subr.bf16.mxu0 %v19756_v34  ;;  %17979 = vmatprep.subr.bf16.mxu1 %v20412_v13 }
 0x921   :  { %v17468_v30 = vadd.f32 %v17467_v48, %v17466_v40  ;;  %v9542_v55 = vadd.f32 %v17465_v44, %v8734_v52  ;;  %v9634_v44 = vrot.slane %v15862_v51, %v21678_v60 }
 0x923   :  { %10385 = vmatpush1.bf16.msra.mxu0 %v19754_v45  ;;  %17980 = vmatpush3.bf16.msra.mxu1 %v19757_v46  ;;  %v9545_v58 = vadd.f32 %v17468_v30, %v8734_v52  ;;  %v9638_v46 = vrot.slane %v15862_v51, %v21720_v11  ;;  %v19810_v51 = vld [vmem:[%s25749_s15 + $0x248] ss:$12 sps:$4 sm:$0xff]  }
 0x924   :  { %10386 = vmatprep.subr.bf16.mxu0 %v19760_v49  ;;  %17981 = vmatprep.subr.bf16.mxu1 %v20412_v13 }
 0x927   :  { %10387 = vmatpush1.bf16.msra.mxu0 %v19758_v50  ;;  %17982 = vmatpush3.bf16.msra.mxu1 %v19761_v42 }
 0x92a   :  { %10405 = vmatmul.mubr.bf16.vlgmr.msra.gmra.mrb[72].mxu0 %v20312_v32  ;;  %17984 = vmatmul.mubr.bf16.vlgmr.msra.gmra.mrb[108].mxu1 %v20312_v32 }
 0x92b   :  { %10576 = vmatprep.mubr.bf16.mxu1 %v20411_v17  ;;  %10657 = vmatprep.mubr.bf16.mxu0 %v20411_v17 }
 0x93d   :  { %v17485_v47 = vpop.f32.mrb[64].mxu0 }
 0x93e   :  { %v17486_v27 = vpop.f32.mrb[65].mxu0 }
 0x93f   :  { %v17487_v53 = vadd.f32 %v17486_v27, %v17485_v47  ;;  %v17488_v56 = vpop.f32.mrb[66].mxu0 }
 0x940   :  { %v17489_v15 = vpop.f32.mrb[67].mxu0 }
 0x941   :  { %v17490_v61 = vadd.f32 %v17489_v15, %v17488_v56  ;;  %v9583_v62 = vadd.f32 %v17487_v53, %v9542_v55 }
 0x943   :  { %v9586_v63 = vadd.f32 %v17490_v61, %v9545_v58  ;;  %v19764_v61 = vld [vmem:[%s25749_s15 + $0x1e4] ss:$12 sps:$4 sm:$0xff]  }
 0x95d   :  { %v9623_v0 = vpop.f32.mrb[68].mxu0 }
 0x95e   :  { %v9624_v3 = vadd.f32 %v9623_v0, %v9583_v62  ;;  %v17965_v7 = vpop.f32.mrb[69].mxu0  ;;  %v19762_v62 = vld [vmem:[%s25749_s15 + $0x1e0] ss:$12 sps:$4 sm:$0xff]  }
 0x95f   :  { %v9626_v14 = vpop.f32.mrb[70].mxu0  ;;  %v20313_v0 = vld [vmem:[%s25766_s1] sm:$0xf]  ;;  %v19765_v7 = vld [vmem:[%s25749_s15 + $0x1f8] ss:$12 sps:$4 sm:$0xff]  }
 0x960   :  { %v9627_v16 = vadd.f32 %v9626_v14, %v9586_v63  ;;  %v17966_v19 = vpop.f32.mrb[71].mxu0  ;;  %v19767_v63 = vld [vmem:[%s25749_s15 + $0x1fc] ss:$12 sps:$4 sm:$0xff]   ;;  %v19770_v14 = vld [vmem:[%s25749_s15 + $0x214] ss:$12 sps:$4 sm:$0xff]  }
 0x961   :  { %v19773_v19 = vld [vmem:[%s25749_s15 + $0x22c] ss:$12 sps:$4 sm:$0xff]  }
 0x962   :  { %v24308_v5 = vpack.c.bf16 %v9627_v16, %v9624_v3  ;;  %v20314_v3 = vld [vmem:[%s25767_s6] sm:$0xf]  ;;  %v19768_v16 = vld [vmem:[%s25749_s15 + $0x210] ss:$12 sps:$4 sm:$0xff]  }
 0x99d   :  { %v9498_v6 = vpop.f32.mrb[96].mxu1 }
 0x99e   :  { %v9500_v57 = vpop.f32.mrb[97].mxu1  ;;  %v18131_v1 = vadd.f32 %v9498_v6, %v8726_v2  ;;  %v19789_v6 = vld [vmem:[%s25749_s15 + $0x2a8] ss:$12 sps:$4 sm:$0xff]  }
 0x99f   :  { %v9502_v21 = vpop.f32.mrb[98].mxu1  ;;  %v18132_v59 = vadd.f32 %v9500_v57, %v8730_v41  ;;  %v19774_v57 = vld [vmem:[%s25749_s15 + $0x240] ss:$12 sps:$4 sm:$0xff]  }
 0x9a0   :  { %v18133_v22 = vadd.f32 %v9502_v21, %v8726_v2  ;;  %v9504_v4 = vpop.f32.mrb[99].mxu1  ;;  %v19771_v2 = vld [vmem:[%s25749_s15 + $0x228] ss:$12 sps:$4 sm:$0xff]   ;;  %v19794_v21 = vld [vmem:[%s25749_s15 + $0x2c0] ss:$12 sps:$4 sm:$0xff]  }
 0x9a1   :  { %v18134_v24 = vadd.f32 %v9504_v4, %v8730_v41  ;;  %v19776_v41 = vld [vmem:[%s25749_s15 + $0x244] ss:$12 sps:$4 sm:$0xff]  }
 0x9a2   :  { %v10538_v26 = vpack.c.bf16 %v18133_v22, %v18131_v1  ;;  %v19779_v1 = vld [vmem:[%s25749_s15 + $0x25c] ss:$12 sps:$4 sm:$0xff]   ;;  %v19795_v22 = vld [vmem:[%s25749_s15 + $0x200] ss:$12 sps:$4 sm:$0xff]   ;;  %v19777_v4 = vld [vmem:[%s25749_s15 + $0x258] ss:$12 sps:$4 sm:$0xff]  }
 0x9a3   :  { %v10539_v20 = vpack.c.bf16 %v18134_v24, %v18132_v59  ;;  %v19799_v59 = vld [vmem:[%s25749_s15 + $0x2d8] ss:$12 sps:$4 sm:$0xff]   ;;  %v19782_v24 = vld [vmem:[%s25749_s15 + $0x274] ss:$12 sps:$4 sm:$0xff]  }
 0x9a5   :  { %10544 = vmatprep.subr.bf16.mxu1 %v10539_v20  ;;  %10625 = vmatprep.subr.bf16.mxu0 %v10539_v20  ;;  %v19780_v20 = vld [vmem:[%s25749_s15 + $0x270] ss:$12 sps:$4 sm:$0xff]  }
 0x9a6   :  { %10545 = vmatpush1.bf16.msra.mxu1 %v10538_v26  ;;  %10626 = vmatpush1.bf16.msra.mxu0 %v10538_v26  ;;  %v19800_v26 = vld [vmem:[%s25749_s15 + $0x218] ss:$12 sps:$4 sm:$0xff]  }
 0x9bd   :  { %v17516_v31 = vpop.f32.mrb[100].mxu1 }
 0x9be   :  { %v17517_v28 = vpop.f32.mrb[101].mxu1 }
 0x9bf   :  { %v17518_v25 = vadd.f32 %v17517_v28, %v17516_v31  ;;  %v17519_v18 = vpop.f32.mrb[102].mxu1  ;;  %v19804_v31 = vld [vmem:[%s25749_s15 + $0x2f0] ss:$12 sps:$4 sm:$0xff]   ;;  %v19785_v28 = vld [vmem:[%s25749_s15 + $0x28c] ss:$12 sps:$4 sm:$0xff]  }
 0x9c0   :  { %v17520_v54 = vpop.f32.mrb[103].mxu1 }
 0x9c1   :  { %v17521_v37 = vadd.f32 %v17520_v54, %v17519_v18  ;;  %v10450_v35 = vadd.f32 %v17518_v25, %v9642_v12  ;;  %v19805_v25 = vld [vmem:[%s25749_s15 + $0x230] ss:$12 sps:$4 sm:$0xff]   ;;  %v19783_v18 = vld [vmem:[%s25749_s15 + $0x288] ss:$12 sps:$4 sm:$0xff]  }
 0x9c2   :  { %v19809_v54 = vld [vmem:[%s25749_s15 + $0x308] ss:$12 sps:$4 sm:$0xff]  }
 0x9c3   :  { %v10453_v38 = vadd.f32 %v17521_v37, %v9642_v12  ;;  %v19788_v37 = vld [vmem:[%s25749_s15 + $0x2a4] ss:$12 sps:$4 sm:$0xff]   ;;  %v19786_v12 = vld [vmem:[%s25749_s15 + $0x2a0] ss:$12 sps:$4 sm:$0xff]  }
 0x9dd   :  { %v17538_v33 = vpop.f32.mrb[104].mxu1 }
 0x9de   :  { %v17539_v23 = vpop.f32.mrb[105].mxu1 }
 0x9df   :  { %v17540_v36 = vadd.f32 %v17539_v23, %v17538_v33  ;;  %v17541_v29 = vpop.f32.mrb[106].mxu1  ;;  %v19814_v33 = vld [vmem:[%s25749_s15 + $0x320] ss:$12 sps:$4 sm:$0xff]   ;;  %v19793_v23 = vld [vmem:[%s25749_s15 + $0x2bc] ss:$12 sps:$4 sm:$0xff]  }
 0x9e0   :  { %v17542_v9 = vpop.f32.mrb[107].mxu1 }
 0x9e1   :  { %v17543_v34 = vadd.f32 %v17542_v9, %v17541_v29  ;;  %v10491_v43 = vadd.f32 %v17540_v36, %v10450_v35  ;;  %v19815_v35 = vld [vmem:[%s25749_s15 + $0x260] ss:$12 sps:$4 sm:$0xff]   ;;  %v19791_v36 = vld [vmem:[%s25749_s15 + $0x2b8] ss:$12 sps:$4 sm:$0xff]  }
 0x9e2   :  { %v19819_v29 = vld [vmem:[%s25749_s15 + $0x338] ss:$12 sps:$4 sm:$0xff]   ;;  %v19798_v9 = vld [vmem:[%s25749_s15 + $0x2d4] ss:$12 sps:$4 sm:$0xff]  }
 0x9e3   :  { %v10494_v39 = vadd.f32 %v17543_v34, %v10453_v38  ;;  %v19820_v38 = vld [vmem:[%s25749_s15 + $0x278] ss:$12 sps:$4 sm:$0xff]   ;;  %v19796_v34 = vld [vmem:[%s25749_s15 + $0x2d0] ss:$12 sps:$4 sm:$0xff]  }
 0x9fd   :  { %v10406_v40 = vpop.f32.mrb[72].mxu0  ;;  %v10531_v45 = vpop.f32.mrb[108].mxu1 }
 0x9fe   :  { %v10532_v48 = vadd.f32 %v10531_v45, %v10491_v43  ;;  %v10408_v49 = vpop.f32.mrb[73].mxu0  ;;  %v17985_v30 = vpop.f32.mrb[109].mxu1  ;;  %v18135_v32 = vadd.f32 %v10406_v40, %v9634_v44  ;;  %v19803_v43 = vld [vmem:[%s25749_s15 + $0x2ec] ss:$12 sps:$4 sm:$0xff]   ;;  %v19813_v45 = vld [vmem:[%s25749_s15 + $0x31c] ss:$12 sps:$4 sm:$0xff]  }
 0x9ff   :  { %v10410_v50 = vpop.f32.mrb[74].mxu0  ;;  %v10534_v42 = vpop.f32.mrb[110].mxu1  ;;  %v18136_v55 = vadd.f32 %v10408_v49, %v9638_v46  ;;  %v19806_v40 = vld [vmem:[%s25749_s15 + $0x300] ss:$12 sps:$4 sm:$0xff]   ;;  %v19816_v49 = vld [vmem:[%s25749_s15 + $0x330] ss:$12 sps:$4 sm:$0xff]  }
 0xa00   :  { %v18137_v8 = vadd.f32 %v10410_v50, %v9634_v44  ;;  %v10535_v52 = vadd.f32 %v10534_v42, %v10494_v39  ;;  %v10412_v47 = vpop.f32.mrb[75].mxu0  ;;  %v17986_v27 = vpop.f32.mrb[111].mxu1  ;;  %v19801_v39 = vld [vmem:[%s25749_s15 + $0x2e8] ss:$12 sps:$4 sm:$0xff]   ;;  %v19808_v44 = vld [vmem:[%s25749_s15 + $0x304] ss:$12 sps:$4 sm:$0xff]  }
 0xa01   :  { %v18138_v53 = vadd.f32 %v10412_v47, %v9638_v46  ;;  %v19811_v46 = vld [vmem:[%s25749_s15 + $0x318] ss:$12 sps:$4 sm:$0xff]   ;;  %v19824_v50 = vld [vmem:[%s25749_s15 + $0x350] ss:$12 sps:$4 sm:$0xff]   ;;  %v19821_v42 = vld [vmem:[%s25749_s15 + $0x348] ss:$12 sps:$4 sm:$0xff]  }
 0xa02   :  { %v10541_v56 = vpack.c.bf16 %v18137_v8, %v18135_v32  ;;  %v10543_v15 = vpack.c.bf16 %v10535_v52, %v10532_v48  ;;  %v19818_v48 = vld [vmem:[%s25749_s15 + $0x334] ss:$12 sps:$4 sm:$0xff]   ;;  %v19823_v30 = vld [vmem:[%s25749_s15 + $0x34c] ss:$12 sps:$4 sm:$0xff]   ;;  %v19825_v32 = vld [vmem:[%s25749_s15 + $0x290] ss:$12 sps:$4 sm:$0xff]  }
 0xa03   :  { %v10542_v58 = vpack.c.bf16 %v18138_v53, %v18136_v55  ;;  %v19828_v8 = vld [vmem:[%s25749_s15 + $0x364] ss:$12 sps:$4 sm:$0xff]  }
 0xa05   :  { %10546 = vmatprep.subr.bf16.mxu1 %v10542_v58  ;;  %10627 = vmatprep.subr.bf16.mxu0 %v10542_v58 }
 0xa06   :  { %10547 = vmatpush1.bf16.msra.mxu1 %v10541_v56  ;;  %10628 = vmatpush1.bf16.msra.mxu0 %v10541_v56 }
 0xa07   :  { %17987 = vmatprep.subr.bf16.mxu1 %v20412_v13  ;;  %11035 = vmatprep.subr.bf16.mxu0 %v19764_v61 }
 0xa09   :  { %16223 = vmatmul.mubr.msk.bf16.vlgmr.msra.gmra.mrb[112].mxu1 %vm3740_vm1, %v20313_v0  ;;  %16225 = vmatmul.mubr.msk.bf16.vlgmr.msra.gmra.mrb[76].mxu0 %vm3740_vm1, %v20314_v3 }
 0xa0a   :  { %17988 = vmatpush3.bf16.msra.mxu1 %v24308_v5  ;;  %17991 = vmatprep.mubr.msk.bf16.mxu1 %vm20413_vm0, %v20412_v13 }
 0xa0b   :  { %17989 = vmatprep.subr.bf16.mxu1 %v20412_v13  ;;  %11036 = vmatpush1.bf16.msra.mxu0 %v19762_v62 }
 0xa0c   :  { %11037 = vmatprep.subr.bf16.mxu0 %v19767_v63 }
 0xa0e   :  { %17990 = vmatpush3.bf16.msra.mxu1 %v10543_v15 }
 0xa0f   :  { %17995 = vmatprep.subr.bf16.mxu1 %v20412_v13  ;;  %11038 = vmatpush1.bf16.msra.mxu0 %v19765_v7 }
 0xa10   :  { %11039 = vmatprep.subr.bf16.mxu0 %v19770_v14  ;;  %v19832_v14 = vld [vmem:[%s25749_s15 + $0x37c] ss:$12 sps:$4 sm:$0xff]  }
 0xa11   :  { %17992 = vmatmul.mubr.msk.bf16.vlgmr.msra.gmra.mrb[116].mxu1 %vm3740_vm1, %v20313_v0  ;;  %v19826_v0 = vld [vmem:[%s25749_s15 + $0x360] ss:$12 sps:$4 sm:$0xff]  }
 0xa12   :  { %17996 = vmatpush3.bf16.msra.mxu1 %v24308_v5  ;;  %17999 = vmatprep.mubr.msk.bf16.mxu1 %vm20413_vm0, %v20412_v13  ;;  %v19790_v5 = vld [vmem:[%s25749_s15 + $0x1e8] ss:$12 sps:$4 sm:$0xff]  }
 0xa13   :  { %17997 = vmatprep.subr.bf16.mxu1 %v20412_v13  ;;  %11040 = vmatpush1.bf16.msra.mxu0 %v19768_v16 }
 0xa14   :  { %11041 = vmatprep.subr.bf16.mxu0 %v19773_v19  ;;  %v19830_v19 = vld [vmem:[%s25749_s15 + $0x378] ss:$12 sps:$4 sm:$0xff]  }
 0xa16   :  { %17998 = vmatpush3.bf16.msra.mxu1 %v10543_v15 }
 0xa17   :  { %11042 = vmatpush1.bf16.msra.mxu0 %v19771_v2  ;;  %17559 = vmatprep.subr.bf16.mxu1 %v19789_v6  ;;  %v19833_v2 = vld [vmem:[%s25749_s15 + $0x380] ss:$12 sps:$4 sm:$0xff]  }
 0xa18   :  { %11043 = vmatprep.subr.bf16.mxu0 %v19776_v41  ;;  %v19836_v41 = vld [vmem:[%s25749_s15 + $0x394] ss:$12 sps:$4 sm:$0xff]  }
 0xa19   :  { %18000 = vmatmul.mubr.msk.bf16.vlgmr.msra.gmra.mrb[120].mxu1 %vm3740_vm1, %v20314_v3  ;;  %v19829_v3 = vld [vmem:[%s25749_s15 + $0x368] ss:$12 sps:$4 sm:$0xff]  }
 0xa1a   :  { %17560 = vmatpush3.bf16.msra.mxu1 %v19790_v5 }
 0xa1b   :  { %11044 = vmatpush1.bf16.msra.mxu0 %v19774_v57  ;;  %17561 = vmatprep.subr.bf16.mxu1 %v19794_v21  ;;  %v19834_v21 = vld [vmem:[%s25749_s15 + $0x390] ss:$12 sps:$4 sm:$0xff]  }
 0xa1c   :  { %11045 = vmatprep.subr.bf16.mxu0 %v19779_v1  ;;  %v19837_v1 = vld [vmem:[%s25749_s15 + $0x398] ss:$12 sps:$4 sm:$0xff]  }
 0xa1e   :  { %17562 = vmatpush3.bf16.msra.mxu1 %v19795_v22  ;;  %v19840_v22 = vld [vmem:[%s25749_s15 + $0x3ac] ss:$12 sps:$4 sm:$0xff]  }
 0xa1f   :  { %11046 = vmatpush1.bf16.msra.mxu0 %v19777_v4  ;;  %17563 = vmatprep.subr.bf16.mxu1 %v19799_v59  ;;  %v19838_v59 = vld [vmem:[%s25749_s15 + $0x3a8] ss:$12 sps:$4 sm:$0xff]  }
 0xa20   :  { %11047 = vmatprep.subr.bf16.mxu0 %v19782_v24  ;;  %v19841_v24 = vld [vmem:[%s25749_s15 + $0x3b0] ss:$12 sps:$4 sm:$0xff]  }
 0xa22   :  { %17564 = vmatpush3.bf16.msra.mxu1 %v19800_v26 }
 0xa23   :  { %11048 = vmatpush1.bf16.msra.mxu0 %v19780_v20  ;;  %17565 = vmatprep.subr.bf16.mxu1 %v19804_v31  ;;  %v19842_v31 = vld [vmem:[%s25750_s16 + $0xe0] sm:$0xff]  }
 0xa24   :  { %11049 = vmatprep.subr.bf16.mxu0 %v19785_v28 }
 0xa26   :  { %17566 = vmatpush3.bf16.msra.mxu1 %v19805_v25 }
 0xa27   :  { %11050 = vmatpush1.bf16.msra.mxu0 %v19783_v18  ;;  %17567 = vmatprep.subr.bf16.mxu1 %v19809_v54  ;;  %v19843_v54 = vld [vmem:[%s25750_s16 + $0xa0] sm:$0xff]  }
 0xa28   :  { %11051 = vmatprep.subr.bf16.mxu0 %v19788_v37  ;;  %v19844_v37 = vld [vmem:[%s25750_s16 + $0xe8] sm:$0xff]  }
 0xa2a   :  { %17568 = vmatpush3.bf16.msra.mxu1 %v19810_v51  ;;  %v19845_v51 = vld [vmem:[%s25750_s16 + $0xa8] sm:$0xff]  }
 0xa2b   :  { %11052 = vmatpush1.bf16.msra.mxu0 %v19786_v12  ;;  %17569 = vmatprep.subr.bf16.mxu1 %v19814_v33  ;;  %v19846_v12 = vld [vmem:[%s25750_s16 + $0xf0] sm:$0xff]  }
 0xa2c   :  { %11053 = vmatprep.subr.bf16.mxu0 %v19793_v23  ;;  %v19847_v33 = vld [vmem:[%s25750_s16 + $0xb0] sm:$0xff]   ;;  %v19848_v23 = vld [vmem:[%s25750_s16 + $0xf8] sm:$0xff]  }
 0xa2e   :  { %17570 = vmatpush3.bf16.msra.mxu1 %v19815_v35  ;;  %v19849_v35 = vld [vmem:[%s25750_s16 + $0xb8] sm:$0xff]  }
 0xa2f   :  { %11054 = vmatpush1.bf16.msra.mxu0 %v19791_v36  ;;  %17571 = vmatprep.subr.bf16.mxu1 %v19819_v29  ;;  %v19850_v36 = vld [vmem:[%s25750_s16 + $0x100] sm:$0xff]  }
 0xa30   :  { %11055 = vmatprep.subr.bf16.mxu0 %v19798_v9  ;;  %v19851_v29 = vld [vmem:[%s25750_s16 + $0xc0] sm:$0xff]  }
 0xa31   :  { %v19852_v9 = vld [vmem:[%s25750_s16 + $0x120] sm:$0xff]  }
 0xa32   :  { %17572 = vmatpush3.bf16.msra.mxu1 %v19820_v38  ;;  %v19853_v38 = vld [vmem:[%s25750_s16 + $0x108] sm:$0xff]  }
 0xa33   :  { %11056 = vmatpush1.bf16.msra.mxu0 %v19796_v34  ;;  %17573 = vmatprep.subr.bf16.mxu1 %v19824_v50  ;;  %v19855_v34 = vld [vmem:[%s25750_s16 + $0x128] sm:$0xff]  }
 0xa34   :  { %11057 = vmatprep.subr.bf16.mxu0 %v19803_v43  ;;  %v19854_v43 = vld [vmem:[%s25750_s16 + $0xc8] sm:$0xff]  }
 0xa36   :  { %17574 = vmatpush3.bf16.msra.mxu1 %v19825_v32 }
 0xa37   :  { %11058 = vmatpush1.bf16.msra.mxu0 %v19801_v39  ;;  %18003 = vmatprep.subr.bf16.mxu1 %v20412_v13  ;;  %v19856_v39 = vld [vmem:[%s25750_s16 + $0x110] sm:$0xff]  }
 0xa38   :  { %11059 = vmatprep.subr.bf16.mxu0 %v19808_v44  ;;  %v19858_v44 = vld [vmem:[%s25750_s16 + $0x130] sm:$0xff]  }
 0xa3b   :  { %11060 = vmatpush1.bf16.msra.mxu0 %v19806_v40  ;;  %v19857_v40 = vld [vmem:[%s25750_s16 + $0xd0] sm:$0xff]  }
 0xa3c   :  { %11061 = vmatprep.subr.bf16.mxu0 %v19813_v45  ;;  %v19859_v45 = vld [vmem:[%s25750_s16 + $0x118] sm:$0xff]  }
 0xa3f   :  { %11062 = vmatpush1.bf16.msra.mxu0 %v19811_v46  ;;  %v19860_v46 = vld [vmem:[%s25750_s16 + $0xd8] sm:$0xff]  }
 0xa40   :  { %11063 = vmatprep.subr.bf16.mxu0 %v19818_v48  ;;  %v19861_v48 = vld [vmem:[%s25750_s16 + $0x138] sm:$0xff]  }
 0xa43   :  { %11064 = vmatpush1.bf16.msra.mxu0 %v19816_v49  ;;  %v19864_v49 = vld [vmem:[%s25745_s11 + $0x784] ss:$12 sps:$4 sm:$0xff]  }
 0xa44   :  { %11065 = vmatprep.subr.bf16.mxu0 %v19823_v30  ;;  %v19865_v30 = vld [vmem:[%s25745_s11 + $0x848] ss:$12 sps:$4 sm:$0xff]  }
 0xa47   :  { %11066 = vmatpush1.bf16.msra.mxu0 %v19821_v42 }
 0xa48   :  { %11076 = vmatprep.subr.bf16.mxu0 %v19828_v8 }
 0xadc   :  { %v10578_v52 = vpop.f32.mrb[112].mxu1  ;;  %v10659_v47 = vpop.f32.mrb[76].mxu0 }
 0xadd   :  { %v10706_v27 = vmul.f32 %v10659_v47, %v10578_v52  ;;  %v10580_v55 = vpop.f32.mrb[113].mxu1  ;;  %v10661_v53 = vpop.f32.mrb[77].mxu0 }
 0xade   :  { %v10707_v56 = vmul.f32 %v10661_v53, %v10580_v55  ;;  %v10582_v15 = vpop.f32.mrb[114].mxu1  ;;  %v10663_v58 = vpop.f32.mrb[78].mxu0 }
 0xadf   :  { %v10583_v61 = vpop.f32.mrb[115].mxu1  ;;  %v10664_v62 = vpop.f32.mrb[79].mxu0  ;;  %v10709_v7 = vpack.c.bf16 %v10706_v27, %v10706_v27 }
 0xae0   :  { %v10710_v63 = vpack.c.bf16 %v10707_v56, %v10707_v56 }
 0xae2   :  { %11067 = vmatprep.mubr.bf16.mxu0 %v10710_v63  ;;  %11149 = vmatprep.mubr.bf16.mxu1 %v10710_v63 }
 0xae3   :  { %11068 = vmatmul.mubr.bf16.vlgmr.msra.gmra.mrb[80].mxu0 %v10709_v7  ;;  %11150 = vmatmul.mubr.bf16.vlgmr.msra.gmra.mrb[124].mxu1 %v10709_v7 }
 0xae4   :  { %11077 = vmatpush1.bf16.msra.mxu0 %v19826_v0  ;;  %18004 = vmatpush3.bf16.msra.mxu1 %v19829_v3  ;;  %v10619_v16 = vpop.f32.mrb[116].mxu1 }
 0xae5   :  { %v17993_v6 = vpop.f32.mrb[117].mxu1  ;;  %11078 = vmatprep.subr.bf16.mxu0 %v19832_v14  ;;  %18005 = vmatprep.subr.bf16.mxu1 %v20412_v13  ;;  %v19862_v14 = vld [vmem:[%s25745_s11 + $0x780] ss:$12 sps:$4 sm:$0xff]  }
 0xae6   :  { %v10622_v5 = vpop.f32.mrb[118].mxu1  ;;  %11108 = vmatprep.mubr.bf16.mxu0 %v20411_v17  ;;  %18011 = vmatprep.mubr.msk.bf16.mxu1 %vm20413_vm0, %v20412_v13  ;;  %v19869_v6 = vld [vmem:[%s25745_s11 + $0x79c] ss:$12 sps:$4 sm:$0xff]  }
 0xae7   :  { %v17994_v57 = vpop.f32.mrb[119].mxu1  ;;  %v19904_v5 = vld [vmem:[%s25769_s9 + $0x4] ss:$20 sps:$4 sm:$0xff]  }
 0xae8   :  { %11079 = vmatpush1.bf16.msra.mxu0 %v19830_v19  ;;  %18006 = vmatpush3.bf16.msra.mxu1 %v19833_v2  ;;  %v19867_v57 = vld [vmem:[%s25745_s11 + $0x798] ss:$12 sps:$4 sm:$0xff]  }
 0xae9   :  { %11080 = vmatprep.subr.bf16.mxu0 %v19836_v41  ;;  %18007 = vmatprep.subr.bf16.mxu1 %v20412_v13  ;;  %v19870_v41 = vld [vmem:[%s25745_s11 + $0x860] ss:$12 sps:$4 sm:$0xff]  }
 0xaec   :  { %11081 = vmatpush1.bf16.msra.mxu0 %v19834_v21  ;;  %18008 = vmatpush3.bf16.msra.mxu1 %v19837_v1  ;;  %v10700_v4 = vpop.f32.mrb[120].mxu1  ;;  %v19871_v21 = vld [vmem:[%s25745_s11 + $0x7a0] ss:$12 sps:$4 sm:$0xff]  }
 0xaed   :  { %v10708_v26 = vmul.f32 %v10700_v4, %v10619_v16  ;;  %v18001_v20 = vpop.f32.mrb[121].mxu1  ;;  %11082 = vmatprep.subr.bf16.mxu0 %v19840_v22  ;;  %18009 = vmatprep.subr.bf16.mxu1 %v20412_v13  ;;  %v19866_v16 = vld [vmem:[%s25745_s11 + $0x788] ss:$12 sps:$4 sm:$0xff]   ;;  %v19875_v22 = vld [vmem:[%s25745_s11 + $0x878] ss:$12 sps:$4 sm:$0xff]  }
 0xaee   :  { %v10703_v28 = vpop.f32.mrb[122].mxu1  ;;  %v19874_v1 = vld [vmem:[%s25745_s11 + $0x7b4] ss:$12 sps:$4 sm:$0xff]   ;;  %v19872_v4 = vld [vmem:[%s25745_s11 + $0x7b0] ss:$12 sps:$4 sm:$0xff]  }
 0xaef   :  { %v10711_v25 = vpack.c.bf16 %v10708_v26, %v10708_v26  ;;  %v18002_v18 = vpop.f32.mrb[123].mxu1  ;;  %v19880_v26 = vld [vmem:[%s25745_s11 + $0x890] ss:$12 sps:$4 sm:$0xff]   ;;  %v19877_v20 = vld [vmem:[%s25745_s11 + $0x7c8] ss:$12 sps:$4 sm:$0xff]  }
 0xaf0   :  { %11083 = vmatpush1.bf16.msra.mxu0 %v19838_v59  ;;  %18010 = vmatpush3.bf16.msra.mxu1 %v19841_v24  ;;  %v19876_v59 = vld [vmem:[%s25745_s11 + $0x7b8] ss:$12 sps:$4 sm:$0xff]   ;;  %v19882_v18 = vld [vmem:[%s25745_s11 + $0x7e0] ss:$12 sps:$4 sm:$0xff]  }
 0xaf1   :  { %17586 = vmatprep.subr.bf16.mxu1 %v19842_v31  ;;  %18015 = vmatprep.subr.bf16.mxu0 %v20412_v13  ;;  %v19879_v24 = vld [vmem:[%s25745_s11 + $0x7cc] ss:$12 sps:$4 sm:$0xff]   ;;  %v19881_v31 = vld [vmem:[%s25745_s11 + $0x7d0] ss:$12 sps:$4 sm:$0xff]  }
 0xaf2   :  { %v19884_v28 = vld [vmem:[%s25745_s11 + $0x7e4] ss:$12 sps:$4 sm:$0xff]  }
 0xaf3   :  { %16287 = vmatmul.mubr.msk.bf16.vlgmr.msra.gmra.mrb[80].mxu0 %vm5010_vm2, %v10711_v25  ;;  %18012 = vmatmul.mubr.msk.bf16.vlgmr.msra.gmra.mrb[128].mxu1 %vm5010_vm2, %v10711_v25  ;;  %v19885_v25 = vld [vmem:[%s25745_s11 + $0x8a8] ss:$12 sps:$4 sm:$0xff]  }
 0xaf4   :  { %17587 = vmatpush3.bf16.msra.mxu1 %v19843_v54  ;;  %18023 = vmatprep.mubr.msk.bf16.mxu0 %vm20413_vm0, %v20412_v13  ;;  %v19886_v54 = vld [vmem:[%s25745_s11 + $0x7e8] ss:$12 sps:$4 sm:$0xff]  }
 0xaf5   :  { %17588 = vmatprep.subr.bf16.mxu1 %v19844_v37  ;;  %18016 = vmatpush3.bf16.msra.mxu0 %v19852_v9  ;;  %v19889_v37 = vld [vmem:[%s25745_s11 + $0x7fc] ss:$12 sps:$4 sm:$0xff]   ;;  %v19899_v9 = vld [vmem:[%s25745_s11 + $0x82c] ss:$12 sps:$4 sm:$0xff]  }
 0xaf6   :  { %18017 = vmatprep.subr.bf16.mxu0 %v20412_v13 }
 0xaf8   :  { %17589 = vmatpush3.bf16.msra.mxu1 %v19845_v51  ;;  %v19890_v51 = vld [vmem:[%s25745_s11 + $0x8c0] ss:$12 sps:$4 sm:$0xff]  }
 0xaf9   :  { %17590 = vmatprep.subr.bf16.mxu1 %v19846_v12  ;;  %18018 = vmatpush3.bf16.msra.mxu0 %v19855_v34  ;;  %v19887_v12 = vld [vmem:[%s25745_s11 + $0x7f8] ss:$12 sps:$4 sm:$0xff]   ;;  %v19897_v34 = vld [vmem:[%s25745_s11 + $0x828] ss:$12 sps:$4 sm:$0xff]  }
 0xafa   :  { %18019 = vmatprep.subr.bf16.mxu0 %v20412_v13 }
 0xafc   :  { %17591 = vmatpush3.bf16.msra.mxu1 %v19847_v33  ;;  %v19891_v33 = vld [vmem:[%s25745_s11 + $0x800] ss:$12 sps:$4 sm:$0xff]  }
 0xafd   :  { %17592 = vmatprep.subr.bf16.mxu1 %v19848_v23  ;;  %18020 = vmatpush3.bf16.msra.mxu0 %v19858_v44  ;;  %v19894_v23 = vld [vmem:[%s25745_s11 + $0x814] ss:$12 sps:$4 sm:$0xff]  }
 0xafe   :  { %18021 = vmatprep.subr.bf16.mxu0 %v20412_v13  ;;  %v19908_v44 = vld [vmem:[%s25745_s11 + $0x9c8] ss:$12 sps:$4 sm:$0xff]  }
 0xb00   :  { %17593 = vmatpush3.bf16.msra.mxu1 %v19849_v35  ;;  %v19895_v35 = vld [vmem:[%s25745_s11 + $0x8d8] ss:$12 sps:$4 sm:$0xff]  }
 0xb01   :  { %17594 = vmatprep.subr.bf16.mxu1 %v19850_v36  ;;  %18022 = vmatpush3.bf16.msra.mxu0 %v19861_v48  ;;  %v19892_v36 = vld [vmem:[%s25745_s11 + $0x810] ss:$12 sps:$4 sm:$0xff]  }
 0xb02   :  { %17613 = vmatprep.subr.bf16.mxu0 %v19865_v30  ;;  %v19912_v48 = vld [vmem:[%s25745_s11 + $0x85c] ss:$12 sps:$4 sm:$0xff]   ;;  %v24719_v30 = vld [vmem:[%s25769_s9 + $0xc] ss:$20 sps:$4 sm:$0xff]  }
 0xb04   :  { %17595 = vmatpush3.bf16.msra.mxu1 %v19851_v29  ;;  %v19896_v29 = vld [vmem:[%s25745_s11 + $0x818] ss:$12 sps:$4 sm:$0xff]  }
 0xb05   :  { %17596 = vmatprep.subr.bf16.mxu1 %v19853_v38  ;;  %v19900_v38 = vld [vmem:[%s25745_s11 + $0x8f0] ss:$12 sps:$4 sm:$0xff]  }
 0xb08   :  { %17597 = vmatpush3.bf16.msra.mxu1 %v19854_v43  ;;  %v19901_v43 = vld [vmem:[%s25745_s11 + $0x830] ss:$12 sps:$4 sm:$0xff]  }
 0xb09   :  { %17598 = vmatprep.subr.bf16.mxu1 %v19856_v39  ;;  %v19907_v39 = vld [vmem:[%s25745_s11 + $0x844] ss:$12 sps:$4 sm:$0xff]  }
 0xb0c   :  { %17599 = vmatpush3.bf16.msra.mxu1 %v19857_v40  ;;  %v24702_v40 = vld [vmem:[%s25769_s9] ss:$20 sps:$4 sm:$0xff]  }
 0xb0d   :  { %17600 = vmatprep.subr.bf16.mxu1 %v19859_v45  ;;  %v19905_v45 = vld [vmem:[%s25745_s11 + $0x840] ss:$12 sps:$4 sm:$0xff]  }
 0xb10   :  { %17601 = vmatpush3.bf16.msra.mxu1 %v19860_v46  ;;  %v19909_v46 = vld [vmem:[%s25745_s11 + $0x908] ss:$12 sps:$4 sm:$0xff]  }
 0xb11   :  { %12537 = vmatprep.subr.bf16.mxu1 %v19864_v49  ;;  %v19913_v49 = vld [vmem:[%s25745_s11 + $0x9e0] ss:$12 sps:$4 sm:$0xff]  }
 0xbb6   :  { %v17575_v50 = vpop.f32.mrb[124].mxu1 }
 0xbb7   :  { %v17576_v42 = vpop.f32.mrb[125].mxu1 }
 0xbb8   :  { %v17577_v32 = vadd.f32 %v17576_v42, %v17575_v50  ;;  %v17578_v8 = vpop.f32.mrb[126].mxu1  ;;  %v19910_v50 = vld [vmem:[%s25745_s11 + $0x858] ss:$12 sps:$4 sm:$0xff]   ;;  %v19914_v42 = vld [vmem:[%s25745_s11 + $0x920] ss:$12 sps:$4 sm:$0xff]  }
 0xbb9   :  { %v17579_v52 = vpop.f32.mrb[127].mxu1  ;;  %v19918_v8 = vld [vmem:[%s25745_s11 + $0x9f8] ss:$12 sps:$4 sm:$0xff]  }
 0xbba   :  { %v19915_v52 = vld [vmem:[%s25745_s11 + $0x870] ss:$12 sps:$4 sm:$0xff]  }
 0xbc6   :  { %v11110_v47 = vpop.f32.mrb[80].mxu0  ;;  %v11191_v27 = vpop.f32.mrb[128].mxu1 }
 0xbc7   :  { %v11197_v55 = vmax.f32 %v11110_v47, 0.0  ;;  %v11192_v53 = vadd.f32 %v17577_v32, %v11191_v27  ;;  %v11112_v56 = vpop.f32.mrb[81].mxu0  ;;  %v18013_v15 = vpop.f32.mrb[129].mxu1  ;;  %v19917_v32 = vld [vmem:[%s25745_s11 + $0x874] ss:$12 sps:$4 sm:$0xff]  }
 0xbc8   :  { %v11198_v58 = vmax.f32 %v11112_v56, 0.0  ;;  %v11114_v61 = vpop.f32.mrb[82].mxu0  ;;  %v11194_v62 = vpop.f32.mrb[130].mxu1  ;;  %v19919_v47 = vld [vmem:[%s25745_s11 + $0x938] ss:$12 sps:$4 sm:$0xff]  }
 0xbc9   :  { %v11199_v63 = vmax.f32 %v11192_v53, 0.0  ;;  %v11115_v0 = vpop.f32.mrb[83].mxu0  ;;  %v18014_v3 = vpop.f32.mrb[131].mxu1  ;;  %v11200_v19 = vpack.c.bf16 %v11197_v55, %v11197_v55  ;;  %v19922_v27 = vld [vmem:[%s25745_s11 + $0x88c] ss:$12 sps:$4 sm:$0xff]  }
 0xbca   :  { %v11201_v7 = vpack.c.bf16 %v11198_v58, %v11198_v58  ;;  %v19923_v55 = vld [vmem:[%s25745_s11 + $0xa10] ss:$12 sps:$4 sm:$0xff]   ;;  %v19920_v53 = vld [vmem:[%s25745_s11 + $0x888] ss:$12 sps:$4 sm:$0xff]   ;;  %v19925_v61 = vld [vmem:[%s25745_s11 + $0x8a0] ss:$12 sps:$4 sm:$0xff]  }
 0xbcb   :  { %v11202_v2 = vpack.c.bf16 %v11199_v63, %v11199_v63  ;;  %v19924_v56 = vld [vmem:[%s25745_s11 + $0x950] ss:$12 sps:$4 sm:$0xff]   ;;  %v19928_v58 = vld [vmem:[%s25745_s11 + $0xa28] ss:$12 sps:$4 sm:$0xff]   ;;  %v19933_v0 = vld [vmem:[%s25745_s11 + $0xa40] ss:$12 sps:$4 sm:$0xff]  }
 0xbcc   :  { %11358 = vmatprep.mubr.bf16.mxu1 %v11201_v7  ;;  %v19927_v15 = vld [vmem:[%s25745_s11 + $0x8a4] ss:$12 sps:$4 sm:$0xff]   ;;  %v19929_v62 = vld [vmem:[%s25745_s11 + $0x968] ss:$12 sps:$4 sm:$0xff]   ;;  %v19934_v7 = vld [vmem:[%s25745_s11 + $0x980] ss:$12 sps:$4 sm:$0xff]  }
 0xbcd   :  { %11359 = vmatmul.mubr.bf16.vlgmr.msra.gmra.mrb[132].mxu1 %v11200_v19  ;;  %18024 = vmatmul.mubr.msk.bf16.vlgmr.msra.gmra.mrb[84].mxu0 %vm5010_vm2, %v11202_v2  ;;  %v19932_v63 = vld [vmem:[%s25745_s11 + $0x8bc] ss:$12 sps:$4 sm:$0xff]   ;;  %v19930_v3 = vld [vmem:[%s25745_s11 + $0x8b8] ss:$12 sps:$4 sm:$0xff]  }
 0xbce   :  { %12538 = vmatpush1.bf16.msra.mxu1 %v19862_v14  ;;  %17614 = vmatpush3.bf16.msra.mxu0 %v19866_v16  ;;  %v19937_v14 = vld [vmem:[%s25745_s11 + $0x8d4] ss:$12 sps:$4 sm:$0xff]   ;;  %v19938_v16 = vld [vmem:[%s25745_s11 + $0xa58] ss:$12 sps:$4 sm:$0xff]   ;;  %v19935_v19 = vld [vmem:[%s25745_s11 + $0x8d0] ss:$12 sps:$4 sm:$0xff]  }
 0xbcf   :  { %12539 = vmatprep.subr.bf16.mxu1 %v19869_v6  ;;  %17615 = vmatprep.subr.bf16.mxu0 %v19870_v41  ;;  %v19939_v2 = vld [vmem:[%s25745_s11 + $0x998] ss:$12 sps:$4 sm:$0xff]   ;;  %v19943_v41 = vld [vmem:[%s25745_s11 + $0xa70] ss:$12 sps:$4 sm:$0xff]  }
 0xbd0   :  { %12698 = vmatprep.mubr.bf16.mxu0 %v19904_v5  ;;  %12569 = vmatprep.mubr.bf16.mxu1 %v19904_v5  ;;  %v19942_v6 = vld [vmem:[%s25745_s11 + $0x8ec] ss:$12 sps:$4 sm:$0xff]   ;;  %v19940_v5 = vld [vmem:[%s25745_s11 + $0x8e8] ss:$12 sps:$4 sm:$0xff]  }
 0xbd2   :  { %12540 = vmatpush1.bf16.msra.mxu1 %v19867_v57  ;;  %17616 = vmatpush3.bf16.msra.mxu0 %v19871_v21  ;;  %v19944_v57 = vld [vmem:[%s25745_s11 + $0x9b0] ss:$12 sps:$4 sm:$0xff]  }
 0xbd3   :  { %12541 = vmatprep.subr.bf16.mxu1 %v19874_v1  ;;  %17617 = vmatprep.subr.bf16.mxu0 %v19875_v22  ;;  %v19950_v21 = vld [vmem:[%s25745_s11 + $0x904] ss:$12 sps:$4 sm:$0xff]   ;;  %v24807_v1 = vld [vmem:[%s25769_s9 + $0x8] ss:$20 sps:$4 sm:$0xff]   ;;  %v19948_v22 = vld [vmem:[%s25745_s11 + $0x900] ss:$12 sps:$4 sm:$0xff]  }
 0xbd6   :  { %12542 = vmatpush1.bf16.msra.mxu1 %v19872_v4  ;;  %17618 = vmatpush3.bf16.msra.mxu0 %v19876_v59  ;;  %v19951_v4 = vld [vmem:[%s25745_s11 + $0xa88] ss:$12 sps:$4 sm:$0xff]  }
 0xbd7   :  { %12543 = vmatprep.subr.bf16.mxu1 %v19879_v24  ;;  %17619 = vmatprep.subr.bf16.mxu0 %v19880_v26  ;;  %v19954_v59 = vld [vmem:[%s25745_s11 + $0x91c] ss:$12 sps:$4 sm:$0xff]   ;;  %v19952_v24 = vld [vmem:[%s25745_s11 + $0x918] ss:$12 sps:$4 sm:$0xff]   ;;  %v19955_v26 = vld [vmem:[%s25745_s11 + $0xaa0] ss:$12 sps:$4 sm:$0xff]  }
 0xbda   :  { %12544 = vmatpush1.bf16.msra.mxu1 %v19877_v20  ;;  %17620 = vmatpush3.bf16.msra.mxu0 %v19881_v31  ;;  %v19958_v20 = vld [vmem:[%s25745_s11 + $0x934] ss:$12 sps:$4 sm:$0xff]   ;;  %v19956_v31 = vld [vmem:[%s25745_s11 + $0x930] ss:$12 sps:$4 sm:$0xff]  }
 0xbdb   :  { %12545 = vmatprep.subr.bf16.mxu1 %v19884_v28  ;;  %17621 = vmatprep.subr.bf16.mxu0 %v19885_v25  ;;  %v19959_v28 = vld [vmem:[%s25745_s11 + $0xab8] ss:$12 sps:$4 sm:$0xff]  }
 0xbdc   :  { %v19962_v25 = vld [vmem:[%s25745_s11 + $0x94c] ss:$12 sps:$4 sm:$0xff]  }
 0xbde   :  { %12546 = vmatpush1.bf16.msra.mxu1 %v19882_v18  ;;  %17622 = vmatpush3.bf16.msra.mxu0 %v19886_v54  ;;  %v19960_v18 = vld [vmem:[%s25745_s11 + $0x948] ss:$12 sps:$4 sm:$0xff]   ;;  %v19963_v54 = vld [vmem:[%s25745_s11 + $0xad0] ss:$12 sps:$4 sm:$0xff]  }
 0xbdf   :  { %12547 = vmatprep.subr.bf16.mxu1 %v19889_v37  ;;  %17623 = vmatprep.subr.bf16.mxu0 %v19890_v51  ;;  %v19966_v37 = vld [vmem:[%s25745_s11 + $0x964] ss:$12 sps:$4 sm:$0xff]   ;;  %v19964_v51 = vld [vmem:[%s25745_s11 + $0x960] ss:$12 sps:$4 sm:$0xff]  }
 0xbe2   :  { %12548 = vmatpush1.bf16.msra.mxu1 %v19887_v12  ;;  %17624 = vmatpush3.bf16.msra.mxu0 %v19891_v33  ;;  %v19967_v12 = vld [vmem:[%s25745_s11 + $0xae8] ss:$12 sps:$4 sm:$0xff]  }
 0xbe3   :  { %12549 = vmatprep.subr.bf16.mxu1 %v19894_v23  ;;  %17625 = vmatprep.subr.bf16.mxu0 %v19895_v35  ;;  %v19970_v33 = vld [vmem:[%s25745_s11 + $0x97c] ss:$12 sps:$4 sm:$0xff]   ;;  %v19968_v23 = vld [vmem:[%s25745_s11 + $0x978] ss:$12 sps:$4 sm:$0xff]   ;;  %v19971_v35 = vld [vmem:[%s25745_s11 + $0xb00] ss:$12 sps:$4 sm:$0xff]  }
 0xbe6   :  { %12550 = vmatpush1.bf16.msra.mxu1 %v19892_v36  ;;  %17626 = vmatpush3.bf16.msra.mxu0 %v19896_v29  ;;  %v19974_v36 = vld [vmem:[%s25745_s11 + $0x994] ss:$12 sps:$4 sm:$0xff]   ;;  %v19972_v29 = vld [vmem:[%s25745_s11 + $0x990] ss:$12 sps:$4 sm:$0xff]  }
 0xbe7   :  { %12551 = vmatprep.subr.bf16.mxu1 %v19899_v9  ;;  %17627 = vmatprep.subr.bf16.mxu0 %v19900_v38  ;;  %v19975_v9 = vld [vmem:[%s25745_s11 + $0xb18] ss:$12 sps:$4 sm:$0xff]  }
 0xbe8   :  { %v19978_v38 = vld [vmem:[%s25745_s11 + $0x9ac] ss:$12 sps:$4 sm:$0xff]  }
 0xbea   :  { %12552 = vmatpush1.bf16.msra.mxu1 %v19897_v34  ;;  %17628 = vmatpush3.bf16.msra.mxu0 %v19901_v43  ;;  %v19976_v34 = vld [vmem:[%s25745_s11 + $0x9a8] ss:$12 sps:$4 sm:$0xff]   ;;  %v19979_v43 = vld [vmem:[%s25745_s11 + $0xb30] ss:$12 sps:$4 sm:$0xff]  }
 0xbeb   :  { %12553 = vmatprep.subr.bf16.mxu1 %v19907_v39  ;;  %17635 = vmatprep.subr.bf16.mxu0 %v19908_v44  ;;  %v19982_v39 = vld [vmem:[%s25745_s11 + $0x9c4] ss:$12 sps:$4 sm:$0xff]  }
 0xbec   :  { %v19986_v44 = vld [vmem:[%s25747_s13 + $0x784] ss:$12 sps:$4 sm:$0xff]  }
 0xbed   :  { %12699 = vmatmul.mubr.bf16.vlgmr.msra.gmra.mrb[88].mxu0 %v24702_v40 }
 0xbee   :  { %12554 = vmatpush1.bf16.msra.mxu1 %v19905_v45  ;;  %17636 = vmatpush3.bf16.msra.mxu0 %v19909_v46  ;;  %v19980_v45 = vld [vmem:[%s25745_s11 + $0x9c0] ss:$12 sps:$4 sm:$0xff]  }
 0xbef   :  { %12555 = vmatprep.subr.bf16.mxu1 %v19912_v48  ;;  %17637 = vmatprep.subr.bf16.mxu0 %v19913_v49  ;;  %v19984_v46 = vld [vmem:[%s25747_s13 + $0x780] ss:$12 sps:$4 sm:$0xff]   ;;  %v19989_v48 = vld [vmem:[%s25745_s11 + $0x9dc] ss:$12 sps:$4 sm:$0xff]  }
 0xbf0   :  { %12739 = vmatprep.mubr.bf16.mxu0 %v24719_v30  ;;  %v19992_v49 = vld [vmem:[%s25747_s13 + $0x79c] ss:$12 sps:$4 sm:$0xff]  }
 0xbf2   :  { %12556 = vmatpush1.bf16.msra.mxu1 %v19910_v50  ;;  %17638 = vmatpush3.bf16.msra.mxu0 %v19914_v42  ;;  %v19987_v50 = vld [vmem:[%s25745_s11 + $0x9d8] ss:$12 sps:$4 sm:$0xff]  }
 0xbf3   :  { %12557 = vmatprep.subr.bf16.mxu1 %v19917_v32  ;;  %17639 = vmatprep.subr.bf16.mxu0 %v19918_v8  ;;  %v19990_v42 = vld [vmem:[%s25747_s13 + $0x798] ss:$12 sps:$4 sm:$0xff]   ;;  %v19995_v32 = vld [vmem:[%s25745_s11 + $0x9f4] ss:$12 sps:$4 sm:$0xff]  }
 0xbf4   :  { %v19998_v8 = vld [vmem:[%s25747_s13 + $0x7b4] ss:$12 sps:$4 sm:$0xff]  }
 0xbf6   :  { %12558 = vmatpush1.bf16.msra.mxu1 %v19915_v52  ;;  %17640 = vmatpush3.bf16.msra.mxu0 %v19919_v47  ;;  %v19993_v52 = vld [vmem:[%s25745_s11 + $0x9f0] ss:$12 sps:$4 sm:$0xff]  }
 0xbf7   :  { %12559 = vmatprep.subr.bf16.mxu1 %v19922_v27  ;;  %17641 = vmatprep.subr.bf16.mxu0 %v19923_v55  ;;  %v19996_v47 = vld [vmem:[%s25747_s13 + $0x7b0] ss:$12 sps:$4 sm:$0xff]   ;;  %v20001_v27 = vld [vmem:[%s25745_s11 + $0xa0c] ss:$12 sps:$4 sm:$0xff]  }
 0xbf8   :  { %v20004_v55 = vld [vmem:[%s25747_s13 + $0x7cc] ss:$12 sps:$4 sm:$0xff]  }
 0xbfa   :  { %12560 = vmatpush1.bf16.msra.mxu1 %v19920_v53  ;;  %17642 = vmatpush3.bf16.msra.mxu0 %v19924_v56  ;;  %v19999_v53 = vld [vmem:[%s25745_s11 + $0xa08] ss:$12 sps:$4 sm:$0xff]  }
 0xbfb   :  { %12561 = vmatprep.subr.bf16.mxu1 %v19927_v15  ;;  %17643 = vmatprep.subr.bf16.mxu0 %v19928_v58  ;;  %v20002_v56 = vld [vmem:[%s25747_s13 + $0x7c8] ss:$12 sps:$4 sm:$0xff]   ;;  %v20007_v15 = vld [vmem:[%s25745_s11 + $0xa24] ss:$12 sps:$4 sm:$0xff]  }
 0xbfc   :  { %v20010_v58 = vld [vmem:[%s25747_s13 + $0x7e4] ss:$12 sps:$4 sm:$0xff]  }
 0xbfe   :  { %12562 = vmatpush1.bf16.msra.mxu1 %v19925_v61  ;;  %17644 = vmatpush3.bf16.msra.mxu0 %v19929_v62  ;;  %v20005_v61 = vld [vmem:[%s25745_s11 + $0xa20] ss:$12 sps:$4 sm:$0xff]  }
 0xbff   :  { %12563 = vmatprep.subr.bf16.mxu1 %v19932_v63  ;;  %17645 = vmatprep.subr.bf16.mxu0 %v19933_v0  ;;  %v20008_v62 = vld [vmem:[%s25747_s13 + $0x7e0] ss:$12 sps:$4 sm:$0xff]   ;;  %v20013_v63 = vld [vmem:[%s25745_s11 + $0xa3c] ss:$12 sps:$4 sm:$0xff]  }
 0xc00   :  { %v20016_v0 = vld [vmem:[%s25747_s13 + $0x7fc] ss:$12 sps:$4 sm:$0xff]  }
 0xc02   :  { %12564 = vmatpush1.bf16.msra.mxu1 %v19930_v3  ;;  %17646 = vmatpush3.bf16.msra.mxu0 %v19934_v7  ;;  %v20011_v3 = vld [vmem:[%s25745_s11 + $0xa38] ss:$12 sps:$4 sm:$0xff]  }
 0xc03   :  { %12565 = vmatprep.subr.bf16.mxu1 %v19937_v14  ;;  %17647 = vmatprep.subr.bf16.mxu0 %v19938_v16  ;;  %v20014_v7 = vld [vmem:[%s25747_s13 + $0x7f8] ss:$12 sps:$4 sm:$0xff]   ;;  %v20019_v14 = vld [vmem:[%s25745_s11 + $0xa54] ss:$12 sps:$4 sm:$0xff]  }
 0xc04   :  { %v20022_v16 = vld [vmem:[%s25747_s13 + $0x814] ss:$12 sps:$4 sm:$0xff]  }
 0xc06   :  { %12566 = vmatpush1.bf16.msra.mxu1 %v19935_v19  ;;  %17648 = vmatpush3.bf16.msra.mxu0 %v19939_v2  ;;  %v20017_v19 = vld [vmem:[%s25745_s11 + $0xa50] ss:$12 sps:$4 sm:$0xff]  }
 0xc07   :  { %12567 = vmatprep.subr.bf16.mxu1 %v19942_v6  ;;  %17649 = vmatprep.subr.bf16.mxu0 %v19943_v41  ;;  %v20020_v2 = vld [vmem:[%s25747_s13 + $0x810] ss:$12 sps:$4 sm:$0xff]   ;;  %v20025_v6 = vld [vmem:[%s25745_s11 + $0xa6c] ss:$12 sps:$4 sm:$0xff]  }
 0xc08   :  { %v20028_v41 = vld [vmem:[%s25747_s13 + $0x82c] ss:$12 sps:$4 sm:$0xff]  }
 0xc0a   :  { %12568 = vmatpush1.bf16.msra.mxu1 %v19940_v5  ;;  %17650 = vmatpush3.bf16.msra.mxu0 %v19944_v57  ;;  %v20023_v5 = vld [vmem:[%s25745_s11 + $0xa68] ss:$12 sps:$4 sm:$0xff]  }
 0xc0b   :  { %12580 = vmatprep.subr.bf16.mxu1 %v19950_v21  ;;  %18027 = vmatprep.subr.bf16.mxu0 %v20412_v13  ;;  %v20026_v57 = vld [vmem:[%s25747_s13 + $0x828] ss:$12 sps:$4 sm:$0xff]   ;;  %v20031_v21 = vld [vmem:[%s25745_s11 + $0xa84] ss:$12 sps:$4 sm:$0xff]  }
 0xc0d   :  { %12740 = vmatmul.mubr.bf16.vlgmr.msra.gmra.mrb[92].mxu0 %v24807_v1  ;;  %12570 = vmatmul.mubr.bf16.vlgmr.msra.gmra.mrb[136].mxu1 %v24702_v40  ;;  %v24900_v40 = vld [vmem:[%s25769_s9 + $0x10] ss:$20 sps:$4 sm:$0xff]  }
 0xc0e   :  { %12581 = vmatpush1.bf16.msra.mxu1 %v19948_v22  ;;  %18028 = vmatpush3.bf16.msra.mxu0 %v19951_v4  ;;  %v20034_v22 = vld [vmem:[%s25747_s13 + $0x844] ss:$12 sps:$4 sm:$0xff]   ;;  %v20029_v4 = vld [vmem:[%s25745_s11 + $0xa80] ss:$12 sps:$4 sm:$0xff]  }
 0xc0f   :  { %12582 = vmatprep.subr.bf16.mxu1 %v19954_v59  ;;  %18029 = vmatprep.subr.bf16.mxu0 %v20412_v13  ;;  %v20032_v59 = vld [vmem:[%s25747_s13 + $0x840] ss:$12 sps:$4 sm:$0xff]  }
 0xc10   :  { %18043 = vmatprep.mubr.msk.bf16.mxu0 %vm20413_vm0, %v20412_v13  ;;  %12612 = vmatprep.mubr.bf16.mxu1 %v24719_v30  ;;  %v24917_v30 = vld [vmem:[%s25769_s9 + $0x2c] ss:$20 sps:$4 sm:$0xff]  }
 0xc12   :  { %12583 = vmatpush1.bf16.msra.mxu1 %v19952_v24  ;;  %18030 = vmatpush3.bf16.msra.mxu0 %v19955_v26  ;;  %v20037_v24 = vld [vmem:[%s25745_s11 + $0xa9c] ss:$12 sps:$4 sm:$0xff]  }
 0xc13   :  { %12584 = vmatprep.subr.bf16.mxu1 %v19958_v20  ;;  %18031 = vmatprep.subr.bf16.mxu0 %v20412_v13  ;;  %v20040_v26 = vld [vmem:[%s25747_s13 + $0x85c] ss:$12 sps:$4 sm:$0xff]   ;;  %v20035_v20 = vld [vmem:[%s25745_s11 + $0xa98] ss:$12 sps:$4 sm:$0xff]  }
 0xc16   :  { %12585 = vmatpush1.bf16.msra.mxu1 %v19956_v31  ;;  %18032 = vmatpush3.bf16.msra.mxu0 %v19959_v28  ;;  %v20038_v31 = vld [vmem:[%s25747_s13 + $0x858] ss:$12 sps:$4 sm:$0xff]   ;;  %v20043_v28 = vld [vmem:[%s25745_s11 + $0xab4] ss:$12 sps:$4 sm:$0xff]  }
 0xc17   :  { %12586 = vmatprep.subr.bf16.mxu1 %v19962_v25  ;;  %18033 = vmatprep.subr.bf16.mxu0 %v20412_v13  ;;  %v20041_v25 = vld [vmem:[%s25745_s11 + $0xab0] ss:$12 sps:$4 sm:$0xff]  }
 0xc1a   :  { %12587 = vmatpush1.bf16.msra.mxu1 %v19960_v18  ;;  %18034 = vmatpush3.bf16.msra.mxu0 %v19963_v54  ;;  %v20044_v18 = vld [vmem:[%s25747_s13 + $0x870] ss:$12 sps:$4 sm:$0xff]   ;;  %v20049_v54 = vld [vmem:[%s25745_s11 + $0xacc] ss:$12 sps:$4 sm:$0xff]  }
 0xc1b   :  { %12588 = vmatprep.subr.bf16.mxu1 %v19966_v37  ;;  %18035 = vmatprep.subr.bf16.mxu0 %v20412_v13  ;;  %v20052_v37 = vld [vmem:[%s25747_s13 + $0x88c] ss:$12 sps:$4 sm:$0xff]  }
 0xc1e   :  { %12589 = vmatpush1.bf16.msra.mxu1 %v19964_v51  ;;  %18036 = vmatpush3.bf16.msra.mxu0 %v19967_v12  ;;  %v20047_v51 = vld [vmem:[%s25745_s11 + $0xac8] ss:$12 sps:$4 sm:$0xff]  }
 0xc1f   :  { %12590 = vmatprep.subr.bf16.mxu1 %v19970_v33  ;;  %18037 = vmatprep.subr.bf16.mxu0 %v20412_v13  ;;  %v20050_v12 = vld [vmem:[%s25747_s13 + $0x888] ss:$12 sps:$4 sm:$0xff]   ;;  %v20055_v33 = vld [vmem:[%s25745_s11 + $0xae4] ss:$12 sps:$4 sm:$0xff]  }
 0xc22   :  { %12591 = vmatpush1.bf16.msra.mxu1 %v19968_v23  ;;  %18038 = vmatpush3.bf16.msra.mxu0 %v19971_v35  ;;  %v20058_v23 = vld [vmem:[%s25747_s13 + $0x8a4] ss:$12 sps:$4 sm:$0xff]   ;;  %v20053_v35 = vld [vmem:[%s25745_s11 + $0xae0] ss:$12 sps:$4 sm:$0xff]  }
 0xc23   :  { %12592 = vmatprep.subr.bf16.mxu1 %v19974_v36  ;;  %18039 = vmatprep.subr.bf16.mxu0 %v20412_v13  ;;  %v20056_v36 = vld [vmem:[%s25747_s13 + $0x8a0] ss:$12 sps:$4 sm:$0xff]  }
 0xc26   :  { %12593 = vmatpush1.bf16.msra.mxu1 %v19972_v29  ;;  %18040 = vmatpush3.bf16.msra.mxu0 %v19975_v9  ;;  %v20061_v29 = vld [vmem:[%s25745_s11 + $0xafc] ss:$12 sps:$4 sm:$0xff]  }
 0xc27   :  { %12594 = vmatprep.subr.bf16.mxu1 %v19978_v38  ;;  %18041 = vmatprep.subr.bf16.mxu0 %v20412_v13  ;;  %v20064_v9 = vld [vmem:[%s25747_s13 + $0x8bc] ss:$12 sps:$4 sm:$0xff]   ;;  %v20059_v38 = vld [vmem:[%s25745_s11 + $0xaf8] ss:$12 sps:$4 sm:$0xff]  }
 0xc2a   :  { %12595 = vmatpush1.bf16.msra.mxu1 %v19976_v34  ;;  %18042 = vmatpush3.bf16.msra.mxu0 %v19979_v43  ;;  %v20062_v34 = vld [vmem:[%s25747_s13 + $0x8b8] ss:$12 sps:$4 sm:$0xff]   ;;  %v20067_v43 = vld [vmem:[%s25745_s11 + $0xb14] ss:$12 sps:$4 sm:$0xff]  }
 0xc2b   :  { %12596 = vmatprep.subr.bf16.mxu1 %v19982_v39  ;;  %13471 = vmatprep.subr.bf16.mxu0 %v19986_v44  ;;  %v20070_v39 = vld [vmem:[%s25747_s13 + $0x8d4] ss:$12 sps:$4 sm:$0xff]   ;;  %v20065_v44 = vld [vmem:[%s25745_s11 + $0xb10] ss:$12 sps:$4 sm:$0xff]  }
 0xc2d   :  { %18044 = vmatmul.mubr.bf16.vlgmr.msra.gmra.mrb[96].mxu0 %v24900_v40 }
 0xc2e   :  { %12597 = vmatpush1.bf16.msra.mxu1 %v19980_v45  ;;  %13472 = vmatpush1.bf16.msra.mxu0 %v19984_v46  ;;  %v20068_v45 = vld [vmem:[%s25747_s13 + $0x8d0] ss:$12 sps:$4 sm:$0xff]   ;;  %v20073_v46 = vld [vmem:[%s25745_s11 + $0xb2c] ss:$12 sps:$4 sm:$0xff]  }
 0xc2f   :  { %12598 = vmatprep.subr.bf16.mxu1 %v19989_v48  ;;  %13473 = vmatprep.subr.bf16.mxu0 %v19992_v49  ;;  %v20076_v48 = vld [vmem:[%s25747_s13 + $0x8ec] ss:$12 sps:$4 sm:$0xff]   ;;  %v20071_v49 = vld [vmem:[%s25745_s11 + $0xb28] ss:$12 sps:$4 sm:$0xff]   ;;  %s20415_s11 = smov [#allocation2]  }
 0xc30   :  { %13503 = vmatprep.mubr.bf16.mxu0 %v24917_v30 }
 0xc32   :  { %12599 = vmatpush1.bf16.msra.mxu1 %v19987_v50  ;;  %13474 = vmatpush1.bf16.msra.mxu0 %v19990_v42  ;;  %v20074_v50 = vld [vmem:[%s25747_s13 + $0x8e8] ss:$12 sps:$4 sm:$0xff]   ;;  %v20082_v42 = vld [vmem:[%s25747_s13 + $0x904] ss:$12 sps:$4 sm:$0xff]  }
 0xc33   :  { %12600 = vmatprep.subr.bf16.mxu1 %v19995_v32  ;;  %13475 = vmatprep.subr.bf16.mxu0 %v19998_v8  ;;  %v20083_v32 = vld [vmem:[%s25747_s13 + $0x848] ss:$12 sps:$4 sm:$0xff]  }
 0xc34   :  { %v25106_v8 = vld [vmem:[%s25769_s9 + $0x28] ss:$20 sps:$4 sm:$0xff]  }
 0xc36   :  { %12601 = vmatpush1.bf16.msra.mxu1 %v19993_v52  ;;  %13476 = vmatpush1.bf16.msra.mxu0 %v19996_v47  ;;  %v20080_v52 = vld [vmem:[%s25747_s13 + $0x900] ss:$12 sps:$4 sm:$0xff]   ;;  %v20084_v47 = vld [vmem:[%s25747_s13 + $0x788] ss:$12 sps:$4 sm:$0xff]  }
 0xc37   :  { %12602 = vmatprep.subr.bf16.mxu1 %v20001_v27  ;;  %13477 = vmatprep.subr.bf16.mxu0 %v20004_v55  ;;  %v20087_v27 = vld [vmem:[%s25747_s13 + $0x91c] ss:$12 sps:$4 sm:$0xff]   ;;  %v20088_v55 = vld [vmem:[%s25747_s13 + $0x860] ss:$12 sps:$4 sm:$0xff]  }
 0xc3a   :  { %12603 = vmatpush1.bf16.msra.mxu1 %v19999_v53  ;;  %13478 = vmatpush1.bf16.msra.mxu0 %v20002_v56  ;;  %v25123_v53 = vld [vmem:[%s25769_s9 + $0x34] ss:$20 sps:$4 sm:$0xff]   ;;  %v20085_v56 = vld [vmem:[%s25747_s13 + $0x918] ss:$12 sps:$4 sm:$0xff]  }
 0xc3b   :  { %12604 = vmatprep.subr.bf16.mxu1 %v20007_v15  ;;  %13479 = vmatprep.subr.bf16.mxu0 %v20010_v58  ;;  %v20089_v15 = vld [vmem:[%s25747_s13 + $0x7a0] ss:$12 sps:$4 sm:$0xff]  }
 0xc3c   :  { %v20092_v58 = vld [vmem:[%s25747_s13 + $0x934] ss:$12 sps:$4 sm:$0xff]  }
 0xc3e   :  { %12605 = vmatpush1.bf16.msra.mxu1 %v20005_v61  ;;  %13480 = vmatpush1.bf16.msra.mxu0 %v20008_v62  ;;  %v20090_v61 = vld [vmem:[%s25747_s13 + $0x930] ss:$12 sps:$4 sm:$0xff]   ;;  %v20094_v62 = vld [vmem:[%s25747_s13 + $0x7b8] ss:$12 sps:$4 sm:$0xff]  }
 0xc3f   :  { %12606 = vmatprep.subr.bf16.mxu1 %v20013_v63  ;;  %13481 = vmatprep.subr.bf16.mxu0 %v20016_v0  ;;  %v20097_v63 = vld [vmem:[%s25747_s13 + $0x94c] ss:$12 sps:$4 sm:$0xff]   ;;  %v20095_v0 = vld [vmem:[%s25747_s13 + $0x948] ss:$12 sps:$4 sm:$0xff]  }
 0xc42   :  { %12607 = vmatpush1.bf16.msra.mxu1 %v20011_v3  ;;  %13482 = vmatpush1.bf16.msra.mxu0 %v20014_v7  ;;  %v20099_v3 = vld [vmem:[%s25747_s13 + $0x7d0] ss:$12 sps:$4 sm:$0xff]  }
 0xc43   :  { %12608 = vmatprep.subr.bf16.mxu1 %v20019_v14  ;;  %13483 = vmatprep.subr.bf16.mxu0 %v20022_v16  ;;  %v20102_v7 = vld [vmem:[%s25747_s13 + $0x964] ss:$12 sps:$4 sm:$0xff]   ;;  %v20103_v14 = vld [vmem:[%s25747_s13 + $0x8a8] ss:$12 sps:$4 sm:$0xff]   ;;  %v20100_v16 = vld [vmem:[%s25747_s13 + $0x960] ss:$12 sps:$4 sm:$0xff]  }
 0xc46   :  { %12609 = vmatpush1.bf16.msra.mxu1 %v20017_v19  ;;  %13484 = vmatpush1.bf16.msra.mxu0 %v20020_v2  ;;  %v20104_v19 = vld [vmem:[%s25747_s13 + $0x7e8] ss:$12 sps:$4 sm:$0xff]  }
 0xc47   :  { %12610 = vmatprep.subr.bf16.mxu1 %v20025_v6  ;;  %13485 = vmatprep.subr.bf16.mxu0 %v20028_v41  ;;  %v20107_v2 = vld [vmem:[%s25747_s13 + $0x97c] ss:$12 sps:$4 sm:$0xff]   ;;  %v20108_v6 = vld [vmem:[%s25747_s13 + $0x8c0] ss:$12 sps:$4 sm:$0xff]   ;;  %v20105_v41 = vld [vmem:[%s25747_s13 + $0x978] ss:$12 sps:$4 sm:$0xff]  }
 0xc4a   :  { %12611 = vmatpush1.bf16.msra.mxu1 %v20023_v5  ;;  %13486 = vmatpush1.bf16.msra.mxu0 %v20026_v57  ;;  %v20109_v5 = vld [vmem:[%s25747_s13 + $0x800] ss:$12 sps:$4 sm:$0xff]  }
 0xc4b   :  { %12623 = vmatprep.subr.bf16.mxu1 %v20031_v21  ;;  %13487 = vmatprep.subr.bf16.mxu0 %v20034_v22  ;;  %v20112_v57 = vld [vmem:[%s25747_s13 + $0x994] ss:$12 sps:$4 sm:$0xff]   ;;  %v20113_v21 = vld [vmem:[%s25747_s13 + $0x8d8] ss:$12 sps:$4 sm:$0xff]   ;;  %v20110_v22 = vld [vmem:[%s25747_s13 + $0x990] ss:$12 sps:$4 sm:$0xff]  }
 0xc4d   :  { %12613 = vmatmul.mubr.bf16.vlgmr.msra.gmra.mrb[136].mxu1 %v24807_v1  ;;  %v20046_v1 = vld [vmem:[%s25747_s13 + $0x874] ss:$12 sps:$4 sm:$0xff]  }
 0xc4e   :  { %12624 = vmatpush1.bf16.msra.mxu1 %v20029_v4  ;;  %13488 = vmatpush1.bf16.msra.mxu0 %v20032_v59  ;;  %v20114_v4 = vld [vmem:[%s25747_s13 + $0x818] ss:$12 sps:$4 sm:$0xff]  }
 0xc4f   :  { %12625 = vmatprep.subr.bf16.mxu1 %v20037_v24  ;;  %13489 = vmatprep.subr.bf16.mxu0 %v20040_v26  ;;  %v20117_v59 = vld [vmem:[%s25747_s13 + $0x9ac] ss:$12 sps:$4 sm:$0xff]   ;;  %v20118_v24 = vld [vmem:[%s25747_s13 + $0x8f0] ss:$12 sps:$4 sm:$0xff]   ;;  %v20115_v26 = vld [vmem:[%s25747_s13 + $0x9a8] ss:$12 sps:$4 sm:$0xff]  }
 0xc50   :  { %12655 = vmatprep.mubr.bf16.mxu1 %v20411_v17 }
 0xc52   :  { %12626 = vmatpush1.bf16.msra.mxu1 %v20035_v20  ;;  %13490 = vmatpush1.bf16.msra.mxu0 %v20038_v31  ;;  %v20119_v20 = vld [vmem:[%s25747_s13 + $0x830] ss:$12 sps:$4 sm:$0xff]  }
 0xc53   :  { %12627 = vmatprep.subr.bf16.mxu1 %v20043_v28  ;;  %13491 = vmatprep.subr.bf16.mxu0 %v20046_v1  ;;  %v20122_v31 = vld [vmem:[%s25747_s13 + $0x9c4] ss:$12 sps:$4 sm:$0xff]   ;;  %v20123_v28 = vld [vmem:[%s25747_s13 + $0x9c8] ss:$12 sps:$4 sm:$0xff]   ;;  %v20120_v1 = vld [vmem:[%s25747_s13 + $0x9c0] ss:$12 sps:$4 sm:$0xff]  }
 0xc56   :  { %12628 = vmatpush1.bf16.msra.mxu1 %v20041_v25  ;;  %13492 = vmatpush1.bf16.msra.mxu0 %v20044_v18  ;;  %v20124_v25 = vld [vmem:[%s25747_s13 + $0x908] ss:$12 sps:$4 sm:$0xff]  }
 0xc57   :  { %12629 = vmatprep.subr.bf16.mxu1 %v20049_v54  ;;  %13493 = vmatprep.subr.bf16.mxu0 %v20052_v37  ;;  %v20127_v18 = vld [vmem:[%s25747_s13 + $0x9dc] ss:$12 sps:$4 sm:$0xff]   ;;  %v20128_v54 = vld [vmem:[%s25747_s13 + $0x9e0] ss:$12 sps:$4 sm:$0xff]   ;;  %v20125_v37 = vld [vmem:[%s25747_s13 + $0x9d8] ss:$12 sps:$4 sm:$0xff]  }
 0xc5a   :  { %12630 = vmatpush1.bf16.msra.mxu1 %v20047_v51  ;;  %13494 = vmatpush1.bf16.msra.mxu0 %v20050_v12  ;;  %v20129_v51 = vld [vmem:[%s25747_s13 + $0x920] ss:$12 sps:$4 sm:$0xff]  }
 0xc5b   :  { %12631 = vmatprep.subr.bf16.mxu1 %v20055_v33  ;;  %13495 = vmatprep.subr.bf16.mxu0 %v20058_v23  ;;  %v20132_v12 = vld [vmem:[%s25747_s13 + $0x9f4] ss:$12 sps:$4 sm:$0xff]   ;;  %v20133_v33 = vld [vmem:[%s25747_s13 + $0x9f8] ss:$12 sps:$4 sm:$0xff]   ;;  %v20130_v23 = vld [vmem:[%s25747_s13 + $0x9f0] ss:$12 sps:$4 sm:$0xff]  }
 0xc5e   :  { %12632 = vmatpush1.bf16.msra.mxu1 %v20053_v35  ;;  %13496 = vmatpush1.bf16.msra.mxu0 %v20056_v36  ;;  %v20134_v35 = vld [vmem:[%s25747_s13 + $0x938] ss:$12 sps:$4 sm:$0xff]  }
 0xc5f   :  { %12633 = vmatprep.subr.bf16.mxu1 %v20061_v29  ;;  %13497 = vmatprep.subr.bf16.mxu0 %v20064_v9  ;;  %v20137_v36 = vld [vmem:[%s25747_s13 + $0xa0c] ss:$12 sps:$4 sm:$0xff]   ;;  %v20138_v29 = vld [vmem:[%s25747_s13 + $0xa10] ss:$12 sps:$4 sm:$0xff]   ;;  %v20135_v9 = vld [vmem:[%s25747_s13 + $0xa08] ss:$12 sps:$4 sm:$0xff]  }
 0xc62   :  { %12634 = vmatpush1.bf16.msra.mxu1 %v20059_v38  ;;  %13498 = vmatpush1.bf16.msra.mxu0 %v20062_v34  ;;  %v20139_v38 = vld [vmem:[%s25747_s13 + $0x950] ss:$12 sps:$4 sm:$0xff]  }
 0xc63   :  { %12635 = vmatprep.subr.bf16.mxu1 %v20067_v43  ;;  %13499 = vmatprep.subr.bf16.mxu0 %v20070_v39  ;;  %v20142_v34 = vld [vmem:[%s25747_s13 + $0xa24] ss:$12 sps:$4 sm:$0xff]   ;;  %v20143_v43 = vld [vmem:[%s25747_s13 + $0xa28] ss:$12 sps:$4 sm:$0xff]   ;;  %v20140_v39 = vld [vmem:[%s25747_s13 + $0xa20] ss:$12 sps:$4 sm:$0xff]  }
 0xc66   :  { %12636 = vmatpush1.bf16.msra.mxu1 %v20065_v44  ;;  %13500 = vmatpush1.bf16.msra.mxu0 %v20068_v45  ;;  %v20144_v44 = vld [vmem:[%s25747_s13 + $0x968] ss:$12 sps:$4 sm:$0xff]  }
 0xc67   :  { %12637 = vmatprep.subr.bf16.mxu1 %v20073_v46  ;;  %13501 = vmatprep.subr.bf16.mxu0 %v20076_v48  ;;  %v20147_v45 = vld [vmem:[%s25747_s13 + $0xa3c] ss:$12 sps:$4 sm:$0xff]   ;;  %v20148_v46 = vld [vmem:[%s25747_s13 + $0xa40] ss:$12 sps:$4 sm:$0xff]   ;;  %v20145_v48 = vld [vmem:[%s25747_s13 + $0xa38] ss:$12 sps:$4 sm:$0xff]  }
 0xc6a   :  { %12638 = vmatpush1.bf16.msra.mxu1 %v20071_v49  ;;  %13502 = vmatpush1.bf16.msra.mxu0 %v20074_v50  ;;  %v20149_v49 = vld [vmem:[%s25747_s13 + $0x980] ss:$12 sps:$4 sm:$0xff]  }
 0xc6b   :  { %13514 = vmatprep.subr.bf16.mxu0 %v20082_v42  ;;  %17666 = vmatprep.subr.bf16.mxu1 %v20083_v32  ;;  %v20152_v50 = vld [vmem:[%s25747_s13 + $0xa54] ss:$12 sps:$4 sm:$0xff]   ;;  %v20153_v42 = vld [vmem:[%s25747_s13 + $0xa58] ss:$12 sps:$4 sm:$0xff]  }
 0xc6d   :  { %12656 = vmatmul.mubr.bf16.vlgmr.msra.gmra.mrb[136].mxu1 %v24900_v40  ;;  %13504 = vmatmul.mubr.bf16.vlgmr.msra.gmra.mrb[100].mxu0 %v25106_v8  ;;  %v20093_v40 = vld [vmem:[%s25747_s13 + $0x878] ss:$12 sps:$4 sm:$0xff]  }
 0xc6e   :  { %13515 = vmatpush1.bf16.msra.mxu0 %v20080_v52  ;;  %17667 = vmatpush3.bf16.msra.mxu1 %v20084_v47 }
 0xc6f   :  { %13516 = vmatprep.subr.bf16.mxu0 %v20087_v27  ;;  %17668 = vmatprep.subr.bf16.mxu1 %v20088_v55 }
 0xc70   :  { %13632 = vmatprep.mubr.bf16.mxu1 %v24917_v30  ;;  %13546 = vmatprep.mubr.bf16.mxu0 %v25123_v53  ;;  %v20098_v30 = vld [vmem:[%s25747_s13 + $0x890] ss:$12 sps:$4 sm:$0xff]  }
 0xc72   :  { %13517 = vmatpush1.bf16.msra.mxu0 %v20085_v56  ;;  %17669 = vmatpush3.bf16.msra.mxu1 %v20089_v15  ;;  %v20150_v56 = vld [vmem:[%s25747_s13 + $0xa50] ss:$12 sps:$4 sm:$0xff]   ;;  %v20154_v15 = vld [vmem:[%s25747_s13 + $0x998] ss:$12 sps:$4 sm:$0xff]  }
 0xc73   :  { %13518 = vmatprep.subr.bf16.mxu0 %v20092_v58  ;;  %17670 = vmatprep.subr.bf16.mxu1 %v20093_v40 }
 0xc76   :  { %13519 = vmatpush1.bf16.msra.mxu0 %v20090_v61  ;;  %17671 = vmatpush3.bf16.msra.mxu1 %v20094_v62  ;;  %v20157_v61 = vld [vmem:[%s25747_s13 + $0xa6c] ss:$12 sps:$4 sm:$0xff]   ;;  %v20158_v62 = vld [vmem:[%s25747_s13 + $0xa70] ss:$12 sps:$4 sm:$0xff]  }
 0xc77   :  { %13520 = vmatprep.subr.bf16.mxu0 %v20097_v63  ;;  %17672 = vmatprep.subr.bf16.mxu1 %v20098_v30  ;;  %v20155_v30 = vld [vmem:[%s25747_s13 + $0xa68] ss:$12 sps:$4 sm:$0xff]  }
 0xc7a   :  { %13521 = vmatpush1.bf16.msra.mxu0 %v20095_v0  ;;  %17673 = vmatpush3.bf16.msra.mxu1 %v20099_v3  ;;  %v20159_v0 = vld [vmem:[%s25747_s13 + $0x9b0] ss:$12 sps:$4 sm:$0xff]  }
 0xc7b   :  { %13522 = vmatprep.subr.bf16.mxu0 %v20102_v7  ;;  %17674 = vmatprep.subr.bf16.mxu1 %v20103_v14  ;;  %v20165_v3 = vld [vmem:[%s25747_s13 + $0xa84] ss:$12 sps:$4 sm:$0xff]   ;;  %v20163_v14 = vld [vmem:[%s25747_s13 + $0xa80] ss:$12 sps:$4 sm:$0xff]  }
 0xc7c   :  { %v20160_v7 = vld [vmem:[%s25769_s9 + $0x30] ss:$20 sps:$4 sm:$0xff]  }
 0xc7e   :  { %13523 = vmatpush1.bf16.msra.mxu0 %v20100_v16  ;;  %17675 = vmatpush3.bf16.msra.mxu1 %v20104_v19  ;;  %v20166_v16 = vld [vmem:[%s25747_s13 + $0xa88] ss:$12 sps:$4 sm:$0xff]  }
 0xc7f   :  { %13524 = vmatprep.subr.bf16.mxu0 %v20107_v2  ;;  %17676 = vmatprep.subr.bf16.mxu1 %v20108_v6  ;;  %v20169_v19 = vld [vmem:[%s25747_s13 + $0xa9c] ss:$12 sps:$4 sm:$0xff]   ;;  %v20167_v2 = vld [vmem:[%s25747_s13 + $0xa98] ss:$12 sps:$4 sm:$0xff]   ;;  %v20170_v6 = vld [vmem:[%s25747_s13 + $0xaa0] ss:$12 sps:$4 sm:$0xff]  }
 0xc82   :  { %13525 = vmatpush1.bf16.msra.mxu0 %v20105_v41  ;;  %17677 = vmatpush3.bf16.msra.mxu1 %v20109_v5  ;;  %v20173_v41 = vld [vmem:[%s25747_s13 + $0xab4] ss:$12 sps:$4 sm:$0xff]   ;;  %v20171_v5 = vld [vmem:[%s25747_s13 + $0xab0] ss:$12 sps:$4 sm:$0xff]  }
 0xc83   :  { %13526 = vmatprep.subr.bf16.mxu0 %v20112_v57  ;;  %17678 = vmatprep.subr.bf16.mxu1 %v20113_v21  ;;  %v20174_v57 = vld [vmem:[%s25747_s13 + $0xab8] ss:$12 sps:$4 sm:$0xff]  }
 0xc84   :  { %v20177_v21 = vld [vmem:[%s25747_s13 + $0xacc] ss:$12 sps:$4 sm:$0xff]  }
 0xc86   :  { %13527 = vmatpush1.bf16.msra.mxu0 %v20110_v22  ;;  %17679 = vmatpush3.bf16.msra.mxu1 %v20114_v4  ;;  %v20175_v22 = vld [vmem:[%s25747_s13 + $0xac8] ss:$12 sps:$4 sm:$0xff]   ;;  %v20178_v4 = vld [vmem:[%s25747_s13 + $0xad0] ss:$12 sps:$4 sm:$0xff]  }
 0xc87   :  { %13528 = vmatprep.subr.bf16.mxu0 %v20117_v59  ;;  %17680 = vmatprep.subr.bf16.mxu1 %v20118_v24  ;;  %v20181_v59 = vld [vmem:[%s25747_s13 + $0xae4] ss:$12 sps:$4 sm:$0xff]   ;;  %v20179_v24 = vld [vmem:[%s25747_s13 + $0xae0] ss:$12 sps:$4 sm:$0xff]  }
 0xc8a   :  { %13529 = vmatpush1.bf16.msra.mxu0 %v20115_v26  ;;  %17681 = vmatpush3.bf16.msra.mxu1 %v20119_v20  ;;  %v20182_v26 = vld [vmem:[%s25747_s13 + $0xae8] ss:$12 sps:$4 sm:$0xff]  }
 0xc8b   :  { %13530 = vmatprep.subr.bf16.mxu0 %v20122_v31  ;;  %17688 = vmatprep.subr.bf16.mxu1 %v20123_v28  ;;  %v20185_v20 = vld [vmem:[%s25747_s13 + $0xafc] ss:$12 sps:$4 sm:$0xff]   ;;  %v20183_v31 = vld [vmem:[%s25747_s13 + $0xaf8] ss:$12 sps:$4 sm:$0xff]   ;;  %v20186_v28 = vld [vmem:[%s25747_s13 + $0xb00] ss:$12 sps:$4 sm:$0xff]  }
 0xc8d   :  { %13633 = vmatmul.mubr.bf16.vlgmr.msra.gmra.mrb[140].mxu1 %v25106_v8 }
 0xc8e   :  { %13531 = vmatpush1.bf16.msra.mxu0 %v20120_v1  ;;  %17689 = vmatpush3.bf16.msra.mxu1 %v20124_v25  ;;  %v20189_v1 = vld [vmem:[%s25747_s13 + $0xb14] ss:$12 sps:$4 sm:$0xff]  }
 0xc8f   :  { %13532 = vmatprep.subr.bf16.mxu0 %v20127_v18  ;;  %17690 = vmatprep.subr.bf16.mxu1 %v20128_v54 }
 0xc90   :  { %13673 = vmatprep.mubr.bf16.mxu1 %v25123_v53 }
 0xc92   :  { %13533 = vmatpush1.bf16.msra.mxu0 %v20125_v37  ;;  %17691 = vmatpush3.bf16.msra.mxu1 %v20129_v51  ;;  %v20187_v51 = vld [vmem:[%s25747_s13 + $0xb10] ss:$12 sps:$4 sm:$0xff]  }
 0xc93   :  { %13534 = vmatprep.subr.bf16.mxu0 %v20132_v12  ;;  %17692 = vmatprep.subr.bf16.mxu1 %v20133_v33  ;;  %v20190_v12 = vld [vmem:[%s25747_s13 + $0xb18] ss:$12 sps:$4 sm:$0xff]  }
 0xc96   :  { %13535 = vmatpush1.bf16.msra.mxu0 %v20130_v23  ;;  %17693 = vmatpush3.bf16.msra.mxu1 %v20134_v35  ;;  %v20193_v23 = vld [vmem:[%s25747_s13 + $0xb2c] ss:$12 sps:$4 sm:$0xff]  }
 0xc97   :  { %13536 = vmatprep.subr.bf16.mxu0 %v20137_v36  ;;  %17694 = vmatprep.subr.bf16.mxu1 %v20138_v29  ;;  %v20191_v36 = vld [vmem:[%s25747_s13 + $0xb28] ss:$12 sps:$4 sm:$0xff]   ;;  %v20194_v29 = vld [vmem:[%s25747_s13 + $0xb30] ss:$12 sps:$4 sm:$0xff]  }
 0xc9a   :  { %13537 = vmatpush1.bf16.msra.mxu0 %v20135_v9  ;;  %17695 = vmatpush3.bf16.msra.mxu1 %v20139_v38  ;;  %v20195_v9 = vld [vmem:[%s25769_s9 + $0x38] ss:$20 sps:$4 sm:$0xff]   ;;  %v16470_v38 = vld [vmem:[%s25746_s12 + $0x6] sm:$0x7] }
 0xc9b   :  { %13538 = vmatprep.subr.bf16.mxu0 %v20142_v34  ;;  %17696 = vmatprep.subr.bf16.mxu1 %v20143_v43  ;;  %v11867_v34 = vrot.slane %v16470_v38, %v21717_v10 }
 0xc9e   :  { %13539 = vmatpush1.bf16.msra.mxu0 %v20140_v39  ;;  %17697 = vmatpush3.bf16.msra.mxu1 %v20144_v44 }
 0xc9f   :  { %13540 = vmatprep.subr.bf16.mxu0 %v20147_v45  ;;  %17698 = vmatprep.subr.bf16.mxu1 %v20148_v46 }
 0xca0   :  { %v17602_v32 = vpop.f32.mrb[132].mxu1  ;;  %v11400_v8 = vpop.f32.mrb[84].mxu0 }
 0xca1   :  { %v17603_v52 = vpop.f32.mrb[133].mxu1  ;;  %v18025_v47 = vpop.f32.mrb[85].mxu0 }
 0xca2   :  { %v17604_v27 = vadd.f32 %v17603_v52, %v17602_v32  ;;  %13541 = vmatpush1.bf16.msra.mxu0 %v20145_v48  ;;  %17699 = vmatpush3.bf16.msra.mxu1 %v20149_v49  ;;  %v17605_v55 = vpop.f32.mrb[134].mxu1  ;;  %v11403_v53 = vpop.f32.mrb[86].mxu0 }
 0xca3   :  { %v17606_v58 = vpop.f32.mrb[135].mxu1  ;;  %v18026_v40 = vpop.f32.mrb[87].mxu0  ;;  %13542 = vmatprep.subr.bf16.mxu0 %v20152_v50  ;;  %17700 = vmatprep.subr.bf16.mxu1 %v20153_v42 }
 0xca4   :  { %v11401_v63 = vadd.f32 %v17604_v27, %v11400_v8  ;;  %v11863_v40 = vrot.slane %v16470_v38, %v21720_v11 }
 0xca6   :  { %13543 = vmatpush1.bf16.msra.mxu0 %v20150_v56  ;;  %17701 = vmatpush3.bf16.msra.mxu1 %v20154_v15  ;;  %11406 = vst [vmem:[#allocation6] sm:$0xff] %v11401_v63  ;;  %v11859_v15 = vrot.slane %v16470_v38, %v21678_v60 }
 0xca7   :  { %13544 = vmatprep.subr.bf16.mxu0 %v20157_v61  ;;  %17702 = vmatprep.subr.bf16.mxu1 %v20158_v62 }
 0xcaa   :  { %13545 = vmatpush1.bf16.msra.mxu0 %v20155_v30  ;;  %17703 = vmatpush3.bf16.msra.mxu1 %v20159_v0 }
 0xcab   :  { %13557 = vmatprep.subr.bf16.mxu0 %v20165_v3  ;;  %18047 = vmatprep.subr.bf16.mxu1 %v20412_v13 }
 0xcad   :  { %13674 = vmatmul.mubr.bf16.vlgmr.msra.gmra.mrb[144].mxu1 %v20160_v7  ;;  %13547 = vmatmul.mubr.bf16.vlgmr.msra.gmra.mrb[100].mxu0 %v20160_v7 }
 0xcae   :  { %13558 = vmatpush1.bf16.msra.mxu0 %v20163_v14  ;;  %18048 = vmatpush3.bf16.msra.mxu1 %v20166_v16 }
 0xcaf   :  { %13559 = vmatprep.subr.bf16.mxu0 %v20169_v19  ;;  %18049 = vmatprep.subr.bf16.mxu1 %v20412_v13 }
 0xcb0   :  { %13589 = vmatprep.mubr.bf16.mxu0 %v20411_v17  ;;  %18063 = vmatprep.mubr.msk.bf16.mxu1 %vm20413_vm0, %v20412_v13 }
 0xcb2   :  { %13560 = vmatpush1.bf16.msra.mxu0 %v20167_v2  ;;  %18050 = vmatpush3.bf16.msra.mxu1 %v20170_v6 }
 0xcb3   :  { %13561 = vmatprep.subr.bf16.mxu0 %v20173_v41  ;;  %18051 = vmatprep.subr.bf16.mxu1 %v20412_v13 }
 0xcb6   :  { %13562 = vmatpush1.bf16.msra.mxu0 %v20171_v5  ;;  %18052 = vmatpush3.bf16.msra.mxu1 %v20174_v57 }
 0xcb7   :  { %13563 = vmatprep.subr.bf16.mxu0 %v20177_v21  ;;  %18053 = vmatprep.subr.bf16.mxu1 %v20412_v13  ;;  %v16631_v21 = vld [vmem:[%s25748_s14 + $0x6] sm:$0x7] }
 0xcba   :  { %13564 = vmatpush1.bf16.msra.mxu0 %v20175_v22  ;;  %18054 = vmatpush3.bf16.msra.mxu1 %v20178_v4  ;;  %v12801_v22 = vrot.slane %v16631_v21, %v21717_v10 }
 0xcbb   :  { %13565 = vmatprep.subr.bf16.mxu0 %v20181_v59  ;;  %18055 = vmatprep.subr.bf16.mxu1 %v20412_v13 }
 0xcbe   :  { %13566 = vmatpush1.bf16.msra.mxu0 %v20179_v24  ;;  %18056 = vmatpush3.bf16.msra.mxu1 %v20182_v26 }
 0xcbf   :  { %13567 = vmatprep.subr.bf16.mxu0 %v20185_v20  ;;  %18057 = vmatprep.subr.bf16.mxu1 %v20412_v13 }
 0xcc0   :  { %v17629_v25 = vpop.f32.mrb[88].mxu0 }
 0xcc1   :  { %v17630_v18 = vpop.f32.mrb[89].mxu0 }
 0xcc2   :  { %v17631_v54 = vadd.f32 %v17630_v18, %v17629_v25  ;;  %v17632_v37 = vpop.f32.mrb[90].mxu0  ;;  %13568 = vmatpush1.bf16.msra.mxu0 %v20183_v31  ;;  %18058 = vmatpush3.bf16.msra.mxu1 %v20186_v28 }
 0xcc3   :  { %v17633_v33 = vpop.f32.mrb[91].mxu0  ;;  %13569 = vmatprep.subr.bf16.mxu0 %v20189_v1  ;;  %18059 = vmatprep.subr.bf16.mxu1 %v20412_v13 }
 0xcc4   :  { %v17634_v35 = vadd.f32 %v17633_v33, %v17632_v37  ;;  %v12701_v44 = vadd.f32 %v17631_v54, %v11867_v34  ;;  %v12793_v54 = vrot.slane %v16631_v21, %v21678_v60  ;;  %v20198_v60 = vld [vmem:[%s25749_s15 + $0x3c4] ss:$12 sps:$4 sm:$0xff]  }
 0xcc6   :  { %13570 = vmatpush1.bf16.msra.mxu0 %v20187_v51  ;;  %18060 = vmatpush3.bf16.msra.mxu1 %v20190_v12  ;;  %v12704_v49 = vadd.f32 %v17634_v35, %v11867_v34  ;;  %v12797_v12 = vrot.slane %v16631_v21, %v21720_v11  ;;  %v20196_v11 = vld [vmem:[%s25749_s15 + $0x3c0] ss:$12 sps:$4 sm:$0xff]   ;;  %v20227_v21 = vld [vmem:[%s25749_s15 + $0x49c] ss:$12 sps:$4 sm:$0xff]  }
 0xcc7   :  { %13571 = vmatprep.subr.bf16.mxu0 %v20193_v23  ;;  %18061 = vmatprep.subr.bf16.mxu1 %v20412_v13 }
 0xcca   :  { %13572 = vmatpush1.bf16.msra.mxu0 %v20191_v36  ;;  %18062 = vmatpush3.bf16.msra.mxu1 %v20194_v29 }
 0xccd   :  { %13590 = vmatmul.mubr.bf16.vlgmr.msra.gmra.mrb[100].mxu0 %v20195_v9  ;;  %18064 = vmatmul.mubr.bf16.vlgmr.msra.gmra.mrb[148].mxu1 %v20195_v9 }
 0xcce   :  { %13761 = vmatprep.mubr.bf16.mxu1 %v20411_v17  ;;  %13842 = vmatprep.mubr.bf16.mxu0 %v20411_v17 }
 0xce0   :  { %v17651_v43 = vpop.f32.mrb[92].mxu0 }
 0xce1   :  { %v17652_v39 = vpop.f32.mrb[93].mxu0 }
 0xce2   :  { %v17653_v45 = vadd.f32 %v17652_v39, %v17651_v43  ;;  %v17654_v46 = vpop.f32.mrb[94].mxu0 }
 0xce3   :  { %v17655_v48 = vpop.f32.mrb[95].mxu0 }
 0xce4   :  { %v17656_v50 = vadd.f32 %v17655_v48, %v17654_v46  ;;  %v12742_v42 = vadd.f32 %v17653_v45, %v12701_v44 }
 0xce6   :  { %v12745_v32 = vadd.f32 %v17656_v50, %v12704_v49  ;;  %v20201_v49 = vld [vmem:[%s25749_s15 + $0x3dc] ss:$12 sps:$4 sm:$0xff]   ;;  %v20315_v50 = vld [vmem:[%s25766_s1] sm:$0xf] }
 0xd00   :  { %v12782_v8 = vpop.f32.mrb[96].mxu0 }
 0xd01   :  { %v12783_v52 = vadd.f32 %v12782_v8, %v12742_v42  ;;  %v18045_v47 = vpop.f32.mrb[97].mxu0  ;;  %v20316_v42 = vld [vmem:[%s25767_s6] sm:$0xf]  ;;  %s14598_s6 = sshll.u32 %s20415_s11, 4  ;;  %s14599_s6 = int_to_ptr.vmem [resolvable:$true] %s14598_s6 }
 0xd02   :  { %v12785_v27 = vpop.f32.mrb[98].mxu0  ;;  %v20204_v8 = vld [vmem:[%s25749_s15 + $0x3f4] ss:$12 sps:$4 sm:$0xff]   ;;  %v20207_v47 = vld [vmem:[%s25749_s15 + $0x40c] ss:$12 sps:$4 sm:$0xff]  }
 0xd03   :  { %v12786_v55 = vadd.f32 %v12785_v27, %v12745_v32  ;;  %v18046_v53 = vpop.f32.mrb[99].mxu0  ;;  %v20199_v32 = vld [vmem:[%s25749_s15 + $0x3d8] ss:$12 sps:$4 sm:$0xff]   ;;  %v20205_v27 = vld [vmem:[%s25749_s15 + $0x408] ss:$12 sps:$4 sm:$0xff]  }
 0xd04   :  { %v20210_v53 = vld [vmem:[%s25749_s15 + $0x424] ss:$12 sps:$4 sm:$0xff]  }
 0xd05   :  { %v25400_v56 = vpack.c.bf16 %v12786_v55, %v12783_v52  ;;  %v20202_v52 = vld [vmem:[%s25749_s15 + $0x3f0] ss:$12 sps:$4 sm:$0xff]   ;;  %v20223_v55 = vld [vmem:[%s25749_s15 + $0x488] ss:$12 sps:$4 sm:$0xff]  }
 0xd40   :  { %v12657_v58 = vpop.f32.mrb[136].mxu1 }
 0xd41   :  { %v12659_v61 = vpop.f32.mrb[137].mxu1  ;;  %v18139_v63 = vadd.f32 %v12657_v58, %v11859_v15  ;;  %v20228_v58 = vld [vmem:[%s25749_s15 + $0x4a0] ss:$12 sps:$4 sm:$0xff]  }
 0xd42   :  { %v12661_v62 = vpop.f32.mrb[138].mxu1  ;;  %v18140_v3 = vadd.f32 %v12659_v61, %v11863_v40  ;;  %v20229_v61 = vld [vmem:[%s25749_s15 + $0x3e0] ss:$12 sps:$4 sm:$0xff]  }
 0xd43   :  { %v18141_v30 = vadd.f32 %v12661_v62, %v11859_v15  ;;  %v12663_v0 = vpop.f32.mrb[139].mxu1  ;;  %v20208_v15 = vld [vmem:[%s25749_s15 + $0x420] ss:$12 sps:$4 sm:$0xff]   ;;  %v20211_v62 = vld [vmem:[%s25749_s15 + $0x438] ss:$12 sps:$4 sm:$0xff]  }
 0xd44   :  { %v18142_v7 = vadd.f32 %v12663_v0, %v11863_v40  ;;  %v20213_v40 = vld [vmem:[%s25749_s15 + $0x43c] ss:$12 sps:$4 sm:$0xff]   ;;  %v20234_v0 = vld [vmem:[%s25749_s15 + $0x3f8] ss:$12 sps:$4 sm:$0xff]  }
 0xd45   :  { %v13723_v14 = vpack.c.bf16 %v18141_v30, %v18139_v63  ;;  %v20233_v63 = vld [vmem:[%s25749_s15 + $0x4b8] ss:$12 sps:$4 sm:$0xff]   ;;  %v20216_v30 = vld [vmem:[%s25749_s15 + $0x454] ss:$12 sps:$4 sm:$0xff]  }
 0xd46   :  { %v13724_v16 = vpack.c.bf16 %v18142_v7, %v18140_v3  ;;  %v20214_v3 = vld [vmem:[%s25749_s15 + $0x450] ss:$12 sps:$4 sm:$0xff]  }
 0xd47   :  { %v20238_v7 = vld [vmem:[%s25749_s15 + $0x4d0] ss:$12 sps:$4 sm:$0xff]  }
 0xd48   :  { %13729 = vmatprep.subr.bf16.mxu1 %v13724_v16  ;;  %13810 = vmatprep.subr.bf16.mxu0 %v13724_v16  ;;  %v20239_v16 = vld [vmem:[%s25749_s15 + $0x410] ss:$12 sps:$4 sm:$0xff]  }
 0xd49   :  { %13730 = vmatpush1.bf16.msra.mxu1 %v13723_v14  ;;  %13811 = vmatpush1.bf16.msra.mxu0 %v13723_v14  ;;  %v20219_v14 = vld [vmem:[%s25749_s15 + $0x46c] ss:$12 sps:$4 sm:$0xff]  }
 0xd60   :  { %v17682_v19 = vpop.f32.mrb[140].mxu1 }
 0xd61   :  { %v17683_v2 = vpop.f32.mrb[141].mxu1 }
 0xd62   :  { %v17684_v6 = vadd.f32 %v17683_v2, %v17682_v19  ;;  %v17685_v41 = vpop.f32.mrb[142].mxu1  ;;  %v20217_v19 = vld [vmem:[%s25749_s15 + $0x468] ss:$12 sps:$4 sm:$0xff]  }
 0xd63   :  { %v17686_v5 = vpop.f32.mrb[143].mxu1  ;;  %v20243_v2 = vld [vmem:[%s25749_s15 + $0x4e8] ss:$12 sps:$4 sm:$0xff]  }
 0xd64   :  { %v17687_v57 = vadd.f32 %v17686_v5, %v17685_v41  ;;  %v13635_v24 = vadd.f32 %v17684_v6, %v12801_v22  ;;  %v20222_v6 = vld [vmem:[%s25749_s15 + $0x484] ss:$12 sps:$4 sm:$0xff]   ;;  %v20244_v41 = vld [vmem:[%s25749_s15 + $0x428] ss:$12 sps:$4 sm:$0xff]   ;;  %v20220_v5 = vld [vmem:[%s25749_s15 + $0x480] ss:$12 sps:$4 sm:$0xff]  }
 0xd66   :  { %v13638_v28 = vadd.f32 %v17687_v57, %v12801_v22  ;;  %v20248_v57 = vld [vmem:[%s25749_s15 + $0x500] ss:$12 sps:$4 sm:$0xff]  }
 0xd67   :  { %v20249_v22 = vld [vmem:[%s25749_s15 + $0x440] ss:$12 sps:$4 sm:$0xff]  }
 0xd80   :  { %v17704_v4 = vpop.f32.mrb[144].mxu1 }
 0xd81   :  { %v17705_v59 = vpop.f32.mrb[145].mxu1 }
 0xd82   :  { %v17706_v26 = vadd.f32 %v17705_v59, %v17704_v4  ;;  %v17707_v20 = vpop.f32.mrb[146].mxu1  ;;  %v20225_v4 = vld [vmem:[%s25749_s15 + $0x498] ss:$12 sps:$4 sm:$0xff]  }
 0xd83   :  { %v17708_v31 = vpop.f32.mrb[147].mxu1  ;;  %v20253_v59 = vld [vmem:[%s25749_s15 + $0x518] ss:$12 sps:$4 sm:$0xff]  }
 0xd84   :  { %v17709_v1 = vadd.f32 %v17708_v31, %v17707_v20  ;;  %v13676_v25 = vadd.f32 %v17706_v26, %v13635_v24  ;;  %v20232_v24 = vld [vmem:[%s25749_s15 + $0x4b4] ss:$12 sps:$4 sm:$0xff]   ;;  %v20254_v26 = vld [vmem:[%s25749_s15 + $0x458] ss:$12 sps:$4 sm:$0xff]   ;;  %v20230_v20 = vld [vmem:[%s25749_s15 + $0x4b0] ss:$12 sps:$4 sm:$0xff]  }
 0xd85   :  { %v20237_v31 = vld [vmem:[%s25749_s15 + $0x4cc] ss:$12 sps:$4 sm:$0xff]  }
 0xd86   :  { %v13679_v18 = vadd.f32 %v17709_v1, %v13638_v28  ;;  %v20235_v28 = vld [vmem:[%s25749_s15 + $0x4c8] ss:$12 sps:$4 sm:$0xff]   ;;  %v20242_v1 = vld [vmem:[%s25749_s15 + $0x4e4] ss:$12 sps:$4 sm:$0xff]  }
 0xda0   :  { %v13591_v37 = vpop.f32.mrb[100].mxu0  ;;  %v13716_v51 = vpop.f32.mrb[148].mxu1 }
 0xda1   :  { %v13717_v33 = vadd.f32 %v13716_v51, %v13676_v25  ;;  %v13593_v23 = vpop.f32.mrb[101].mxu0  ;;  %v18065_v35 = vpop.f32.mrb[149].mxu1  ;;  %v18143_v29 = vadd.f32 %v13591_v37, %v12793_v54  ;;  %v20240_v25 = vld [vmem:[%s25749_s15 + $0x4e0] ss:$12 sps:$4 sm:$0xff]   ;;  %v20250_v51 = vld [vmem:[%s25749_s15 + $0x510] ss:$12 sps:$4 sm:$0xff]  }
 0xda2   :  { %v13595_v10 = vpop.f32.mrb[102].mxu0  ;;  %v13719_v36 = vpop.f32.mrb[150].mxu1  ;;  %v18144_v39 = vadd.f32 %v13593_v23, %v12797_v12  ;;  %v20252_v37 = vld [vmem:[%s25749_s15 + $0x514] ss:$12 sps:$4 sm:$0xff]   ;;  %v20259_v35 = vld [vmem:[%s25749_s15 + $0x470] ss:$12 sps:$4 sm:$0xff]  }
 0xda3   :  { %v18145_v9 = vadd.f32 %v13595_v10, %v12793_v54  ;;  %v13720_v38 = vadd.f32 %v13719_v36, %v13679_v18  ;;  %v13597_v34 = vpop.f32.mrb[103].mxu0  ;;  %v18066_v43 = vpop.f32.mrb[151].mxu1  ;;  %v20247_v18 = vld [vmem:[%s25749_s15 + $0x4fc] ss:$12 sps:$4 sm:$0xff]   ;;  %v20245_v54 = vld [vmem:[%s25749_s15 + $0x4f8] ss:$12 sps:$4 sm:$0xff]  }
 0xda4   :  { %v18146_v44 = vadd.f32 %v13597_v34, %v12797_v12  ;;  %v20257_v12 = vld [vmem:[%s25749_s15 + $0x52c] ss:$12 sps:$4 sm:$0xff]   ;;  %v20255_v23 = vld [vmem:[%s25749_s15 + $0x528] ss:$12 sps:$4 sm:$0xff]   ;;  %v20262_v10 = vld [vmem:[%s25749_s15 + $0x544] ss:$12 sps:$4 sm:$0xff]  }
 0xda5   :  { %v13726_v45 = vpack.c.bf16 %v18145_v9, %v18143_v29  ;;  %v13728_v46 = vpack.c.bf16 %v13720_v38, %v13717_v33  ;;  %v20258_v33 = vld [vmem:[%s25749_s15 + $0x530] ss:$12 sps:$4 sm:$0xff]  }
 0xda6   :  { %v13727_v48 = vpack.c.bf16 %v18146_v44, %v18144_v39 }
 0xda8   :  { %13731 = vmatprep.subr.bf16.mxu1 %v13727_v48  ;;  %13812 = vmatprep.subr.bf16.mxu0 %v13727_v48 }
 0xda9   :  { %13732 = vmatpush1.bf16.msra.mxu1 %v13726_v45  ;;  %13813 = vmatpush1.bf16.msra.mxu0 %v13726_v45 }
 0xdaa   :  { %18067 = vmatprep.subr.bf16.mxu1 %v20412_v13  ;;  %14220 = vmatprep.subr.bf16.mxu0 %v20198_v60  ;;  %v20260_v60 = vld [vmem:[%s25749_s15 + $0x540] ss:$12 sps:$4 sm:$0xff]  }
 0xdac   :  { %17002 = vmatmul.mubr.msk.bf16.vlgmr.msra.gmra.mrb[152].mxu1 %vm3740_vm1, %v20315_v50  ;;  %17004 = vmatmul.mubr.msk.bf16.vlgmr.msra.gmra.mrb[104].mxu0 %vm3740_vm1, %v20316_v42 }
 0xdad   :  { %18068 = vmatpush3.bf16.msra.mxu1 %v25400_v56  ;;  %18071 = vmatprep.mubr.msk.bf16.mxu1 %vm20413_vm0, %v20412_v13 }
 0xdae   :  { %18069 = vmatprep.subr.bf16.mxu1 %v20412_v13  ;;  %14221 = vmatpush1.bf16.msra.mxu0 %v20196_v11  ;;  %v20263_v11 = vld [vmem:[%s25749_s15 + $0x548] ss:$12 sps:$4 sm:$0xff]  }
 0xdaf   :  { %14222 = vmatprep.subr.bf16.mxu0 %v20201_v49 }
 0xdb1   :  { %18070 = vmatpush3.bf16.msra.mxu1 %v13728_v46 }
 0xdb2   :  { %18075 = vmatprep.subr.bf16.mxu1 %v20412_v13  ;;  %14223 = vmatpush1.bf16.msra.mxu0 %v20199_v32  ;;  %v20264_v32 = vld [vmem:[%s25749_s15 + $0x558] ss:$12 sps:$4 sm:$0xff]  }
 0xdb3   :  { %14224 = vmatprep.subr.bf16.mxu0 %v20204_v8  ;;  %v20267_v8 = vld [vmem:[%s25749_s15 + $0x560] ss:$12 sps:$4 sm:$0xff]  }
 0xdb4   :  { %18072 = vmatmul.mubr.msk.bf16.vlgmr.msra.gmra.mrb[156].mxu1 %vm3740_vm1, %v20315_v50  ;;  %v20266_v50 = vld [vmem:[%s25749_s15 + $0x55c] ss:$12 sps:$4 sm:$0xff]  }
 0xdb5   :  { %18076 = vmatpush3.bf16.msra.mxu1 %v25400_v56  ;;  %18079 = vmatprep.mubr.msk.bf16.mxu1 %vm20413_vm0, %v20412_v13  ;;  %v20224_v56 = vld [vmem:[%s25749_s15 + $0x3c8] ss:$12 sps:$4 sm:$0xff]  }
 0xdb6   :  { %18077 = vmatprep.subr.bf16.mxu1 %v20412_v13  ;;  %14225 = vmatpush1.bf16.msra.mxu0 %v20202_v52 }
 0xdb7   :  { %14226 = vmatprep.subr.bf16.mxu0 %v20207_v47  ;;  %v20270_v47 = vld [vmem:[%s25749_s15 + $0x574] ss:$12 sps:$4 sm:$0xff]  }
 0xdb9   :  { %18078 = vmatpush3.bf16.msra.mxu1 %v13728_v46 }
 0xdba   :  { %14227 = vmatpush1.bf16.msra.mxu0 %v20205_v27  ;;  %17725 = vmatprep.subr.bf16.mxu1 %v20223_v55 }
 0xdbb   :  { %14228 = vmatprep.subr.bf16.mxu0 %v20210_v53  ;;  %v20268_v53 = vld [vmem:[%s25749_s15 + $0x570] ss:$12 sps:$4 sm:$0xff]  }
 0xdbc   :  { %18080 = vmatmul.mubr.msk.bf16.vlgmr.msra.gmra.mrb[160].mxu1 %vm3740_vm1, %v20316_v42 }
 0xdbd   :  { %17726 = vmatpush3.bf16.msra.mxu1 %v20224_v56  ;;  %v20271_v56 = vld [vmem:[%s25749_s15 + $0x578] ss:$12 sps:$4 sm:$0xff]  }
 0xdbe   :  { %14229 = vmatpush1.bf16.msra.mxu0 %v20208_v15  ;;  %17727 = vmatprep.subr.bf16.mxu1 %v20228_v58  ;;  %v20272_v58 = vld [vmem:[%s25749_s15 + $0x588] ss:$12 sps:$4 sm:$0xff]  }
 0xdbf   :  { %14230 = vmatprep.subr.bf16.mxu0 %v20213_v40  ;;  %v20275_v40 = vld [vmem:[%s25749_s15 + $0x590] ss:$12 sps:$4 sm:$0xff]  }
 0xdc1   :  { %17728 = vmatpush3.bf16.msra.mxu1 %v20229_v61 }
 0xdc2   :  { %14231 = vmatpush1.bf16.msra.mxu0 %v20211_v62  ;;  %17729 = vmatprep.subr.bf16.mxu1 %v20233_v63  ;;  %v20276_v63 = vld [vmem:[%s25750_s16 + $0x180] sm:$0xff]  }
 0xdc3   :  { %14232 = vmatprep.subr.bf16.mxu0 %v20216_v30 }
 0xdc5   :  { %17730 = vmatpush3.bf16.msra.mxu1 %v20234_v0 }
 0xdc6   :  { %14233 = vmatpush1.bf16.msra.mxu0 %v20214_v3  ;;  %17731 = vmatprep.subr.bf16.mxu1 %v20238_v7  ;;  %v20277_v7 = vld [vmem:[%s25750_s16 + $0x140] sm:$0xff]  }
 0xdc7   :  { %14234 = vmatprep.subr.bf16.mxu0 %v20219_v14  ;;  %v20278_v14 = vld [vmem:[%s25750_s16 + $0x188] sm:$0xff]  }
 0xdc9   :  { %17732 = vmatpush3.bf16.msra.mxu1 %v20239_v16  ;;  %v20279_v16 = vld [vmem:[%s25750_s16 + $0x148] sm:$0xff]  }
 0xdca   :  { %14235 = vmatpush1.bf16.msra.mxu0 %v20217_v19  ;;  %17733 = vmatprep.subr.bf16.mxu1 %v20243_v2  ;;  %v20280_v19 = vld [vmem:[%s25750_s16 + $0x190] sm:$0xff]  }
 0xdcb   :  { %14236 = vmatprep.subr.bf16.mxu0 %v20222_v6  ;;  %v20281_v2 = vld [vmem:[%s25750_s16 + $0x150] sm:$0xff]   ;;  %v20282_v6 = vld [vmem:[%s25750_s16 + $0x198] sm:$0xff]  }
 0xdcd   :  { %17734 = vmatpush3.bf16.msra.mxu1 %v20244_v41  ;;  %v20283_v41 = vld [vmem:[%s25750_s16 + $0x158] sm:$0xff]  }
 0xdce   :  { %14237 = vmatpush1.bf16.msra.mxu0 %v20220_v5  ;;  %17735 = vmatprep.subr.bf16.mxu1 %v20248_v57  ;;  %v20284_v5 = vld [vmem:[%s25750_s16 + $0x1a0] sm:$0xff]  }
 0xdcf   :  { %14238 = vmatprep.subr.bf16.mxu0 %v20227_v21  ;;  %v20286_v57 = vld [vmem:[%s25750_s16 + $0x1c0] sm:$0xff]  }
 0xdd0   :  { %v20285_v21 = vld [vmem:[%s25750_s16 + $0x160] sm:$0xff]  }
 0xdd1   :  { %17736 = vmatpush3.bf16.msra.mxu1 %v20249_v22  ;;  %v20287_v22 = vld [vmem:[%s25750_s16 + $0x1a8] sm:$0xff]  }
 0xdd2   :  { %14239 = vmatpush1.bf16.msra.mxu0 %v20225_v4  ;;  %17737 = vmatprep.subr.bf16.mxu1 %v20253_v59  ;;  %v20289_v4 = vld [vmem:[%s25750_s16 + $0x1c8] sm:$0xff]  }
 0xdd3   :  { %14240 = vmatprep.subr.bf16.mxu0 %v20232_v24  ;;  %v20288_v59 = vld [vmem:[%s25750_s16 + $0x168] sm:$0xff]   ;;  %v20290_v24 = vld [vmem:[%s25750_s16 + $0x1b0] sm:$0xff]  }
 0xdd5   :  { %17738 = vmatpush3.bf16.msra.mxu1 %v20254_v26  ;;  %v20291_v26 = vld [vmem:[%s25750_s16 + $0x170] sm:$0xff]  }
 0xdd6   :  { %14241 = vmatpush1.bf16.msra.mxu0 %v20230_v20  ;;  %17739 = vmatprep.subr.bf16.mxu1 %v20258_v33  ;;  %v20292_v20 = vld [vmem:[%s25750_s16 + $0x1d0] sm:$0xff]  }
 0xdd7   :  { %14242 = vmatprep.subr.bf16.mxu0 %v20237_v31  ;;  %v20293_v31 = vld [vmem:[%s25750_s16 + $0x1b8] sm:$0xff]  }
 0xdd9   :  { %17740 = vmatpush3.bf16.msra.mxu1 %v20259_v35 }
 0xdda   :  { %14243 = vmatpush1.bf16.msra.mxu0 %v20235_v28  ;;  %18083 = vmatprep.subr.bf16.mxu1 %v20412_v13  ;;  %v20294_v28 = vld [vmem:[%s25750_s16 + $0x178] sm:$0xff]  }
 0xddb   :  { %14244 = vmatprep.subr.bf16.mxu0 %v20242_v1  ;;  %v20295_v1 = vld [vmem:[%s25750_s16 + $0x1d8] sm:$0xff]   ;;  %s20414_s16 = smov [#allocation4]  }
 0xddc   :  { %s14608_s1 = sshll.u32 %s20414_s16, 4  ;;  %s14609_s1 = int_to_ptr.vmem [resolvable:$true] %s14608_s1 }
 0xddd   :  { %s20317_s3 = scalar_lea.vmem %s14609_s1, 128  ;;  %p20322_p1 = scmp.lt.s32.totalorder %s14609_s1, %s14609_s1 }
 0xdde   :  { %14245 = vmatpush1.bf16.msra.mxu0 %v20240_v25  ;;  %p20318_p0 = scmp.ne.s32.totalorder %s14609_s1, %s20317_s3  ;;  %p20323_p2 = scmp.lt.s32.totalorder %s20317_s3, %s20317_s3 }
 0xddf   :  { %14246 = vmatprep.subr.bf16.mxu0 %v20247_v18 }
 0xde0   :  { %p20324_p3 = por %p20323_p2, %p20322_p1 }
 0xde2   :  { %14247 = vmatpush1.bf16.msra.mxu0 %v20245_v54  ;;  %p20325_p4 = pnand %p20324_p3, %p20318_p0 }
 0xde3   :  { %14248 = vmatprep.subr.bf16.mxu0 %v20252_v37 }
 0xde6   :  { %14249 = vmatpush1.bf16.msra.mxu0 %v20250_v51 }
 0xde7   :  { %14250 = vmatprep.subr.bf16.mxu0 %v20257_v12 }
 0xdea   :  { %14251 = vmatpush1.bf16.msra.mxu0 %v20255_v23 }
 0xdeb   :  { %14261 = vmatprep.subr.bf16.mxu0 %v20262_v10 }
 0xe7f   :  { %v13763_v36 = vpop.f32.mrb[152].mxu1  ;;  %v13844_v29 = vpop.f32.mrb[104].mxu0 }
 0xe80   :  { %v13891_v9 = vmul.f32 %v13844_v29, %v13763_v36  ;;  %v13765_v38 = vpop.f32.mrb[153].mxu1  ;;  %v13846_v34 = vpop.f32.mrb[105].mxu0 }
 0xe81   :  { %v13892_v43 = vmul.f32 %v13846_v34, %v13765_v38  ;;  %v13767_v39 = vpop.f32.mrb[154].mxu1  ;;  %v13848_v44 = vpop.f32.mrb[106].mxu0 }
 0xe82   :  { %v13768_v45 = vpop.f32.mrb[155].mxu1  ;;  %v13849_v46 = vpop.f32.mrb[107].mxu0  ;;  %v13894_v49 = vpack.c.bf16 %v13891_v9, %v13891_v9 }
 0xe83   :  { %v13895_v48 = vpack.c.bf16 %v13892_v43, %v13892_v43 }
 0xe85   :  { %14252 = vmatprep.mubr.bf16.mxu0 %v13895_v48  ;;  %14334 = vmatprep.mubr.bf16.mxu1 %v13895_v48 }
 0xe86   :  { %14253 = vmatmul.mubr.bf16.vlgmr.msra.gmra.mrb[108].mxu0 %v13894_v49  ;;  %14335 = vmatmul.mubr.bf16.vlgmr.msra.gmra.mrb[164].mxu1 %v13894_v49 }
 0xe87   :  { %14262 = vmatpush1.bf16.msra.mxu0 %v20260_v60  ;;  %18084 = vmatpush3.bf16.msra.mxu1 %v20263_v11  ;;  %v13804_v42 = vpop.f32.mrb[156].mxu1 }
 0xe88   :  { %v18073_v52 = vpop.f32.mrb[157].mxu1  ;;  %14263 = vmatprep.subr.bf16.mxu0 %v20266_v50  ;;  %18085 = vmatprep.subr.bf16.mxu1 %v20412_v13 }
 0xe89   :  { %v13807_v27 = vpop.f32.mrb[158].mxu1  ;;  %14293 = vmatprep.mubr.bf16.mxu0 %v20411_v17  ;;  %18091 = vmatprep.mubr.msk.bf16.mxu1 %vm20413_vm0, %v20412_v13  ;;  %v20274_v17 = vld [vmem:[%s25749_s15 + $0x58c] ss:$12 sps:$4 sm:$0xff]  }
 0xe8a   :  { %v18074_v55 = vpop.f32.mrb[159].mxu1 }
 0xe8b   :  { %14264 = vmatpush1.bf16.msra.mxu0 %v20264_v32  ;;  %18086 = vmatpush3.bf16.msra.mxu1 %v20267_v8 }
 0xe8c   :  { %14265 = vmatprep.subr.bf16.mxu0 %v20270_v47  ;;  %18087 = vmatprep.subr.bf16.mxu1 %v20412_v13 }
 0xe8f   :  { %14266 = vmatpush1.bf16.msra.mxu0 %v20268_v53  ;;  %18088 = vmatpush3.bf16.msra.mxu1 %v20271_v56  ;;  %v13885_v15 = vpop.f32.mrb[160].mxu1 }
 0xe90   :  { %v13893_v61 = vmul.f32 %v13885_v15, %v13804_v42  ;;  %v18081_v62 = vpop.f32.mrb[161].mxu1  ;;  %14267 = vmatprep.subr.bf16.mxu0 %v20274_v17  ;;  %18089 = vmatprep.subr.bf16.mxu1 %v20412_v13 }
 0xe91   :  { %v13888_v30 = vpop.f32.mrb[162].mxu1 }
 0xe92   :  { %v13896_v0 = vpack.c.bf16 %v13893_v61, %v13893_v61  ;;  %v18082_v3 = vpop.f32.mrb[163].mxu1 }
 0xe93   :  { %14268 = vmatpush1.bf16.msra.mxu0 %v20272_v58  ;;  %18090 = vmatpush3.bf16.msra.mxu1 %v20275_v40 }
 0xe94   :  { %17752 = vmatprep.subr.bf16.mxu1 %v20276_v63  ;;  %18095 = vmatprep.subr.bf16.mxu0 %v20412_v13 }
 0xe96   :  { %17066 = vmatmul.mubr.msk.bf16.vlgmr.msra.gmra.mrb[108].mxu0 %vm5010_vm2, %v13896_v0  ;;  %18092 = vmatmul.mubr.msk.bf16.vlgmr.msra.gmra.mrb[168].mxu1 %vm5010_vm2, %v13896_v0 }
 0xe97   :  { %17753 = vmatpush3.bf16.msra.mxu1 %v20277_v7  ;;  %18103 = vmatprep.mubr.msk.bf16.mxu0 %vm20413_vm0, %v20412_v13 }
 0xe98   :  { %17754 = vmatprep.subr.bf16.mxu1 %v20278_v14  ;;  %18096 = vmatpush3.bf16.msra.mxu0 %v20286_v57 }
 0xe99   :  { %18097 = vmatprep.subr.bf16.mxu0 %v20412_v13 }
 0xe9b   :  { %17755 = vmatpush3.bf16.msra.mxu1 %v20279_v16 }
 0xe9c   :  { %17756 = vmatprep.subr.bf16.mxu1 %v20280_v19  ;;  %18098 = vmatpush3.bf16.msra.mxu0 %v20289_v4 }
 0xe9d   :  { %18099 = vmatprep.subr.bf16.mxu0 %v20412_v13 }
 0xe9f   :  { %17757 = vmatpush3.bf16.msra.mxu1 %v20281_v2 }
 0xea0   :  { %17758 = vmatprep.subr.bf16.mxu1 %v20282_v6  ;;  %18100 = vmatpush3.bf16.msra.mxu0 %v20292_v20 }
 0xea1   :  { %18101 = vmatprep.subr.bf16.mxu0 %v20412_v13 }
 0xea3   :  { %17759 = vmatpush3.bf16.msra.mxu1 %v20283_v41 }
 0xea4   :  { %17760 = vmatprep.subr.bf16.mxu1 %v20284_v5  ;;  %18102 = vmatpush3.bf16.msra.mxu0 %v20295_v1 }
 0xea7   :  { %17761 = vmatpush3.bf16.msra.mxu1 %v20285_v21 }
 0xea8   :  { %17762 = vmatprep.subr.bf16.mxu1 %v20287_v22 }
 0xeab   :  { %17763 = vmatpush3.bf16.msra.mxu1 %v20288_v59 }
 0xeac   :  { %17764 = vmatprep.subr.bf16.mxu1 %v20290_v24 }
 0xeaf   :  { %17765 = vmatpush3.bf16.msra.mxu1 %v20291_v26 }
 0xeb0   :  { %17766 = vmatprep.subr.bf16.mxu1 %v20293_v31 }
 0xeb3   :  { %17767 = vmatpush3.bf16.msra.mxu1 %v20294_v28 }
 0xf59   :  { %v17741_v25 = vpop.f32.mrb[164].mxu1 }
 0xf5a   :  { %v17742_v18 = vpop.f32.mrb[165].mxu1 }
 0xf5b   :  { %v17743_v54 = vadd.f32 %v17742_v18, %v17741_v25  ;;  %v17744_v37 = vpop.f32.mrb[166].mxu1 }
 0xf5c   :  { %v17745_v51 = vpop.f32.mrb[167].mxu1 }
 0xf69   :  { %v14295_v12 = vpop.f32.mrb[108].mxu0  ;;  %v14376_v33 = vpop.f32.mrb[168].mxu1 }
 0xf6a   :  { %v14382_v23 = vmax.f32 %v14295_v12, 0.0  ;;  %v14377_v13 = vadd.f32 %v17743_v54, %v14376_v33  ;;  %v14297_v35 = vpop.f32.mrb[109].mxu0  ;;  %v18093_v10 = vpop.f32.mrb[169].mxu1 }
 0xf6b   :  { %v14383_v36 = vmax.f32 %v14297_v35, 0.0  ;;  %v14299_v29 = vpop.f32.mrb[110].mxu0  ;;  %v14379_v9 = vpop.f32.mrb[170].mxu1 }
 0xf6c   :  { %v14384_v38 = vmax.f32 %v14377_v13, 0.0  ;;  %v14300_v34 = vpop.f32.mrb[111].mxu0  ;;  %v18094_v43 = vpop.f32.mrb[171].mxu1  ;;  %v14385_v44 = vpack.c.bf16 %v14382_v23, %v14382_v23 }
 0xf6d   :  { %v14386_v39 = vpack.c.bf16 %v14383_v36, %v14383_v36 }
 0xf6e   :  { %v14387_v45 = vpack.c.bf16 %v14384_v38, %v14384_v38 }
 0xf6f   :  { %14543 = vmatprep.mubr.bf16.mxu1 %v14386_v39 }
 0xf70   :  { %14544 = vmatmul.mubr.bf16.vlgmr.msra.gmra.mrb[172].mxu1 %v14385_v44  ;;  %18104 = vmatmul.mubr.msk.bf16.vlgmr.msra.gmra.mrb[112].mxu0 %vm5010_vm2, %v14387_v45 }
 0xf71   :  { %20328 = shalt.err (!%p20325_p4)
}
 0xf72   :  { %s20329_s8 = scalar_lea.hbm %s25752_s18, 128 }
 0xf73   :  { %p20330_p5 = scmp.ne.s32.totalorder %s25752_s18, %s20329_s8  ;;  %p20333_p6 = scmp.lt.u32.totalorder %s20329_s8, %s25752_s18 }
 0xf75   :  { %p20335_p7 = pnand %p20333_p6, %p20330_p5 }
 0xf77   :  { %20338 = shalt.err (!%p20335_p7)
}
 0xf78   :  { %14611 = dma.vmem_to_hbm [thread:$0]  %s14609_s1, 128, %s25752_s18, [#allocation5]  }
 0xf79   :  { %s20339_s14 = scalar_lea.vmem %s14599_s6, 128  ;;  %p20344_p9 = scmp.lt.s32.totalorder %s14599_s6, %s14599_s6 }
 0xf7a   :  { %p20340_p8 = scmp.ne.s32.totalorder %s14599_s6, %s20339_s14  ;;  %p20345_p10 = scmp.lt.s32.totalorder %s20339_s14, %s20339_s14 }
 0xf7c   :  { %p20346_p11 = por %p20345_p10, %p20344_p9 }
 0xf7e   :  { %p20347_p12 = pnand %p20346_p11, %p20340_p8 }
 0xf80   :  { %20350 = shalt.err (!%p20347_p12)
}
 0xf81   :  { %s20351_s15 = scalar_lea.hbm %s25751_s17, 128 }
 0xf82   :  { %p20352_p13 = scmp.ne.s32.totalorder %s25751_s17, %s20351_s15  ;;  %p20355_p0 = scmp.lt.u32.totalorder %s20351_s15, %s25751_s17 }
 0xf84   :  { %p20357_p1 = pnand %p20355_p0, %p20352_p13 }
 0xf86   :  { %20360 = shalt.err (!%p20357_p1)
}
 0xf87   :  { %14601 = dma.vmem_to_hbm [thread:$0]  %s14599_s6, 128, %s25751_s17, [#allocation3]  }
 0xf88   :  { %s20416_s10 = smov [#allocation6]  }
 0xf89   :  { %s14618_s30 = sshll.u32 %s20416_s10, 4  ;;  %s14619_s30 = int_to_ptr.vmem [resolvable:$true] %s14618_s30 }
 0xf8a   :  { %s20361_s5 = scalar_lea.vmem %s14619_s30, 128  ;;  %p20366_p3 = scmp.lt.s32.totalorder %s14619_s30, %s14619_s30 }
 0xf8b   :  { %p20362_p2 = scmp.ne.s32.totalorder %s14619_s30, %s20361_s5  ;;  %p20367_p4 = scmp.lt.s32.totalorder %s20361_s5, %s20361_s5 }
 0xf8d   :  { %p20368_p5 = por %p20367_p4, %p20366_p3 }
 0xf8f   :  { %p20369_p6 = pnand %p20368_p5, %p20362_p2 }
 0xf91   :  { %20372 = shalt.err (!%p20369_p6)
}
 0xf92   :  { %s20373_s1 = scalar_lea.hbm %s25753_s19, 128 }
 0xf93   :  { %p20374_p7 = scmp.ne.s32.totalorder %s25753_s19, %s20373_s1  ;;  %p20377_p8 = scmp.lt.u32.totalorder %s20373_s1, %s25753_s19 }
 0xf95   :  { %p20379_p9 = pnand %p20377_p8, %p20374_p7 }
 0xf97   :  { %20382 = shalt.err (!%p20379_p9)
}
 0xf98   :  { %14621 = dma.vmem_to_hbm [thread:$0]  %s14619_s30, 128, %s25753_s19, [#allocation5]  }
 0xf99   :  { %s20417_s8 = smov [#allocation7]  }
 0xf9a   :  { %s14628_s22 = sshll.u32 %s20417_s8, 4  ;;  %s14629_s22 = int_to_ptr.vmem [resolvable:$true] %s14628_s22 }
 0xf9b   :  { %s20383_s24 = scalar_lea.vmem %s14629_s22, 128  ;;  %p20388_p11 = scmp.lt.s32.totalorder %s14629_s22, %s14629_s22 }
 0xf9c   :  { %p20384_p10 = scmp.ne.s32.totalorder %s14629_s22, %s20383_s24  ;;  %p20389_p12 = scmp.lt.s32.totalorder %s20383_s24, %s20383_s24 }
 0xf9e   :  { %p20390_p13 = por %p20389_p12, %p20388_p11 }
 0xfa0   :  { %p20391_p0 = pnand %p20390_p13, %p20384_p10 }
0x1043   :  { %v17768_v46 = vpop.f32.mrb[172].mxu1  ;;  %v14585_v48 = vpop.f32.mrb[112].mxu0 }
0x1044   :  { %v17769_v60 = vpop.f32.mrb[173].mxu1  ;;  %v18105_v11 = vpop.f32.mrb[113].mxu0 }
0x1045   :  { %v17770_v49 = vadd.f32 %v17769_v60, %v17768_v46  ;;  %v17771_v50 = vpop.f32.mrb[174].mxu1  ;;  %v14588_v42 = vpop.f32.mrb[114].mxu0 }
0x1046   :  { %v17772_v32 = vpop.f32.mrb[175].mxu1  ;;  %v18106_v8 = vpop.f32.mrb[115].mxu0 }
0x1047   :  { %v14586_v52 = vadd.f32 %v17770_v49, %v14585_v48 }
0x1049   :  { %14591 = vst [vmem:[#allocation7] sm:$0xff] %v14586_v52 }
0x104a   :  { %20394 = shalt.err (!%p20391_p0)
}
0x104b   :  { %s20395_s23 = scalar_lea.hbm %s25754_s20, 128 }
0x104c   :  { %p20396_p1 = scmp.ne.s32.totalorder %s25754_s20, %s20395_s23  ;;  %p20399_p2 = scmp.lt.u32.totalorder %s20395_s23, %s25754_s20 }
0x104e   :  { %p20401_p3 = pnand %p20399_p2, %p20396_p1 }
0x1050   :  { %20404 = shalt.err (!%p20401_p3)
}
0x1051   :  { %14631 = dma.vmem_to_hbm [thread:$0]  %s14629_s22, 128, %s25754_s20, [#allocation8]  }
0x1052   :  { %20405 = dma.done.wait [#allocation3], 128  }
0x1053   :  { %20406 = vsyncadd [#allocation3], 4294967168 }
0x1054   :  { %20407 = dma.done.wait [#allocation5], 256  }
0x1055   :  { %20408 = vsyncadd [#allocation5], 4294967040 }
0x1056   :  { %20409 = dma.done.wait [#allocation8], 128  }
0x1057   :  { %20410 = vsyncadd [#allocation8], 4294967168 }
0x1058   :  { %14644 = vsyncpa [#allocation3], 1 }
0x1059   :  { %14645 = vsyncpa [#allocation5], 1 }
0x105a   :  { %14646 = vsyncpa [#allocation8], 1 }

</bundles_post_ra>
